<compile_context>
chip_gen: v6e
topology: v6e:2x2x1
jax: 0.10.0
libtpu: 0.0.40
codegen_flags: <defaults>
</compile_context>

<pallas_src>
import functools

import jax
import jax.numpy as jnp
from jax.experimental import pallas as pl
from jax.experimental.pallas import tpu as pltpu  # noqa: F401  (TPU backend)

LRELU_SLOPE = 0.01


# ----------------------------------------------------------------------------
# Pallas kernels
# ----------------------------------------------------------------------------
def _leaky_relu(y):
    return jnp.where(y > 0, y, LRELU_SLOPE * y)


def _mm_epilogue_kernel(p_ref, w_ref, s_ref, o_ref, *, lrelu):
    # out (Cout, M) = W (Cout, K) @ patches (K, M) + shift (Cout, 1)  [+ LeakyReLU]
    y = jnp.dot(w_ref[...], p_ref[...], preferred_element_type=jnp.float32)
    y = y + s_ref[...]
    if lrelu:
        y = _leaky_relu(y)
    o_ref[...] = y.astype(o_ref.dtype)


def _dual_mm_residual_kernel(p1_ref, p2_ref, w1_ref, w2_ref, s_ref, o_ref):
    # out = W1 @ P1 + W2 @ P2 + shift      == conv2(t) + conv11(x) + (b2 + b11)
    y = jnp.dot(w1_ref[...], p1_ref[...], preferred_element_type=jnp.float32)
    y = y + jnp.dot(w2_ref[...], p2_ref[...], preferred_element_type=jnp.float32)
    o_ref[...] = (y + s_ref[...]).astype(o_ref.dtype)


def _tail_kernel(p3a_ref, p3b_ref, w31_ref, s31_ref, w32_ref, w311_ref, s3o_ref,
                 wblk_ref, sblk_ref, bn_s_ref, bn_b_ref, wfc_ref, bfc_ref, o_ref):
    # Fused tail: block3 -> mp -> blocks4..6 -> mp -> blocks7..9 -> bn -> lrelu
    #             -> mp -> flatten -> (dropout = identity) -> fc1.
    # From block3's output on the spatial size is 1x1, so every MaxPool(3,3,1) is the
    # identity and every remaining conv reduces to its centre 32x32 tap.
    n = p3b_ref.shape[1]                                   # 3B (one column per sample)

    # block3.conv1 + bn1 + lrelu on the 2x2 map; columns ordered (h, w, batch)
    t3 = jnp.dot(w31_ref[...], p3a_ref[...], preferred_element_type=jnp.float32)
    t3 = _leaky_relu(t3 + s31_ref[...])                    # (32, 4*n)

    # block3: conv11(x) (full im2col) + conv2(t3): on a 2x2 map with stride 3 / pad 1
    # only the 4 inner taps of conv2 hit real pixels -> 4 centre-ish 32x32 matmuls.
    h = jnp.dot(w311_ref[...], p3b_ref[...], preferred_element_type=jnp.float32)
    for p in range(4):
        h = h + jnp.dot(w32_ref[p], t3[:, p * n:(p + 1) * n],
                        preferred_element_type=jnp.float32)
    h = h + s3o_ref[...]                                   # (32, n)

    # blocks 4..9 (1x1 spatial): centre-tap matmuls only; bn1 folded into conv1
    for k in range(6):
        w1 = wblk_ref[3 * k + 0]
        s1 = sblk_ref[3 * k + 0]
        w11 = wblk_ref[3 * k + 1]
        s11 = sblk_ref[3 * k + 1]
        w2 = wblk_ref[3 * k + 2]
        s2 = sblk_ref[3 * k + 2]
        pm = jnp.dot(w11, h, preferred_element_type=jnp.float32) + s11
        t = _leaky_relu(jnp.dot(w1, h, preferred_element_type=jnp.float32) + s1)
        h = jnp.dot(w2, t, preferred_element_type=jnp.float32) + s2 + pm

    # top-level bn + lrelu, identity maxpool, flatten (view), dropout=identity, fc1
    h = _leaky_relu(h * bn_s_ref[...] + bn_b_ref[...])
    o = jnp.dot(wfc_ref[...], h, preferred_element_type=jnp.float32) + bfc_ref[...]
    o_ref[...] = o.astype(o_ref.dtype)


# ----------------------------------------------------------------------------
# pallas_call plumbing: arrays are small, so every operand is one full-size VMEM
# block (block_shape == full array dims satisfies the (8,128) tiling rule).
# ----------------------------------------------------------------------------
def _full_spec(shape):
    nd = len(shape)
    return pl.BlockSpec(shape, lambda i, nd=nd: (0,) * nd)


def _pallas(kernel, out_struct, *args):
    return pl.pallas_call(
        kernel,
        out_shape=out_struct,
        grid=(1,),
        in_specs=[_full_spec(a.shape) for a in args],
        out_specs=_full_spec(out_struct.shape),
    )(*args)


# ----------------------------------------------------------------------------
# XLA glue: transposed im2col + trace-time weight folding
# ----------------------------------------------------------------------------
def _im2col_T(f, stride, spatial_major=False):
    """f: (C, N, H, W) channel-major feature -> transposed patches (9*C, M).

    Rows ordered (tap = ky*3+kx, cin) to match w.reshape(9*Cin, Cout).
    Columns ordered (n, ho, wo), or (ho, wo, n) when spatial_major=True.
    """
    C, N, H, W = f.shape
    Ho = (H + 2 - 3) // stride + 1
    Wo = (W + 2 - 3) // stride + 1
    fp = jnp.pad(f, ((0, 0), (0, 0), (1, 1), (1, 1)))
    taps = []
    for ky in range(3):
        for kx in range(3):
            t = jax.lax.slice(
                fp, (0, 0, ky, kx),
                (C, N, ky + (Ho - 1) * stride + 1, kx + (Wo - 1) * stride + 1),
                (1, 1, stride, stride))                    # (C, N, Ho, Wo)
            if spatial_major:
                t = jnp.transpose(t, (0, 2, 3, 1))         # (C, Ho, Wo, N)
            taps.append(t)
    patches = jnp.stack(taps, axis=0)                      # (9, C, ...)
    return patches.reshape(9 * C, N * Ho * Wo), (Ho, Wo)


def _wt(w):
    # (3, 3, Cin, Cout) -> (Cout, 9*Cin); K ordered (ky, kx, cin)
    return w.reshape(-1, w.shape[-1]).T


def _fold_bn(w, b, bn_scale, bn_shift):
    # eval-mode BN folded into the conv: y = (scale * W) x + (scale * b + shift)
    return _wt(w) * bn_scale[:, None], (bn_scale * b + bn_shift)[:, None]


# ----------------------------------------------------------------------------
# Model stages
# ----------------------------------------------------------------------------
def _conv_bias(f, w, b):
    # network conv1: plain 3x3 stride-1 conv (no BN / activation afterwards)
    _, N, H, W = f.shape
    patches, (Ho, Wo) = _im2col_T(f, 1)
    wt = _wt(w)
    out = _pallas(functools.partial(_mm_epilogue_kernel, lrelu=False),
                  jax.ShapeDtypeStruct((wt.shape[0], N * Ho * Wo), jnp.float32),
                  patches, wt, b[:, None])
    return out.reshape(wt.shape[0], N, Ho, Wo)


def _residual_block_spatial(f, p):
    """Residualblock on a feature map with spatial extent > 1 (two fused kernels).
    NOTE: the pre_bn/lrelu branch of non-first blocks is dead code in the PyTorch
    forward (conv1 reads `x`, not `out`) and is therefore omitted, exactly as there."""
    _, N, H, W = f.shape
    # conv1 + bn1 + lrelu   (dropout = identity in inference)
    w1t, s1 = _fold_bn(p["w1"], p["b1"], p["bn1_scale"], p["bn1_shift"])
    pa, _ = _im2col_T(f, 1)
    t = _pallas(functools.partial(_mm_epilogue_kernel, lrelu=True),
                jax.ShapeDtypeStruct((w1t.shape[0], N * H * W), jnp.float32),
                pa, w1t, s1)
    t = t.reshape(w1t.shape[0], N, H, W)
    # conv2(t, stride 3) + conv11(x, stride 3) + biases, fused in one kernel
    pc, (Ho, Wo) = _im2col_T(t, 3)
    pb, _ = _im2col_T(f, 3)
    w2t, w11t = _wt(p["w2"]), _wt(p["w11"])
    s_out = (p["b2"] + p["b11"])[:, None]
    out = _pallas(_dual_mm_residual_kernel,
                  jax.ShapeDtypeStruct((w2t.shape[0], N * Ho * Wo), jnp.float32),
                  pc, pb, w2t, w11t, s_out)
    return out.reshape(w2t.shape[0], N, Ho, Wo)


def _fused_tail(f3, params):
    """block3 .. fc1 in ONE kernel.  Requires f3 spatial == 2x2 (16x16 network input)
    so block3's output is 1x1 and all later MaxPool(3,3,1) are the identity."""
    C, N, H, W = f3.shape
    assert (H, W) == (2, 2), "fused tail assumes a 16x16 network input (block3 sees 2x2)"
    p3 = params["block3"]
    p3a, _ = _im2col_T(f3, 1, spatial_major=True)           # (9C, 4N), cols = (h, w, n)
    p3b, _ = _im2col_T(f3, 3)                               # (9C, N)
    w31t, s31 = _fold_bn(p3["w1"], p3["b1"], p3["bn1_scale"], p3["bn1_shift"])
    w311t = _wt(p3["w11"])
    s3o = (p3["b2"] + p3["b11"])[:, None]
    # block3.conv2 sees a 2x2 map: only w2[1:3, 1:3] taps hit real pixels;
    # pass them as 4 (Cout, Cin) matrices indexed by spatial position p = dh*2+dw.
    w32t = jnp.transpose(p3["w2"][1:3, 1:3], (0, 1, 3, 2)).reshape(4, C, C)
    # blocks 4..9 act on 1x1 maps: centre taps only, bn1 folded into conv1
    wlist, slist = [], []
    for i in range(4, 10):
        bp = params[f"block{i}"]
        wlist.append(bp["w1"][1, 1].T * bp["bn1_scale"][:, None])
        slist.append((bp["bn1_scale"] * bp["b1"] + bp["bn1_shift"])[:, None])
        wlist.append(bp["w11"][1, 1].T)
        slist.append(bp["b11"][:, None])
        wlist.append(bp["w2"][1, 1].T)
        slist.append(bp["b2"][:, None])
    wblk = jnp.stack(wlist, axis=0)                         # (18, C, C)
    sblk = jnp.stack(slist, axis=0)                         # (18, C, 1)
    bn_s = params["bn_scale"][:, None]
    bn_b = params["bn_shift"][:, None]
    wfc = params["fc1_w"].T                                 # (E, C)
    bfc = params["fc1_b"][:, None]                          # (E, 1)
    emb_t = _pallas(_tail_kernel,
                    jax.ShapeDtypeStruct((wfc.shape[0], N), jnp.float32),
                    p3a, p3b, w31t, s31, w32t, w311t, s3o,
                    wblk, sblk, bn_s, bn_b, wfc, bfc)
    return emb_t.T                                          # (N, E)


def forward_batched(x, params):
    # x: (N, H, W) single-channel images (triplet-batched); returns (N, E)
    f = x[None].astype(jnp.float32)                         # (1, N, H, W) channel-major
    f = _conv_bias(f, params["conv1_w"], params["conv1_b"])     # (32, N, 16, 16)
    f = _residual_block_spatial(f, params["block1"])            # (32, N, 6, 6)
    f = _residual_block_spatial(f, params["block2"])            # (32, N, 2, 2)
    return _fused_tail(f, params)                               # block3 .. fc1


def triplet_forward(x, x_pos, x_neg, params):
    # weights are shared across the three branches -> run them as one batched forward
    B = x.shape[0]
    emb = forward_batched(jnp.concatenate([x, x_pos, x_neg], axis=0), params)
    return emb[:B], emb[B:2 * B], emb[2 * B:]


# ----------------------------------------------------------------------------
# Deterministic parameter initialization (synthetic; matches PyTorch shapes)
# ----------------------------------------------------------------------------
def init_params(key, embedding_size=32):
    C = 32
    keys = iter(jax.random.split(key, 100))

    def conv_p(cin, cout):
        w = jax.random.normal(next(keys), (3, 3, cin, cout), jnp.float32) / jnp.sqrt(9.0 * cin)
        b = 0.01 * jax.random.normal(next(keys), (cout,), jnp.float32)
        return w, b

    def bn_p(c):
        gamma = 1.0 + 0.1 * jax.random.normal(next(keys), (c,), jnp.float32)
        beta = 0.1 * jax.random.normal(next(keys), (c,), jnp.float32)
        running_mean = jnp.zeros((c,), jnp.float32)
        running_var = jnp.ones((c,), jnp.float32)
        scale = gamma / jnp.sqrt(running_var + 1e-5)
        shift = beta - running_mean * scale
        return scale, shift

    def block_p(cin, cout):
        w1, b1 = conv_p(cin, cout)
        w11, b11 = conv_p(cin, cout)
        w2, b2 = conv_p(cout, cout)
        s, sh = bn_p(cout)
        return dict(w1=w1, b1=b1, w11=w11, b11=b11, w2=w2, b2=b2,
                    bn1_scale=s, bn1_shift=sh)

    params = {}
    params["conv1_w"], params["conv1_b"] = conv_p(1, C)
    for i in range(1, 10):
        params[f"block{i}"] = block_p(C, C)
    params["bn_scale"], params["bn_shift"] = bn_p(C)
    params["fc1_w"] = jax.random.normal(next(keys), (C, embedding_size), jnp.float32) / jnp.sqrt(C)
    params["fc1_b"] = 0.01 * jax.random.normal(next(keys), (embedding_size,), jnp.float32)
    # TODO(synk): fc2 / logsoftmax are defined but unused in the PyTorch forward(); not materialized.
    return params


if __name__ == "__main__":
    embedding_size = 32
    key = jax.random.PRNGKey(0)
    k_params, k_x, k_pos, k_neg = jax.random.split(key, 4)
    params = init_params(k_params, embedding_size)

    B, H, W = 2, 16, 16
    x = jax.random.normal(k_x, (B, H, W), jnp.float32)
    x_pos = jax.random.normal(k_pos, (B, H, W), jnp.float32)
    x_neg = jax.random.normal(k_neg, (B, H, W), jnp.float32)

    fwd = jax.jit(functools.partial(triplet_forward, params=params))
    out, out_pos, out_neg = fwd(x, x_pos, x_neg)
    jax.block_until_ready((out, out_pos, out_neg))
    assert out.shape == (B, embedding_size)
    assert out_pos.shape == (B, embedding_size)
    assert out_neg.shape == (B, embedding_size)
    assert bool(jnp.all(jnp.isfinite(out)))
    assert bool(jnp.all(jnp.isfinite(out_pos)))
    assert bool(jnp.all(jnp.isfinite(out_neg)))
    print("KERNEL_OK")
</pallas_src>

<mosaic_0001>
module attributes {stable_mosaic.version = 11 : i64} {
  func.func @_mm_epilogue_kernel(%arg0: i32, %arg1: memref<9x1536xf32, #tpu.memory_space<vmem>>, %arg2: memref<32x9xf32, #tpu.memory_space<vmem>>, %arg3: memref<32x1xf32, #tpu.memory_space<vmem>>, %arg4: memref<32x1536xf32, #tpu.memory_space<vmem>>) attributes {dimension_semantics = [#tpu.dimension_semantics<arbitrary>], iteration_bounds = array<i64: 1>, scalar_prefetch = 0 : i64, scratch_operands = 0 : i64, tpu.core_type = #tpu.core_type<tc>, window_params = [{pipeline_mode = #tpu.pipeline_mode<synchronous>, transform_indices = @transform_0, window_bounds = array<i64: 9, 1536>}, {pipeline_mode = #tpu.pipeline_mode<synchronous>, transform_indices = @transform_1, window_bounds = array<i64: 32, 9>}, {pipeline_mode = #tpu.pipeline_mode<synchronous>, transform_indices = @transform_2, window_bounds = array<i64: 32, 1>}, {pipeline_mode = #tpu.pipeline_mode<synchronous>, transform_indices = @transform_3, window_bounds = array<i64: 32, 1536>}]} {
    %c0 = arith.constant 0 : index
    %c0_0 = arith.constant 0 : index
    %0 = vector.load %arg2[%c0, %c0_0] : memref<32x9xf32, #tpu.memory_space<vmem>>, vector<32x9xf32>
    %c0_1 = arith.constant 0 : index
    %c0_2 = arith.constant 0 : index
    %1 = vector.load %arg1[%c0_1, %c0_2] : memref<9x1536xf32, #tpu.memory_space<vmem>>, vector<9x1536xf32>
    %cst = arith.constant dense<0.000000e+00> : vector<32x1536xf32>
    %2 = tpu.matmul %0, %1, %cst {dimension_numbers = #tpu.dot_dimension_numbers<[1], [0], [0], [1], [0, 0, 1, 1], [], []>} : vector<32x9xf32>, vector<9x1536xf32>, vector<32x1536xf32> -> vector<32x1536xf32>
    %c0_3 = arith.constant 0 : index
    %c0_4 = arith.constant 0 : index
    %3 = vector.load %arg3[%c0_3, %c0_4] : memref<32x1xf32, #tpu.memory_space<vmem>>, vector<32x1xf32>
    %4 = vector.broadcast %3 : vector<32x1xf32> to vector<32x1536xf32>
    %5 = arith.addf %2, %4 : vector<32x1536xf32>
    %c0_5 = arith.constant 0 : index
    %c0_6 = arith.constant 0 : index
    %6 = vector.load %arg4[%c0_5, %c0_6] : memref<32x1536xf32, #tpu.memory_space<vmem>>, vector<32x1536xf32>
    tpu.vector_store %arg4[%c0_5, %c0_6], %5 {strides = array<i32>} : memref<32x1536xf32, #tpu.memory_space<vmem>>, vector<32x1536xf32>,
    return
  }
  func.func @transform_0(%arg0: i32) -> (i32, i32) {
    %c0_i32 = arith.constant 0 : i32
    %c0_i32_0 = arith.constant 0 : i32
    %c0_i32_1 = arith.constant 0 : i32
    return %c0_i32, %c0_i32_0 : i32, i32
  }
  func.func @transform_1(%arg0: i32) -> (i32, i32) {
    %c0_i32 = arith.constant 0 : i32
    %c0_i32_0 = arith.constant 0 : i32
    %c0_i32_1 = arith.constant 0 : i32
    return %c0_i32, %c0_i32_0 : i32, i32
  }
  func.func @transform_2(%arg0: i32) -> (i32, i32) {
    %c0_i32 = arith.constant 0 : i32
    %c0_i32_0 = arith.constant 0 : i32
    %c0_i32_1 = arith.constant 0 : i32
    return %c0_i32, %c0_i32_0 : i32, i32
  }
  func.func @transform_3(%arg0: i32) -> (i32, i32) {
    %c0_i32 = arith.constant 0 : i32
    %c0_i32_0 = arith.constant 0 : i32
    %c0_i32_1 = arith.constant 0 : i32
    return %c0_i32, %c0_i32_0 : i32, i32
  }
}

module attributes {stable_mosaic.version = 11 : i64} {
  func.func @_mm_epilogue_kernel(%arg0: i32, %arg1: memref<288x1536xf32, #tpu.memory_space<vmem>>, %arg2: memref<32x288xf32, #tpu.memory_space<vmem>>, %arg3: memref<32x1xf32, #tpu.memory_space<vmem>>, %arg4: memref<32x1536xf32, #tpu.memory_space<vmem>>) attributes {dimension_semantics = [#tpu.dimension_semantics<arbitrary>], iteration_bounds = array<i64: 1>, scalar_prefetch = 0 : i64, scratch_operands = 0 : i64, tpu.core_type = #tpu.core_type<tc>, window_params = [{pipeline_mode = #tpu.pipeline_mode<synchronous>, transform_indices = @transform_0, window_bounds = array<i64: 288, 1536>}, {pipeline_mode = #tpu.pipeline_mode<synchronous>, transform_indices = @transform_1, window_bounds = array<i64: 32, 288>}, {pipeline_mode = #tpu.pipeline_mode<synchronous>, transform_indices = @transform_2, window_bounds = array<i64: 32, 1>}, {pipeline_mode = #tpu.pipeline_mode<synchronous>, transform_indices = @transform_3, window_bounds = array<i64: 32, 1536>}]} {
    %c0 = arith.constant 0 : index
    %c0_0 = arith.constant 0 : index
    %0 = vector.load %arg2[%c0, %c0_0] : memref<32x288xf32, #tpu.memory_space<vmem>>, vector<32x288xf32>
    %c0_1 = arith.constant 0 : index
    %c0_2 = arith.constant 0 : index
    %1 = vector.load %arg1[%c0_1, %c0_2] : memref<288x1536xf32, #tpu.memory_space<vmem>>, vector<288x1536xf32>
    %cst = arith.constant dense<0.000000e+00> : vector<32x1536xf32>
    %2 = tpu.matmul %0, %1, %cst {dimension_numbers = #tpu.dot_dimension_numbers<[1], [0], [0], [1], [0, 0, 1, 1], [], []>} : vector<32x288xf32>, vector<288x1536xf32>, vector<32x1536xf32> -> vector<32x1536xf32>
    %c0_3 = arith.constant 0 : index
    %c0_4 = arith.constant 0 : index
    %3 = vector.load %arg3[%c0_3, %c0_4] : memref<32x1xf32, #tpu.memory_space<vmem>>, vector<32x1xf32>
    %4 = vector.broadcast %3 : vector<32x1xf32> to vector<32x1536xf32>
    %5 = arith.addf %2, %4 : vector<32x1536xf32>
    %cst_5 = arith.constant 0.000000e+00 : f32
    %6 = vector.broadcast %cst_5 : f32 to vector<32x1536xf32>
    %7 = arith.cmpf ogt, %5, %6 : vector<32x1536xf32>
    %cst_6 = arith.constant 0.00999999977 : f32
    %8 = vector.broadcast %cst_6 : f32 to vector<32x1536xf32>
    %9 = arith.mulf %8, %5 : vector<32x1536xf32>
    %10 = arith.select %7, %5, %9 : vector<32x1536xi1>, vector<32x1536xf32>
    %c0_7 = arith.constant 0 : index
    %c0_8 = arith.constant 0 : index
    %11 = vector.load %arg4[%c0_7, %c0_8] : memref<32x1536xf32, #tpu.memory_space<vmem>>, vector<32x1536xf32>
    tpu.vector_store %arg4[%c0_7, %c0_8], %10 {strides = array<i32>} : memref<32x1536xf32, #tpu.memory_space<vmem>>, vector<32x1536xf32>,
    return
  }
  func.func @transform_0(%arg0: i32) -> (i32, i32) {
    %c0_i32 = arith.constant 0 : i32
    %c0_i32_0 = arith.constant 0 : i32
    %c0_i32_1 = arith.constant 0 : i32
    return %c0_i32, %c0_i32_0 : i32, i32
  }
  func.func @transform_1(%arg0: i32) -> (i32, i32) {
    %c0_i32 = arith.constant 0 : i32
    %c0_i32_0 = arith.constant 0 : i32
    %c0_i32_1 = arith.constant 0 : i32
    return %c0_i32, %c0_i32_0 : i32, i32
  }
  func.func @transform_2(%arg0: i32) -> (i32, i32) {
    %c0_i32 = arith.constant 0 : i32
    %c0_i32_0 = arith.constant 0 : i32
    %c0_i32_1 = arith.constant 0 : i32
    return %c0_i32, %c0_i32_0 : i32, i32
  }
  func.func @transform_3(%arg0: i32) -> (i32, i32) {
    %c0_i32 = arith.constant 0 : i32
    %c0_i32_0 = arith.constant 0 : i32
    %c0_i32_1 = arith.constant 0 : i32
    return %c0_i32, %c0_i32_0 : i32, i32
  }
}

module attributes {stable_mosaic.version = 11 : i64} {
  func.func @_dual_mm_residual_kernel(%arg0: i32, %arg1: memref<288x216xf32, #tpu.memory_space<vmem>>, %arg2: memref<288x216xf32, #tpu.memory_space<vmem>>, %arg3: memref<32x288xf32, #tpu.memory_space<vmem>>, %arg4: memref<32x288xf32, #tpu.memory_space<vmem>>, %arg5: memref<32x1xf32, #tpu.memory_space<vmem>>, %arg6: memref<32x216xf32, #tpu.memory_space<vmem>>) attributes {dimension_semantics = [#tpu.dimension_semantics<arbitrary>], iteration_bounds = array<i64: 1>, scalar_prefetch = 0 : i64, scratch_operands = 0 : i64, tpu.core_type = #tpu.core_type<tc>, window_params = [{pipeline_mode = #tpu.pipeline_mode<synchronous>, transform_indices = @transform_0, window_bounds = array<i64: 288, 216>}, {pipeline_mode = #tpu.pipeline_mode<synchronous>, transform_indices = @transform_1, window_bounds = array<i64: 288, 216>}, {pipeline_mode = #tpu.pipeline_mode<synchronous>, transform_indices = @transform_2, window_bounds = array<i64: 32, 288>}, {pipeline_mode = #tpu.pipeline_mode<synchronous>, transform_indices = @transform_3, window_bounds = array<i64: 32, 288>}, {pipeline_mode = #tpu.pipeline_mode<synchronous>, transform_indices = @transform_4, window_bounds = array<i64: 32, 1>}, {pipeline_mode = #tpu.pipeline_mode<synchronous>, transform_indices = @transform_5, window_bounds = array<i64: 32, 216>}]} {
    %c0 = arith.constant 0 : index
    %c0_0 = arith.constant 0 : index
    %0 = vector.load %arg3[%c0, %c0_0] : memref<32x288xf32, #tpu.memory_space<vmem>>, vector<32x288xf32>
    %c0_1 = arith.constant 0 : index
    %c0_2 = arith.constant 0 : index
    %1 = vector.load %arg1[%c0_1, %c0_2] : memref<288x216xf32, #tpu.memory_space<vmem>>, vector<288x216xf32>
    %cst = arith.constant dense<0.000000e+00> : vector<32x216xf32>
    %2 = tpu.matmul %0, %1, %cst {dimension_numbers = #tpu.dot_dimension_numbers<[1], [0], [0], [1], [0, 0, 1, 1], [], []>} : vector<32x288xf32>, vector<288x216xf32>, vector<32x216xf32> -> vector<32x216xf32>
    %c0_3 = arith.constant 0 : index
    %c0_4 = arith.constant 0 : index
    %3 = vector.load %arg4[%c0_3, %c0_4] : memref<32x288xf32, #tpu.memory_space<vmem>>, vector<32x288xf32>
    %c0_5 = arith.constant 0 : index
    %c0_6 = arith.constant 0 : index
    %4 = vector.load %arg2[%c0_5, %c0_6] : memref<288x216xf32, #tpu.memory_space<vmem>>, vector<288x216xf32>
    %cst_7 = arith.constant dense<0.000000e+00> : vector<32x216xf32>
    %5 = tpu.matmul %3, %4, %cst_7 {dimension_numbers = #tpu.dot_dimension_numbers<[1], [0], [0], [1], [0, 0, 1, 1], [], []>} : vector<32x288xf32>, vector<288x216xf32>, vector<32x216xf32> -> vector<32x216xf32>
    %6 = arith.addf %2, %5 : vector<32x216xf32>
    %c0_8 = arith.constant 0 : index
    %c0_9 = arith.constant 0 : index
    %7 = vector.load %arg5[%c0_8, %c0_9] : memref<32x1xf32, #tpu.memory_space<vmem>>, vector<32x1xf32>
    %8 = vector.broadcast %7 : vector<32x1xf32> to vector<32x216xf32>
    %9 = arith.addf %6, %8 : vector<32x216xf32>
    %c0_10 = arith.constant 0 : index
    %c0_11 = arith.constant 0 : index
    %10 = vector.load %arg6[%c0_10, %c0_11] : memref<32x216xf32, #tpu.memory_space<vmem>>, vector<32x216xf32>
    tpu.vector_store %arg6[%c0_10, %c0_11], %9 {strides = array<i32>} : memref<32x216xf32, #tpu.memory_space<vmem>>, vector<32x216xf32>,
    return
  }
  func.func @transform_0(%arg0: i32) -> (i32, i32) {
    %c0_i32 = arith.constant 0 : i32
    %c0_i32_0 = arith.constant 0 : i32
    %c0_i32_1 = arith.constant 0 : i32
    return %c0_i32, %c0_i32_0 : i32, i32
  }
  func.func @transform_1(%arg0: i32) -> (i32, i32) {
    %c0_i32 = arith.constant 0 : i32
    %c0_i32_0 = arith.constant 0 : i32
    %c0_i32_1 = arith.constant 0 : i32
    return %c0_i32, %c0_i32_0 : i32, i32
  }
  func.func @transform_2(%arg0: i32) -> (i32, i32) {
    %c0_i32 = arith.constant 0 : i32
    %c0_i32_0 = arith.constant 0 : i32
    %c0_i32_1 = arith.constant 0 : i32
    return %c0_i32, %c0_i32_0 : i32, i32
  }
  func.func @transform_3(%arg0: i32) -> (i32, i32) {
    %c0_i32 = arith.constant 0 : i32
    %c0_i32_0 = arith.constant 0 : i32
    %c0_i32_1 = arith.constant 0 : i32
    return %c0_i32, %c0_i32_0 : i32, i32
  }
  func.func @transform_4(%arg0: i32) -> (i32, i32) {
    %c0_i32 = arith.constant 0 : i32
    %c0_i32_0 = arith.constant 0 : i32
    %c0_i32_1 = arith.constant 0 : i32
    return %c0_i32, %c0_i32_0 : i32, i32
  }
  func.func @transform_5(%arg0: i32) -> (i32, i32) {
    %c0_i32 = arith.constant 0 : i32
    %c0_i32_0 = arith.constant 0 : i32
    %c0_i32_1 = arith.constant 0 : i32
    return %c0_i32, %c0_i32_0 : i32, i32
  }
}

module attributes {stable_mosaic.version = 11 : i64} {
  func.func @_mm_epilogue_kernel(%arg0: i32, %arg1: memref<288x216xf32, #tpu.memory_space<vmem>>, %arg2: memref<32x288xf32, #tpu.memory_space<vmem>>, %arg3: memref<32x1xf32, #tpu.memory_space<vmem>>, %arg4: memref<32x216xf32, #tpu.memory_space<vmem>>) attributes {dimension_semantics = [#tpu.dimension_semantics<arbitrary>], iteration_bounds = array<i64: 1>, scalar_prefetch = 0 : i64, scratch_operands = 0 : i64, tpu.core_type = #tpu.core_type<tc>, window_params = [{pipeline_mode = #tpu.pipeline_mode<synchronous>, transform_indices = @transform_0, window_bounds = array<i64: 288, 216>}, {pipeline_mode = #tpu.pipeline_mode<synchronous>, transform_indices = @transform_1, window_bounds = array<i64: 32, 288>}, {pipeline_mode = #tpu.pipeline_mode<synchronous>, transform_indices = @transform_2, window_bounds = array<i64: 32, 1>}, {pipeline_mode = #tpu.pipeline_mode<synchronous>, transform_indices = @transform_3, window_bounds = array<i64: 32, 216>}]} {
    %c0 = arith.constant 0 : index
    %c0_0 = arith.constant 0 : index
    %0 = vector.load %arg2[%c0, %c0_0] : memref<32x288xf32, #tpu.memory_space<vmem>>, vector<32x288xf32>
    %c0_1 = arith.constant 0 : index
    %c0_2 = arith.constant 0 : index
    %1 = vector.load %arg1[%c0_1, %c0_2] : memref<288x216xf32, #tpu.memory_space<vmem>>, vector<288x216xf32>
    %cst = arith.constant dense<0.000000e+00> : vector<32x216xf32>
    %2 = tpu.matmul %0, %1, %cst {dimension_numbers = #tpu.dot_dimension_numbers<[1], [0], [0], [1], [0, 0, 1, 1], [], []>} : vector<32x288xf32>, vector<288x216xf32>, vector<32x216xf32> -> vector<32x216xf32>
    %c0_3 = arith.constant 0 : index
    %c0_4 = arith.constant 0 : index
    %3 = vector.load %arg3[%c0_3, %c0_4] : memref<32x1xf32, #tpu.memory_space<vmem>>, vector<32x1xf32>
    %4 = vector.broadcast %3 : vector<32x1xf32> to vector<32x216xf32>
    %5 = arith.addf %2, %4 : vector<32x216xf32>
    %cst_5 = arith.constant 0.000000e+00 : f32
    %6 = vector.broadcast %cst_5 : f32 to vector<32x216xf32>
    %7 = arith.cmpf ogt, %5, %6 : vector<32x216xf32>
    %cst_6 = arith.constant 0.00999999977 : f32
    %8 = vector.broadcast %cst_6 : f32 to vector<32x216xf32>
    %9 = arith.mulf %8, %5 : vector<32x216xf32>
    %10 = arith.select %7, %5, %9 : vector<32x216xi1>, vector<32x216xf32>
    %c0_7 = arith.constant 0 : index
    %c0_8 = arith.constant 0 : index
    %11 = vector.load %arg4[%c0_7, %c0_8] : memref<32x216xf32, #tpu.memory_space<vmem>>, vector<32x216xf32>
    tpu.vector_store %arg4[%c0_7, %c0_8], %10 {strides = array<i32>} : memref<32x216xf32, #tpu.memory_space<vmem>>, vector<32x216xf32>,
    return
  }
  func.func @transform_0(%arg0: i32) -> (i32, i32) {
    %c0_i32 = arith.constant 0 : i32
    %c0_i32_0 = arith.constant 0 : i32
    %c0_i32_1 = arith.constant 0 : i32
    return %c0_i32, %c0_i32_0 : i32, i32
  }
  func.func @transform_1(%arg0: i32) -> (i32, i32) {
    %c0_i32 = arith.constant 0 : i32
    %c0_i32_0 = arith.constant 0 : i32
    %c0_i32_1 = arith.constant 0 : i32
    return %c0_i32, %c0_i32_0 : i32, i32
  }
  func.func @transform_2(%arg0: i32) -> (i32, i32) {
    %c0_i32 = arith.constant 0 : i32
    %c0_i32_0 = arith.constant 0 : i32
    %c0_i32_1 = arith.constant 0 : i32
    return %c0_i32, %c0_i32_0 : i32, i32
  }
  func.func @transform_3(%arg0: i32) -> (i32, i32) {
    %c0_i32 = arith.constant 0 : i32
    %c0_i32_0 = arith.constant 0 : i32
    %c0_i32_1 = arith.constant 0 : i32
    return %c0_i32, %c0_i32_0 : i32, i32
  }
}

module attributes {stable_mosaic.version = 11 : i64} {
  func.func @_dual_mm_residual_kernel(%arg0: i32, %arg1: memref<288x24xf32, #tpu.memory_space<vmem>>, %arg2: memref<288x24xf32, #tpu.memory_space<vmem>>, %arg3: memref<32x288xf32, #tpu.memory_space<vmem>>, %arg4: memref<32x288xf32, #tpu.memory_space<vmem>>, %arg5: memref<32x1xf32, #tpu.memory_space<vmem>>, %arg6: memref<32x24xf32, #tpu.memory_space<vmem>>) attributes {dimension_semantics = [#tpu.dimension_semantics<arbitrary>], iteration_bounds = array<i64: 1>, scalar_prefetch = 0 : i64, scratch_operands = 0 : i64, tpu.core_type = #tpu.core_type<tc>, window_params = [{pipeline_mode = #tpu.pipeline_mode<synchronous>, transform_indices = @transform_0, window_bounds = array<i64: 288, 24>}, {pipeline_mode = #tpu.pipeline_mode<synchronous>, transform_indices = @transform_1, window_bounds = array<i64: 288, 24>}, {pipeline_mode = #tpu.pipeline_mode<synchronous>, transform_indices = @transform_2, window_bounds = array<i64: 32, 288>}, {pipeline_mode = #tpu.pipeline_mode<synchronous>, transform_indices = @transform_3, window_bounds = array<i64: 32, 288>}, {pipeline_mode = #tpu.pipeline_mode<synchronous>, transform_indices = @transform_4, window_bounds = array<i64: 32, 1>}, {pipeline_mode = #tpu.pipeline_mode<synchronous>, transform_indices = @transform_5, window_bounds = array<i64: 32, 24>}]} {
    %c0 = arith.constant 0 : index
    %c0_0 = arith.constant 0 : index
    %0 = vector.load %arg3[%c0, %c0_0] : memref<32x288xf32, #tpu.memory_space<vmem>>, vector<32x288xf32>
    %c0_1 = arith.constant 0 : index
    %c0_2 = arith.constant 0 : index
    %1 = vector.load %arg1[%c0_1, %c0_2] : memref<288x24xf32, #tpu.memory_space<vmem>>, vector<288x24xf32>
    %cst = arith.constant dense<0.000000e+00> : vector<32x24xf32>
    %2 = tpu.matmul %0, %1, %cst {dimension_numbers = #tpu.dot_dimension_numbers<[1], [0], [0], [1], [0, 0, 1, 1], [], []>} : vector<32x288xf32>, vector<288x24xf32>, vector<32x24xf32> -> vector<32x24xf32>
    %c0_3 = arith.constant 0 : index
    %c0_4 = arith.constant 0 : index
    %3 = vector.load %arg4[%c0_3, %c0_4] : memref<32x288xf32, #tpu.memory_space<vmem>>, vector<32x288xf32>
    %c0_5 = arith.constant 0 : index
    %c0_6 = arith.constant 0 : index
    %4 = vector.load %arg2[%c0_5, %c0_6] : memref<288x24xf32, #tpu.memory_space<vmem>>, vector<288x24xf32>
    %cst_7 = arith.constant dense<0.000000e+00> : vector<32x24xf32>
    %5 = tpu.matmul %3, %4, %cst_7 {dimension_numbers = #tpu.dot_dimension_numbers<[1], [0], [0], [1], [0, 0, 1, 1], [], []>} : vector<32x288xf32>, vector<288x24xf32>, vector<32x24xf32> -> vector<32x24xf32>
    %6 = arith.addf %2, %5 : vector<32x24xf32>
    %c0_8 = arith.constant 0 : index
    %c0_9 = arith.constant 0 : index
    %7 = vector.load %arg5[%c0_8, %c0_9] : memref<32x1xf32, #tpu.memory_space<vmem>>, vector<32x1xf32>
    %8 = vector.broadcast %7 : vector<32x1xf32> to vector<32x24xf32>
    %9 = arith.addf %6, %8 : vector<32x24xf32>
    %c0_10 = arith.constant 0 : index
    %c0_11 = arith.constant 0 : index
    %10 = vector.load %arg6[%c0_10, %c0_11] : memref<32x24xf32, #tpu.memory_space<vmem>>, vector<32x24xf32>
    tpu.vector_store %arg6[%c0_10, %c0_11], %9 {strides = array<i32>} : memref<32x24xf32, #tpu.memory_space<vmem>>, vector<32x24xf32>,
    return
  }
  func.func @transform_0(%arg0: i32) -> (i32, i32) {
    %c0_i32 = arith.constant 0 : i32
    %c0_i32_0 = arith.constant 0 : i32
    %c0_i32_1 = arith.constant 0 : i32
    return %c0_i32, %c0_i32_0 : i32, i32
  }
  func.func @transform_1(%arg0: i32) -> (i32, i32) {
    %c0_i32 = arith.constant 0 : i32
    %c0_i32_0 = arith.constant 0 : i32
    %c0_i32_1 = arith.constant 0 : i32
    return %c0_i32, %c0_i32_0 : i32, i32
  }
  func.func @transform_2(%arg0: i32) -> (i32, i32) {
    %c0_i32 = arith.constant 0 : i32
    %c0_i32_0 = arith.constant 0 : i32
    %c0_i32_1 = arith.constant 0 : i32
    return %c0_i32, %c0_i32_0 : i32, i32
  }
  func.func @transform_3(%arg0: i32) -> (i32, i32) {
    %c0_i32 = arith.constant 0 : i32
    %c0_i32_0 = arith.constant 0 : i32
    %c0_i32_1 = arith.constant 0 : i32
    return %c0_i32, %c0_i32_0 : i32, i32
  }
  func.func @transform_4(%arg0: i32) -> (i32, i32) {
    %c0_i32 = arith.constant 0 : i32
    %c0_i32_0 = arith.constant 0 : i32
    %c0_i32_1 = arith.constant 0 : i32
    return %c0_i32, %c0_i32_0 : i32, i32
  }
  func.func @transform_5(%arg0: i32) -> (i32, i32) {
    %c0_i32 = arith.constant 0 : i32
    %c0_i32_0 = arith.constant 0 : i32
    %c0_i32_1 = arith.constant 0 : i32
    return %c0_i32, %c0_i32_0 : i32, i32
  }
}

module attributes {stable_mosaic.version = 11 : i64} {
  func.func @_tail_kernel(%arg0: i32, %arg1: memref<288x24xf32, #tpu.memory_space<vmem>>, %arg2: memref<288x6xf32, #tpu.memory_space<vmem>>, %arg3: memref<32x288xf32, #tpu.memory_space<vmem>>, %arg4: memref<32x1xf32, #tpu.memory_space<vmem>>, %arg5: memref<4x32x32xf32, #tpu.memory_space<vmem>>, %arg6: memref<32x288xf32, #tpu.memory_space<vmem>>, %arg7: memref<32x1xf32, #tpu.memory_space<vmem>>, %arg8: memref<18x32x32xf32, #tpu.memory_space<vmem>>, %arg9: memref<18x32x1xf32, #tpu.memory_space<vmem>>, %arg10: memref<32x1xf32, #tpu.memory_space<vmem>>, %arg11: memref<32x1xf32, #tpu.memory_space<vmem>>, %arg12: memref<32x32xf32, #tpu.memory_space<vmem>>, %arg13: memref<32x1xf32, #tpu.memory_space<vmem>>, %arg14: memref<32x6xf32, #tpu.memory_space<vmem>>) attributes {dimension_semantics = [#tpu.dimension_semantics<arbitrary>], iteration_bounds = array<i64: 1>, scalar_prefetch = 0 : i64, scratch_operands = 0 : i64, tpu.core_type = #tpu.core_type<tc>, window_params = [{pipeline_mode = #tpu.pipeline_mode<synchronous>, transform_indices = @transform_0, window_bounds = array<i64: 288, 24>}, {pipeline_mode = #tpu.pipeline_mode<synchronous>, transform_indices = @transform_1, window_bounds = array<i64: 288, 6>}, {pipeline_mode = #tpu.pipeline_mode<synchronous>, transform_indices = @transform_2, window_bounds = array<i64: 32, 288>}, {pipeline_mode = #tpu.pipeline_mode<synchronous>, transform_indices = @transform_3, window_bounds = array<i64: 32, 1>}, {pipeline_mode = #tpu.pipeline_mode<synchronous>, transform_indices = @transform_4, window_bounds = array<i64: 4, 32, 32>}, {pipeline_mode = #tpu.pipeline_mode<synchronous>, transform_indices = @transform_5, window_bounds = array<i64: 32, 288>}, {pipeline_mode = #tpu.pipeline_mode<synchronous>, transform_indices = @transform_6, window_bounds = array<i64: 32, 1>}, {pipeline_mode = #tpu.pipeline_mode<synchronous>, transform_indices = @transform_7, window_bounds = array<i64: 18, 32, 32>}, {pipeline_mode = #tpu.pipeline_mode<synchronous>, transform_indices = @transform_8, window_bounds = array<i64: 18, 32, 1>}, {pipeline_mode = #tpu.pipeline_mode<synchronous>, transform_indices = @transform_9, window_bounds = array<i64: 32, 1>}, {pipeline_mode = #tpu.pipeline_mode<synchronous>, transform_indices = @transform_10, window_bounds = array<i64: 32, 1>}, {pipeline_mode = #tpu.pipeline_mode<synchronous>, transform_indices = @transform_11, window_bounds = array<i64: 32, 32>}, {pipeline_mode = #tpu.pipeline_mode<synchronous>, transform_indices = @transform_12, window_bounds = array<i64: 32, 1>}, {pipeline_mode = #tpu.pipeline_mode<synchronous>, transform_indices = @transform_13, window_bounds = array<i64: 32, 6>}]} {
    %c0 = arith.constant 0 : index
    %c0_0 = arith.constant 0 : index
    %0 = vector.load %arg3[%c0, %c0_0] : memref<32x288xf32, #tpu.memory_space<vmem>>, vector<32x288xf32>
    %c0_1 = arith.constant 0 : index
    %c0_2 = arith.constant 0 : index
    %1 = vector.load %arg1[%c0_1, %c0_2] : memref<288x24xf32, #tpu.memory_space<vmem>>, vector<288x24xf32>
    %cst = arith.constant dense<0.000000e+00> : vector<32x24xf32>
    %2 = tpu.matmul %0, %1, %cst {dimension_numbers = #tpu.dot_dimension_numbers<[1], [0], [0], [1], [0, 0, 1, 1], [], []>} : vector<32x288xf32>, vector<288x24xf32>, vector<32x24xf32> -> vector<32x24xf32>
    %c0_3 = arith.constant 0 : index
    %c0_4 = arith.constant 0 : index
    %3 = vector.load %arg4[%c0_3, %c0_4] : memref<32x1xf32, #tpu.memory_space<vmem>>, vector<32x1xf32>
    %4 = vector.broadcast %3 : vector<32x1xf32> to vector<32x24xf32>
    %5 = arith.addf %2, %4 : vector<32x24xf32>
    %cst_5 = arith.constant 0.000000e+00 : f32
    %6 = vector.broadcast %cst_5 : f32 to vector<32x24xf32>
    %7 = arith.cmpf ogt, %5, %6 : vector<32x24xf32>
    %cst_6 = arith.constant 0.00999999977 : f32
    %8 = vector.broadcast %cst_6 : f32 to vector<32x24xf32>
    %9 = arith.mulf %8, %5 : vector<32x24xf32>
    %10 = arith.select %7, %5, %9 : vector<32x24xi1>, vector<32x24xf32>
    %c0_7 = arith.constant 0 : index
    %c0_8 = arith.constant 0 : index
    %11 = vector.load %arg6[%c0_7, %c0_8] : memref<32x288xf32, #tpu.memory_space<vmem>>, vector<32x288xf32>
    %c0_9 = arith.constant 0 : index
    %c0_10 = arith.constant 0 : index
    %12 = vector.load %arg2[%c0_9, %c0_10] : memref<288x6xf32, #tpu.memory_space<vmem>>, vector<288x6xf32>
    %cst_11 = arith.constant dense<0.000000e+00> : vector<32x6xf32>
    %13 = tpu.matmul %11, %12, %cst_11 {dimension_numbers = #tpu.dot_dimension_numbers<[1], [0], [0], [1], [0, 0, 1, 1], [], []>} : vector<32x288xf32>, vector<288x6xf32>, vector<32x6xf32> -> vector<32x6xf32>
    %c0_12 = arith.constant 0 : index
    %c0_13 = arith.constant 0 : index
    %c0_14 = arith.constant 0 : index
    %14 = vector.load %arg5[%c0_12, %c0_13, %c0_14] : memref<4x32x32xf32, #tpu.memory_space<vmem>>, vector<1x32x32xf32>
    %15 = vector.shape_cast %14 : vector<1x32x32xf32> to vector<32x32xf32>
    %16 = vector.extract_strided_slice %10 {offsets = [0, 0], sizes = [32, 6], strides = [1, 1]} : vector<32x24xf32> to vector<32x6xf32>
    %cst_15 = arith.constant dense<0.000000e+00> : vector<32x6xf32>
    %17 = tpu.matmul %15, %16, %cst_15 {dimension_numbers = #tpu.dot_dimension_numbers<[1], [0], [0], [1], [0, 0, 1, 1], [], []>} : vector<32x32xf32>, vector<32x6xf32>, vector<32x6xf32> -> vector<32x6xf32>
    %18 = arith.addf %13, %17 : vector<32x6xf32>
    %c1 = arith.constant 1 : index
    %c0_16 = arith.constant 0 : index
    %c0_17 = arith.constant 0 : index
    %19 = vector.load %arg5[%c1, %c0_16, %c0_17] : memref<4x32x32xf32, #tpu.memory_space<vmem>>, vector<1x32x32xf32>
    %20 = vector.shape_cast %19 : vector<1x32x32xf32> to vector<32x32xf32>
    %21 = vector.extract_strided_slice %10 {offsets = [0, 6], sizes = [32, 6], strides = [1, 1]} : vector<32x24xf32> to vector<32x6xf32>
    %cst_18 = arith.constant dense<0.000000e+00> : vector<32x6xf32>
    %22 = tpu.matmul %20, %21, %cst_18 {dimension_numbers = #tpu.dot_dimension_numbers<[1], [0], [0], [1], [0, 0, 1, 1], [], []>} : vector<32x32xf32>, vector<32x6xf32>, vector<32x6xf32> -> vector<32x6xf32>
    %23 = arith.addf %18, %22 : vector<32x6xf32>
    %c2 = arith.constant 2 : index
    %c0_19 = arith.constant 0 : index
    %c0_20 = arith.constant 0 : index
    %24 = vector.load %arg5[%c2, %c0_19, %c0_20] : memref<4x32x32xf32, #tpu.memory_space<vmem>>, vector<1x32x32xf32>
    %25 = vector.shape_cast %24 : vector<1x32x32xf32> to vector<32x32xf32>
    %26 = vector.extract_strided_slice %10 {offsets = [0, 12], sizes = [32, 6], strides = [1, 1]} : vector<32x24xf32> to vector<32x6xf32>
    %cst_21 = arith.constant dense<0.000000e+00> : vector<32x6xf32>
    %27 = tpu.matmul %25, %26, %cst_21 {dimension_numbers = #tpu.dot_dimension_numbers<[1], [0], [0], [1], [0, 0, 1, 1], [], []>} : vector<32x32xf32>, vector<32x6xf32>, vector<32x6xf32> -> vector<32x6xf32>
    %28 = arith.addf %23, %27 : vector<32x6xf32>
    %c3 = arith.constant 3 : index
    %c0_22 = arith.constant 0 : index
    %c0_23 = arith.constant 0 : index
    %29 = vector.load %arg5[%c3, %c0_22, %c0_23] : memref<4x32x32xf32, #tpu.memory_space<vmem>>, vector<1x32x32xf32>
    %30 = vector.shape_cast %29 : vector<1x32x32xf32> to vector<32x32xf32>
    %31 = vector.extract_strided_slice %10 {offsets = [0, 18], sizes = [32, 6], strides = [1, 1]} : vector<32x24xf32> to vector<32x6xf32>
    %cst_24 = arith.constant dense<0.000000e+00> : vector<32x6xf32>
    %32 = tpu.matmul %30, %31, %cst_24 {dimension_numbers = #tpu.dot_dimension_numbers<[1], [0], [0], [1], [0, 0, 1, 1], [], []>} : vector<32x32xf32>, vector<32x6xf32>, vector<32x6xf32> -> vector<32x6xf32>
    %33 = arith.addf %28, %32 : vector<32x6xf32>
    %c0_25 = arith.constant 0 : index
    %c0_26 = arith.constant 0 : index
    %34 = vector.load %arg7[%c0_25, %c0_26] : memref<32x1xf32, #tpu.memory_space<vmem>>, vector<32x1xf32>
    %35 = vector.broadcast %34 : vector<32x1xf32> to vector<32x6xf32>
    %36 = arith.addf %33, %35 : vector<32x6xf32>
    %c0_27 = arith.constant 0 : index
    %c0_28 = arith.constant 0 : index
    %c0_29 = arith.constant 0 : index
    %37 = vector.load %arg8[%c0_27, %c0_28, %c0_29] : memref<18x32x32xf32, #tpu.memory_space<vmem>>, vector<1x32x32xf32>
    %38 = vector.shape_cast %37 : vector<1x32x32xf32> to vector<32x32xf32>
    %c0_30 = arith.constant 0 : index
    %c0_31 = arith.constant 0 : index
    %c0_32 = arith.constant 0 : index
    %39 = vector.load %arg9[%c0_30, %c0_31, %c0_32] : memref<18x32x1xf32, #tpu.memory_space<vmem>>, vector<1x32x1xf32>
    %40 = vector.shape_cast %39 : vector<1x32x1xf32> to vector<32x1xf32>
    %c1_33 = arith.constant 1 : index
    %c0_34 = arith.constant 0 : index
    %c0_35 = arith.constant 0 : index
    %41 = vector.load %arg8[%c1_33, %c0_34, %c0_35] : memref<18x32x32xf32, #tpu.memory_space<vmem>>, vector<1x32x32xf32>
    %42 = vector.shape_cast %41 : vector<1x32x32xf32> to vector<32x32xf32>
    %c1_36 = arith.constant 1 : index
    %c0_37 = arith.constant 0 : index
    %c0_38 = arith.constant 0 : index
    %43 = vector.load %arg9[%c1_36, %c0_37, %c0_38] : memref<18x32x1xf32, #tpu.memory_space<vmem>>, vector<1x32x1xf32>
    %44 = vector.shape_cast %43 : vector<1x32x1xf32> to vector<32x1xf32>
    %c2_39 = arith.constant 2 : index
    %c0_40 = arith.constant 0 : index
    %c0_41 = arith.constant 0 : index
    %45 = vector.load %arg8[%c2_39, %c0_40, %c0_41] : memref<18x32x32xf32, #tpu.memory_space<vmem>>, vector<1x32x32xf32>
    %46 = vector.shape_cast %45 : vector<1x32x32xf32> to vector<32x32xf32>
    %c2_42 = arith.constant 2 : index
    %c0_43 = arith.constant 0 : index
    %c0_44 = arith.constant 0 : index
    %47 = vector.load %arg9[%c2_42, %c0_43, %c0_44] : memref<18x32x1xf32, #tpu.memory_space<vmem>>, vector<1x32x1xf32>
    %48 = vector.shape_cast %47 : vector<1x32x1xf32> to vector<32x1xf32>
    %cst_45 = arith.constant dense<0.000000e+00> : vector<32x6xf32>
    %49 = tpu.matmul %42, %36, %cst_45 {dimension_numbers = #tpu.dot_dimension_numbers<[1], [0], [0], [1], [0, 0, 1, 1], [], []>} : vector<32x32xf32>, vector<32x6xf32>, vector<32x6xf32> -> vector<32x6xf32>
    %50 = vector.broadcast %44 : vector<32x1xf32> to vector<32x6xf32>
    %51 = arith.addf %49, %50 : vector<32x6xf32>
    %cst_46 = arith.constant dense<0.000000e+00> : vector<32x6xf32>
    %52 = tpu.matmul %38, %36, %cst_46 {dimension_numbers = #tpu.dot_dimension_numbers<[1], [0], [0], [1], [0, 0, 1, 1], [], []>} : vector<32x32xf32>, vector<32x6xf32>, vector<32x6xf32> -> vector<32x6xf32>
    %53 = vector.broadcast %40 : vector<32x1xf32> to vector<32x6xf32>
    %54 = arith.addf %52, %53 : vector<32x6xf32>
    %cst_47 = arith.constant 0.000000e+00 : f32
    %55 = vector.broadcast %cst_47 : f32 to vector<32x6xf32>
    %56 = arith.cmpf ogt, %54, %55 : vector<32x6xf32>
    %cst_48 = arith.constant 0.00999999977 : f32
    %57 = vector.broadcast %cst_48 : f32 to vector<32x6xf32>
    %58 = arith.mulf %57, %54 : vector<32x6xf32>
    %59 = arith.select %56, %54, %58 : vector<32x6xi1>, vector<32x6xf32>
    %cst_49 = arith.constant dense<0.000000e+00> : vector<32x6xf32>
    %60 = tpu.matmul %46, %59, %cst_49 {dimension_numbers = #tpu.dot_dimension_numbers<[1], [0], [0], [1], [0, 0, 1, 1], [], []>} : vector<32x32xf32>, vector<32x6xf32>, vector<32x6xf32> -> vector<32x6xf32>
    %61 = vector.broadcast %48 : vector<32x1xf32> to vector<32x6xf32>
    %62 = arith.addf %60, %61 : vector<32x6xf32>
    %63 = arith.addf %62, %51 : vector<32x6xf32>
    %c3_50 = arith.constant 3 : index
    %c0_51 = arith.constant 0 : index
    %c0_52 = arith.constant 0 : index
    %64 = vector.load %arg8[%c3_50, %c0_51, %c0_52] : memref<18x32x32xf32, #tpu.memory_space<vmem>>, vector<1x32x32xf32>
    %65 = vector.shape_cast %64 : vector<1x32x32xf32> to vector<32x32xf32>
    %c3_53 = arith.constant 3 : index
    %c0_54 = arith.constant 0 : index
    %c0_55 = arith.constant 0 : index
    %66 = vector.load %arg9[%c3_53, %c0_54, %c0_55] : memref<18x32x1xf32, #tpu.memory_space<vmem>>, vector<1x32x1xf32>
    %67 = vector.shape_cast %66 : vector<1x32x1xf32> to vector<32x1xf32>
    %c4 = arith.constant 4 : index
    %c0_56 = arith.constant 0 : index
    %c0_57 = arith.constant 0 : index
    %68 = vector.load %arg8[%c4, %c0_56, %c0_57] : memref<18x32x32xf32, #tpu.memory_space<vmem>>, vector<1x32x32xf32>
    %69 = vector.shape_cast %68 : vector<1x32x32xf32> to vector<32x32xf32>
    %c4_58 = arith.constant 4 : index
    %c0_59 = arith.constant 0 : index
    %c0_60 = arith.constant 0 : index
    %70 = vector.load %arg9[%c4_58, %c0_59, %c0_60] : memref<18x32x1xf32, #tpu.memory_space<vmem>>, vector<1x32x1xf32>
    %71 = vector.shape_cast %70 : vector<1x32x1xf32> to vector<32x1xf32>
    %c5 = arith.constant 5 : index
    %c0_61 = arith.constant 0 : index
    %c0_62 = arith.constant 0 : index
    %72 = vector.load %arg8[%c5, %c0_61, %c0_62] : memref<18x32x32xf32, #tpu.memory_space<vmem>>, vector<1x32x32xf32>
    %73 = vector.shape_cast %72 : vector<1x32x32xf32> to vector<32x32xf32>
    %c5_63 = arith.constant 5 : index
    %c0_64 = arith.constant 0 : index
    %c0_65 = arith.constant 0 : index
    %74 = vector.load %arg9[%c5_63, %c0_64, %c0_65] : memref<18x32x1xf32, #tpu.memory_space<vmem>>, vector<1x32x1xf32>
    %75 = vector.shape_cast %74 : vector<1x32x1xf32> to vector<32x1xf32>
    %cst_66 = arith.constant dense<0.000000e+00> : vector<32x6xf32>
    %76 = tpu.matmul %69, %63, %cst_66 {dimension_numbers = #tpu.dot_dimension_numbers<[1], [0], [0], [1], [0, 0, 1, 1], [], []>} : vector<32x32xf32>, vector<32x6xf32>, vector<32x6xf32> -> vector<32x6xf32>
    %77 = vector.broadcast %71 : vector<32x1xf32> to vector<32x6xf32>
    %78 = arith.addf %76, %77 : vector<32x6xf32>
    %cst_67 = arith.constant dense<0.000000e+00> : vector<32x6xf32>
    %79 = tpu.matmul %65, %63, %cst_67 {dimension_numbers = #tpu.dot_dimension_numbers<[1], [0], [0], [1], [0, 0, 1, 1], [], []>} : vector<32x32xf32>, vector<32x6xf32>, vector<32x6xf32> -> vector<32x6xf32>
    %80 = vector.broadcast %67 : vector<32x1xf32> to vector<32x6xf32>
    %81 = arith.addf %79, %80 : vector<32x6xf32>
    %cst_68 = arith.constant 0.000000e+00 : f32
    %82 = vector.broadcast %cst_68 : f32 to vector<32x6xf32>
    %83 = arith.cmpf ogt, %81, %82 : vector<32x6xf32>
    %cst_69 = arith.constant 0.00999999977 : f32
    %84 = vector.broadcast %cst_69 : f32 to vector<32x6xf32>
    %85 = arith.mulf %84, %81 : vector<32x6xf32>
    %86 = arith.select %83, %81, %85 : vector<32x6xi1>, vector<32x6xf32>
    %cst_70 = arith.constant dense<0.000000e+00> : vector<32x6xf32>
    %87 = tpu.matmul %73, %86, %cst_70 {dimension_numbers = #tpu.dot_dimension_numbers<[1], [0], [0], [1], [0, 0, 1, 1], [], []>} : vector<32x32xf32>, vector<32x6xf32>, vector<32x6xf32> -> vector<32x6xf32>
    %88 = vector.broadcast %75 : vector<32x1xf32> to vector<32x6xf32>
    %89 = arith.addf %87, %88 : vector<32x6xf32>
    %90 = arith.addf %89, %78 : vector<32x6xf32>
    %c6 = arith.constant 6 : index
    %c0_71 = arith.constant 0 : index
    %c0_72 = arith.constant 0 : index
    %91 = vector.load %arg8[%c6, %c0_71, %c0_72] : memref<18x32x32xf32, #tpu.memory_space<vmem>>, vector<1x32x32xf32>
    %92 = vector.shape_cast %91 : vector<1x32x32xf32> to vector<32x32xf32>
    %c6_73 = arith.constant 6 : index
    %c0_74 = arith.constant 0 : index
    %c0_75 = arith.constant 0 : index
    %93 = vector.load %arg9[%c6_73, %c0_74, %c0_75] : memref<18x32x1xf32, #tpu.memory_space<vmem>>, vector<1x32x1xf32>
    %94 = vector.shape_cast %93 : vector<1x32x1xf32> to vector<32x1xf32>
    %c7 = arith.constant 7 : index
    %c0_76 = arith.constant 0 : index
    %c0_77 = arith.constant 0 : index
    %95 = vector.load %arg8[%c7, %c0_76, %c0_77] : memref<18x32x32xf32, #tpu.memory_space<vmem>>, vector<1x32x32xf32>
    %96 = vector.shape_cast %95 : vector<1x32x32xf32> to vector<32x32xf32>
    %c7_78 = arith.constant 7 : index
    %c0_79 = arith.constant 0 : index
    %c0_80 = arith.constant 0 : index
    %97 = vector.load %arg9[%c7_78, %c0_79, %c0_80] : memref<18x32x1xf32, #tpu.memory_space<vmem>>, vector<1x32x1xf32>
    %98 = vector.shape_cast %97 : vector<1x32x1xf32> to vector<32x1xf32>
    %c8 = arith.constant 8 : index
    %c0_81 = arith.constant 0 : index
    %c0_82 = arith.constant 0 : index
    %99 = vector.load %arg8[%c8, %c0_81, %c0_82] : memref<18x32x32xf32, #tpu.memory_space<vmem>>, vector<1x32x32xf32>
    %100 = vector.shape_cast %99 : vector<1x32x32xf32> to vector<32x32xf32>
    %c8_83 = arith.constant 8 : index
    %c0_84 = arith.constant 0 : index
    %c0_85 = arith.constant 0 : index
    %101 = vector.load %arg9[%c8_83, %c0_84, %c0_85] : memref<18x32x1xf32, #tpu.memory_space<vmem>>, vector<1x32x1xf32>
    %102 = vector.shape_cast %101 : vector<1x32x1xf32> to vector<32x1xf32>
    %cst_86 = arith.constant dense<0.000000e+00> : vector<32x6xf32>
    %103 = tpu.matmul %96, %90, %cst_86 {dimension_numbers = #tpu.dot_dimension_numbers<[1], [0], [0], [1], [0, 0, 1, 1], [], []>} : vector<32x32xf32>, vector<32x6xf32>, vector<32x6xf32> -> vector<32x6xf32>
    %104 = vector.broadcast %98 : vector<32x1xf32> to vector<32x6xf32>
    %105 = arith.addf %103, %104 : vector<32x6xf32>
    %cst_87 = arith.constant dense<0.000000e+00> : vector<32x6xf32>
    %106 = tpu.matmul %92, %90, %cst_87 {dimension_numbers = #tpu.dot_dimension_numbers<[1], [0], [0], [1], [0, 0, 1, 1], [], []>} : vector<32x32xf32>, vector<32x6xf32>, vector<32x6xf32> -> vector<32x6xf32>
    %107 = vector.broadcast %94 : vector<32x1xf32> to vector<32x6xf32>
    %108 = arith.addf %106, %107 : vector<32x6xf32>
    %cst_88 = arith.constant 0.000000e+00 : f32
    %109 = vector.broadcast %cst_88 : f32 to vector<32x6xf32>
    %110 = arith.cmpf ogt, %108, %109 : vector<32x6xf32>
    %cst_89 = arith.constant 0.00999999977 : f32
    %111 = vector.broadcast %cst_89 : f32 to vector<32x6xf32>
    %112 = arith.mulf %111, %108 : vector<32x6xf32>
    %113 = arith.select %110, %108, %112 : vector<32x6xi1>, vector<32x6xf32>
    %cst_90 = arith.constant dense<0.000000e+00> : vector<32x6xf32>
    %114 = tpu.matmul %100, %113, %cst_90 {dimension_numbers = #tpu.dot_dimension_numbers<[1], [0], [0], [1], [0, 0, 1, 1], [], []>} : vector<32x32xf32>, vector<32x6xf32>, vector<32x6xf32> -> vector<32x6xf32>
    %115 = vector.broadcast %102 : vector<32x1xf32> to vector<32x6xf32>
    %116 = arith.addf %114, %115 : vector<32x6xf32>
    %117 = arith.addf %116, %105 : vector<32x6xf32>
    %c9 = arith.constant 9 : index
    %c0_91 = arith.constant 0 : index
    %c0_92 = arith.constant 0 : index
    %118 = vector.load %arg8[%c9, %c0_91, %c0_92] : memref<18x32x32xf32, #tpu.memory_space<vmem>>, vector<1x32x32xf32>
    %119 = vector.shape_cast %118 : vector<1x32x32xf32> to vector<32x32xf32>
    %c9_93 = arith.constant 9 : index
    %c0_94 = arith.constant 0 : index
    %c0_95 = arith.constant 0 : index
    %120 = vector.load %arg9[%c9_93, %c0_94, %c0_95] : memref<18x32x1xf32, #tpu.memory_space<vmem>>, vector<1x32x1xf32>
    %121 = vector.shape_cast %120 : vector<1x32x1xf32> to vector<32x1xf32>
    %c10 = arith.constant 10 : index
    %c0_96 = arith.constant 0 : index
    %c0_97 = arith.constant 0 : index
    %122 = vector.load %arg8[%c10, %c0_96, %c0_97] : memref<18x32x32xf32, #tpu.memory_space<vmem>>, vector<1x32x32xf32>
    %123 = vector.shape_cast %122 : vector<1x32x32xf32> to vector<32x32xf32>
    %c10_98 = arith.constant 10 : index
    %c0_99 = arith.constant 0 : index
    %c0_100 = arith.constant 0 : index
    %124 = vector.load %arg9[%c10_98, %c0_99, %c0_100] : memref<18x32x1xf32, #tpu.memory_space<vmem>>, vector<1x32x1xf32>
    %125 = vector.shape_cast %124 : vector<1x32x1xf32> to vector<32x1xf32>
    %c11 = arith.constant 11 : index
    %c0_101 = arith.constant 0 : index
    %c0_102 = arith.constant 0 : index
    %126 = vector.load %arg8[%c11, %c0_101, %c0_102] : memref<18x32x32xf32, #tpu.memory_space<vmem>>, vector<1x32x32xf32>
    %127 = vector.shape_cast %126 : vector<1x32x32xf32> to vector<32x32xf32>
    %c11_103 = arith.constant 11 : index
    %c0_104 = arith.constant 0 : index
    %c0_105 = arith.constant 0 : index
    %128 = vector.load %arg9[%c11_103, %c0_104, %c0_105] : memref<18x32x1xf32, #tpu.memory_space<vmem>>, vector<1x32x1xf32>
    %129 = vector.shape_cast %128 : vector<1x32x1xf32> to vector<32x1xf32>
    %cst_106 = arith.constant dense<0.000000e+00> : vector<32x6xf32>
    %130 = tpu.matmul %123, %117, %cst_106 {dimension_numbers = #tpu.dot_dimension_numbers<[1], [0], [0], [1], [0, 0, 1, 1], [], []>} : vector<32x32xf32>, vector<32x6xf32>, vector<32x6xf32> -> vector<32x6xf32>
    %131 = vector.broadcast %125 : vector<32x1xf32> to vector<32x6xf32>
    %132 = arith.addf %130, %131 : vector<32x6xf32>
    %cst_107 = arith.constant dense<0.000000e+00> : vector<32x6xf32>
    %133 = tpu.matmul %119, %117, %cst_107 {dimension_numbers = #tpu.dot_dimension_numbers<[1], [0], [0], [1], [0, 0, 1, 1], [], []>} : vector<32x32xf32>, vector<32x6xf32>, vector<32x6xf32> -> vector<32x6xf32>
    %134 = vector.broadcast %121 : vector<32x1xf32> to vector<32x6xf32>
    %135 = arith.addf %133, %134 : vector<32x6xf32>
    %cst_108 = arith.constant 0.000000e+00 : f32
    %136 = vector.broadcast %cst_108 : f32 to vector<32x6xf32>
    %137 = arith.cmpf ogt, %135, %136 : vector<32x6xf32>
    %cst_109 = arith.constant 0.00999999977 : f32
    %138 = vector.broadcast %cst_109 : f32 to vector<32x6xf32>
    %139 = arith.mulf %138, %135 : vector<32x6xf32>
    %140 = arith.select %137, %135, %139 : vector<32x6xi1>, vector<32x6xf32>
    %cst_110 = arith.constant dense<0.000000e+00> : vector<32x6xf32>
    %141 = tpu.matmul %127, %140, %cst_110 {dimension_numbers = #tpu.dot_dimension_numbers<[1], [0], [0], [1], [0, 0, 1, 1], [], []>} : vector<32x32xf32>, vector<32x6xf32>, vector<32x6xf32> -> vector<32x6xf32>
    %142 = vector.broadcast %129 : vector<32x1xf32> to vector<32x6xf32>
    %143 = arith.addf %141, %142 : vector<32x6xf32>
    %144 = arith.addf %143, %132 : vector<32x6xf32>
    %c12 = arith.constant 12 : index
    %c0_111 = arith.constant 0 : index
    %c0_112 = arith.constant 0 : index
    %145 = vector.load %arg8[%c12, %c0_111, %c0_112] : memref<18x32x32xf32, #tpu.memory_space<vmem>>, vector<1x32x32xf32>
    %146 = vector.shape_cast %145 : vector<1x32x32xf32> to vector<32x32xf32>
    %c12_113 = arith.constant 12 : index
    %c0_114 = arith.constant 0 : index
    %c0_115 = arith.constant 0 : index
    %147 = vector.load %arg9[%c12_113, %c0_114, %c0_115] : memref<18x32x1xf32, #tpu.memory_space<vmem>>, vector<1x32x1xf32>
    %148 = vector.shape_cast %147 : vector<1x32x1xf32> to vector<32x1xf32>
    %c13 = arith.constant 13 : index
    %c0_116 = arith.constant 0 : index
    %c0_117 = arith.constant 0 : index
    %149 = vector.load %arg8[%c13, %c0_116, %c0_117] : memref<18x32x32xf32, #tpu.memory_space<vmem>>, vector<1x32x32xf32>
    %150 = vector.shape_cast %149 : vector<1x32x32xf32> to vector<32x32xf32>
    %c13_118 = arith.constant 13 : index
    %c0_119 = arith.constant 0 : index
    %c0_120 = arith.constant 0 : index
    %151 = vector.load %arg9[%c13_118, %c0_119, %c0_120] : memref<18x32x1xf32, #tpu.memory_space<vmem>>, vector<1x32x1xf32>
    %152 = vector.shape_cast %151 : vector<1x32x1xf32> to vector<32x1xf32>
    %c14 = arith.constant 14 : index
    %c0_121 = arith.constant 0 : index
    %c0_122 = arith.constant 0 : index
    %153 = vector.load %arg8[%c14, %c0_121, %c0_122] : memref<18x32x32xf32, #tpu.memory_space<vmem>>, vector<1x32x32xf32>
    %154 = vector.shape_cast %153 : vector<1x32x32xf32> to vector<32x32xf32>
    %c14_123 = arith.constant 14 : index
    %c0_124 = arith.constant 0 : index
    %c0_125 = arith.constant 0 : index
    %155 = vector.load %arg9[%c14_123, %c0_124, %c0_125] : memref<18x32x1xf32, #tpu.memory_space<vmem>>, vector<1x32x1xf32>
    %156 = vector.shape_cast %155 : vector<1x32x1xf32> to vector<32x1xf32>
    %cst_126 = arith.constant dense<0.000000e+00> : vector<32x6xf32>
    %157 = tpu.matmul %150, %144, %cst_126 {dimension_numbers = #tpu.dot_dimension_numbers<[1], [0], [0], [1], [0, 0, 1, 1], [], []>} : vector<32x32xf32>, vector<32x6xf32>, vector<32x6xf32> -> vector<32x6xf32>
    %158 = vector.broadcast %152 : vector<32x1xf32> to vector<32x6xf32>
    %159 = arith.addf %157, %158 : vector<32x6xf32>
    %cst_127 = arith.constant dense<0.000000e+00> : vector<32x6xf32>
    %160 = tpu.matmul %146, %144, %cst_127 {dimension_numbers = #tpu.dot_dimension_numbers<[1], [0], [0], [1], [0, 0, 1, 1], [], []>} : vector<32x32xf32>, vector<32x6xf32>, vector<32x6xf32> -> vector<32x6xf32>
    %161 = vector.broadcast %148 : vector<32x1xf32> to vector<32x6xf32>
    %162 = arith.addf %160, %161 : vector<32x6xf32>
    %cst_128 = arith.constant 0.000000e+00 : f32
    %163 = vector.broadcast %cst_128 : f32 to vector<32x6xf32>
    %164 = arith.cmpf ogt, %162, %163 : vector<32x6xf32>
    %cst_129 = arith.constant 0.00999999977 : f32
    %165 = vector.broadcast %cst_129 : f32 to vector<32x6xf32>
    %166 = arith.mulf %165, %162 : vector<32x6xf32>
    %167 = arith.select %164, %162, %166 : vector<32x6xi1>, vector<32x6xf32>
    %cst_130 = arith.constant dense<0.000000e+00> : vector<32x6xf32>
    %168 = tpu.matmul %154, %167, %cst_130 {dimension_numbers = #tpu.dot_dimension_numbers<[1], [0], [0], [1], [0, 0, 1, 1], [], []>} : vector<32x32xf32>, vector<32x6xf32>, vector<32x6xf32> -> vector<32x6xf32>
    %169 = vector.broadcast %156 : vector<32x1xf32> to vector<32x6xf32>
    %170 = arith.addf %168, %169 : vector<32x6xf32>
    %171 = arith.addf %170, %159 : vector<32x6xf32>
    %c15 = arith.constant 15 : index
    %c0_131 = arith.constant 0 : index
    %c0_132 = arith.constant 0 : index
    %172 = vector.load %arg8[%c15, %c0_131, %c0_132] : memref<18x32x32xf32, #tpu.memory_space<vmem>>, vector<1x32x32xf32>
    %173 = vector.shape_cast %172 : vector<1x32x32xf32> to vector<32x32xf32>
    %c15_133 = arith.constant 15 : index
    %c0_134 = arith.constant 0 : index
    %c0_135 = arith.constant 0 : index
    %174 = vector.load %arg9[%c15_133, %c0_134, %c0_135] : memref<18x32x1xf32, #tpu.memory_space<vmem>>, vector<1x32x1xf32>
    %175 = vector.shape_cast %174 : vector<1x32x1xf32> to vector<32x1xf32>
    %c16 = arith.constant 16 : index
    %c0_136 = arith.constant 0 : index
    %c0_137 = arith.constant 0 : index
    %176 = vector.load %arg8[%c16, %c0_136, %c0_137] : memref<18x32x32xf32, #tpu.memory_space<vmem>>, vector<1x32x32xf32>
    %177 = vector.shape_cast %176 : vector<1x32x32xf32> to vector<32x32xf32>
    %c16_138 = arith.constant 16 : index
    %c0_139 = arith.constant 0 : index
    %c0_140 = arith.constant 0 : index
    %178 = vector.load %arg9[%c16_138, %c0_139, %c0_140] : memref<18x32x1xf32, #tpu.memory_space<vmem>>, vector<1x32x1xf32>
    %179 = vector.shape_cast %178 : vector<1x32x1xf32> to vector<32x1xf32>
    %c17 = arith.constant 17 : index
    %c0_141 = arith.constant 0 : index
    %c0_142 = arith.constant 0 : index
    %180 = vector.load %arg8[%c17, %c0_141, %c0_142] : memref<18x32x32xf32, #tpu.memory_space<vmem>>, vector<1x32x32xf32>
    %181 = vector.shape_cast %180 : vector<1x32x32xf32> to vector<32x32xf32>
    %c17_143 = arith.constant 17 : index
    %c0_144 = arith.constant 0 : index
    %c0_145 = arith.constant 0 : index
    %182 = vector.load %arg9[%c17_143, %c0_144, %c0_145] : memref<18x32x1xf32, #tpu.memory_space<vmem>>, vector<1x32x1xf32>
    %183 = vector.shape_cast %182 : vector<1x32x1xf32> to vector<32x1xf32>
    %cst_146 = arith.constant dense<0.000000e+00> : vector<32x6xf32>
    %184 = tpu.matmul %177, %171, %cst_146 {dimension_numbers = #tpu.dot_dimension_numbers<[1], [0], [0], [1], [0, 0, 1, 1], [], []>} : vector<32x32xf32>, vector<32x6xf32>, vector<32x6xf32> -> vector<32x6xf32>
    %185 = vector.broadcast %179 : vector<32x1xf32> to vector<32x6xf32>
    %186 = arith.addf %184, %185 : vector<32x6xf32>
    %cst_147 = arith.constant dense<0.000000e+00> : vector<32x6xf32>
    %187 = tpu.matmul %173, %171, %cst_147 {dimension_numbers = #tpu.dot_dimension_numbers<[1], [0], [0], [1], [0, 0, 1, 1], [], []>} : vector<32x32xf32>, vector<32x6xf32>, vector<32x6xf32> -> vector<32x6xf32>
    %188 = vector.broadcast %175 : vector<32x1xf32> to vector<32x6xf32>
    %189 = arith.addf %187, %188 : vector<32x6xf32>
    %cst_148 = arith.constant 0.000000e+00 : f32
    %190 = vector.broadcast %cst_148 : f32 to vector<32x6xf32>
    %191 = arith.cmpf ogt, %189, %190 : vector<32x6xf32>
    %cst_149 = arith.constant 0.00999999977 : f32
    %192 = vector.broadcast %cst_149 : f32 to vector<32x6xf32>
    %193 = arith.mulf %192, %189 : vector<32x6xf32>
    %194 = arith.select %191, %189, %193 : vector<32x6xi1>, vector<32x6xf32>
    %cst_150 = arith.constant dense<0.000000e+00> : vector<32x6xf32>
    %195 = tpu.matmul %181, %194, %cst_150 {dimension_numbers = #tpu.dot_dimension_numbers<[1], [0], [0], [1], [0, 0, 1, 1], [], []>} : vector<32x32xf32>, vector<32x6xf32>, vector<32x6xf32> -> vector<32x6xf32>
    %196 = vector.broadcast %183 : vector<32x1xf32> to vector<32x6xf32>
    %197 = arith.addf %195, %196 : vector<32x6xf32>
    %198 = arith.addf %197, %186 : vector<32x6xf32>
    %c0_151 = arith.constant 0 : index
    %c0_152 = arith.constant 0 : index
    %199 = vector.load %arg10[%c0_151, %c0_152] : memref<32x1xf32, #tpu.memory_space<vmem>>, vector<32x1xf32>
    %200 = vector.broadcast %199 : vector<32x1xf32> to vector<32x6xf32>
    %201 = arith.mulf %198, %200 : vector<32x6xf32>
    %c0_153 = arith.constant 0 : index
    %c0_154 = arith.constant 0 : index
    %202 = vector.load %arg11[%c0_153, %c0_154] : memref<32x1xf32, #tpu.memory_space<vmem>>, vector<32x1xf32>
    %203 = vector.broadcast %202 : vector<32x1xf32> to vector<32x6xf32>
    %204 = arith.addf %201, %203 : vector<32x6xf32>
    %cst_155 = arith.constant 0.000000e+00 : f32
    %205 = vector.broadcast %cst_155 : f32 to vector<32x6xf32>
    %206 = arith.cmpf ogt, %204, %205 : vector<32x6xf32>
    %cst_156 = arith.constant 0.00999999977 : f32
    %207 = vector.broadcast %cst_156 : f32 to vector<32x6xf32>
    %208 = arith.mulf %207, %204 : vector<32x6xf32>
    %209 = arith.select %206, %204, %208 : vector<32x6xi1>, vector<32x6xf32>
    %c0_157 = arith.constant 0 : index
    %c0_158 = arith.constant 0 : index
    %210 = vector.load %arg12[%c0_157, %c0_158] : memref<32x32xf32, #tpu.memory_space<vmem>>, vector<32x32xf32>
    %cst_159 = arith.constant dense<0.000000e+00> : vector<32x6xf32>
    %211 = tpu.matmul %210, %209, %cst_159 {dimension_numbers = #tpu.dot_dimension_numbers<[1], [0], [0], [1], [0, 0, 1, 1], [], []>} : vector<32x32xf32>, vector<32x6xf32>, vector<32x6xf32> -> vector<32x6xf32>
    %c0_160 = arith.constant 0 : index
    %c0_161 = arith.constant 0 : index
    %212 = vector.load %arg13[%c0_160, %c0_161] : memref<32x1xf32, #tpu.memory_space<vmem>>, vector<32x1xf32>
    %213 = vector.broadcast %212 : vector<32x1xf32> to vector<32x6xf32>
    %214 = arith.addf %211, %213 : vector<32x6xf32>
    %c0_162 = arith.constant 0 : index
    %c0_163 = arith.constant 0 : index
    %215 = vector.load %arg14[%c0_162, %c0_163] : memref<32x6xf32, #tpu.memory_space<vmem>>, vector<32x6xf32>
    tpu.vector_store %arg14[%c0_162, %c0_163], %214 {strides = array<i32>} : memref<32x6xf32, #tpu.memory_space<vmem>>, vector<32x6xf32>,
    return
  }
  func.func @transform_0(%arg0: i32) -> (i32, i32) {
    %c0_i32 = arith.constant 0 : i32
    %c0_i32_0 = arith.constant 0 : i32
    %c0_i32_1 = arith.constant 0 : i32
    return %c0_i32, %c0_i32_0 : i32, i32
  }
  func.func @transform_1(%arg0: i32) -> (i32, i32) {
    %c0_i32 = arith.constant 0 : i32
    %c0_i32_0 = arith.constant 0 : i32
    %c0_i32_1 = arith.constant 0 : i32
    return %c0_i32, %c0_i32_0 : i32, i32
  }
  func.func @transform_2(%arg0: i32) -> (i32, i32) {
    %c0_i32 = arith.constant 0 : i32
    %c0_i32_0 = arith.constant 0 : i32
    %c0_i32_1 = arith.constant 0 : i32
    return %c0_i32, %c0_i32_0 : i32, i32
  }
  func.func @transform_3(%arg0: i32) -> (i32, i32) {
    %c0_i32 = arith.constant 0 : i32
    %c0_i32_0 = arith.constant 0 : i32
    %c0_i32_1 = arith.constant 0 : i32
    return %c0_i32, %c0_i32_0 : i32, i32
  }
  func.func @transform_4(%arg0: i32) -> (i32, i32, i32) {
    %c0_i32 = arith.constant 0 : i32
    %c0_i32_0 = arith.constant 0 : i32
    %c0_i32_1 = arith.constant 0 : i32
    %c0_i32_2 = arith.constant 0 : i32
    return %c0_i32, %c0_i32_0, %c0_i32_1 : i32, i32, i32
  }
  func.func @transform_5(%arg0: i32) -> (i32, i32) {
    %c0_i32 = arith.constant 0 : i32
    %c0_i32_0 = arith.constant 0 : i32
    %c0_i32_1 = arith.constant 0 : i32
    return %c0_i32, %c0_i32_0 : i32, i32
  }
  func.func @transform_6(%arg0: i32) -> (i32, i32) {
    %c0_i32 = arith.constant 0 : i32
    %c0_i32_0 = arith.constant 0 : i32
    %c0_i32_1 = arith.constant 0 : i32
    return %c0_i32, %c0_i32_0 : i32, i32
  }
  func.func @transform_7(%arg0: i32) -> (i32, i32, i32) {
    %c0_i32 = arith.constant 0 : i32
    %c0_i32_0 = arith.constant 0 : i32
    %c0_i32_1 = arith.constant 0 : i32
    %c0_i32_2 = arith.constant 0 : i32
    return %c0_i32, %c0_i32_0, %c0_i32_1 : i32, i32, i32
  }
  func.func @transform_8(%arg0: i32) -> (i32, i32, i32) {
    %c0_i32 = arith.constant 0 : i32
    %c0_i32_0 = arith.constant 0 : i32
    %c0_i32_1 = arith.constant 0 : i32
    %c0_i32_2 = arith.constant 0 : i32
    return %c0_i32, %c0_i32_0, %c0_i32_1 : i32, i32, i32
  }
  func.func @transform_9(%arg0: i32) -> (i32, i32) {
    %c0_i32 = arith.constant 0 : i32
    %c0_i32_0 = arith.constant 0 : i32
    %c0_i32_1 = arith.constant 0 : i32
    return %c0_i32, %c0_i32_0 : i32, i32
  }
  func.func @transform_10(%arg0: i32) -> (i32, i32) {
    %c0_i32 = arith.constant 0 : i32
    %c0_i32_0 = arith.constant 0 : i32
    %c0_i32_1 = arith.constant 0 : i32
    return %c0_i32, %c0_i32_0 : i32, i32
  }
  func.func @transform_11(%arg0: i32) -> (i32, i32) {
    %c0_i32 = arith.constant 0 : i32
    %c0_i32_0 = arith.constant 0 : i32
    %c0_i32_1 = arith.constant 0 : i32
    return %c0_i32, %c0_i32_0 : i32, i32
  }
  func.func @transform_12(%arg0: i32) -> (i32, i32) {
    %c0_i32 = arith.constant 0 : i32
    %c0_i32_0 = arith.constant 0 : i32
    %c0_i32_1 = arith.constant 0 : i32
    return %c0_i32, %c0_i32_0 : i32, i32
  }
  func.func @transform_13(%arg0: i32) -> (i32, i32) {
    %c0_i32 = arith.constant 0 : i32
    %c0_i32_0 = arith.constant 0 : i32
    %c0_i32_1 = arith.constant 0 : i32
    return %c0_i32, %c0_i32_0 : i32, i32
  }
}

</mosaic_0001>

<bundles_post_ra>
// kernel: triplet_forward.6
= control target key start
LH: loop header
LB: loop body
LE: loop exit
PB: predicated region body
PF: predicated region fallthrough
CT: control target
= control target key end

     0   :  { %8 = vsyncpa [#allocation3], 0  ;;  %s1208_s0 = inlined_call_operand.vmem [shape: f32[9,1536], index: 0, kind: input, shape index: {}]   ;;  %s1209_s1 = inlined_call_operand.hbm [shape: f32[32,9], index: 1, kind: input, shape index: {}]   ;;  %s1210_s2 = inlined_call_operand.hbm [shape: f32[32,1], index: 2, kind: input, shape index: {}]   ;;  %s1211_s3 = inlined_call_operand.vmem [shape: f32[32,1536], index: 3, kind: output, shape index: {}]  }
   0x1   :  { %9 = vsyncpa [#allocation5], 0  ;;  %s820_s12 = smov [#allocation2]  }
   0x2   :  { %s17_s13 = sshll.u32 %s820_s12, 4  ;;  %s18_s13 = int_to_ptr.vmem [resolvable:$true] %s17_s13 }
   0x3   :  { %s784_s14 = scalar_lea.vmem %s18_s13, 512  ;;  %p789_p1 = scmp.lt.s32.totalorder %s18_s13, %s18_s13 }
   0x4   :  { %p785_p0 = scmp.ne.s32.totalorder %s18_s13, %s784_s14  ;;  %p790_p2 = scmp.lt.s32.totalorder %s784_s14, %s784_s14 }
   0x6   :  { %p791_p3 = por %p790_p2, %p789_p1 }
   0x8   :  { %p792_p4 = pnand %p791_p3, %p785_p0 }
   0xa   :  { %795 = shalt.err (!%p792_p4)
}
   0xb   :  { %s821_s15 = smov 128   ;;  %s822_s16 = smov 8  }
   0xc   :  { %23 = dma.hbm_to_vmem [thread:$0]  %s1209_s1, 512, %s18_s13, [#allocation3], %s821_s15, %s821_s15, %s822_s16  }
   0xd   :  { %s823_s19 = smov [#allocation4]  }
   0xe   :  { %s29_s20 = sshll.u32 %s823_s19, 4  ;;  %s30_s20 = int_to_ptr.vmem [resolvable:$true] %s29_s20 }
   0xf   :  { %s804_s21 = scalar_lea.vmem %s30_s20, 512  ;;  %p809_p6 = scmp.lt.s32.totalorder %s30_s20, %s30_s20 }
  0x10   :  { %p805_p5 = scmp.ne.s32.totalorder %s30_s20, %s804_s21  ;;  %p810_p7 = scmp.lt.s32.totalorder %s804_s21, %s804_s21 }
  0x12   :  { %p811_p8 = por %p810_p7, %p809_p6 }
  0x14   :  { %p812_p9 = pnand %p811_p8, %p805_p5 }
  0x16   :  { %815 = shalt.err (!%p812_p9)
}
  0x17   :  { %35 = dma.hbm_to_vmem [thread:$0]  %s1210_s2, 512, %s30_s20, [#allocation5], %s821_s15, %s821_s15, %s822_s16  }
  0x18   :  { %816 = dma.done.wait [#allocation3], 512  }
  0x19   :  { %817 = vsyncadd [#allocation3], 4294966784 }
  0x1a   :  { %818 = dma.done.wait [#allocation5], 512  }
  0x1b   :  { %819 = vsyncadd [#allocation5], 4294966784  ;;  %v824_v0 = vmov 0.0   ;;  %v825_v1 = vmov 0   ;;  %vm107_vm0 = vcmask 1040384   ;;  %v47_v6 = vld [vmem:[%s1208_s0 + $0x8] sm:$0xff] }
  0x1c   :  { %208 = vmatprep.mubr.f32.mxu0 %v824_v0  ;;  %297 = vmatprep.mubr.f32.mxu1 %v824_v0  ;;  %v59_v2 = vld [vmem:[%s1208_s0 + $0x68] sm:$0x1]  ;;  %v61_v3 = vld [vmem:[%s1208_s0 + $0x78] sm:$0x1]  ;;  %v58_v4 = vld [vmem:[%s1208_s0 + $0x60] sm:$0x1] }
  0x1d   :  { %774 = vset.pattern.permute.xlu0 %v825_v1  ;;  %775 = vset.pattern.permute.xlu1 %v825_v1  ;;  %v60_v5 = vld [vmem:[%s1208_s0 + $0x70] sm:$0x1]  ;;  %v49_v7 = vld [vmem:[%s1208_s0 + $0x18] sm:$0xff]  ;;  %v46_v8 = vld [vmem:[%s1208_s0] sm:$0xff]  ;;  %vm94_vm1 = vcmask 72704  }
  0x1e   :  { %732 = vmatprep.subr.msk.mxu0 %vm107_vm0, %v59_v2  ;;  %738 = vmatprep.subr.msk.mxu1 %vm107_vm0, %v61_v3  ;;  %v48_v9 = vld [vmem:[%s1208_s0 + $0x10] sm:$0xff]  ;;  %v882_v10 = vld [vmem:[#allocation2] sm:$0xff]  ;;  %v63_v11 = vld [vmem:[%s1208_s0 + $0x88] sm:$0x1] }
  0x1f   :  { %733 = vmatpush1.msk.msra.mxu0 %vm107_vm0, %v58_v4  ;;  %739 = vmatpush1.msk.msra.mxu1 %vm107_vm0, %v60_v5  ;;  %v65_v12 = vld [vmem:[%s1208_s0 + $0x98] sm:$0x1]  ;;  %v62_v13 = vld [vmem:[%s1208_s0 + $0x80] sm:$0x1]  ;;  %v64_v14 = vld [vmem:[%s1208_s0 + $0x90] sm:$0x1] }
  0x20   :  { %174 = vmatprep.subr.mxu0 %v47_v6  ;;  %263 = vmatprep.subr.mxu1 %v49_v7  ;;  %v902_v15 = vld [vmem:[#allocation2 + $0x8] sm:$0xff]  ;;  %v53_v17 = vld [vmem:[%s1208_s0 + $0x38] sm:$0xff]  ;;  %v50_v18 = vld [vmem:[%s1208_s0 + $0x20] sm:$0xff] }
  0x21   :  { %175 = vmatpush1.msra.mxu0 %v46_v8  ;;  %264 = vmatpush1.msra.mxu1 %v48_v9  ;;  %v51_v16 = vld [vmem:[%s1208_s0 + $0x28] sm:$0xff]  ;;  %v52_v19 = vld [vmem:[%s1208_s0 + $0x30] sm:$0xff]  ;;  %v69_v22 = vld [vmem:[%s1208_s0 + $0xb8] sm:$0x1] }
  0x22   :  { %734 = vmatmul.mubr.msk.f32.vlgmr.msra.gmra.mxu0 %vm94_vm1, %v882_v10  ;;  %740 = vmatmul.mubr.msk.f32.vlgmr.msra.gmra.mxu1 %vm94_vm1, %v882_v10  ;;  %v926_v20 = vld [vmem:[#allocation2 + $0x10] sm:$0xff]  ;;  %v67_v21 = vld [vmem:[%s1208_s0 + $0xa8] sm:$0x1]  ;;  %v70_v23 = vld [vmem:[#allocation4] sm:$0xff] }
  0x23   :  { %744 = vmatprep.subr.msk.mxu0 %vm107_vm0, %v63_v11  ;;  %750 = vmatprep.subr.msk.mxu1 %vm107_vm0, %v65_v12  ;;  %v72_v24 = vld [vmem:[#allocation4 + $0x10] sm:$0xff]  ;;  %v45_v25 = vld [vmem:[#allocation2 + $0x18] sm:$0xff]  ;;  %v71_v26 = vld [vmem:[#allocation4 + $0x8] sm:$0xff] }
  0x24   :  { %745 = vmatpush1.msk.msra.mxu0 %vm107_vm0, %v62_v13  ;;  %751 = vmatpush1.msk.msra.mxu1 %vm107_vm0, %v64_v14  ;;  %v73_v27 = vld [vmem:[#allocation4 + $0x18] sm:$0xff]  ;;  %v66_v28 = vld [vmem:[%s1208_s0 + $0xa0] sm:$0x1]  ;;  %v68_v29 = vld [vmem:[%s1208_s0 + $0xb0] sm:$0x1] }
  0x25   :  { %214 = vmatprep.mubr.f32.mxu0 %v824_v0  ;;  %303 = vmatprep.mubr.f32.mxu1 %v824_v0  ;;  %v55_v30 = vld [vmem:[%s1208_s0 + $0x48] sm:$0xff]  ;;  %v57_v31 = vld [vmem:[%s1208_s0 + $0x58] sm:$0xff]  ;;  %v54_v32 = vld [vmem:[%s1208_s0 + $0x40] sm:$0xff] }
  0x26   :  { %735 = vmatmul.mubr.msk.f32.gmra.mxu0 %vm94_vm1, %v902_v15  ;;  %741 = vmatmul.mubr.msk.f32.gmra.mxu1 %vm94_vm1, %v902_v15  ;;  %v56_v33 = vld [vmem:[%s1208_s0 + $0x50] sm:$0xff] }
  0x27   :  { %220 = vmatprep.mubr.f32.mxu0 %v824_v0  ;;  %309 = vmatprep.mubr.f32.mxu1 %v824_v0 }
  0x28   :  { %352 = vmatprep.subr.mxu0 %v51_v16  ;;  %441 = vmatprep.subr.mxu1 %v53_v17 }
  0x29   :  { %353 = vmatpush1.msra.mxu0 %v50_v18  ;;  %442 = vmatpush1.msra.mxu1 %v52_v19 }
  0x2a   :  { %736 = vmatmul.mubr.msk.f32.gmra.mxu0 %vm94_vm1, %v926_v20  ;;  %742 = vmatmul.mubr.msk.f32.gmra.mxu1 %vm94_vm1, %v926_v20 }
  0x2b   :  { %226 = vmatprep.mubr.f32.mxu0 %v824_v0  ;;  %315 = vmatprep.mubr.f32.mxu1 %v824_v0 }
  0x2c   :  { %756 = vmatprep.subr.msk.mxu0 %vm107_vm0, %v67_v21  ;;  %762 = vmatprep.subr.msk.mxu1 %vm107_vm0, %v69_v22 }
  0x2d   :  { %76 = vperm.xlu0 %774, %v70_v23   ;;  %86 = vperm.xlu1 %775, %v72_v24  }
  0x2e   :  { %737 = vmatmul.mubr.msk.f32.gmra.mxu0 %vm94_vm1, %v45_v25  ;;  %743 = vmatmul.mubr.msk.f32.gmra.mxu1 %vm94_vm1, %v45_v25 }
  0x2f   :  { %386 = vmatprep.mubr.f32.mxu0 %v824_v0  ;;  %475 = vmatprep.mubr.f32.mxu1 %v824_v0 }
  0x31   :  { %81 = vperm.xlu0 %774, %v71_v26   ;;  %91 = vperm.xlu1 %775, %v73_v27  }
  0x32   :  { %746 = vmatmul.mubr.msk.f32.vlgmr.msra.gmra.mxu0 %vm94_vm1, %v882_v10  ;;  %752 = vmatmul.mubr.msk.f32.vlgmr.msra.gmra.mxu1 %vm94_vm1, %v882_v10 }
  0x33   :  { %757 = vmatpush1.msk.msra.mxu0 %vm107_vm0, %v66_v28  ;;  %763 = vmatpush1.msk.msra.mxu1 %vm107_vm0, %v68_v29 }
  0x34   :  { %392 = vmatprep.mubr.f32.mxu0 %v824_v0  ;;  %481 = vmatprep.mubr.f32.mxu1 %v824_v0 }
  0x35   :  { %530 = vmatprep.subr.mxu0 %v55_v30  ;;  %619 = vmatprep.subr.mxu1 %v57_v31 }
  0x36   :  { %747 = vmatmul.mubr.msk.f32.gmra.mxu0 %vm94_vm1, %v902_v15  ;;  %753 = vmatmul.mubr.msk.f32.gmra.mxu1 %vm94_vm1, %v902_v15 }
  0x37   :  { %398 = vmatprep.mubr.f32.mxu0 %v824_v0  ;;  %487 = vmatprep.mubr.f32.mxu1 %v824_v0 }
  0x38   :  { %531 = vmatpush1.msra.mxu0 %v54_v32  ;;  %620 = vmatpush1.msra.mxu1 %v56_v33 }
  0x3a   :  { %748 = vmatmul.mubr.msk.f32.gmra.mxu0 %vm94_vm1, %v926_v20  ;;  %754 = vmatmul.mubr.msk.f32.gmra.mxu1 %vm94_vm1, %v926_v20 }
  0x3b   :  { %404 = vmatprep.mubr.f32.mxu0 %v824_v0  ;;  %493 = vmatprep.mubr.f32.mxu1 %v824_v0 }
  0x3e   :  { %749 = vmatmul.mubr.msk.f32.gmra.mxu0 %vm94_vm1, %v45_v25  ;;  %755 = vmatmul.mubr.msk.f32.gmra.mxu1 %vm94_vm1, %v45_v25 }
  0x3f   :  { %564 = vmatprep.mubr.f32.mxu0 %v824_v0  ;;  %653 = vmatprep.mubr.f32.mxu1 %v824_v0 }
  0x42   :  { %758 = vmatmul.mubr.msk.f32.vlgmr.msra.gmra.mxu0 %vm94_vm1, %v882_v10  ;;  %764 = vmatmul.mubr.msk.f32.vlgmr.msra.gmra.mxu1 %vm94_vm1, %v882_v10 }
  0x43   :  { %570 = vmatprep.mubr.f32.mxu0 %v824_v0  ;;  %659 = vmatprep.mubr.f32.mxu1 %v824_v0 }
  0x46   :  { %759 = vmatmul.mubr.msk.f32.gmra.mxu0 %vm94_vm1, %v902_v15  ;;  %765 = vmatmul.mubr.msk.f32.gmra.mxu1 %vm94_vm1, %v902_v15 }
  0x47   :  { %576 = vmatprep.mubr.f32.mxu0 %v824_v0  ;;  %665 = vmatprep.mubr.f32.mxu1 %v824_v0 }
  0x4a   :  { %760 = vmatmul.mubr.msk.f32.gmra.mxu0 %vm94_vm1, %v926_v20  ;;  %766 = vmatmul.mubr.msk.f32.gmra.mxu1 %vm94_vm1, %v926_v20 }
  0x4b   :  { %582 = vmatprep.mubr.f32.mxu0 %v824_v0  ;;  %671 = vmatprep.mubr.f32.mxu1 %v824_v0 }
  0x4e   :  { %761 = vmatmul.mubr.msk.f32.gmra.mxu0 %vm94_vm1, %v45_v25  ;;  %767 = vmatmul.mubr.msk.f32.gmra.mxu1 %vm94_vm1, %v45_v25 }
  0xa8   :  { %v1008_v34 = vpop.permute.xlu0 %76  ;;  %v1022_v44 = vpop.permute.xlu1 %86 }
  0xac   :  { %v1012_v39 = vpop.permute.xlu0 %81  ;;  %v1048_v57 = vpop.permute.xlu1 %91 }
  0xe2   :  { %v210_v35 = vpop.f32.mrf.mxu0  ;;  %v299_v36 = vpop.f32.mrf.mxu1 }
  0xe3   :  { %v211_v37 = vadd.f32 %v210_v35, %v1008_v34  ;;  %v300_v38 = vadd.f32 %v299_v36, %v1008_v34 }
  0xe4   :  { %v212_v40 = vpop.f32.mrf.mxu0  ;;  %v301_v41 = vpop.f32.mrf.mxu1 }
  0xe5   :  { %678 = vst [vmem:[%s1211_s3] sm:$0xff] %v211_v37  ;;  %680 = vst [vmem:[%s1211_s3 + $0x10] sm:$0xff] %v300_v38  ;;  %v213_v42 = vadd.f32 %v212_v40, %v1008_v34  ;;  %v302_v43 = vadd.f32 %v301_v41, %v1008_v34 }
  0xe6   :  { %v216_v45 = vpop.f32.mrf.mxu0  ;;  %v305_v46 = vpop.f32.mrf.mxu1 }
  0xe7   :  { %679 = vst [vmem:[%s1211_s3 + $0x8] sm:$0xff] %v213_v42  ;;  %681 = vst [vmem:[%s1211_s3 + $0x18] sm:$0xff] %v302_v43  ;;  %v217_v47 = vadd.f32 %v216_v45, %v1012_v39  ;;  %v306_v48 = vadd.f32 %v305_v46, %v1012_v39 }
  0xe8   :  { %v218_v49 = vpop.f32.mrf.mxu0  ;;  %v307_v50 = vpop.f32.mrf.mxu1 }
  0xe9   :  { %690 = vst [vmem:[%s1211_s3 + $0x60] sm:$0xff] %v217_v47  ;;  %692 = vst [vmem:[%s1211_s3 + $0x70] sm:$0xff] %v306_v48  ;;  %v219_v51 = vadd.f32 %v218_v49, %v1012_v39  ;;  %v308_v52 = vadd.f32 %v307_v50, %v1012_v39 }
  0xea   :  { %v222_v53 = vpop.f32.mrf.mxu0  ;;  %v311_v54 = vpop.f32.mrf.mxu1 }
  0xeb   :  { %691 = vst [vmem:[%s1211_s3 + $0x68] sm:$0xff] %v219_v51  ;;  %693 = vst [vmem:[%s1211_s3 + $0x78] sm:$0xff] %v308_v52  ;;  %v223_v55 = vadd.f32 %v222_v53, %v1022_v44  ;;  %v312_v56 = vadd.f32 %v311_v54, %v1022_v44 }
  0xec   :  { %v224_v58 = vpop.f32.mrf.mxu0  ;;  %v313_v59 = vpop.f32.mrf.mxu1 }
  0xed   :  { %702 = vst [vmem:[%s1211_s3 + $0xc0] sm:$0xff] %v223_v55  ;;  %704 = vst [vmem:[%s1211_s3 + $0xd0] sm:$0xff] %v312_v56  ;;  %v225_v60 = vadd.f32 %v224_v58, %v1022_v44  ;;  %v314_v61 = vadd.f32 %v313_v59, %v1022_v44 }
  0xee   :  { %v228_v62 = vpop.f32.mrf.mxu0  ;;  %v317_v63 = vpop.f32.mrf.mxu1 }
  0xef   :  { %703 = vst [vmem:[%s1211_s3 + $0xc8] sm:$0xff] %v225_v60  ;;  %705 = vst [vmem:[%s1211_s3 + $0xd8] sm:$0xff] %v314_v61  ;;  %v229_v0 = vadd.f32 %v228_v62, %v1048_v57  ;;  %v318_v1 = vadd.f32 %v317_v63, %v1048_v57 }
  0xf0   :  { %v230_v2 = vpop.f32.mrf.mxu0  ;;  %v319_v3 = vpop.f32.mrf.mxu1 }
  0xf1   :  { %714 = vst [vmem:[%s1211_s3 + $0x120] sm:$0xff] %v229_v0  ;;  %716 = vst [vmem:[%s1211_s3 + $0x130] sm:$0xff] %v318_v1  ;;  %v231_v4 = vadd.f32 %v230_v2, %v1048_v57  ;;  %v320_v5 = vadd.f32 %v319_v3, %v1048_v57 }
  0xf2   :  { %v388_v6 = vpop.f32.mrf.mxu0  ;;  %v477_v7 = vpop.f32.mrf.mxu1 }
  0xf3   :  { %715 = vst [vmem:[%s1211_s3 + $0x128] sm:$0xff] %v231_v4  ;;  %717 = vst [vmem:[%s1211_s3 + $0x138] sm:$0xff] %v320_v5  ;;  %v389_v8 = vadd.f32 %v388_v6, %v1008_v34  ;;  %v478_v9 = vadd.f32 %v477_v7, %v1008_v34 }
  0xf4   :  { %v390_v10 = vpop.f32.mrf.mxu0  ;;  %v479_v11 = vpop.f32.mrf.mxu1 }
  0xf5   :  { %682 = vst [vmem:[%s1211_s3 + $0x20] sm:$0xff] %v389_v8  ;;  %684 = vst [vmem:[%s1211_s3 + $0x30] sm:$0xff] %v478_v9  ;;  %v391_v12 = vadd.f32 %v390_v10, %v1008_v34  ;;  %v480_v13 = vadd.f32 %v479_v11, %v1008_v34 }
  0xf6   :  { %v394_v14 = vpop.f32.mrf.mxu0  ;;  %v483_v15 = vpop.f32.mrf.mxu1 }
  0xf7   :  { %683 = vst [vmem:[%s1211_s3 + $0x28] sm:$0xff] %v391_v12  ;;  %685 = vst [vmem:[%s1211_s3 + $0x38] sm:$0xff] %v480_v13  ;;  %v395_v16 = vadd.f32 %v394_v14, %v1012_v39  ;;  %v484_v17 = vadd.f32 %v483_v15, %v1012_v39 }
  0xf8   :  { %v396_v18 = vpop.f32.mrf.mxu0  ;;  %v485_v19 = vpop.f32.mrf.mxu1 }
  0xf9   :  { %694 = vst [vmem:[%s1211_s3 + $0x80] sm:$0xff] %v395_v16  ;;  %696 = vst [vmem:[%s1211_s3 + $0x90] sm:$0xff] %v484_v17  ;;  %v397_v20 = vadd.f32 %v396_v18, %v1012_v39  ;;  %v486_v21 = vadd.f32 %v485_v19, %v1012_v39 }
  0xfa   :  { %v400_v22 = vpop.f32.mrf.mxu0  ;;  %v489_v23 = vpop.f32.mrf.mxu1 }
  0xfb   :  { %695 = vst [vmem:[%s1211_s3 + $0x88] sm:$0xff] %v397_v20  ;;  %697 = vst [vmem:[%s1211_s3 + $0x98] sm:$0xff] %v486_v21  ;;  %v401_v24 = vadd.f32 %v400_v22, %v1022_v44  ;;  %v490_v25 = vadd.f32 %v489_v23, %v1022_v44 }
  0xfc   :  { %v402_v26 = vpop.f32.mrf.mxu0  ;;  %v491_v27 = vpop.f32.mrf.mxu1 }
  0xfd   :  { %706 = vst [vmem:[%s1211_s3 + $0xe0] sm:$0xff] %v401_v24  ;;  %708 = vst [vmem:[%s1211_s3 + $0xf0] sm:$0xff] %v490_v25  ;;  %v403_v28 = vadd.f32 %v402_v26, %v1022_v44  ;;  %v492_v29 = vadd.f32 %v491_v27, %v1022_v44 }
  0xfe   :  { %v406_v30 = vpop.f32.mrf.mxu0  ;;  %v495_v31 = vpop.f32.mrf.mxu1 }
  0xff   :  { %707 = vst [vmem:[%s1211_s3 + $0xe8] sm:$0xff] %v403_v28  ;;  %709 = vst [vmem:[%s1211_s3 + $0xf8] sm:$0xff] %v492_v29  ;;  %v407_v32 = vadd.f32 %v406_v30, %v1048_v57  ;;  %v496_v33 = vadd.f32 %v495_v31, %v1048_v57 }
 0x100   :  { %v408_v35 = vpop.f32.mrf.mxu0  ;;  %v497_v36 = vpop.f32.mrf.mxu1 }
 0x101   :  { %718 = vst [vmem:[%s1211_s3 + $0x140] sm:$0xff] %v407_v32  ;;  %720 = vst [vmem:[%s1211_s3 + $0x150] sm:$0xff] %v496_v33  ;;  %v409_v37 = vadd.f32 %v408_v35, %v1048_v57  ;;  %v498_v38 = vadd.f32 %v497_v36, %v1048_v57 }
 0x102   :  { %v566_v40 = vpop.f32.mrf.mxu0  ;;  %v655_v41 = vpop.f32.mrf.mxu1 }
 0x103   :  { %719 = vst [vmem:[%s1211_s3 + $0x148] sm:$0xff] %v409_v37  ;;  %721 = vst [vmem:[%s1211_s3 + $0x158] sm:$0xff] %v498_v38  ;;  %v567_v42 = vadd.f32 %v566_v40, %v1008_v34  ;;  %v656_v43 = vadd.f32 %v655_v41, %v1008_v34 }
 0x104   :  { %v568_v45 = vpop.f32.mrf.mxu0  ;;  %v657_v46 = vpop.f32.mrf.mxu1 }
 0x105   :  { %686 = vst [vmem:[%s1211_s3 + $0x40] sm:$0xff] %v567_v42  ;;  %688 = vst [vmem:[%s1211_s3 + $0x50] sm:$0xff] %v656_v43  ;;  %v569_v47 = vadd.f32 %v568_v45, %v1008_v34  ;;  %v658_v48 = vadd.f32 %v657_v46, %v1008_v34 }
 0x106   :  { %v572_v49 = vpop.f32.mrf.mxu0  ;;  %v661_v50 = vpop.f32.mrf.mxu1 }
 0x107   :  { %687 = vst [vmem:[%s1211_s3 + $0x48] sm:$0xff] %v569_v47  ;;  %689 = vst [vmem:[%s1211_s3 + $0x58] sm:$0xff] %v658_v48  ;;  %v573_v51 = vadd.f32 %v572_v49, %v1012_v39  ;;  %v662_v52 = vadd.f32 %v661_v50, %v1012_v39 }
 0x108   :  { %v574_v53 = vpop.f32.mrf.mxu0  ;;  %v663_v54 = vpop.f32.mrf.mxu1 }
 0x109   :  { %698 = vst [vmem:[%s1211_s3 + $0xa0] sm:$0xff] %v573_v51  ;;  %700 = vst [vmem:[%s1211_s3 + $0xb0] sm:$0xff] %v662_v52  ;;  %v575_v34 = vadd.f32 %v574_v53, %v1012_v39  ;;  %v664_v55 = vadd.f32 %v663_v54, %v1012_v39 }
 0x10a   :  { %v578_v56 = vpop.f32.mrf.mxu0  ;;  %v667_v58 = vpop.f32.mrf.mxu1 }
 0x10b   :  { %699 = vst [vmem:[%s1211_s3 + $0xa8] sm:$0xff] %v575_v34  ;;  %701 = vst [vmem:[%s1211_s3 + $0xb8] sm:$0xff] %v664_v55  ;;  %v579_v59 = vadd.f32 %v578_v56, %v1022_v44  ;;  %v668_v60 = vadd.f32 %v667_v58, %v1022_v44 }
 0x10c   :  { %v580_v61 = vpop.f32.mrf.mxu0  ;;  %v669_v62 = vpop.f32.mrf.mxu1 }
 0x10d   :  { %710 = vst [vmem:[%s1211_s3 + $0x100] sm:$0xff] %v579_v59  ;;  %712 = vst [vmem:[%s1211_s3 + $0x110] sm:$0xff] %v668_v60  ;;  %v581_v39 = vadd.f32 %v580_v61, %v1022_v44  ;;  %v670_v63 = vadd.f32 %v669_v62, %v1022_v44 }
 0x10e   :  { %v584_v0 = vpop.f32.mrf.mxu0  ;;  %v673_v1 = vpop.f32.mrf.mxu1 }
 0x10f   :  { %711 = vst [vmem:[%s1211_s3 + $0x108] sm:$0xff] %v581_v39  ;;  %713 = vst [vmem:[%s1211_s3 + $0x118] sm:$0xff] %v670_v63  ;;  %v585_v2 = vadd.f32 %v584_v0, %v1048_v57  ;;  %v674_v3 = vadd.f32 %v673_v1, %v1048_v57 }
 0x110   :  { %v586_v4 = vpop.f32.mrf.mxu0  ;;  %v675_v5 = vpop.f32.mrf.mxu1 }
 0x111   :  { %722 = vst [vmem:[%s1211_s3 + $0x160] sm:$0xff] %v585_v2  ;;  %724 = vst [vmem:[%s1211_s3 + $0x170] sm:$0xff] %v674_v3  ;;  %v587_v44 = vadd.f32 %v586_v4, %v1048_v57  ;;  %v676_v6 = vadd.f32 %v675_v5, %v1048_v57 }
 0x113   :  { %723 = vst [vmem:[%s1211_s3 + $0x168] sm:$0xff] %v587_v44  ;;  %725 = vst [vmem:[%s1211_s3 + $0x178] sm:$0xff] %v676_v6 }
 0x114   :  { %730 = vsyncpa [#allocation3], 1 }
 0x115   :  { %731 = vsyncpa [#allocation5], 1 }

// kernel: triplet_forward.8
= control target key start
LH: loop header
LB: loop body
LE: loop exit
PB: predicated region body
PF: predicated region fallthrough
CT: control target
= control target key end

     0   :  { %v634_v3 = vmov 0.0   ;;  %v635_v4 = vmov 0   ;;  %vm188_vm0 = vcmask 261120   ;;  %vm602_vm1 = vcmask 719872   ;;  %s1228_s1 = inlined_call_operand.vmem [shape: f32[288,216], index: 1, kind: input, shape index: {}]   ;;  %s1229_s3 = inlined_call_operand.vmem [shape: f32[32,288], index: 3, kind: input, shape index: {}]   ;;  %s1230_s0 = inlined_call_operand.vmem [shape: f32[288,216], index: 0, kind: input, shape index: {}]   ;;  %s1231_s2 = inlined_call_operand.vmem [shape: f32[32,288], index: 2, kind: input, shape index: {}]   ;;  %s1232_s4 = inlined_call_operand.vmem [shape: f32[32,1], index: 4, kind: input, shape index: {}]   ;;  %s1233_s5 = inlined_call_operand.vmem [shape: f32[32,216], index: 5, kind: output, shape index: {}]  }
   0x1   :  { %v147_v0 = vld [vmem:[%s1228_s1 + $0xf8] sm:$0xff]  ;;  %v146_v2 = vld [vmem:[%s1228_s1 + $0xf0] sm:$0xff]  ;;  %354 = vmatprep.mubr.f32.mxu1 %v634_v3  ;;  %632 = vset.pattern.permute.xlu0 %v635_v4  ;;  %v145_v6 = vld [vmem:[%s1228_s1 + $0xe8] sm:$0xff] }
   0x2   :  { %v187_v1 = vld [vmem:[%s1228_s1 + $0x238] sm:$0xff]  ;;  %201 = vmatprep.subr.mxu0 %v147_v0  ;;  %v186_v5 = vld [vmem:[%s1228_s1 + $0x230] sm:$0xff]  ;;  %v185_v7 = vld [vmem:[%s1228_s1 + $0x228] sm:$0xff]  ;;  %633 = vset.pattern.permute.xlu1 %v635_v4 }
   0x3   :  { %314 = vmatprep.subr.mxu1 %v187_v1  ;;  %202 = vmatpush1.msra.mxu0 %v146_v2  ;;  %v144_v8 = vld [vmem:[%s1228_s1 + $0xe0] sm:$0xff]  ;;  %v143_v10 = vld [vmem:[%s1228_s1 + $0xd8] sm:$0xff]  ;;  %v142_v12 = vld [vmem:[%s1228_s1 + $0xd0] sm:$0xff] }
   0x4   :  { %315 = vmatpush1.msra.mxu1 %v186_v5  ;;  %v184_v9 = vld [vmem:[%s1228_s1 + $0x220] sm:$0xff]  ;;  %203 = vmatprep.subr.mxu0 %v145_v6  ;;  %v183_v11 = vld [vmem:[%s1228_s1 + $0x218] sm:$0xff]  ;;  %v182_v13 = vld [vmem:[%s1228_s1 + $0x210] sm:$0xff] }
   0x5   :  { %316 = vmatprep.subr.mxu1 %v185_v7  ;;  %204 = vmatpush1.msra.mxu0 %v144_v8  ;;  %v141_v14 = vld [vmem:[%s1228_s1 + $0xc8] sm:$0xff]  ;;  %v140_v16 = vld [vmem:[%s1228_s1 + $0xc0] sm:$0xff]  ;;  %v139_v18 = vld [vmem:[%s1228_s1 + $0xb8] sm:$0xff] }
   0x6   :  { %317 = vmatpush1.msra.mxu1 %v184_v9  ;;  %v181_v15 = vld [vmem:[%s1228_s1 + $0x208] sm:$0xff]  ;;  %205 = vmatprep.subr.mxu0 %v143_v10  ;;  %v180_v17 = vld [vmem:[%s1228_s1 + $0x200] sm:$0xff]  ;;  %v106_v19 = vld [vmem:[%s1229_s3 + $0x10] sm:$0xff] }
   0x7   :  { %318 = vmatprep.subr.mxu1 %v183_v11  ;;  %206 = vmatpush1.msra.mxu0 %v142_v12  ;;  %v63_v20 = vld [vmem:[%s1230_s0 + $0xf8] sm:$0xff]  ;;  %v138_v21 = vld [vmem:[%s1228_s1 + $0xb0] sm:$0xff]  ;;  %v137_v23 = vld [vmem:[%s1228_s1 + $0xa8] sm:$0xff] }
   0x8   :  { %319 = vmatpush1.msra.mxu1 %v182_v13  ;;  %207 = vmatprep.subr.mxu0 %v141_v14  ;;  %v62_v22 = vld [vmem:[%s1230_s0 + $0xf0] sm:$0xff]  ;;  %v61_v24 = vld [vmem:[%s1230_s0 + $0xe8] sm:$0xff]  ;;  %v136_v25 = vld [vmem:[%s1228_s1 + $0xa0] sm:$0xff] }
   0x9   :  { %320 = vmatprep.subr.mxu1 %v181_v15  ;;  %208 = vmatpush1.msra.mxu0 %v140_v16  ;;  %v60_v26 = vld [vmem:[%s1230_s0 + $0xe0] sm:$0xff]  ;;  %v135_v27 = vld [vmem:[%s1228_s1 + $0x98] sm:$0xff]  ;;  %v134_v29 = vld [vmem:[%s1228_s1 + $0x90] sm:$0xff] }
   0xa   :  { %321 = vmatpush1.msra.mxu1 %v180_v17  ;;  %209 = vmatprep.subr.mxu0 %v139_v18  ;;  %v59_v28 = vld [vmem:[%s1230_s0 + $0xd8] sm:$0xff]  ;;  %v58_v30 = vld [vmem:[%s1230_s0 + $0xd0] sm:$0xff]  ;;  %v133_v31 = vld [vmem:[%s1228_s1 + $0x88] sm:$0xff] }
   0xb   :  { %614 = vmatmul.mubr.msk.f32.vlgmr.msra.gmra.mxu1 %vm188_vm0, %v106_v19  ;;  %391 = vmatprep.subr.mxu1 %v63_v20  ;;  %v57_v32 = vld [vmem:[%s1230_s0 + $0xc8] sm:$0xff]  ;;  %v132_v33 = vld [vmem:[%s1228_s1 + $0x80] sm:$0xff]  ;;  %v131_v35 = vld [vmem:[%s1228_s1 + $0x78] sm:$0xff] }
   0xc   :  { %210 = vmatpush1.msra.mxu0 %v138_v21  ;;  %392 = vmatpush1.msra.mxu1 %v62_v22  ;;  %v56_v34 = vld [vmem:[%s1230_s0 + $0xc0] sm:$0xff]  ;;  %v55_v36 = vld [vmem:[%s1230_s0 + $0xb8] sm:$0xff]  ;;  %v130_v37 = vld [vmem:[%s1228_s1 + $0x70] sm:$0xff] }
   0xd   :  { %211 = vmatprep.subr.mxu0 %v137_v23  ;;  %393 = vmatprep.subr.mxu1 %v61_v24  ;;  %v54_v38 = vld [vmem:[%s1230_s0 + $0xb0] sm:$0xff]  ;;  %v129_v39 = vld [vmem:[%s1228_s1 + $0x68] sm:$0xff]  ;;  %v128_v41 = vld [vmem:[%s1228_s1 + $0x60] sm:$0xff] }
   0xe   :  { %212 = vmatpush1.msra.mxu0 %v136_v25  ;;  %394 = vmatpush1.msra.mxu1 %v60_v26  ;;  %v53_v40 = vld [vmem:[%s1230_s0 + $0xa8] sm:$0xff]  ;;  %v52_v42 = vld [vmem:[%s1230_s0 + $0xa0] sm:$0xff]  ;;  %v127_v43 = vld [vmem:[%s1228_s1 + $0x58] sm:$0xff] }
   0xf   :  { %213 = vmatprep.subr.mxu0 %v135_v27  ;;  %395 = vmatprep.subr.mxu1 %v59_v28  ;;  %v51_v44 = vld [vmem:[%s1230_s0 + $0x98] sm:$0xff]  ;;  %v126_v45 = vld [vmem:[%s1228_s1 + $0x50] sm:$0xff]  ;;  %v125_v47 = vld [vmem:[%s1228_s1 + $0x48] sm:$0xff] }
  0x10   :  { %214 = vmatpush1.msra.mxu0 %v134_v29  ;;  %396 = vmatpush1.msra.mxu1 %v58_v30  ;;  %v50_v46 = vld [vmem:[%s1230_s0 + $0x90] sm:$0xff]  ;;  %v49_v48 = vld [vmem:[%s1230_s0 + $0x88] sm:$0xff]  ;;  %v124_v49 = vld [vmem:[%s1228_s1 + $0x40] sm:$0xff] }
  0x11   :  { %215 = vmatprep.subr.mxu0 %v133_v31  ;;  %397 = vmatprep.subr.mxu1 %v57_v32  ;;  %v48_v50 = vld [vmem:[%s1230_s0 + $0x80] sm:$0xff]  ;;  %v123_v51 = vld [vmem:[%s1228_s1 + $0x38] sm:$0xff]  ;;  %v122_v53 = vld [vmem:[%s1228_s1 + $0x30] sm:$0xff] }
  0x12   :  { %216 = vmatpush1.msra.mxu0 %v132_v33  ;;  %398 = vmatpush1.msra.mxu1 %v56_v34  ;;  %v47_v52 = vld [vmem:[%s1230_s0 + $0x78] sm:$0xff]  ;;  %v46_v54 = vld [vmem:[%s1230_s0 + $0x70] sm:$0xff]  ;;  %v121_v55 = vld [vmem:[%s1228_s1 + $0x28] sm:$0xff] }
  0x13   :  { %217 = vmatprep.subr.mxu0 %v131_v35  ;;  %399 = vmatprep.subr.mxu1 %v55_v36  ;;  %v45_v56 = vld [vmem:[%s1230_s0 + $0x68] sm:$0xff]  ;;  %v120_v57 = vld [vmem:[%s1228_s1 + $0x20] sm:$0xff]  ;;  %v119_v59 = vld [vmem:[%s1228_s1 + $0x18] sm:$0xff] }
  0x14   :  { %218 = vmatpush1.msra.mxu0 %v130_v37  ;;  %400 = vmatpush1.msra.mxu1 %v54_v38  ;;  %v44_v58 = vld [vmem:[%s1230_s0 + $0x60] sm:$0xff]  ;;  %v43_v60 = vld [vmem:[%s1230_s0 + $0x58] sm:$0xff]  ;;  %v118_v61 = vld [vmem:[%s1228_s1 + $0x10] sm:$0xff] }
  0x15   :  { %219 = vmatprep.subr.mxu0 %v129_v39  ;;  %401 = vmatprep.subr.mxu1 %v53_v40  ;;  %v42_v62 = vld [vmem:[%s1230_s0 + $0x50] sm:$0xff]  ;;  %v117_v63 = vld [vmem:[%s1228_s1 + $0x8] sm:$0xff]  ;;  %v116_v1 = vld [vmem:[%s1228_s1] sm:$0xff] }
  0x16   :  { %220 = vmatpush1.msra.mxu0 %v128_v41  ;;  %402 = vmatpush1.msra.mxu1 %v52_v42  ;;  %v41_v0 = vld [vmem:[%s1230_s0 + $0x48] sm:$0xff]  ;;  %v40_v2 = vld [vmem:[%s1230_s0 + $0x40] sm:$0xff]  ;;  %v179_v5 = vld [vmem:[%s1228_s1 + $0x1f8] sm:$0xff] }
  0x17   :  { %221 = vmatprep.subr.mxu0 %v127_v43  ;;  %403 = vmatprep.subr.mxu1 %v51_v44  ;;  %v39_v6 = vld [vmem:[%s1230_s0 + $0x38] sm:$0xff]  ;;  %v178_v7 = vld [vmem:[%s1228_s1 + $0x1f0] sm:$0xff]  ;;  %v177_v9 = vld [vmem:[%s1228_s1 + $0x1e8] sm:$0xff] }
  0x18   :  { %222 = vmatpush1.msra.mxu0 %v126_v45  ;;  %404 = vmatpush1.msra.mxu1 %v50_v46  ;;  %v38_v8 = vld [vmem:[%s1230_s0 + $0x30] sm:$0xff]  ;;  %v37_v10 = vld [vmem:[%s1230_s0 + $0x28] sm:$0xff]  ;;  %v176_v11 = vld [vmem:[%s1228_s1 + $0x1e0] sm:$0xff] }
  0x19   :  { %223 = vmatprep.subr.mxu0 %v125_v47  ;;  %405 = vmatprep.subr.mxu1 %v49_v48  ;;  %v36_v12 = vld [vmem:[%s1230_s0 + $0x20] sm:$0xff]  ;;  %v175_v13 = vld [vmem:[%s1228_s1 + $0x1d8] sm:$0xff]  ;;  %v174_v15 = vld [vmem:[%s1228_s1 + $0x1d0] sm:$0xff] }
  0x1a   :  { %224 = vmatpush1.msra.mxu0 %v124_v49  ;;  %406 = vmatpush1.msra.mxu1 %v48_v50  ;;  %v35_v14 = vld [vmem:[%s1230_s0 + $0x18] sm:$0xff]  ;;  %v34_v16 = vld [vmem:[%s1230_s0 + $0x10] sm:$0xff]  ;;  %v173_v17 = vld [vmem:[%s1228_s1 + $0x1c8] sm:$0xff] }
  0x1b   :  { %225 = vmatprep.subr.mxu0 %v123_v51  ;;  %407 = vmatprep.subr.mxu1 %v47_v52  ;;  %v33_v18 = vld [vmem:[%s1230_s0 + $0x8] sm:$0xff]  ;;  %v172_v19 = vld [vmem:[%s1228_s1 + $0x1c0] sm:$0xff]  ;;  %v171_v21 = vld [vmem:[%s1228_s1 + $0x1b8] sm:$0xff] }
  0x1c   :  { %226 = vmatpush1.msra.mxu0 %v122_v53  ;;  %408 = vmatpush1.msra.mxu1 %v46_v54  ;;  %v32_v20 = vld [vmem:[%s1230_s0] sm:$0xff]  ;;  %v95_v22 = vld [vmem:[%s1230_s0 + $0x1f8] sm:$0xff]  ;;  %v170_v23 = vld [vmem:[%s1228_s1 + $0x1b0] sm:$0xff] }
  0x1d   :  { %227 = vmatprep.subr.mxu0 %v121_v55  ;;  %409 = vmatprep.subr.mxu1 %v45_v56  ;;  %v94_v24 = vld [vmem:[%s1230_s0 + $0x1f0] sm:$0xff]  ;;  %v169_v25 = vld [vmem:[%s1228_s1 + $0x1a8] sm:$0xff]  ;;  %v168_v27 = vld [vmem:[%s1228_s1 + $0x1a0] sm:$0xff] }
  0x1e   :  { %228 = vmatpush1.msra.mxu0 %v120_v57  ;;  %410 = vmatpush1.msra.mxu1 %v44_v58  ;;  %v93_v26 = vld [vmem:[%s1230_s0 + $0x1e8] sm:$0xff]  ;;  %v92_v28 = vld [vmem:[%s1230_s0 + $0x1e0] sm:$0xff]  ;;  %v167_v29 = vld [vmem:[%s1228_s1 + $0x198] sm:$0xff] }
  0x1f   :  { %229 = vmatprep.subr.mxu0 %v119_v59  ;;  %411 = vmatprep.subr.mxu1 %v43_v60  ;;  %v91_v30 = vld [vmem:[%s1230_s0 + $0x1d8] sm:$0xff]  ;;  %v166_v31 = vld [vmem:[%s1228_s1 + $0x190] sm:$0xff]  ;;  %v165_v33 = vld [vmem:[%s1228_s1 + $0x188] sm:$0xff] }
  0x20   :  { %230 = vmatpush1.msra.mxu0 %v118_v61  ;;  %412 = vmatpush1.msra.mxu1 %v42_v62  ;;  %v90_v32 = vld [vmem:[%s1230_s0 + $0x1d0] sm:$0xff]  ;;  %v89_v34 = vld [vmem:[%s1230_s0 + $0x1c8] sm:$0xff]  ;;  %v164_v35 = vld [vmem:[%s1228_s1 + $0x180] sm:$0xff] }
  0x21   :  { %231 = vmatprep.subr.mxu0 %v117_v63  ;;  %413 = vmatprep.subr.mxu1 %v41_v0  ;;  %v88_v36 = vld [vmem:[%s1230_s0 + $0x1c0] sm:$0xff]  ;;  %v163_v37 = vld [vmem:[%s1228_s1 + $0x178] sm:$0xff]  ;;  %v162_v39 = vld [vmem:[%s1228_s1 + $0x170] sm:$0xff] }
  0x22   :  { %232 = vmatpush1.msra.mxu0 %v116_v1  ;;  %414 = vmatpush1.msra.mxu1 %v40_v2  ;;  %v87_v38 = vld [vmem:[%s1230_s0 + $0x1b8] sm:$0xff]  ;;  %v86_v40 = vld [vmem:[%s1230_s0 + $0x1b0] sm:$0xff]  ;;  %v161_v41 = vld [vmem:[%s1228_s1 + $0x168] sm:$0xff] }
  0x23   :  { %233 = vmatprep.subr.mxu0 %v179_v5  ;;  %415 = vmatprep.subr.mxu1 %v39_v6  ;;  %v85_v42 = vld [vmem:[%s1230_s0 + $0x1a8] sm:$0xff]  ;;  %v160_v43 = vld [vmem:[%s1228_s1 + $0x160] sm:$0xff]  ;;  %v159_v45 = vld [vmem:[%s1228_s1 + $0x158] sm:$0xff] }
  0x24   :  { %234 = vmatpush2.msra.mxu0 %v178_v7  ;;  %416 = vmatpush1.msra.mxu1 %v38_v8  ;;  %v84_v44 = vld [vmem:[%s1230_s0 + $0x1a0] sm:$0xff]  ;;  %v83_v46 = vld [vmem:[%s1230_s0 + $0x198] sm:$0xff]  ;;  %v158_v47 = vld [vmem:[%s1228_s1 + $0x150] sm:$0xff] }
  0x25   :  { %235 = vmatprep.subr.mxu0 %v177_v9  ;;  %417 = vmatprep.subr.mxu1 %v37_v10  ;;  %v82_v48 = vld [vmem:[%s1230_s0 + $0x190] sm:$0xff]  ;;  %v157_v49 = vld [vmem:[%s1228_s1 + $0x148] sm:$0xff]  ;;  %v156_v51 = vld [vmem:[%s1228_s1 + $0x140] sm:$0xff] }
  0x26   :  { %236 = vmatpush2.msra.mxu0 %v176_v11  ;;  %418 = vmatpush1.msra.mxu1 %v36_v12  ;;  %v81_v50 = vld [vmem:[%s1230_s0 + $0x188] sm:$0xff]  ;;  %v80_v52 = vld [vmem:[%s1230_s0 + $0x180] sm:$0xff]  ;;  %v155_v53 = vld [vmem:[%s1228_s1 + $0x138] sm:$0xff] }
  0x27   :  { %237 = vmatprep.subr.mxu0 %v175_v13  ;;  %419 = vmatprep.subr.mxu1 %v35_v14  ;;  %v79_v54 = vld [vmem:[%s1230_s0 + $0x178] sm:$0xff]  ;;  %v154_v55 = vld [vmem:[%s1228_s1 + $0x130] sm:$0xff]  ;;  %v153_v57 = vld [vmem:[%s1228_s1 + $0x128] sm:$0xff] }
  0x28   :  { %238 = vmatpush2.msra.mxu0 %v174_v15  ;;  %420 = vmatpush1.msra.mxu1 %v34_v16  ;;  %v78_v56 = vld [vmem:[%s1230_s0 + $0x170] sm:$0xff]  ;;  %v77_v58 = vld [vmem:[%s1230_s0 + $0x168] sm:$0xff]  ;;  %v152_v59 = vld [vmem:[%s1228_s1 + $0x120] sm:$0xff] }
  0x29   :  { %239 = vmatprep.subr.mxu0 %v173_v17  ;;  %421 = vmatprep.subr.mxu1 %v33_v18  ;;  %v109_v60 = vld [vmem:[%s1229_s3 + $0x28] sm:$0xff]  ;;  %v76_v61 = vld [vmem:[%s1230_s0 + $0x160] sm:$0xff]  ;;  %v151_v62 = vld [vmem:[%s1228_s1 + $0x118] sm:$0xff] }
  0x2a   :  { %240 = vmatpush2.msra.mxu0 %v172_v19  ;;  %422 = vmatpush1.msra.mxu1 %v32_v20  ;;  %v75_v63 = vld [vmem:[%s1230_s0 + $0x158] sm:$0xff]  ;;  %v150_v0 = vld [vmem:[%s1228_s1 + $0x110] sm:$0xff]  ;;  %v149_v2 = vld [vmem:[%s1228_s1 + $0x108] sm:$0xff] }
  0x2b   :  { %241 = vmatprep.subr.mxu0 %v171_v21  ;;  %423 = vmatprep.subr.mxu1 %v95_v22  ;;  %v74_v1 = vld [vmem:[%s1230_s0 + $0x150] sm:$0xff]  ;;  %v73_v5 = vld [vmem:[%s1230_s0 + $0x148] sm:$0xff]  ;;  %v148_v6 = vld [vmem:[%s1228_s1 + $0x100] sm:$0xff] }
  0x2c   :  { %242 = vmatpush2.msra.mxu0 %v170_v23  ;;  %424 = vmatpush2.msra.mxu1 %v94_v24  ;;  %v105_v7 = vld [vmem:[%s1229_s3 + $0x8] sm:$0xff]  ;;  %v112_v8 = vld [vmem:[%s1229_s3 + $0x40] sm:$0xff]  ;;  %v103_v11 = vld [vmem:[%s1230_s0 + $0x238] sm:$0xff] }
  0x2d   :  { %243 = vmatprep.subr.mxu0 %v169_v25  ;;  %425 = vmatprep.subr.mxu1 %v93_v26  ;;  %v104_v9 = vld [vmem:[%s1229_s3] sm:$0xff]  ;;  %v71_v12 = vld [vmem:[%s1230_s0 + $0x138] sm:$0xff]  ;;  %v102_v13 = vld [vmem:[%s1230_s0 + $0x230] sm:$0xff] }
  0x2e   :  { %244 = vmatpush2.msra.mxu0 %v168_v27  ;;  %426 = vmatpush2.msra.mxu1 %v92_v28  ;;  %v72_v10 = vld [vmem:[%s1230_s0 + $0x140] sm:$0xff]  ;;  %v70_v14 = vld [vmem:[%s1230_s0 + $0x130] sm:$0xff]  ;;  %v69_v15 = vld [vmem:[%s1230_s0 + $0x128] sm:$0xff] }
  0x2f   :  { %245 = vmatprep.subr.mxu0 %v167_v29  ;;  %427 = vmatprep.subr.mxu1 %v91_v30  ;;  %v108_v16 = vld [vmem:[%s1229_s3 + $0x20] sm:$0xff]  ;;  %v115_v17 = vld [vmem:[%s1229_s3 + $0x58] sm:$0xff]  ;;  %v101_v20 = vld [vmem:[%s1230_s0 + $0x228] sm:$0xff] }
  0x30   :  { %246 = vmatpush2.msra.mxu0 %v166_v31  ;;  %428 = vmatpush2.msra.mxu1 %v90_v32  ;;  %v107_v18 = vld [vmem:[%s1229_s3 + $0x18] sm:$0xff]  ;;  %v68_v19 = vld [vmem:[%s1230_s0 + $0x120] sm:$0xff]  ;;  %v66_v23 = vld [vmem:[%s1230_s0 + $0x110] sm:$0xff] }
  0x31   :  { %247 = vmatprep.subr.mxu0 %v165_v33  ;;  %429 = vmatprep.subr.mxu1 %v89_v34  ;;  %v67_v21 = vld [vmem:[%s1230_s0 + $0x118] sm:$0xff]  ;;  %v100_v22 = vld [vmem:[%s1230_s0 + $0x220] sm:$0xff]  ;;  %v65_v25 = vld [vmem:[%s1230_s0 + $0x108] sm:$0xff] }
  0x32   :  { %248 = vmatpush2.msra.mxu0 %v164_v35  ;;  %430 = vmatpush2.msra.mxu1 %v88_v36  ;;  %v111_v24 = vld [vmem:[%s1229_s3 + $0x38] sm:$0xff]  ;;  %v21_v26 = vld [vmem:[%s1231_s2 + $0x8] sm:$0xff]  ;;  %v64_v27 = vld [vmem:[%s1230_s0 + $0x100] sm:$0xff] }
  0x33   :  { %249 = vmatprep.subr.mxu0 %v163_v37  ;;  %431 = vmatprep.subr.mxu1 %v87_v38  ;;  %v110_v28 = vld [vmem:[%s1229_s3 + $0x30] sm:$0xff]  ;;  %v20_v29 = vld [vmem:[%s1231_s2] sm:$0xff]  ;;  %v99_v30 = vld [vmem:[%s1230_s0 + $0x218] sm:$0xff] }
  0x34   :  { %250 = vmatpush2.msra.mxu0 %v162_v39  ;;  %432 = vmatpush2.msra.mxu1 %v86_v40  ;;  %v98_v31 = vld [vmem:[%s1230_s0 + $0x210] sm:$0xff]  ;;  %v24_v33 = vld [vmem:[%s1231_s2 + $0x20] sm:$0xff]  ;;  %v113_v34 = vld [vmem:[%s1229_s3 + $0x48] sm:$0xff] }
  0x35   :  { %251 = vmatprep.subr.mxu0 %v161_v41  ;;  %433 = vmatprep.subr.mxu1 %v85_v42  ;;  %v114_v32 = vld [vmem:[%s1229_s3 + $0x50] sm:$0xff]  ;;  %v23_v35 = vld [vmem:[%s1231_s2 + $0x18] sm:$0xff]  ;;  %v97_v36 = vld [vmem:[%s1230_s0 + $0x208] sm:$0xff] }
  0x36   :  { %252 = vmatpush2.msra.mxu0 %v160_v43  ;;  %434 = vmatpush2.msra.mxu1 %v84_v44  ;;  %v96_v37 = vld [vmem:[%s1230_s0 + $0x200] sm:$0xff]  ;;  %v27_v38 = vld [vmem:[%s1231_s2 + $0x38] sm:$0xff]  ;;  %v26_v39 = vld [vmem:[%s1231_s2 + $0x30] sm:$0xff] }
  0x37   :  { %253 = vmatprep.subr.mxu0 %v159_v45  ;;  %435 = vmatprep.subr.mxu1 %v83_v46  ;;  %v22_v40 = vld [vmem:[%s1231_s2 + $0x10] sm:$0xff]  ;;  %v569_v42 = vld [vmem:[%s1232_s4] sm:$0xff]  ;;  %v29_v43 = vld [vmem:[%s1231_s2 + $0x48] sm:$0xff] }
  0x38   :  { %254 = vmatpush2.msra.mxu0 %v158_v47  ;;  %436 = vmatpush2.msra.mxu1 %v82_v48  ;;  %v30_v41 = vld [vmem:[%s1231_s2 + $0x50] sm:$0xff]  ;;  %v25_v44 = vld [vmem:[%s1231_s2 + $0x28] sm:$0xff]  ;;  %v28_v47 = vld [vmem:[%s1231_s2 + $0x40] sm:$0xff] }
  0x39   :  { %255 = vmatprep.subr.mxu0 %v157_v49  ;;  %437 = vmatprep.subr.mxu1 %v81_v50  ;;  %v571_v45 = vld [vmem:[%s1232_s4 + $0x10] sm:$0xff]  ;;  %v570_v46 = vld [vmem:[%s1232_s4 + $0x8] sm:$0xff]  ;;  %v31_v48 = vld [vmem:[%s1231_s2 + $0x58] sm:$0xff] }
  0x3a   :  { %256 = vmatpush2.msra.mxu0 %v156_v51  ;;  %438 = vmatpush2.msra.mxu1 %v80_v52 }
  0x3b   :  { %257 = vmatprep.subr.mxu0 %v155_v53  ;;  %439 = vmatprep.subr.mxu1 %v79_v54 }
  0x3c   :  { %258 = vmatpush2.msra.mxu0 %v154_v55  ;;  %440 = vmatpush2.msra.mxu1 %v78_v56 }
  0x3d   :  { %259 = vmatprep.subr.mxu0 %v153_v57  ;;  %360 = vmatprep.mubr.f32.mxu1 %v634_v3 }
  0x3e   :  { %441 = vmatprep.subr.mxu1 %v77_v58  ;;  %260 = vmatpush2.msra.mxu0 %v152_v59 }
  0x3f   :  { %615 = vmatmul.mubr.msk.f32.gmra.mxu1 %vm188_vm0, %v109_v60  ;;  %261 = vmatprep.subr.mxu0 %v151_v62 }
  0x40   :  { %442 = vmatpush2.msra.mxu1 %v76_v61  ;;  %262 = vmatpush2.msra.mxu0 %v150_v0 }
  0x41   :  { %443 = vmatprep.subr.mxu1 %v75_v63  ;;  %263 = vmatprep.subr.mxu0 %v149_v2 }
  0x42   :  { %444 = vmatpush2.msra.mxu1 %v74_v1  ;;  %366 = vmatprep.mubr.f32.mxu1 %v634_v3 }
  0x43   :  { %445 = vmatprep.subr.mxu1 %v73_v5  ;;  %264 = vmatpush2.msra.mxu0 %v148_v6 }
  0x44   :  { %265 = vmatprep.mubr.f32.mxu0 %v105_v7  ;;  %616 = vmatmul.mubr.msk.f32.gmra.mxu1 %vm188_vm0, %v112_v8 }
  0x45   :  { %266 = vmatmul.mubr.f32.vlgmr.msra.gmra.mxu0 %v104_v9  ;;  %446 = vmatpush2.msra.mxu1 %v72_v10 }
  0x46   :  { %504 = vmatprep.subr.mxu0 %v103_v11  ;;  %447 = vmatprep.subr.mxu1 %v71_v12 }
  0x47   :  { %505 = vmatpush1.msra.mxu0 %v102_v13  ;;  %448 = vmatpush2.msra.mxu1 %v70_v14 }
  0x48   :  { %372 = vmatprep.mubr.f32.mxu1 %v634_v3  ;;  %449 = vmatprep.subr.mxu1 %v69_v15 }
  0x49   :  { %271 = vmatprep.mubr.f32.mxu0 %v108_v16  ;;  %617 = vmatmul.mubr.msk.f32.gmra.mxu1 %vm188_vm0, %v115_v17 }
  0x4a   :  { %272 = vmatmul.mubr.f32.gmra.mxu0 %v107_v18  ;;  %450 = vmatpush2.msra.mxu1 %v68_v19 }
  0x4b   :  { %506 = vmatprep.subr.mxu0 %v101_v20  ;;  %451 = vmatprep.subr.mxu1 %v67_v21 }
  0x4c   :  { %507 = vmatpush1.msra.mxu0 %v100_v22  ;;  %452 = vmatpush2.msra.mxu1 %v66_v23 }
  0x4d   :  { %277 = vmatprep.mubr.f32.mxu0 %v111_v24  ;;  %453 = vmatprep.subr.mxu1 %v65_v25 }
  0x4e   :  { %455 = vmatprep.mubr.f32.mxu1 %v21_v26  ;;  %454 = vmatpush2.msra.mxu1 %v64_v27 }
  0x4f   :  { %278 = vmatmul.mubr.f32.gmra.mxu0 %v110_v28  ;;  %456 = vmatmul.mubr.f32.vlgmr.msra.gmra.mxu1 %v20_v29 }
  0x50   :  { %622 = vmatprep.subr.mxu1 %v103_v11  ;;  %508 = vmatprep.subr.mxu0 %v99_v30 }
  0x51   :  { %626 = vmatpush1.msra.mxu1 %v102_v13  ;;  %509 = vmatpush1.msra.mxu0 %v98_v31 }
  0x52   :  { %283 = vmatprep.mubr.f32.mxu0 %v114_v32  ;;  %461 = vmatprep.mubr.f32.mxu1 %v24_v33 }
  0x53   :  { %284 = vmatmul.mubr.f32.gmra.mxu0 %v113_v34  ;;  %462 = vmatmul.mubr.f32.gmra.mxu1 %v23_v35 }
  0x54   :  { %623 = vmatprep.subr.mxu1 %v101_v20  ;;  %510 = vmatprep.subr.mxu0 %v97_v36 }
  0x55   :  { %627 = vmatpush1.msra.mxu1 %v100_v22  ;;  %511 = vmatpush1.msra.mxu0 %v96_v37 }
  0x56   :  { %467 = vmatprep.mubr.f32.mxu1 %v27_v38  ;;  %544 = vmatprep.mubr.f32.mxu0 %v634_v3 }
  0x57   :  { %624 = vmatprep.subr.mxu1 %v99_v30  ;;  %468 = vmatmul.mubr.f32.gmra.mxu1 %v26_v39 }
  0x58   :  { %618 = vmatmul.mubr.msk.f32.vlgmr.msra.gmra.mxu0 %vm188_vm0, %v22_v40  ;;  %628 = vmatpush1.msra.mxu1 %v98_v31 }
  0x59   :  { %473 = vmatprep.mubr.f32.mxu1 %v30_v41  ;;  %550 = vmatprep.mubr.f32.mxu0 %v634_v3 }
  0x5a   :  { %625 = vmatprep.subr.mxu1 %v97_v36  ;;  %575 = vperm.xlu0 %632, %v569_v42  }
  0x5b   :  { %629 = vmatpush1.msra.mxu1 %v96_v37  ;;  %585 = vperm.xlu1 %633, %v571_v45  }
  0x5c   :  { %474 = vmatmul.mubr.f32.gmra.mxu1 %v29_v43  ;;  %619 = vmatmul.mubr.msk.f32.gmra.mxu0 %vm188_vm0, %v25_v44 }
  0x5d   :  { %556 = vmatprep.mubr.f32.mxu0 %v634_v3  ;;  %562 = vmatprep.mubr.f32.mxu1 %v634_v3  ;;  %v572_v3 = vld [vmem:[%s1232_s4 + $0x18] sm:$0xff] }
  0x5e   :  { %580 = vperm.xlu0 %632, %v570_v46  }
  0x5f   :  { %590 = vperm.xlu1 %633, %v572_v3  }
  0x60   :  { %620 = vmatmul.mubr.msk.f32.gmra.mxu0 %vm188_vm0, %v28_v47  ;;  %621 = vmatmul.mubr.msk.f32.vlgmr.msra.gmra.mxu1 %vm188_vm0, %v31_v48 }
  0xcb   :  { %v356_v49 = vpop.f32.mrf.mxu1 }
  0xcd   :  { %v358_v50 = vpop.f32.mrf.mxu1 }
  0xd5   :  { %v576_v6 = vpop.permute.xlu0 %575 }
  0xd6   :  { %v586_v21 = vpop.permute.xlu1 %585 }
  0xd9   :  { %v581_v22 = vpop.permute.xlu0 %580 }
  0xda   :  { %v591_v45 = vpop.permute.xlu1 %590 }
  0xff   :  { %v362_v51 = vpop.f32.mrf.mxu1 }
 0x101   :  { %v364_v52 = vpop.f32.mrf.mxu1 }
 0x104   :  { %v368_v53 = vpop.f32.mrf.mxu1 }
 0x105   :  { %v267_v54 = vpop.f32.mrf.mxu0 }
 0x106   :  { %v370_v55 = vpop.f32.mrf.mxu1  ;;  %v357_v2 = vadd.f32 %v356_v49, %v267_v54 }
 0x107   :  { %v269_v56 = vpop.f32.mrf.mxu0 }
 0x108   :  { %v359_v8 = vadd.f32 %v358_v50, %v269_v56 }
 0x109   :  { %v374_v4 = vpop.f32.mrf.mxu1 }
 0x10a   :  { %v273_v57 = vpop.f32.mrf.mxu0 }
 0x10b   :  { %v376_v59 = vpop.f32.mrf.mxu1  ;;  %v363_v12 = vadd.f32 %v362_v51, %v273_v57 }
 0x10c   :  { %v275_v58 = vpop.f32.mrf.mxu0 }
 0x10d   :  { %v365_v17 = vadd.f32 %v364_v52, %v275_v58 }
 0x10f   :  { %v279_v60 = vpop.f32.mrf.mxu0  ;;  %v457_v61 = vpop.f32.mrf.mxu1 }
 0x110   :  { %v458_v9 = vadd.f32 %v457_v61, %v357_v2  ;;  %v369_v23 = vadd.f32 %v368_v53, %v279_v60 }
 0x111   :  { %v281_v62 = vpop.f32.mrf.mxu0  ;;  %v459_v63 = vpop.f32.mrf.mxu1 }
 0x112   :  { %v460_v13 = vadd.f32 %v459_v63, %v359_v8  ;;  %v371_v30 = vadd.f32 %v370_v55, %v281_v62 }
 0x113   :  { %v285_v0 = vpop.f32.mrf.mxu0  ;;  %v463_v1 = vpop.f32.mrf.mxu1 }
 0x114   :  { %v464_v18 = vadd.f32 %v463_v1, %v363_v12  ;;  %v375_v26 = vadd.f32 %v374_v4, %v285_v0 }
 0x115   :  { %v287_v5 = vpop.f32.mrf.mxu0  ;;  %v465_v7 = vpop.f32.mrf.mxu1 }
 0x116   :  { %v466_v27 = vadd.f32 %v465_v7, %v365_v17  ;;  %v377_v31 = vadd.f32 %v376_v59, %v287_v5 }
 0x117   :  { %v469_v10 = vpop.f32.mrf.mxu1 }
 0x118   :  { %v546_v11 = vpop.f32.mrf.mxu0  ;;  %v470_v34 = vadd.f32 %v469_v10, %v369_v23 }
 0x119   :  { %v547_v14 = vadd.f32 %v546_v11, %v458_v9  ;;  %v471_v15 = vpop.f32.mrf.mxu1 }
 0x11a   :  { %v548_v16 = vpop.f32.mrf.mxu0  ;;  %v472_v38 = vadd.f32 %v471_v15, %v371_v30 }
 0x11b   :  { %v593_v19 = vadd.f32 %v576_v6, %v547_v14  ;;  %v549_v20 = vadd.f32 %v548_v16, %v460_v13 }
 0x11c   :  { %v475_v24 = vpop.f32.mrf.mxu1  ;;  %v552_v25 = vpop.f32.mrf.mxu0 }
 0x11d   :  { %601 = vst [vmem:[%s1233_s5] sm:$0xff] %v593_v19  ;;  %v594_v28 = vadd.f32 %v576_v6, %v549_v20  ;;  %v553_v29 = vadd.f32 %v552_v25, %v464_v18  ;;  %v476_v35 = vadd.f32 %v475_v24, %v375_v26 }
 0x11e   :  { %v477_v32 = vpop.f32.mrf.mxu1  ;;  %v554_v33 = vpop.f32.mrf.mxu0 }
 0x11f   :  { %603 = vst.msk [vmem:[%s1233_s5 + $0x8] sm:$0xff] %vm602_vm1, %v594_v28  ;;  %v595_v36 = vadd.f32 %v581_v22, %v553_v29  ;;  %v555_v37 = vadd.f32 %v554_v33, %v466_v27  ;;  %v478_v41 = vadd.f32 %v477_v32, %v377_v31 }
 0x120   :  { %v558_v39 = vpop.f32.mrf.mxu0  ;;  %v564_v40 = vpop.f32.mrf.mxu1 }
 0x121   :  { %604 = vst [vmem:[%s1233_s5 + $0x10] sm:$0xff] %v595_v36  ;;  %v596_v42 = vadd.f32 %v581_v22, %v555_v37  ;;  %v559_v43 = vadd.f32 %v558_v39, %v470_v34  ;;  %v565_v44 = vadd.f32 %v564_v40, %v476_v35 }
 0x122   :  { %v560_v46 = vpop.f32.mrf.mxu0  ;;  %v566_v47 = vpop.f32.mrf.mxu1 }
 0x123   :  { %605 = vst.msk [vmem:[%s1233_s5 + $0x18] sm:$0xff] %vm602_vm1, %v596_v42  ;;  %v597_v48 = vadd.f32 %v586_v21, %v559_v43  ;;  %v599_v3 = vadd.f32 %v591_v45, %v565_v44  ;;  %v561_v49 = vadd.f32 %v560_v46, %v472_v38  ;;  %v567_v50 = vadd.f32 %v566_v47, %v478_v41 }
 0x125   :  { %606 = vst [vmem:[%s1233_s5 + $0x20] sm:$0xff] %v597_v48  ;;  %608 = vst [vmem:[%s1233_s5 + $0x30] sm:$0xff] %v599_v3  ;;  %v598_v51 = vadd.f32 %v586_v21, %v561_v49  ;;  %v600_v52 = vadd.f32 %v591_v45, %v567_v50 }
 0x127   :  { %607 = vst.msk [vmem:[%s1233_s5 + $0x28] sm:$0xff] %vm602_vm1, %v598_v51  ;;  %609 = vst.msk [vmem:[%s1233_s5 + $0x38] sm:$0xff] %vm602_vm1, %v600_v52 }

// kernel: triplet_forward.7
= control target key start
LH: loop header
LB: loop body
LE: loop exit
PB: predicated region body
PF: predicated region fallthrough
CT: control target
= control target key end

     0   :  { %v1799_v3 = vmov 0.0   ;;  %vm482_vm0 = vcmask 261120   ;;  %s3574_s0 = inlined_call_operand.vmem [shape: f32[288,1536], index: 0, kind: input, shape index: {}]   ;;  %s3575_s1 = inlined_call_operand.vmem [shape: f32[32,288], index: 1, kind: input, shape index: {}]   ;;  %s3576_s2 = inlined_call_operand.vmem [shape: f32[32,1], index: 2, kind: input, shape index: {}]   ;;  %s3577_s3 = inlined_call_operand.vmem [shape: f32[32,1536], index: 3, kind: output, shape index: {}]  }
   0x1   :  { %v207_v0 = vld [vmem:[%s3574_s0 + $0x5a8] sm:$0xff]  ;;  %v206_v2 = vld [vmem:[%s3574_s0 + $0x5a0] sm:$0xff]  ;;  %648 = vmatprep.mubr.f32.mxu1 %v1799_v3  ;;  %v209_v18 = vld [vmem:[%s3574_s0 + $0x5b8] sm:$0xff] }
   0x2   :  { %v447_v1 = vld [vmem:[%s3574_s0 + $0xd28] sm:$0xff]  ;;  %495 = vmatprep.subr.mxu0 %v207_v0  ;;  %v446_v4 = vld [vmem:[%s3574_s0 + $0xd20] sm:$0xff]  ;;  %v1882_v20 = vld [vmem:[%s3575_s1 + $0x10] sm:$0xff] }
   0x3   :  { %608 = vmatprep.subr.mxu1 %v447_v1  ;;  %v195_v5 = vld [vmem:[%s3574_s0 + $0x548] sm:$0xff]  ;;  %496 = vmatpush1.msra.mxu0 %v206_v2  ;;  %v194_v7 = vld [vmem:[%s3574_s0 + $0x540] sm:$0xff]  ;;  %v208_v21 = vld [vmem:[%s3574_s0 + $0x5b0] sm:$0xff] }
   0x4   :  { %v435_v6 = vld [vmem:[%s3574_s0 + $0xcc8] sm:$0xff]  ;;  %609 = vmatpush1.msra.mxu1 %v446_v4  ;;  %v434_v8 = vld [vmem:[%s3574_s0 + $0xcc0] sm:$0xff]  ;;  %497 = vmatprep.subr.mxu0 %v195_v5  ;;  %v197_v23 = vld [vmem:[%s3574_s0 + $0x558] sm:$0xff] }
   0x5   :  { %v183_v9 = vld [vmem:[%s3574_s0 + $0x4e8] sm:$0xff]  ;;  %610 = vmatprep.subr.mxu1 %v435_v6  ;;  %v182_v11 = vld [vmem:[%s3574_s0 + $0x4e0] sm:$0xff]  ;;  %498 = vmatpush1.msra.mxu0 %v194_v7  ;;  %v196_v25 = vld [vmem:[%s3574_s0 + $0x550] sm:$0xff] }
   0x6   :  { %v423_v10 = vld [vmem:[%s3574_s0 + $0xc68] sm:$0xff]  ;;  %v422_v12 = vld [vmem:[%s3574_s0 + $0xc60] sm:$0xff]  ;;  %611 = vmatpush1.msra.mxu1 %v434_v8  ;;  %499 = vmatprep.subr.mxu0 %v183_v9  ;;  %v185_v27 = vld [vmem:[%s3574_s0 + $0x4f8] sm:$0xff] }
   0x7   :  { %v171_v13 = vld [vmem:[%s3574_s0 + $0x488] sm:$0xff]  ;;  %612 = vmatprep.subr.mxu1 %v423_v10  ;;  %v170_v15 = vld [vmem:[%s3574_s0 + $0x480] sm:$0xff]  ;;  %500 = vmatpush1.msra.mxu0 %v182_v11  ;;  %v184_v29 = vld [vmem:[%s3574_s0 + $0x4f0] sm:$0xff] }
   0x8   :  { %v411_v14 = vld [vmem:[%s3574_s0 + $0xc08] sm:$0xff]  ;;  %v410_v16 = vld [vmem:[%s3574_s0 + $0xc00] sm:$0xff]  ;;  %613 = vmatpush1.msra.mxu1 %v422_v12  ;;  %501 = vmatprep.subr.mxu0 %v171_v13  ;;  %v173_v31 = vld [vmem:[%s3574_s0 + $0x498] sm:$0xff] }
   0x9   :  { %v159_v17 = vld [vmem:[%s3574_s0 + $0x428] sm:$0xff]  ;;  %614 = vmatprep.subr.mxu1 %v411_v14  ;;  %v158_v19 = vld [vmem:[%s3574_s0 + $0x420] sm:$0xff]  ;;  %502 = vmatpush1.msra.mxu0 %v170_v15  ;;  %v172_v33 = vld [vmem:[%s3574_s0 + $0x490] sm:$0xff] }
   0xa   :  { %615 = vmatpush1.msra.mxu1 %v410_v16  ;;  %v147_v22 = vld [vmem:[%s3574_s0 + $0x3c8] sm:$0xff]  ;;  %503 = vmatprep.subr.mxu0 %v159_v17  ;;  %v146_v24 = vld [vmem:[%s3574_s0 + $0x3c0] sm:$0xff]  ;;  %v161_v35 = vld [vmem:[%s3574_s0 + $0x438] sm:$0xff] }
   0xb   :  { %673 = vmatprep.subr.mxu1 %v209_v18  ;;  %504 = vmatpush1.msra.mxu0 %v158_v19  ;;  %v135_v26 = vld [vmem:[%s3574_s0 + $0x368] sm:$0xff]  ;;  %v134_v28 = vld [vmem:[%s3574_s0 + $0x360] sm:$0xff]  ;;  %v160_v37 = vld [vmem:[%s3574_s0 + $0x430] sm:$0xff] }
   0xc   :  { %1759 = vmatmul.mubr.msk.f32.vlgmr.msra.gmra.mxu1 %vm482_vm0, %v1882_v20  ;;  %505 = vmatprep.subr.mxu0 %v147_v22  ;;  %v123_v30 = vld [vmem:[%s3574_s0 + $0x308] sm:$0xff]  ;;  %v122_v32 = vld [vmem:[%s3574_s0 + $0x300] sm:$0xff]  ;;  %v149_v39 = vld [vmem:[%s3574_s0 + $0x3d8] sm:$0xff] }
   0xd   :  { %674 = vmatpush1.msra.mxu1 %v208_v21  ;;  %506 = vmatpush1.msra.mxu0 %v146_v24  ;;  %v111_v34 = vld [vmem:[%s3574_s0 + $0x2a8] sm:$0xff]  ;;  %v110_v36 = vld [vmem:[%s3574_s0 + $0x2a0] sm:$0xff]  ;;  %v148_v41 = vld [vmem:[%s3574_s0 + $0x3d0] sm:$0xff] }
   0xe   :  { %675 = vmatprep.subr.mxu1 %v197_v23  ;;  %507 = vmatprep.subr.mxu0 %v135_v26  ;;  %v99_v38 = vld [vmem:[%s3574_s0 + $0x248] sm:$0xff]  ;;  %v98_v40 = vld [vmem:[%s3574_s0 + $0x240] sm:$0xff]  ;;  %v137_v43 = vld [vmem:[%s3574_s0 + $0x378] sm:$0xff] }
   0xf   :  { %676 = vmatpush1.msra.mxu1 %v196_v25  ;;  %508 = vmatpush1.msra.mxu0 %v134_v28  ;;  %v87_v42 = vld [vmem:[%s3574_s0 + $0x1e8] sm:$0xff]  ;;  %v86_v44 = vld [vmem:[%s3574_s0 + $0x1e0] sm:$0xff]  ;;  %v136_v45 = vld [vmem:[%s3574_s0 + $0x370] sm:$0xff] }
  0x10   :  { %677 = vmatprep.subr.mxu1 %v185_v27  ;;  %509 = vmatprep.subr.mxu0 %v123_v30  ;;  %v75_v46 = vld [vmem:[%s3574_s0 + $0x188] sm:$0xff]  ;;  %v125_v47 = vld [vmem:[%s3574_s0 + $0x318] sm:$0xff]  ;;  %v74_v48 = vld [vmem:[%s3574_s0 + $0x180] sm:$0xff] }
  0x11   :  { %678 = vmatpush1.msra.mxu1 %v184_v29  ;;  %510 = vmatpush1.msra.mxu0 %v122_v32  ;;  %v124_v49 = vld [vmem:[%s3574_s0 + $0x310] sm:$0xff]  ;;  %v63_v50 = vld [vmem:[%s3574_s0 + $0x128] sm:$0xff]  ;;  %v113_v51 = vld [vmem:[%s3574_s0 + $0x2b8] sm:$0xff] }
  0x12   :  { %679 = vmatprep.subr.mxu1 %v173_v31  ;;  %511 = vmatprep.subr.mxu0 %v111_v34  ;;  %v62_v52 = vld [vmem:[%s3574_s0 + $0x120] sm:$0xff]  ;;  %v112_v53 = vld [vmem:[%s3574_s0 + $0x2b0] sm:$0xff]  ;;  %v51_v54 = vld [vmem:[%s3574_s0 + $0xc8] sm:$0xff] }
  0x13   :  { %680 = vmatpush1.msra.mxu1 %v172_v33  ;;  %512 = vmatpush1.msra.mxu0 %v110_v36  ;;  %v101_v55 = vld [vmem:[%s3574_s0 + $0x258] sm:$0xff]  ;;  %v50_v56 = vld [vmem:[%s3574_s0 + $0xc0] sm:$0xff]  ;;  %v100_v57 = vld [vmem:[%s3574_s0 + $0x250] sm:$0xff] }
  0x14   :  { %681 = vmatprep.subr.mxu1 %v161_v35  ;;  %513 = vmatprep.subr.mxu0 %v99_v38  ;;  %v39_v58 = vld [vmem:[%s3574_s0 + $0x68] sm:$0xff]  ;;  %v89_v59 = vld [vmem:[%s3574_s0 + $0x1f8] sm:$0xff]  ;;  %v38_v60 = vld [vmem:[%s3574_s0 + $0x60] sm:$0xff] }
  0x15   :  { %682 = vmatpush1.msra.mxu1 %v160_v37  ;;  %514 = vmatpush1.msra.mxu0 %v98_v40  ;;  %v88_v61 = vld [vmem:[%s3574_s0 + $0x1f0] sm:$0xff]  ;;  %v27_v62 = vld [vmem:[%s3574_s0 + $0x8] sm:$0xff]  ;;  %v77_v63 = vld [vmem:[%s3574_s0 + $0x198] sm:$0xff] }
  0x16   :  { %683 = vmatprep.subr.mxu1 %v149_v39  ;;  %515 = vmatprep.subr.mxu0 %v87_v42  ;;  %v26_v0 = vld [vmem:[%s3574_s0] sm:$0xff]  ;;  %v76_v1 = vld [vmem:[%s3574_s0 + $0x190] sm:$0xff]  ;;  %v399_v2 = vld [vmem:[%s3574_s0 + $0xba8] sm:$0xff] }
  0x17   :  { %684 = vmatpush1.msra.mxu1 %v148_v41  ;;  %516 = vmatpush1.msra.mxu0 %v86_v44  ;;  %v65_v4 = vld [vmem:[%s3574_s0 + $0x138] sm:$0xff]  ;;  %v398_v5 = vld [vmem:[%s3574_s0 + $0xba0] sm:$0xff]  ;;  %v64_v6 = vld [vmem:[%s3574_s0 + $0x130] sm:$0xff] }
  0x18   :  { %685 = vmatprep.subr.mxu1 %v137_v43  ;;  %517 = vmatprep.subr.mxu0 %v75_v46  ;;  %v387_v7 = vld [vmem:[%s3574_s0 + $0xb48] sm:$0xff]  ;;  %v53_v8 = vld [vmem:[%s3574_s0 + $0xd8] sm:$0xff]  ;;  %v386_v9 = vld [vmem:[%s3574_s0 + $0xb40] sm:$0xff] }
  0x19   :  { %686 = vmatpush1.msra.mxu1 %v136_v45  ;;  %518 = vmatpush1.msra.mxu0 %v74_v48  ;;  %v52_v10 = vld [vmem:[%s3574_s0 + $0xd0] sm:$0xff]  ;;  %v375_v11 = vld [vmem:[%s3574_s0 + $0xae8] sm:$0xff]  ;;  %v41_v12 = vld [vmem:[%s3574_s0 + $0x78] sm:$0xff] }
  0x1a   :  { %687 = vmatprep.subr.mxu1 %v125_v47  ;;  %519 = vmatprep.subr.mxu0 %v63_v50  ;;  %v374_v13 = vld [vmem:[%s3574_s0 + $0xae0] sm:$0xff]  ;;  %v40_v14 = vld [vmem:[%s3574_s0 + $0x70] sm:$0xff]  ;;  %v363_v15 = vld [vmem:[%s3574_s0 + $0xa88] sm:$0xff] }
  0x1b   :  { %688 = vmatpush1.msra.mxu1 %v124_v49  ;;  %520 = vmatpush1.msra.mxu0 %v62_v52  ;;  %v29_v16 = vld [vmem:[%s3574_s0 + $0x18] sm:$0xff]  ;;  %v362_v17 = vld [vmem:[%s3574_s0 + $0xa80] sm:$0xff]  ;;  %v28_v18 = vld [vmem:[%s3574_s0 + $0x10] sm:$0xff] }
  0x1c   :  { %689 = vmatprep.subr.mxu1 %v113_v51  ;;  %521 = vmatprep.subr.mxu0 %v51_v54  ;;  %v351_v19 = vld [vmem:[%s3574_s0 + $0xa28] sm:$0xff]  ;;  %v401_v21 = vld [vmem:[%s3574_s0 + $0xbb8] sm:$0xff]  ;;  %v350_v22 = vld [vmem:[%s3574_s0 + $0xa20] sm:$0xff] }
  0x1d   :  { %690 = vmatpush1.msra.mxu1 %v112_v53  ;;  %522 = vmatpush1.msra.mxu0 %v50_v56  ;;  %v400_v23 = vld [vmem:[%s3574_s0 + $0xbb0] sm:$0xff]  ;;  %v339_v24 = vld [vmem:[%s3574_s0 + $0x9c8] sm:$0xff]  ;;  %v389_v25 = vld [vmem:[%s3574_s0 + $0xb58] sm:$0xff] }
  0x1e   :  { %691 = vmatprep.subr.mxu1 %v101_v55  ;;  %523 = vmatprep.subr.mxu0 %v39_v58  ;;  %v338_v26 = vld [vmem:[%s3574_s0 + $0x9c0] sm:$0xff]  ;;  %v388_v27 = vld [vmem:[%s3574_s0 + $0xb50] sm:$0xff]  ;;  %v327_v28 = vld [vmem:[%s3574_s0 + $0x968] sm:$0xff] }
  0x1f   :  { %692 = vmatpush1.msra.mxu1 %v100_v57  ;;  %524 = vmatpush1.msra.mxu0 %v38_v60  ;;  %v377_v29 = vld [vmem:[%s3574_s0 + $0xaf8] sm:$0xff]  ;;  %v326_v30 = vld [vmem:[%s3574_s0 + $0x960] sm:$0xff]  ;;  %v376_v31 = vld [vmem:[%s3574_s0 + $0xaf0] sm:$0xff] }
  0x20   :  { %693 = vmatprep.subr.mxu1 %v89_v59  ;;  %525 = vmatprep.subr.mxu0 %v27_v62  ;;  %v315_v32 = vld [vmem:[%s3574_s0 + $0x908] sm:$0xff]  ;;  %v365_v33 = vld [vmem:[%s3574_s0 + $0xa98] sm:$0xff]  ;;  %v314_v34 = vld [vmem:[%s3574_s0 + $0x900] sm:$0xff] }
  0x21   :  { %694 = vmatpush1.msra.mxu1 %v88_v61  ;;  %526 = vmatpush1.msra.mxu0 %v26_v0  ;;  %v364_v35 = vld [vmem:[%s3574_s0 + $0xa90] sm:$0xff]  ;;  %v303_v36 = vld [vmem:[%s3574_s0 + $0x8a8] sm:$0xff]  ;;  %v353_v37 = vld [vmem:[%s3574_s0 + $0xa38] sm:$0xff] }
  0x22   :  { %695 = vmatprep.subr.mxu1 %v77_v63  ;;  %527 = vmatprep.subr.mxu0 %v399_v2  ;;  %v302_v38 = vld [vmem:[%s3574_s0 + $0x8a0] sm:$0xff]  ;;  %v352_v39 = vld [vmem:[%s3574_s0 + $0xa30] sm:$0xff]  ;;  %v291_v40 = vld [vmem:[%s3574_s0 + $0x848] sm:$0xff] }
  0x23   :  { %696 = vmatpush1.msra.mxu1 %v76_v1  ;;  %528 = vmatpush2.msra.mxu0 %v398_v5  ;;  %v341_v41 = vld [vmem:[%s3574_s0 + $0x9d8] sm:$0xff]  ;;  %v290_v42 = vld [vmem:[%s3574_s0 + $0x840] sm:$0xff]  ;;  %v340_v43 = vld [vmem:[%s3574_s0 + $0x9d0] sm:$0xff] }
  0x24   :  { %697 = vmatprep.subr.mxu1 %v65_v4  ;;  %529 = vmatprep.subr.mxu0 %v387_v7  ;;  %v279_v44 = vld [vmem:[%s3574_s0 + $0x7e8] sm:$0xff]  ;;  %v329_v45 = vld [vmem:[%s3574_s0 + $0x978] sm:$0xff]  ;;  %v278_v46 = vld [vmem:[%s3574_s0 + $0x7e0] sm:$0xff] }
  0x25   :  { %698 = vmatpush1.msra.mxu1 %v64_v6  ;;  %530 = vmatpush2.msra.mxu0 %v386_v9  ;;  %v328_v47 = vld [vmem:[%s3574_s0 + $0x970] sm:$0xff]  ;;  %v267_v48 = vld [vmem:[%s3574_s0 + $0x788] sm:$0xff]  ;;  %v317_v49 = vld [vmem:[%s3574_s0 + $0x918] sm:$0xff] }
  0x26   :  { %699 = vmatprep.subr.mxu1 %v53_v8  ;;  %531 = vmatprep.subr.mxu0 %v375_v11  ;;  %v266_v50 = vld [vmem:[%s3574_s0 + $0x780] sm:$0xff]  ;;  %v316_v51 = vld [vmem:[%s3574_s0 + $0x910] sm:$0xff]  ;;  %v255_v52 = vld [vmem:[%s3574_s0 + $0x728] sm:$0xff] }
  0x27   :  { %700 = vmatpush1.msra.mxu1 %v52_v10  ;;  %532 = vmatpush2.msra.mxu0 %v374_v13  ;;  %v305_v53 = vld [vmem:[%s3574_s0 + $0x8b8] sm:$0xff]  ;;  %v254_v54 = vld [vmem:[%s3574_s0 + $0x720] sm:$0xff]  ;;  %v304_v55 = vld [vmem:[%s3574_s0 + $0x8b0] sm:$0xff] }
  0x28   :  { %701 = vmatprep.subr.mxu1 %v41_v12  ;;  %533 = vmatprep.subr.mxu0 %v363_v15  ;;  %v243_v56 = vld [vmem:[%s3574_s0 + $0x6c8] sm:$0xff]  ;;  %v293_v57 = vld [vmem:[%s3574_s0 + $0x858] sm:$0xff]  ;;  %v242_v58 = vld [vmem:[%s3574_s0 + $0x6c0] sm:$0xff] }
  0x29   :  { %702 = vmatpush1.msra.mxu1 %v40_v14  ;;  %534 = vmatpush2.msra.mxu0 %v362_v17  ;;  %v292_v59 = vld [vmem:[%s3574_s0 + $0x850] sm:$0xff]  ;;  %v231_v60 = vld [vmem:[%s3574_s0 + $0x668] sm:$0xff]  ;;  %v281_v61 = vld [vmem:[%s3574_s0 + $0x7f8] sm:$0xff] }
  0x2a   :  { %703 = vmatprep.subr.mxu1 %v29_v16  ;;  %535 = vmatprep.subr.mxu0 %v351_v19  ;;  %v230_v62 = vld [vmem:[%s3574_s0 + $0x660] sm:$0xff]  ;;  %v2201_v63 = vld [vmem:[%s3575_s1 + $0x28] sm:$0xff]  ;;  %v280_v0 = vld [vmem:[%s3574_s0 + $0x7f0] sm:$0xff] }
  0x2b   :  { %704 = vmatpush1.msra.mxu1 %v28_v18  ;;  %536 = vmatpush2.msra.mxu0 %v350_v22  ;;  %v219_v1 = vld [vmem:[%s3574_s0 + $0x608] sm:$0xff]  ;;  %v269_v2 = vld [vmem:[%s3574_s0 + $0x798] sm:$0xff]  ;;  %v218_v4 = vld [vmem:[%s3574_s0 + $0x600] sm:$0xff] }
  0x2c   :  { %705 = vmatprep.subr.mxu1 %v401_v21  ;;  %537 = vmatprep.subr.mxu0 %v339_v24  ;;  %v2221_v5 = vld [vmem:[%s3575_s1 + $0x8] sm:$0xff]  ;;  %v268_v6 = vld [vmem:[%s3574_s0 + $0x790] sm:$0xff]  ;;  %v2229_v7 = vld [vmem:[%s3575_s1] sm:$0xff] }
  0x2d   :  { %706 = vmatpush2.msra.mxu1 %v400_v23  ;;  %538 = vmatpush2.msra.mxu0 %v338_v26  ;;  %v257_v8 = vld [vmem:[%s3574_s0 + $0x738] sm:$0xff]  ;;  %v2241_v10 = vld [vmem:[%s3575_s1 + $0x40] sm:$0xff]  ;;  %v448_v11 = vld [vmem:[%s3574_s0 + $0xd30] sm:$0xff] }
  0x2e   :  { %707 = vmatprep.subr.mxu1 %v389_v25  ;;  %539 = vmatprep.subr.mxu0 %v327_v28  ;;  %v449_v9 = vld [vmem:[%s3574_s0 + $0xd38] sm:$0xff]  ;;  %v256_v12 = vld [vmem:[%s3574_s0 + $0x730] sm:$0xff]  ;;  %v2254_v13 = vld [vmem:[%s3575_s1 + $0x20] sm:$0xff] }
  0x2f   :  { %708 = vmatpush2.msra.mxu1 %v388_v27  ;;  %540 = vmatpush2.msra.mxu0 %v326_v30  ;;  %v245_v14 = vld [vmem:[%s3574_s0 + $0x6d8] sm:$0xff]  ;;  %v244_v16 = vld [vmem:[%s3574_s0 + $0x6d0] sm:$0xff]  ;;  %v211_v28 = vld [vmem:[%s3574_s0 + $0x5c8] sm:$0xff] }
  0x30   :  { %709 = vmatprep.subr.mxu1 %v377_v29  ;;  %541 = vmatprep.subr.mxu0 %v315_v32  ;;  %v2262_v15 = vld [vmem:[%s3575_s1 + $0x18] sm:$0xff]  ;;  %v436_v21 = vld [vmem:[%s3574_s0 + $0xcd0] sm:$0xff]  ;;  %v210_v30 = vld [vmem:[%s3574_s0 + $0x5c0] sm:$0xff] }
  0x31   :  { %710 = vmatpush2.msra.mxu1 %v376_v31  ;;  %542 = vmatpush2.msra.mxu0 %v314_v34  ;;  %v233_v17 = vld [vmem:[%s3574_s0 + $0x678] sm:$0xff]  ;;  %v232_v22 = vld [vmem:[%s3574_s0 + $0x670] sm:$0xff]  ;;  %v199_v32 = vld [vmem:[%s3574_s0 + $0x568] sm:$0xff] }
  0x32   :  { %711 = vmatprep.subr.mxu1 %v365_v33  ;;  %543 = vmatprep.subr.mxu0 %v303_v36  ;;  %v437_v18 = vld [vmem:[%s3574_s0 + $0xcd8] sm:$0xff]  ;;  %v2300_v25 = vld [vmem:[%s3575_s1 + $0x30] sm:$0xff]  ;;  %v2333_v33 = vld [vmem:[%s3575_s1 + $0x48] sm:$0xff] }
  0x33   :  { %712 = vmatpush2.msra.mxu1 %v364_v35  ;;  %544 = vmatpush2.msra.mxu0 %v302_v38  ;;  %v2280_v19 = vld [vmem:[%s3575_s1 + $0x58] sm:$0xff]  ;;  %v220_v26 = vld [vmem:[%s3574_s0 + $0x610] sm:$0xff]  ;;  %v198_v34 = vld [vmem:[%s3574_s0 + $0x560] sm:$0xff] }
  0x34   :  { %713 = vmatprep.subr.mxu1 %v353_v37  ;;  %545 = vmatprep.subr.mxu0 %v291_v40  ;;  %v2292_v23 = vld [vmem:[%s3575_s1 + $0x38] sm:$0xff]  ;;  %v424_v29 = vld [vmem:[%s3574_s0 + $0xc70] sm:$0xff]  ;;  %v187_v36 = vld [vmem:[%s3574_s0 + $0x508] sm:$0xff] }
  0x35   :  { %714 = vmatpush2.msra.mxu1 %v352_v39  ;;  %546 = vmatpush2.msra.mxu0 %v290_v42  ;;  %v221_v24 = vld [vmem:[%s3574_s0 + $0x618] sm:$0xff]  ;;  %v2325_v31 = vld [vmem:[%s3575_s1 + $0x50] sm:$0xff]  ;;  %v186_v38 = vld [vmem:[%s3574_s0 + $0x500] sm:$0xff] }
  0x36   :  { %715 = vmatprep.subr.mxu1 %v341_v41  ;;  %547 = vmatprep.subr.mxu0 %v279_v44  ;;  %v425_v27 = vld [vmem:[%s3574_s0 + $0xc78] sm:$0xff]  ;;  %v412_v37 = vld [vmem:[%s3574_s0 + $0xc10] sm:$0xff]  ;;  %v175_v39 = vld [vmem:[%s3574_s0 + $0x4a8] sm:$0xff] }
  0x37   :  { %716 = vmatpush2.msra.mxu1 %v340_v43  ;;  %548 = vmatpush2.msra.mxu0 %v278_v46  ;;  %v413_v35 = vld [vmem:[%s3574_s0 + $0xc18] sm:$0xff]  ;;  %v174_v40 = vld [vmem:[%s3574_s0 + $0x4a0] sm:$0xff]  ;;  %v451_v41 = vld [vmem:[%s3574_s0 + $0xd48] sm:$0xff] }
  0x38   :  { %717 = vmatprep.subr.mxu1 %v329_v45  ;;  %549 = vmatprep.subr.mxu0 %v267_v48  ;;  %v163_v42 = vld [vmem:[%s3574_s0 + $0x448] sm:$0xff]  ;;  %v162_v43 = vld [vmem:[%s3574_s0 + $0x440] sm:$0xff] }
  0x39   :  { %718 = vmatpush2.msra.mxu1 %v328_v47  ;;  %550 = vmatpush2.msra.mxu0 %v266_v50  ;;  %v450_v44 = vld [vmem:[%s3574_s0 + $0xd40] sm:$0xff]  ;;  %v151_v45 = vld [vmem:[%s3574_s0 + $0x3e8] sm:$0xff] }
  0x3a   :  { %719 = vmatprep.subr.mxu1 %v317_v49  ;;  %551 = vmatprep.subr.mxu0 %v255_v52  ;;  %v150_v46 = vld [vmem:[%s3574_s0 + $0x3e0] sm:$0xff]  ;;  %v139_v47 = vld [vmem:[%s3574_s0 + $0x388] sm:$0xff] }
  0x3b   :  { %720 = vmatpush2.msra.mxu1 %v316_v51  ;;  %552 = vmatpush2.msra.mxu0 %v254_v54  ;;  %v439_v48 = vld [vmem:[%s3574_s0 + $0xce8] sm:$0xff]  ;;  %v138_v49 = vld [vmem:[%s3574_s0 + $0x380] sm:$0xff] }
  0x3c   :  { %721 = vmatprep.subr.mxu1 %v305_v53  ;;  %553 = vmatprep.subr.mxu0 %v243_v56  ;;  %v438_v50 = vld [vmem:[%s3574_s0 + $0xce0] sm:$0xff]  ;;  %v127_v51 = vld [vmem:[%s3574_s0 + $0x328] sm:$0xff] }
  0x3d   :  { %722 = vmatpush2.msra.mxu1 %v304_v55  ;;  %554 = vmatpush2.msra.mxu0 %v242_v58  ;;  %v126_v52 = vld [vmem:[%s3574_s0 + $0x320] sm:$0xff]  ;;  %v115_v53 = vld [vmem:[%s3574_s0 + $0x2c8] sm:$0xff] }
  0x3e   :  { %723 = vmatprep.subr.mxu1 %v293_v57  ;;  %555 = vmatprep.subr.mxu0 %v231_v60  ;;  %v427_v54 = vld [vmem:[%s3574_s0 + $0xc88] sm:$0xff]  ;;  %v114_v55 = vld [vmem:[%s3574_s0 + $0x2c0] sm:$0xff] }
  0x3f   :  { %724 = vmatpush2.msra.mxu1 %v292_v59  ;;  %654 = vmatprep.mubr.f32.mxu1 %v1799_v3  ;;  %v426_v56 = vld [vmem:[%s3574_s0 + $0xc80] sm:$0xff]  ;;  %v103_v57 = vld [vmem:[%s3574_s0 + $0x268] sm:$0xff] }
  0x40   :  { %725 = vmatprep.subr.mxu1 %v281_v61  ;;  %556 = vmatpush2.msra.mxu0 %v230_v62  ;;  %v102_v58 = vld [vmem:[%s3574_s0 + $0x260] sm:$0xff]  ;;  %v91_v59 = vld [vmem:[%s3574_s0 + $0x208] sm:$0xff] }
  0x41   :  { %1760 = vmatmul.mubr.msk.f32.gmra.mxu1 %vm482_vm0, %v2201_v63  ;;  %557 = vmatprep.subr.mxu0 %v219_v1  ;;  %v415_v60 = vld [vmem:[%s3574_s0 + $0xc28] sm:$0xff]  ;;  %v90_v61 = vld [vmem:[%s3574_s0 + $0x200] sm:$0xff] }
  0x42   :  { %726 = vmatpush2.msra.mxu1 %v280_v0  ;;  %558 = vmatpush2.msra.mxu0 %v218_v4  ;;  %v414_v62 = vld [vmem:[%s3574_s0 + $0xc20] sm:$0xff]  ;;  %v79_v0 = vld [vmem:[%s3574_s0 + $0x1a8] sm:$0xff] }
  0x43   :  { %727 = vmatprep.subr.mxu1 %v269_v2  ;;  %559 = vmatprep.mubr.f32.mxu0 %v2221_v5  ;;  %v78_v1 = vld [vmem:[%s3574_s0 + $0x1a0] sm:$0xff]  ;;  %v213_v2 = vld [vmem:[%s3574_s0 + $0x5d8] sm:$0xff]  ;;  %v67_v4 = vld [vmem:[%s3574_s0 + $0x148] sm:$0xff] }
  0x44   :  { %728 = vmatpush2.msra.mxu1 %v268_v6  ;;  %560 = vmatmul.mubr.f32.vlgmr.msra.gmra.mxu0 %v2229_v7  ;;  %v66_v6 = vld [vmem:[%s3574_s0 + $0x140] sm:$0xff] }
  0x45   :  { %660 = vmatprep.mubr.f32.mxu1 %v1799_v3  ;;  %729 = vmatprep.subr.mxu1 %v257_v8  ;;  %v212_v8 = vld [vmem:[%s3574_s0 + $0x5d0] sm:$0xff] }
  0x46   :  { %786 = vmatprep.subr.mxu0 %v449_v9  ;;  %1761 = vmatmul.mubr.msk.f32.gmra.mxu1 %vm482_vm0, %v2241_v10  ;;  %v55_v9 = vld [vmem:[%s3574_s0 + $0xe8] sm:$0xff] }
  0x47   :  { %787 = vmatpush1.msra.mxu0 %v448_v11  ;;  %730 = vmatpush2.msra.mxu1 %v256_v12  ;;  %v201_v11 = vld [vmem:[%s3574_s0 + $0x578] sm:$0xff]  ;;  %v54_v12 = vld [vmem:[%s3574_s0 + $0xe0] sm:$0xff] }
  0x48   :  { %565 = vmatprep.mubr.f32.mxu0 %v2254_v13  ;;  %731 = vmatprep.subr.mxu1 %v245_v14  ;;  %v200_v14 = vld [vmem:[%s3574_s0 + $0x570] sm:$0xff] }
  0x49   :  { %566 = vmatmul.mubr.f32.gmra.mxu0 %v2262_v15  ;;  %732 = vmatpush2.msra.mxu1 %v244_v16  ;;  %v43_v16 = vld [vmem:[%s3574_s0 + $0x88] sm:$0xff] }
  0x4a   :  { %666 = vmatprep.mubr.f32.mxu1 %v1799_v3  ;;  %733 = vmatprep.subr.mxu1 %v233_v17  ;;  %v189_v17 = vld [vmem:[%s3574_s0 + $0x518] sm:$0xff] }
  0x4b   :  { %788 = vmatprep.subr.mxu0 %v437_v18  ;;  %1762 = vmatmul.mubr.msk.f32.gmra.mxu1 %vm482_vm0, %v2280_v19  ;;  %v42_v18 = vld [vmem:[%s3574_s0 + $0x80] sm:$0xff] }
  0x4c   :  { %789 = vmatpush1.msra.mxu0 %v436_v21  ;;  %734 = vmatpush2.msra.mxu1 %v232_v22  ;;  %v31_v21 = vld [vmem:[%s3574_s0 + $0x28] sm:$0xff]  ;;  %v177_v22 = vld [vmem:[%s3574_s0 + $0x4b8] sm:$0xff] }
  0x4d   :  { %571 = vmatprep.mubr.f32.mxu0 %v2292_v23  ;;  %735 = vmatprep.subr.mxu1 %v221_v24  ;;  %v30_v24 = vld [vmem:[%s3574_s0 + $0x20] sm:$0xff] }
  0x4e   :  { %572 = vmatmul.mubr.f32.gmra.mxu0 %v2300_v25  ;;  %736 = vmatpush2.msra.mxu1 %v220_v26  ;;  %v176_v26 = vld [vmem:[%s3574_s0 + $0x4b0] sm:$0xff] }
  0x4f   :  { %737 = vmatprep.mubr.f32.mxu1 %v2221_v5  ;;  %790 = vmatprep.subr.mxu0 %v425_v27  ;;  %v403_v27 = vld [vmem:[%s3574_s0 + $0xbc8] sm:$0xff] }
  0x50   :  { %851 = vmatprep.subr.mxu1 %v211_v28  ;;  %738 = vmatmul.mubr.f32.vlgmr.msra.gmra.mxu1 %v2229_v7  ;;  %v165_v28 = vld [vmem:[%s3574_s0 + $0x458] sm:$0xff] }
  0x51   :  { %791 = vmatpush1.msra.mxu0 %v424_v29  ;;  %852 = vmatpush1.msra.mxu1 %v210_v30  ;;  %v402_v29 = vld [vmem:[%s3574_s0 + $0xbc0] sm:$0xff]  ;;  %v164_v30 = vld [vmem:[%s3574_s0 + $0x450] sm:$0xff] }
  0x52   :  { %577 = vmatprep.mubr.f32.mxu0 %v2325_v31  ;;  %853 = vmatprep.subr.mxu1 %v199_v32  ;;  %v391_v32 = vld [vmem:[%s3574_s0 + $0xb68] sm:$0xff] }
  0x53   :  { %578 = vmatmul.mubr.f32.gmra.mxu0 %v2333_v33  ;;  %854 = vmatpush1.msra.mxu1 %v198_v34  ;;  %v153_v34 = vld [vmem:[%s3574_s0 + $0x3f8] sm:$0xff] }
  0x54   :  { %792 = vmatprep.subr.mxu0 %v413_v35  ;;  %855 = vmatprep.subr.mxu1 %v187_v36  ;;  %v390_v35 = vld [vmem:[%s3574_s0 + $0xb60] sm:$0xff]  ;;  %v152_v36 = vld [vmem:[%s3574_s0 + $0x3f0] sm:$0xff] }
  0x55   :  { %793 = vmatpush1.msra.mxu0 %v412_v37  ;;  %856 = vmatpush1.msra.mxu1 %v186_v38  ;;  %v379_v37 = vld [vmem:[%s3574_s0 + $0xb08] sm:$0xff]  ;;  %v141_v38 = vld [vmem:[%s3574_s0 + $0x398] sm:$0xff] }
  0x56   :  { %826 = vmatprep.mubr.f32.mxu0 %v1799_v3  ;;  %857 = vmatprep.subr.mxu1 %v175_v39  ;;  %v378_v39 = vld [vmem:[%s3574_s0 + $0xb00] sm:$0xff] }
  0x57   :  { %1763 = vmatmul.mubr.msk.f32.vlgmr.msra.gmra.mxu0 %vm482_vm0, %v1882_v20  ;;  %858 = vmatpush1.msra.mxu1 %v174_v40  ;;  %v140_v40 = vld [vmem:[%s3574_s0 + $0x390] sm:$0xff] }
  0x58   :  { %964 = vmatprep.subr.mxu0 %v451_v41  ;;  %859 = vmatprep.subr.mxu1 %v163_v42  ;;  %v367_v41 = vld [vmem:[%s3574_s0 + $0xaa8] sm:$0xff]  ;;  %v129_v42 = vld [vmem:[%s3574_s0 + $0x338] sm:$0xff] }
  0x59   :  { %743 = vmatprep.mubr.f32.mxu1 %v2254_v13  ;;  %860 = vmatpush1.msra.mxu1 %v162_v43  ;;  %v366_v43 = vld [vmem:[%s3574_s0 + $0xaa0] sm:$0xff] }
  0x5a   :  { %965 = vmatpush1.msra.mxu0 %v450_v44  ;;  %744 = vmatmul.mubr.f32.gmra.mxu1 %v2262_v15  ;;  %v128_v44 = vld [vmem:[%s3574_s0 + $0x330] sm:$0xff] }
  0x5b   :  { %861 = vmatprep.subr.mxu1 %v151_v45  ;;  %832 = vmatprep.mubr.f32.mxu0 %v1799_v3  ;;  %v355_v45 = vld [vmem:[%s3574_s0 + $0xa48] sm:$0xff] }
  0x5c   :  { %862 = vmatpush1.msra.mxu1 %v150_v46  ;;  %1764 = vmatmul.mubr.msk.f32.gmra.mxu0 %vm482_vm0, %v2201_v63  ;;  %v117_v46 = vld [vmem:[%s3574_s0 + $0x2d8] sm:$0xff] }
  0x5d   :  { %863 = vmatprep.subr.mxu1 %v139_v47  ;;  %966 = vmatprep.subr.mxu0 %v439_v48  ;;  %v354_v47 = vld [vmem:[%s3574_s0 + $0xa40] sm:$0xff]  ;;  %v116_v48 = vld [vmem:[%s3574_s0 + $0x2d0] sm:$0xff] }
  0x5e   :  { %749 = vmatprep.mubr.f32.mxu1 %v2292_v23  ;;  %864 = vmatpush1.msra.mxu1 %v138_v49  ;;  %v343_v49 = vld [vmem:[%s3574_s0 + $0x9e8] sm:$0xff] }
  0x5f   :  { %967 = vmatpush1.msra.mxu0 %v438_v50  ;;  %750 = vmatmul.mubr.f32.gmra.mxu1 %v2300_v25  ;;  %v105_v50 = vld [vmem:[%s3574_s0 + $0x278] sm:$0xff] }
  0x60   :  { %865 = vmatprep.subr.mxu1 %v127_v51  ;;  %838 = vmatprep.mubr.f32.mxu0 %v1799_v3  ;;  %v342_v51 = vld [vmem:[%s3574_s0 + $0x9e0] sm:$0xff] }
  0x61   :  { %866 = vmatpush1.msra.mxu1 %v126_v52  ;;  %1765 = vmatmul.mubr.msk.f32.gmra.mxu0 %vm482_vm0, %v2241_v10  ;;  %v104_v52 = vld [vmem:[%s3574_s0 + $0x270] sm:$0xff] }
  0x62   :  { %867 = vmatprep.subr.mxu1 %v115_v53  ;;  %968 = vmatprep.subr.mxu0 %v427_v54  ;;  %v331_v53 = vld [vmem:[%s3574_s0 + $0x988] sm:$0xff]  ;;  %v93_v54 = vld [vmem:[%s3574_s0 + $0x218] sm:$0xff] }
  0x63   :  { %755 = vmatprep.mubr.f32.mxu1 %v2325_v31  ;;  %868 = vmatpush1.msra.mxu1 %v114_v55  ;;  %v330_v55 = vld [vmem:[%s3574_s0 + $0x980] sm:$0xff] }
  0x64   :  { %969 = vmatpush1.msra.mxu0 %v426_v56  ;;  %756 = vmatmul.mubr.f32.gmra.mxu1 %v2333_v33  ;;  %v92_v56 = vld [vmem:[%s3574_s0 + $0x210] sm:$0xff] }
  0x65   :  { %869 = vmatprep.subr.mxu1 %v103_v57  ;;  %844 = vmatprep.mubr.f32.mxu0 %v1799_v3  ;;  %v319_v57 = vld [vmem:[%s3574_s0 + $0x928] sm:$0xff] }
  0x66   :  { %870 = vmatpush1.msra.mxu1 %v102_v58  ;;  %1766 = vmatmul.mubr.msk.f32.gmra.mxu0 %vm482_vm0, %v2280_v19  ;;  %v81_v58 = vld [vmem:[%s3574_s0 + $0x1b8] sm:$0xff] }
  0x67   :  { %871 = vmatprep.subr.mxu1 %v91_v59  ;;  %970 = vmatprep.subr.mxu0 %v415_v60  ;;  %v318_v59 = vld [vmem:[%s3574_s0 + $0x920] sm:$0xff]  ;;  %v80_v60 = vld [vmem:[%s3574_s0 + $0x1b0] sm:$0xff] }
  0x68   :  { %872 = vmatpush1.msra.mxu1 %v90_v61  ;;  %971 = vmatpush1.msra.mxu0 %v414_v62  ;;  %v307_v61 = vld [vmem:[%s3574_s0 + $0x8c8] sm:$0xff]  ;;  %v69_v62 = vld [vmem:[%s3574_s0 + $0x158] sm:$0xff] }
  0x69   :  { %873 = vmatprep.subr.mxu1 %v79_v0  ;;  %1004 = vmatprep.mubr.f32.mxu0 %v1799_v3  ;;  %v306_v0 = vld [vmem:[%s3574_s0 + $0x8c0] sm:$0xff] }
  0x6a   :  { %874 = vmatpush1.msra.mxu1 %v78_v1  ;;  %1029 = vmatprep.subr.mxu0 %v213_v2  ;;  %v68_v1 = vld [vmem:[%s3574_s0 + $0x150] sm:$0xff]  ;;  %v295_v2 = vld [vmem:[%s3574_s0 + $0x868] sm:$0xff] }
  0x6b   :  { %875 = vmatprep.subr.mxu1 %v67_v4  ;;  %1767 = vmatmul.mubr.msk.f32.vlgmr.msra.gmra.mxu0 %vm482_vm0, %v1882_v20  ;;  %v188_v20 = vld [vmem:[%s3574_s0 + $0x510] sm:$0xff]  ;;  %v57_v4 = vld [vmem:[%s3574_s0 + $0xf8] sm:$0xff] }
  0x6c   :  { %876 = vmatpush1.msra.mxu1 %v66_v6  ;;  %1030 = vmatpush1.msra.mxu0 %v212_v8  ;;  %v294_v6 = vld [vmem:[%s3574_s0 + $0x860] sm:$0xff]  ;;  %v56_v8 = vld [vmem:[%s3574_s0 + $0xf0] sm:$0xff] }
  0x6d   :  { %877 = vmatprep.subr.mxu1 %v55_v9  ;;  %1031 = vmatprep.subr.mxu0 %v201_v11  ;;  %v283_v9 = vld [vmem:[%s3574_s0 + $0x808] sm:$0xff]  ;;  %v45_v11 = vld [vmem:[%s3574_s0 + $0x98] sm:$0xff] }
  0x6e   :  { %878 = vmatpush1.msra.mxu1 %v54_v12  ;;  %1032 = vmatpush1.msra.mxu0 %v200_v14  ;;  %v282_v12 = vld [vmem:[%s3574_s0 + $0x800] sm:$0xff]  ;;  %v44_v14 = vld [vmem:[%s3574_s0 + $0x90] sm:$0xff] }
  0x6f   :  { %879 = vmatprep.subr.mxu1 %v43_v16  ;;  %1033 = vmatprep.subr.mxu0 %v189_v17  ;;  %v271_v16 = vld [vmem:[%s3574_s0 + $0x7a8] sm:$0xff]  ;;  %v33_v17 = vld [vmem:[%s3574_s0 + $0x38] sm:$0xff] }
  0x70   :  { %880 = vmatpush1.msra.mxu1 %v42_v18  ;;  %1034 = vmatpush1.msra.mxu0 %v188_v20  ;;  %v270_v18 = vld [vmem:[%s3574_s0 + $0x7a0] sm:$0xff]  ;;  %v32_v20 = vld [vmem:[%s3574_s0 + $0x30] sm:$0xff] }
  0x71   :  { %881 = vmatprep.subr.mxu1 %v31_v21  ;;  %1035 = vmatprep.subr.mxu0 %v177_v22  ;;  %v259_v21 = vld [vmem:[%s3574_s0 + $0x748] sm:$0xff]  ;;  %v405_v22 = vld [vmem:[%s3574_s0 + $0xbd8] sm:$0xff] }
  0x72   :  { %882 = vmatpush1.msra.mxu1 %v30_v24  ;;  %1036 = vmatpush1.msra.mxu0 %v176_v26  ;;  %v258_v24 = vld [vmem:[%s3574_s0 + $0x740] sm:$0xff]  ;;  %v404_v26 = vld [vmem:[%s3574_s0 + $0xbd0] sm:$0xff] }
  0x73   :  { %883 = vmatprep.subr.mxu1 %v403_v27  ;;  %1037 = vmatprep.subr.mxu0 %v165_v28  ;;  %v247_v27 = vld [vmem:[%s3574_s0 + $0x6e8] sm:$0xff]  ;;  %v393_v28 = vld [vmem:[%s3574_s0 + $0xb78] sm:$0xff] }
  0x74   :  { %884 = vmatpush2.msra.mxu1 %v402_v29  ;;  %1038 = vmatpush1.msra.mxu0 %v164_v30  ;;  %v246_v29 = vld [vmem:[%s3574_s0 + $0x6e0] sm:$0xff]  ;;  %v392_v30 = vld [vmem:[%s3574_s0 + $0xb70] sm:$0xff] }
  0x75   :  { %885 = vmatprep.subr.mxu1 %v391_v32  ;;  %1039 = vmatprep.subr.mxu0 %v153_v34  ;;  %v381_v32 = vld [vmem:[%s3574_s0 + $0xb18] sm:$0xff]  ;;  %v235_v34 = vld [vmem:[%s3574_s0 + $0x688] sm:$0xff] }
  0x76   :  { %886 = vmatpush2.msra.mxu1 %v390_v35  ;;  %1040 = vmatpush1.msra.mxu0 %v152_v36  ;;  %v380_v35 = vld [vmem:[%s3574_s0 + $0xb10] sm:$0xff]  ;;  %v458_v36 = vld [vmem:[%s3576_s2] sm:$0xff] }
  0x77   :  { %887 = vmatprep.subr.mxu1 %v379_v37  ;;  %1041 = vmatprep.subr.mxu0 %v141_v38  ;;  %v1800_v37 = vmov 0   ;;  %v234_v38 = vld [vmem:[%s3574_s0 + $0x680] sm:$0xff] }
  0x78   :  { %888 = vmatpush2.msra.mxu1 %v378_v39  ;;  %1042 = vmatpush1.msra.mxu0 %v140_v40  ;;  %v369_v39 = vld [vmem:[%s3574_s0 + $0xab8] sm:$0xff]  ;;  %v223_v40 = vld [vmem:[%s3574_s0 + $0x628] sm:$0xff] }
  0x79   :  { %889 = vmatprep.subr.mxu1 %v367_v41  ;;  %1043 = vmatprep.subr.mxu0 %v129_v42  ;;  %v368_v41 = vld [vmem:[%s3574_s0 + $0xab0] sm:$0xff]  ;;  %v222_v42 = vld [vmem:[%s3574_s0 + $0x620] sm:$0xff] }
  0x7a   :  { %890 = vmatpush2.msra.mxu1 %v366_v43  ;;  %1044 = vmatpush1.msra.mxu0 %v128_v44  ;;  %v357_v43 = vld [vmem:[%s3574_s0 + $0xa58] sm:$0xff]  ;;  %v356_v44 = vld [vmem:[%s3574_s0 + $0xa50] sm:$0xff] }
  0x7b   :  { %891 = vmatprep.subr.mxu1 %v355_v45  ;;  %1045 = vmatprep.subr.mxu0 %v117_v46  ;;  %v459_v45 = vld [vmem:[%s3576_s2 + $0x8] sm:$0xff]  ;;  %v345_v46 = vld [vmem:[%s3574_s0 + $0x9f8] sm:$0xff] }
  0x7c   :  { %892 = vmatpush2.msra.mxu1 %v354_v47  ;;  %1046 = vmatpush1.msra.mxu0 %v116_v48  ;;  %v344_v47 = vld [vmem:[%s3574_s0 + $0x9f0] sm:$0xff]  ;;  %v333_v48 = vld [vmem:[%s3574_s0 + $0x998] sm:$0xff] }
  0x7d   :  { %893 = vmatprep.subr.mxu1 %v343_v49  ;;  %1047 = vmatprep.subr.mxu0 %v105_v50  ;;  %v332_v49 = vld [vmem:[%s3574_s0 + $0x990] sm:$0xff] }
  0x7e   :  { %894 = vmatpush2.msra.mxu1 %v342_v51  ;;  %1048 = vmatpush1.msra.mxu0 %v104_v52  ;;  %v460_v50 = vld [vmem:[%s3576_s2 + $0x10] sm:$0xff]  ;;  %v321_v51 = vld [vmem:[%s3574_s0 + $0x938] sm:$0xff] }
  0x7f   :  { %895 = vmatprep.subr.mxu1 %v331_v53  ;;  %1049 = vmatprep.subr.mxu0 %v93_v54  ;;  %v320_v52 = vld [vmem:[%s3574_s0 + $0x930] sm:$0xff]  ;;  %v309_v53 = vld [vmem:[%s3574_s0 + $0x8d8] sm:$0xff] }
  0x80   :  { %896 = vmatpush2.msra.mxu1 %v330_v55  ;;  %1050 = vmatpush1.msra.mxu0 %v92_v56  ;;  %v453_v54 = vld [vmem:[%s3574_s0 + $0xd58] sm:$0xff]  ;;  %v308_v55 = vld [vmem:[%s3574_s0 + $0x8d0] sm:$0xff] }
  0x81   :  { %897 = vmatprep.subr.mxu1 %v319_v57  ;;  %1051 = vmatprep.subr.mxu0 %v81_v58  ;;  %v452_v56 = vld [vmem:[%s3574_s0 + $0xd50] sm:$0xff]  ;;  %v461_v57 = vld [vmem:[%s3576_s2 + $0x18] sm:$0xff] }
  0x82   :  { %898 = vmatpush2.msra.mxu1 %v318_v59  ;;  %1052 = vmatpush1.msra.mxu0 %v80_v60  ;;  %v297_v58 = vld [vmem:[%s3574_s0 + $0x878] sm:$0xff]  ;;  %v296_v60 = vld [vmem:[%s3574_s0 + $0x870] sm:$0xff] }
  0x83   :  { %899 = vmatprep.subr.mxu1 %v307_v61  ;;  %1053 = vmatprep.subr.mxu0 %v69_v62  ;;  %v441_v59 = vld [vmem:[%s3574_s0 + $0xcf8] sm:$0xff]  ;;  %v440_v61 = vld [vmem:[%s3574_s0 + $0xcf0] sm:$0xff] }
  0x84   :  { %900 = vmatpush2.msra.mxu1 %v306_v0  ;;  %1054 = vmatpush1.msra.mxu0 %v68_v1  ;;  %v285_v62 = vld [vmem:[%s3574_s0 + $0x818] sm:$0xff]  ;;  %v428_v1 = vld [vmem:[%s3574_s0 + $0xc90] sm:$0xff] }
  0x85   :  { %901 = vmatprep.subr.mxu1 %v295_v2  ;;  %1055 = vmatprep.subr.mxu0 %v57_v4  ;;  %v429_v0 = vld [vmem:[%s3574_s0 + $0xc98] sm:$0xff]  ;;  %v284_v2 = vld [vmem:[%s3574_s0 + $0x810] sm:$0xff] }
  0x86   :  { %902 = vmatpush2.msra.mxu1 %v294_v6  ;;  %1056 = vmatpush1.msra.mxu0 %v56_v8  ;;  %v417_v4 = vld [vmem:[%s3574_s0 + $0xc38] sm:$0xff]  ;;  %v416_v8 = vld [vmem:[%s3574_s0 + $0xc30] sm:$0xff] }
  0x87   :  { %903 = vmatprep.subr.mxu1 %v283_v9  ;;  %1057 = vmatprep.subr.mxu0 %v45_v11  ;;  %v273_v6 = vld [vmem:[%s3574_s0 + $0x7b8] sm:$0xff]  ;;  %v272_v9 = vld [vmem:[%s3574_s0 + $0x7b0] sm:$0xff] }
  0x88   :  { %904 = vmatpush2.msra.mxu1 %v282_v12  ;;  %1058 = vmatpush1.msra.mxu0 %v44_v14  ;;  %v261_v11 = vld [vmem:[%s3574_s0 + $0x758] sm:$0xff]  ;;  %v215_v12 = vld [vmem:[%s3574_s0 + $0x5e8] sm:$0xff]  ;;  %v260_v14 = vld [vmem:[%s3574_s0 + $0x750] sm:$0xff] }
  0x89   :  { %905 = vmatprep.subr.mxu1 %v271_v16  ;;  %1059 = vmatprep.subr.mxu0 %v33_v17  ;;  %v214_v16 = vld [vmem:[%s3574_s0 + $0x5e0] sm:$0xff]  ;;  %v249_v17 = vld [vmem:[%s3574_s0 + $0x6f8] sm:$0xff] }
  0x8a   :  { %906 = vmatpush2.msra.mxu1 %v270_v18  ;;  %1060 = vmatpush1.msra.mxu0 %v32_v20  ;;  %v203_v18 = vld [vmem:[%s3574_s0 + $0x588] sm:$0xff]  ;;  %v248_v20 = vld [vmem:[%s3574_s0 + $0x6f0] sm:$0xff] }
  0x8b   :  { %907 = vmatprep.subr.mxu1 %v259_v21  ;;  %1061 = vmatprep.subr.mxu0 %v405_v22  ;;  %v2818_v21 = vld [vmem:[%s3575_s1 + $0x10] sm:$0xff]  ;;  %v202_v22 = vld [vmem:[%s3574_s0 + $0x580] sm:$0xff] }
  0x8c   :  { %908 = vmatpush2.msra.mxu1 %v258_v24  ;;  %1062 = vmatpush2.msra.mxu0 %v404_v26  ;;  %v237_v24 = vld [vmem:[%s3574_s0 + $0x698] sm:$0xff]  ;;  %v191_v26 = vld [vmem:[%s3574_s0 + $0x528] sm:$0xff] }
  0x8d   :  { %909 = vmatprep.subr.mxu1 %v247_v27  ;;  %1063 = vmatprep.subr.mxu0 %v393_v28  ;;  %v236_v27 = vld [vmem:[%s3574_s0 + $0x690] sm:$0xff]  ;;  %v190_v28 = vld [vmem:[%s3574_s0 + $0x520] sm:$0xff] }
  0x8e   :  { %910 = vmatpush2.msra.mxu1 %v246_v29  ;;  %1064 = vmatpush2.msra.mxu0 %v392_v30  ;;  %v225_v29 = vld [vmem:[%s3574_s0 + $0x638] sm:$0xff]  ;;  %v179_v30 = vld [vmem:[%s3574_s0 + $0x4c8] sm:$0xff] }
  0x8f   :  { %1785 = vset.pattern.permute.xlu0 %v1800_v37  ;;  %1065 = vmatprep.subr.mxu0 %v381_v32  ;;  %v224_v32 = vld [vmem:[%s3574_s0 + $0x630] sm:$0xff] }
  0x90   :  { %911 = vmatprep.subr.mxu1 %v235_v34  ;;  %1066 = vmatpush2.msra.mxu0 %v380_v35  ;;  %v178_v34 = vld [vmem:[%s3574_s0 + $0x4c0] sm:$0xff]  ;;  %v167_v35 = vld [vmem:[%s3574_s0 + $0x468] sm:$0xff] }
  0x91   :  { %464 = vperm.xlu0 %1785, %v458_v36   ;;  %912 = vmatpush2.msra.mxu1 %v234_v38  ;;  %v455_v36 = vld [vmem:[%s3574_s0 + $0xd68] sm:$0xff]  ;;  %v454_v38 = vld [vmem:[%s3574_s0 + $0xd60] sm:$0xff] }
  0x92   :  { %1067 = vmatprep.subr.mxu0 %v369_v39  ;;  %913 = vmatprep.subr.mxu1 %v223_v40  ;;  %v155_v39 = vld [vmem:[%s3574_s0 + $0x408] sm:$0xff]  ;;  %v154_v40 = vld [vmem:[%s3574_s0 + $0x400] sm:$0xff] }
  0x93   :  { %1068 = vmatpush2.msra.mxu0 %v368_v41  ;;  %914 = vmatpush2.msra.mxu1 %v222_v42  ;;  %v443_v41 = vld [vmem:[%s3574_s0 + $0xd08] sm:$0xff]  ;;  %v442_v42 = vld [vmem:[%s3574_s0 + $0xd00] sm:$0xff] }
  0x94   :  { %915 = vmatprep.mubr.f32.mxu1 %v2221_v5  ;;  %1069 = vmatprep.subr.mxu0 %v357_v43  ;;  %v131_v43 = vld [vmem:[%s3574_s0 + $0x348] sm:$0xff] }
  0x95   :  { %916 = vmatmul.mubr.f32.vlgmr.msra.gmra.mxu1 %v2229_v7  ;;  %1070 = vmatpush2.msra.mxu0 %v356_v44  ;;  %v119_v44 = vld [vmem:[%s3574_s0 + $0x2e8] sm:$0xff] }
  0x96   :  { %469 = vperm.xlu0 %1785, %v459_v45   ;;  %1071 = vmatprep.subr.mxu0 %v345_v46  ;;  %v118_v45 = vld [vmem:[%s3574_s0 + $0x2e0] sm:$0xff] }
  0x97   :  { %921 = vmatprep.mubr.f32.mxu1 %v2254_v13  ;;  %1072 = vmatpush2.msra.mxu0 %v344_v47  ;;  %v430_v46 = vld [vmem:[%s3574_s0 + $0xca0] sm:$0xff]  ;;  %v95_v47 = vld [vmem:[%s3574_s0 + $0x228] sm:$0xff] }
  0x98   :  { %1786 = vset.pattern.permute.xlu1 %v1800_v37  ;;  %1073 = vmatprep.subr.mxu0 %v333_v48  ;;  %v166_v37 = vld [vmem:[%s3574_s0 + $0x460] sm:$0xff] }
  0x99   :  { %922 = vmatmul.mubr.f32.gmra.mxu1 %v2262_v15  ;;  %1074 = vmatpush2.msra.mxu0 %v332_v49  ;;  %v94_v48 = vld [vmem:[%s3574_s0 + $0x220] sm:$0xff] }
  0x9a   :  { %474 = vperm.xlu1 %1786, %v460_v50   ;;  %1075 = vmatprep.subr.mxu0 %v321_v51  ;;  %v418_v49 = vld [vmem:[%s3574_s0 + $0xc40] sm:$0xff]  ;;  %v217_v50 = vld [vmem:[%s3574_s0 + $0x5f8] sm:$0xff] }
  0x9b   :  { %927 = vmatprep.mubr.f32.mxu1 %v2292_v23  ;;  %1076 = vmatpush2.msra.mxu0 %v320_v52  ;;  %v70_v51 = vld [vmem:[%s3574_s0 + $0x160] sm:$0xff]  ;;  %v216_v52 = vld [vmem:[%s3574_s0 + $0x5f0] sm:$0xff] }
  0x9c   :  { %1010 = vmatprep.mubr.f32.mxu0 %v1799_v3  ;;  %1077 = vmatprep.subr.mxu0 %v309_v53  ;;  %v59_v53 = vld [vmem:[%s3574_s0 + $0x108] sm:$0xff] }
  0x9d   :  { %1142 = vmatprep.subr.mxu1 %v453_v54  ;;  %928 = vmatmul.mubr.f32.gmra.mxu1 %v2300_v25  ;;  %v58_v54 = vld [vmem:[%s3574_s0 + $0x100] sm:$0xff] }
  0x9e   :  { %1768 = vmatmul.mubr.msk.f32.gmra.mxu0 %vm482_vm0, %v2201_v63  ;;  %1143 = vmatpush1.msra.mxu1 %v452_v56  ;;  %v47_v56 = vld [vmem:[%s3574_s0 + $0xa8] sm:$0xff] }
  0x9f   :  { %1078 = vmatpush2.msra.mxu0 %v308_v55  ;;  %479 = vperm.xlu1 %1786, %v461_v57   ;;  %v204_v55 = vld [vmem:[%s3574_s0 + $0x590] sm:$0xff]  ;;  %v193_v57 = vld [vmem:[%s3574_s0 + $0x538] sm:$0xff] }
  0xa0   :  { %1079 = vmatprep.subr.mxu0 %v297_v58  ;;  %1144 = vmatprep.subr.mxu1 %v441_v59  ;;  %v46_v58 = vld [vmem:[%s3574_s0 + $0xa0] sm:$0xff]  ;;  %v192_v59 = vld [vmem:[%s3574_s0 + $0x530] sm:$0xff] }
  0xa1   :  { %1080 = vmatpush2.msra.mxu0 %v296_v60  ;;  %1145 = vmatpush1.msra.mxu1 %v440_v61  ;;  %v35_v60 = vld [vmem:[%s3574_s0 + $0x48] sm:$0xff]  ;;  %v181_v61 = vld [vmem:[%s3574_s0 + $0x4d8] sm:$0xff] }
  0xa2   :  { %933 = vmatprep.mubr.f32.mxu1 %v2325_v31  ;;  %1016 = vmatprep.mubr.f32.mxu0 %v1799_v3 }
  0xa3   :  { %1081 = vmatprep.subr.mxu0 %v285_v62  ;;  %1146 = vmatprep.subr.mxu1 %v429_v0  ;;  %v34_v62 = vld [vmem:[%s3574_s0 + $0x40] sm:$0xff]  ;;  %v180_v0 = vld [vmem:[%s3574_s0 + $0x4d0] sm:$0xff] }
  0xa4   :  { %934 = vmatmul.mubr.f32.gmra.mxu1 %v2333_v33  ;;  %1769 = vmatmul.mubr.msk.f32.gmra.mxu0 %vm482_vm0, %v2241_v10 }
  0xa5   :  { %1147 = vmatpush1.msra.mxu1 %v428_v1  ;;  %1082 = vmatpush2.msra.mxu0 %v284_v2  ;;  %v407_v1 = vld [vmem:[%s3574_s0 + $0xbe8] sm:$0xff]  ;;  %v169_v2 = vld [vmem:[%s3574_s0 + $0x478] sm:$0xff] }
  0xa6   :  { %1148 = vmatprep.subr.mxu1 %v417_v4  ;;  %1083 = vmatprep.subr.mxu0 %v273_v6  ;;  %v406_v4 = vld [vmem:[%s3574_s0 + $0xbe0] sm:$0xff]  ;;  %v168_v6 = vld [vmem:[%s3574_s0 + $0x470] sm:$0xff] }
  0xa7   :  { %1149 = vmatpush1.msra.mxu1 %v416_v8  ;;  %1084 = vmatpush2.msra.mxu0 %v272_v9  ;;  %v395_v8 = vld [vmem:[%s3574_s0 + $0xb88] sm:$0xff]  ;;  %v157_v9 = vld [vmem:[%s3574_s0 + $0x418] sm:$0xff] }
  0xa8   :  { %1022 = vmatprep.mubr.f32.mxu0 %v1799_v3  ;;  %1085 = vmatprep.subr.mxu0 %v261_v11  ;;  %v394_v11 = vld [vmem:[%s3574_s0 + $0xb80] sm:$0xff] }
  0xa9   :  { %1182 = vmatprep.mubr.f32.mxu1 %v1799_v3  ;;  %1207 = vmatprep.subr.mxu1 %v215_v12  ;;  %v156_v12 = vld [vmem:[%s3574_s0 + $0x410] sm:$0xff] }
  0xaa   :  { %1770 = vmatmul.mubr.msk.f32.gmra.mxu0 %vm482_vm0, %v2280_v19  ;;  %1771 = vmatmul.mubr.msk.f32.vlgmr.msra.gmra.mxu1 %vm482_vm0, %v2818_v21 }
  0xab   :  { %1086 = vmatpush2.msra.mxu0 %v260_v14  ;;  %1208 = vmatpush1.msra.mxu1 %v214_v16  ;;  %v383_v14 = vld [vmem:[%s3574_s0 + $0xb28] sm:$0xff]  ;;  %v145_v16 = vld [vmem:[%s3574_s0 + $0x3b8] sm:$0xff] }
  0xac   :  { %1087 = vmatprep.subr.mxu0 %v249_v17  ;;  %1209 = vmatprep.subr.mxu1 %v203_v18  ;;  %v382_v17 = vld [vmem:[%s3574_s0 + $0xb20] sm:$0xff]  ;;  %v144_v18 = vld [vmem:[%s3574_s0 + $0x3b0] sm:$0xff] }
  0xad   :  { %1088 = vmatpush2.msra.mxu0 %v248_v20  ;;  %1210 = vmatpush1.msra.mxu1 %v202_v22  ;;  %v371_v20 = vld [vmem:[%s3574_s0 + $0xac8] sm:$0xff]  ;;  %v133_v22 = vld [vmem:[%s3574_s0 + $0x358] sm:$0xff] }
  0xae   :  { %1089 = vmatprep.subr.mxu0 %v237_v24  ;;  %1211 = vmatprep.subr.mxu1 %v191_v26  ;;  %v370_v24 = vld [vmem:[%s3574_s0 + $0xac0] sm:$0xff]  ;;  %v132_v26 = vld [vmem:[%s3574_s0 + $0x350] sm:$0xff] }
  0xaf   :  { %1090 = vmatpush2.msra.mxu0 %v236_v27  ;;  %1212 = vmatpush1.msra.mxu1 %v190_v28  ;;  %v359_v27 = vld [vmem:[%s3574_s0 + $0xa68] sm:$0xff]  ;;  %v121_v28 = vld [vmem:[%s3574_s0 + $0x2f8] sm:$0xff] }
  0xb0   :  { %1091 = vmatprep.subr.mxu0 %v225_v29  ;;  %1213 = vmatprep.subr.mxu1 %v179_v30  ;;  %v358_v29 = vld [vmem:[%s3574_s0 + $0xa60] sm:$0xff]  ;;  %v120_v30 = vld [vmem:[%s3574_s0 + $0x2f0] sm:$0xff] }
  0xb1   :  { %1092 = vmatpush2.msra.mxu0 %v224_v32  ;;  %1093 = vmatprep.mubr.f32.mxu0 %v2221_v5  ;;  %v143_v5 = vld [vmem:[%s3574_s0 + $0x3a8] sm:$0xff] }
  0xb2   :  { %1214 = vmatpush1.msra.mxu1 %v178_v34  ;;  %1094 = vmatmul.mubr.f32.vlgmr.msra.gmra.mxu0 %v2229_v7  ;;  %v142_v7 = vld [vmem:[%s3574_s0 + $0x3a0] sm:$0xff]  ;;  %v347_v32 = vld [vmem:[%s3574_s0 + $0xa08] sm:$0xff]  ;;  %v109_v34 = vld [vmem:[%s3574_s0 + $0x298] sm:$0xff] }
  0xb3   :  { %1215 = vmatprep.subr.mxu1 %v167_v35  ;;  %1320 = vmatprep.subr.mxu0 %v455_v36  ;;  %v346_v35 = vld [vmem:[%s3574_s0 + $0xa00] sm:$0xff]  ;;  %v108_v36 = vld [vmem:[%s3574_s0 + $0x290] sm:$0xff] }
  0xb4   :  { %1216 = vmatpush1.msra.mxu1 %v166_v37  ;;  %1321 = vmatpush1.msra.mxu0 %v454_v38  ;;  %v335_v37 = vld [vmem:[%s3574_s0 + $0x9a8] sm:$0xff]  ;;  %v97_v38 = vld [vmem:[%s3574_s0 + $0x238] sm:$0xff] }
  0xb5   :  { %1217 = vmatprep.subr.mxu1 %v155_v39  ;;  %1099 = vmatprep.mubr.f32.mxu0 %v2254_v13  ;;  %v130_v13 = vld [vmem:[%s3574_s0 + $0x340] sm:$0xff] }
  0xb6   :  { %1218 = vmatpush1.msra.mxu1 %v154_v40  ;;  %1100 = vmatmul.mubr.f32.gmra.mxu0 %v2262_v15  ;;  %v431_v15 = vld [vmem:[%s3574_s0 + $0xca8] sm:$0xff]  ;;  %v334_v39 = vld [vmem:[%s3574_s0 + $0x9a0] sm:$0xff]  ;;  %v96_v40 = vld [vmem:[%s3574_s0 + $0x230] sm:$0xff] }
  0xb7   :  { %1219 = vmatprep.subr.mxu1 %v143_v5  ;;  %1322 = vmatprep.subr.mxu0 %v443_v41  ;;  %v323_v5 = vld [vmem:[%s3574_s0 + $0x948] sm:$0xff]  ;;  %v85_v41 = vld [vmem:[%s3574_s0 + $0x1d8] sm:$0xff] }
  0xb8   :  { %1188 = vmatprep.mubr.f32.mxu1 %v1799_v3  ;;  %1220 = vmatpush1.msra.mxu1 %v142_v7  ;;  %v322_v7 = vld [vmem:[%s3574_s0 + $0x940] sm:$0xff] }
  0xb9   :  { %1323 = vmatpush1.msra.mxu0 %v442_v42  ;;  %1772 = vmatmul.mubr.msk.f32.gmra.mxu1 %vm482_vm0, %v2201_v63  ;;  %v107_v63 = vld [vmem:[%s3574_s0 + $0x288] sm:$0xff]  ;;  %v84_v42 = vld [vmem:[%s3574_s0 + $0x1d0] sm:$0xff] }
  0xba   :  { %1221 = vmatprep.subr.mxu1 %v131_v43  ;;  %1105 = vmatprep.mubr.f32.mxu0 %v2292_v23  ;;  %v106_v23 = vld [vmem:[%s3574_s0 + $0x280] sm:$0xff]  ;;  %v311_v43 = vld [vmem:[%s3574_s0 + $0x8e8] sm:$0xff] }
  0xbb   :  { %1222 = vmatpush1.msra.mxu1 %v130_v13  ;;  %1106 = vmatmul.mubr.f32.gmra.mxu0 %v2300_v25  ;;  %v419_v25 = vld [vmem:[%s3574_s0 + $0xc48] sm:$0xff]  ;;  %v73_v13 = vld [vmem:[%s3574_s0 + $0x178] sm:$0xff] }
  0xbc   :  { %1223 = vmatprep.subr.mxu1 %v119_v44  ;;  %1324 = vmatprep.subr.mxu0 %v431_v15  ;;  %v310_v44 = vld [vmem:[%s3574_s0 + $0x8e0] sm:$0xff]  ;;  %v72_v15 = vld [vmem:[%s3574_s0 + $0x170] sm:$0xff] }
  0xbd   :  { %1194 = vmatprep.mubr.f32.mxu1 %v1799_v3  ;;  %1224 = vmatpush1.msra.mxu1 %v118_v45  ;;  %v299_v45 = vld [vmem:[%s3574_s0 + $0x888] sm:$0xff] }
  0xbe   :  { %1325 = vmatpush1.msra.mxu0 %v430_v46  ;;  %1773 = vmatmul.mubr.msk.f32.gmra.mxu1 %vm482_vm0, %v2241_v10  ;;  %v83_v10 = vld [vmem:[%s3574_s0 + $0x1c8] sm:$0xff]  ;;  %v61_v46 = vld [vmem:[%s3574_s0 + $0x118] sm:$0xff] }
  0xbf   :  { %1225 = vmatprep.subr.mxu1 %v107_v63  ;;  %1111 = vmatprep.mubr.f32.mxu0 %v2325_v31  ;;  %v82_v31 = vld [vmem:[%s3574_s0 + $0x1c0] sm:$0xff] }
  0xc0   :  { %1226 = vmatpush1.msra.mxu1 %v106_v23  ;;  %1112 = vmatmul.mubr.f32.gmra.mxu0 %v2333_v33  ;;  %v71_v33 = vld [vmem:[%s3574_s0 + $0x168] sm:$0xff]  ;;  %v298_v63 = vld [vmem:[%s3574_s0 + $0x880] sm:$0xff]  ;;  %v60_v23 = vld [vmem:[%s3574_s0 + $0x110] sm:$0xff] }
  0xc1   :  { %1227 = vmatprep.subr.mxu1 %v95_v47  ;;  %1326 = vmatprep.subr.mxu0 %v419_v25  ;;  %v287_v47 = vld [vmem:[%s3574_s0 + $0x828] sm:$0xff]  ;;  %v49_v25 = vld [vmem:[%s3574_s0 + $0xb8] sm:$0xff] }
  0xc2   :  { %1200 = vmatprep.mubr.f32.mxu1 %v1799_v3  ;;  %1228 = vmatpush1.msra.mxu1 %v94_v48  ;;  %v286_v48 = vld [vmem:[%s3574_s0 + $0x820] sm:$0xff] }
  0xc3   :  { %1327 = vmatpush1.msra.mxu0 %v418_v49  ;;  %1774 = vmatmul.mubr.msk.f32.gmra.mxu1 %vm482_vm0, %v2280_v19  ;;  %v205_v19 = vld [vmem:[%s3574_s0 + $0x598] sm:$0xff]  ;;  %v48_v49 = vld [vmem:[%s3574_s0 + $0xb0] sm:$0xff] }
  0xc4   :  { %1229 = vmatprep.subr.mxu1 %v83_v10  ;;  %1360 = vmatprep.mubr.f32.mxu0 %v1799_v3  ;;  %v275_v10 = vld [vmem:[%s3574_s0 + $0x7c8] sm:$0xff] }
  0xc5   :  { %1230 = vmatpush1.msra.mxu1 %v82_v31  ;;  %1385 = vmatprep.subr.mxu0 %v217_v50  ;;  %v37_v31 = vld [vmem:[%s3574_s0 + $0x58] sm:$0xff]  ;;  %v274_v50 = vld [vmem:[%s3574_s0 + $0x7c0] sm:$0xff] }
  0xc6   :  { %1231 = vmatprep.subr.mxu1 %v71_v33  ;;  %1775 = vmatmul.mubr.msk.f32.vlgmr.msra.gmra.mxu0 %vm482_vm0, %v2818_v21  ;;  %v36_v33 = vld [vmem:[%s3574_s0 + $0x50] sm:$0xff] }
  0xc7   :  { %1232 = vmatpush1.msra.mxu1 %v70_v51  ;;  %1386 = vmatpush1.msra.mxu0 %v216_v52  ;;  %v263_v51 = vld [vmem:[%s3574_s0 + $0x768] sm:$0xff]  ;;  %v409_v52 = vld [vmem:[%s3574_s0 + $0xbf8] sm:$0xff] }
  0xc8   :  { %1233 = vmatprep.subr.mxu1 %v59_v53  ;;  %1387 = vmatprep.subr.mxu0 %v205_v19  ;;  %v262_v53 = vld [vmem:[%s3574_s0 + $0x760] sm:$0xff]  ;;  %v408_v19 = vld [vmem:[%s3574_s0 + $0xbf0] sm:$0xff] }
  0xc9   :  { %1234 = vmatpush1.msra.mxu1 %v58_v54  ;;  %1388 = vmatpush1.msra.mxu0 %v204_v55  ;;  %v251_v54 = vld [vmem:[%s3574_s0 + $0x708] sm:$0xff]  ;;  %v397_v55 = vld [vmem:[%s3574_s0 + $0xb98] sm:$0xff] }
  0xca   :  { %1235 = vmatprep.subr.mxu1 %v47_v56  ;;  %1389 = vmatprep.subr.mxu0 %v193_v57  ;;  %v250_v56 = vld [vmem:[%s3574_s0 + $0x700] sm:$0xff]  ;;  %v396_v57 = vld [vmem:[%s3574_s0 + $0xb90] sm:$0xff] }
  0xcb   :  { %1236 = vmatpush1.msra.mxu1 %v46_v58  ;;  %1390 = vmatpush1.msra.mxu0 %v192_v59  ;;  %v239_v58 = vld [vmem:[%s3574_s0 + $0x6a8] sm:$0xff]  ;;  %v385_v59 = vld [vmem:[%s3574_s0 + $0xb38] sm:$0xff] }
  0xcc   :  { %1237 = vmatprep.subr.mxu1 %v35_v60  ;;  %1391 = vmatprep.subr.mxu0 %v181_v61  ;;  %v238_v60 = vld [vmem:[%s3574_s0 + $0x6a0] sm:$0xff]  ;;  %v384_v61 = vld [vmem:[%s3574_s0 + $0xb30] sm:$0xff] }
  0xcd   :  { %1238 = vmatpush1.msra.mxu1 %v34_v62  ;;  %1392 = vmatpush1.msra.mxu0 %v180_v0  ;;  %v227_v62 = vld [vmem:[%s3574_s0 + $0x648] sm:$0xff]  ;;  %v373_v0 = vld [vmem:[%s3574_s0 + $0xad8] sm:$0xff] }
  0xce   :  { %1239 = vmatprep.subr.mxu1 %v407_v1  ;;  %1393 = vmatprep.subr.mxu0 %v169_v2  ;;  %v226_v1 = vld [vmem:[%s3574_s0 + $0x640] sm:$0xff]  ;;  %v372_v2 = vld [vmem:[%s3574_s0 + $0xad0] sm:$0xff] }
  0xcf   :  { %1240 = vmatpush2.msra.mxu1 %v406_v4  ;;  %1394 = vmatpush1.msra.mxu0 %v168_v6  ;;  %v361_v4 = vld [vmem:[%s3574_s0 + $0xa78] sm:$0xff]  ;;  %v360_v6 = vld [vmem:[%s3574_s0 + $0xa70] sm:$0xff] }
  0xd0   :  { %1241 = vmatprep.subr.mxu1 %v395_v8  ;;  %1395 = vmatprep.subr.mxu0 %v157_v9  ;;  %v3190_v8 = vld [vmem:[%s3575_s1 + $0x8] sm:$0xff]  ;;  %v349_v9 = vld [vmem:[%s3574_s0 + $0xa18] sm:$0xff] }
  0xd1   :  { %1242 = vmatpush2.msra.mxu1 %v394_v11  ;;  %1396 = vmatpush1.msra.mxu0 %v156_v12  ;;  %v3199_v11 = vld [vmem:[%s3575_s1] sm:$0xff]  ;;  %v348_v12 = vld [vmem:[%s3574_s0 + $0xa10] sm:$0xff] }
  0xd2   :  { %1243 = vmatprep.subr.mxu1 %v383_v14  ;;  %1397 = vmatprep.subr.mxu0 %v145_v16  ;;  %v457_v14 = vld [vmem:[%s3574_s0 + $0xd78] sm:$0xff] }
  0xd3   :  { %1244 = vmatpush2.msra.mxu1 %v382_v17  ;;  %1398 = vmatpush1.msra.mxu0 %v144_v18  ;;  %v337_v16 = vld [vmem:[%s3574_s0 + $0x9b8] sm:$0xff]  ;;  %v3214_v17 = vld [vmem:[%s3575_s1 + $0x20] sm:$0xff]  ;;  %v336_v18 = vld [vmem:[%s3574_s0 + $0x9b0] sm:$0xff] }
  0xd4   :  { %1245 = vmatprep.subr.mxu1 %v371_v20  ;;  %1399 = vmatprep.subr.mxu0 %v133_v22  ;;  %v325_v20 = vld [vmem:[%s3574_s0 + $0x958] sm:$0xff] }
  0xd5   :  { %1246 = vmatpush2.msra.mxu1 %v370_v24  ;;  %1400 = vmatpush1.msra.mxu0 %v132_v26  ;;  %v3227_v22 = vld [vmem:[%s3575_s1 + $0x18] sm:$0xff]  ;;  %v324_v24 = vld [vmem:[%s3574_s0 + $0x950] sm:$0xff] }
  0xd6   :  { %1247 = vmatprep.subr.mxu1 %v359_v27  ;;  %1401 = vmatprep.subr.mxu0 %v121_v28  ;;  %v456_v26 = vld [vmem:[%s3574_s0 + $0xd70] sm:$0xff]  ;;  %v313_v27 = vld [vmem:[%s3574_s0 + $0x8f8] sm:$0xff] }
  0xd7   :  { %1248 = vmatpush2.msra.mxu1 %v358_v29  ;;  %1402 = vmatpush1.msra.mxu0 %v120_v30  ;;  %v3242_v28 = vld [vmem:[%s3575_s1 + $0x38] sm:$0xff]  ;;  %v3248_v29 = vld [vmem:[%s3575_s1 + $0x28] sm:$0xff]  ;;  %v312_v30 = vld [vmem:[%s3574_s0 + $0x8f0] sm:$0xff] }
  0xd8   :  { %1249 = vmatprep.subr.mxu1 %v347_v32  ;;  %1403 = vmatprep.subr.mxu0 %v109_v34  ;;  %v301_v32 = vld [vmem:[%s3574_s0 + $0x898] sm:$0xff]  ;;  %v3261_v34 = vld [vmem:[%s3575_s1 + $0x30] sm:$0xff] }
  0xd9   :  { %1250 = vmatpush2.msra.mxu1 %v346_v35  ;;  %1404 = vmatpush1.msra.mxu0 %v108_v36  ;;  %v300_v35 = vld [vmem:[%s3574_s0 + $0x890] sm:$0xff]  ;;  %v289_v36 = vld [vmem:[%s3574_s0 + $0x838] sm:$0xff] }
  0xda   :  { %1251 = vmatprep.subr.mxu1 %v335_v37  ;;  %1405 = vmatprep.subr.mxu0 %v97_v38  ;;  %v445_v37 = vld [vmem:[%s3574_s0 + $0xd18] sm:$0xff]  ;;  %v3277_v38 = vld [vmem:[%s3575_s1 + $0x40] sm:$0xff] }
  0xdb   :  { %1252 = vmatpush2.msra.mxu1 %v334_v39  ;;  %1406 = vmatpush1.msra.mxu0 %v96_v40  ;;  %v288_v39 = vld [vmem:[%s3574_s0 + $0x830] sm:$0xff] }
  0xdc   :  { %1253 = vmatprep.subr.mxu1 %v323_v5  ;;  %1407 = vmatprep.subr.mxu0 %v85_v41  ;;  %v3287_v40 = vld [vmem:[%s3575_s1 + $0x50] sm:$0xff]  ;;  %v277_v5 = vld [vmem:[%s3574_s0 + $0x7d8] sm:$0xff] }
  0xdd   :  { %1254 = vmatpush2.msra.mxu1 %v322_v7  ;;  %1408 = vmatpush1.msra.mxu0 %v84_v42  ;;  %v444_v41 = vld [vmem:[%s3574_s0 + $0xd10] sm:$0xff]  ;;  %v3296_v7 = vpop.f32.mrf.mxu1 }
  0xde   :  { %1255 = vmatprep.subr.mxu1 %v311_v43  ;;  %1409 = vmatprep.subr.mxu0 %v73_v13  ;;  %v276_v42 = vld [vmem:[%s3574_s0 + $0x7d0] sm:$0xff]  ;;  %v3304_v43 = vld [vmem:[%s3575_s1 + $0x48] sm:$0xff]  ;;  %v265_v13 = vld [vmem:[%s3574_s0 + $0x778] sm:$0xff] }
  0xdf   :  { %1256 = vmatpush2.msra.mxu1 %v310_v44  ;;  %1410 = vmatpush1.msra.mxu0 %v72_v15  ;;  %v264_v44 = vld [vmem:[%s3574_s0 + $0x770] sm:$0xff]  ;;  %v433_v15 = vld [vmem:[%s3574_s0 + $0xcb8] sm:$0xff] }
  0xe0   :  { %1257 = vmatprep.subr.mxu1 %v299_v45  ;;  %1411 = vmatprep.subr.mxu0 %v61_v46  ;;  %v253_v45 = vld [vmem:[%s3574_s0 + $0x718] sm:$0xff]  ;;  %v432_v46 = vld [vmem:[%s3574_s0 + $0xcb0] sm:$0xff] }
  0xe1   :  { %1258 = vmatpush2.msra.mxu1 %v298_v63  ;;  %1412 = vmatpush1.msra.mxu0 %v60_v23  ;;  %v652_v63 = vpop.f32.mrf.mxu1  ;;  %v1798_v23 = vld [vmem:[%s3575_s1 + $0x58] sm:$0xff] }
  0xe2   :  { %1259 = vmatprep.subr.mxu1 %v287_v47  ;;  %1413 = vmatprep.subr.mxu0 %v49_v25  ;;  %v252_v47 = vld [vmem:[%s3574_s0 + $0x710] sm:$0xff]  ;;  %v421_v25 = vld [vmem:[%s3574_s0 + $0xc58] sm:$0xff] }
  0xe3   :  { %1260 = vmatpush2.msra.mxu1 %v286_v48  ;;  %1414 = vmatpush1.msra.mxu0 %v48_v49  ;;  %v241_v48 = vld [vmem:[%s3574_s0 + $0x6b8] sm:$0xff]  ;;  %v240_v49 = vld [vmem:[%s3574_s0 + $0x6b0] sm:$0xff] }
  0xe4   :  { %1261 = vmatprep.subr.mxu1 %v275_v10  ;;  %1415 = vmatprep.subr.mxu0 %v37_v31  ;;  %v420_v10 = vld [vmem:[%s3574_s0 + $0xc50] sm:$0xff] }
  0xe5   :  { %1262 = vmatpush2.msra.mxu1 %v274_v50  ;;  %1416 = vmatpush1.msra.mxu0 %v36_v33  ;;  %v229_v50 = vld [vmem:[%s3574_s0 + $0x658] sm:$0xff]  ;;  %v228_v33 = vld [vmem:[%s3574_s0 + $0x650] sm:$0xff] }
  0xe6   :  { %1263 = vmatprep.subr.mxu1 %v263_v51  ;;  %1417 = vmatprep.subr.mxu0 %v409_v52 }
  0xe7   :  { %1264 = vmatpush2.msra.mxu1 %v262_v53  ;;  %1418 = vmatpush2.msra.mxu0 %v408_v19 }
  0xe8   :  { %1265 = vmatprep.subr.mxu1 %v251_v54  ;;  %1419 = vmatprep.subr.mxu0 %v397_v55 }
  0xe9   :  { %1266 = vmatpush2.msra.mxu1 %v250_v56  ;;  %1420 = vmatpush2.msra.mxu0 %v396_v57 }
  0xea   :  { %1267 = vmatprep.subr.mxu1 %v239_v58  ;;  %1421 = vmatprep.subr.mxu0 %v385_v59 }
  0xeb   :  { %1268 = vmatpush2.msra.mxu1 %v238_v60  ;;  %1422 = vmatpush2.msra.mxu0 %v384_v61 }
  0xec   :  { %1269 = vmatprep.subr.mxu1 %v227_v62  ;;  %1423 = vmatprep.subr.mxu0 %v373_v0 }
  0xed   :  { %1270 = vmatpush2.msra.mxu1 %v226_v1  ;;  %1424 = vmatpush2.msra.mxu0 %v372_v2 }
  0xee   :  { %1271 = vmatprep.mubr.f32.mxu1 %v3190_v8  ;;  %1425 = vmatprep.subr.mxu0 %v361_v4 }
  0xef   :  { %1272 = vmatmul.mubr.f32.vlgmr.msra.gmra.mxu1 %v3199_v11  ;;  %1426 = vmatpush2.msra.mxu0 %v360_v6 }
  0xf0   :  { %1277 = vmatprep.mubr.f32.mxu1 %v3214_v17  ;;  %1427 = vmatprep.subr.mxu0 %v349_v9 }
  0xf1   :  { %1366 = vmatprep.mubr.f32.mxu0 %v1799_v3  ;;  %1428 = vmatpush2.msra.mxu0 %v348_v12 }
  0xf2   :  { %1498 = vmatprep.subr.mxu1 %v457_v14  ;;  %1429 = vmatprep.subr.mxu0 %v337_v16 }
  0xf3   :  { %1278 = vmatmul.mubr.f32.gmra.mxu1 %v3227_v22  ;;  %1430 = vmatpush2.msra.mxu0 %v336_v18 }
  0xf4   :  { %1283 = vmatprep.mubr.f32.mxu1 %v3242_v28  ;;  %1431 = vmatprep.subr.mxu0 %v325_v20 }
  0xf5   :  { %1776 = vmatmul.mubr.msk.f32.gmra.mxu0 %vm482_vm0, %v3248_v29  ;;  %1499 = vmatpush1.msra.mxu1 %v456_v26 }
  0xf6   :  { %1432 = vmatpush2.msra.mxu0 %v324_v24  ;;  %1372 = vmatprep.mubr.f32.mxu0 %v1799_v3 }
  0xf7   :  { %1433 = vmatprep.subr.mxu0 %v313_v27  ;;  %1284 = vmatmul.mubr.f32.gmra.mxu1 %v3261_v34 }
  0xf8   :  { %1434 = vmatpush2.msra.mxu0 %v312_v30  ;;  %1289 = vmatprep.mubr.f32.mxu1 %v3287_v40 }
  0xf9   :  { %1435 = vmatprep.subr.mxu0 %v301_v32  ;;  %1777 = vmatmul.mubr.msk.f32.gmra.mxu0 %vm482_vm0, %v3277_v38 }
  0xfa   :  { %1436 = vmatpush2.msra.mxu0 %v300_v35  ;;  %1500 = vmatprep.subr.mxu1 %v445_v37 }
  0xfb   :  { %1437 = vmatprep.subr.mxu0 %v289_v36  ;;  %1290 = vmatmul.mubr.f32.gmra.mxu1 %v3304_v43 }
  0xfc   :  { %1438 = vmatpush2.msra.mxu0 %v288_v39  ;;  %1501 = vmatpush1.msra.mxu1 %v444_v41 }
  0xfd   :  { %1439 = vmatprep.subr.mxu0 %v277_v5  ;;  %1378 = vmatprep.mubr.f32.mxu0 %v1799_v3 }
  0xfe   :  { %1440 = vmatpush2.msra.mxu0 %v276_v42  ;;  %1502 = vmatprep.subr.mxu1 %v433_v15 }
  0xff   :  { %1441 = vmatprep.subr.mxu0 %v265_v13  ;;  %1778 = vmatmul.mubr.msk.f32.gmra.mxu0 %vm482_vm0, %v1798_v23 }
 0x100   :  { %1442 = vmatpush2.msra.mxu0 %v264_v44  ;;  %1503 = vmatpush1.msra.mxu1 %v432_v46 }
 0x101   :  { %1443 = vmatprep.subr.mxu0 %v253_v45  ;;  %v656_v31 = vpop.f32.mrf.mxu1  ;;  %1504 = vmatprep.subr.mxu1 %v421_v25 }
 0x102   :  { %1444 = vmatpush2.msra.mxu0 %v252_v47  ;;  %1449 = vmatprep.mubr.f32.mxu0 %v3190_v8 }
 0x103   :  { %1445 = vmatprep.subr.mxu0 %v241_v48  ;;  %v658_v51 = vpop.f32.mrf.mxu1  ;;  %1505 = vmatpush1.msra.mxu1 %v420_v10 }
 0x104   :  { %1446 = vmatpush2.msra.mxu0 %v240_v49  ;;  %1538 = vmatprep.mubr.f32.mxu1 %v1799_v3  ;;  %v561_v52 = vpop.f32.mrf.mxu0 }
 0x105   :  { %1447 = vmatprep.subr.mxu0 %v229_v50  ;;  %1779 = vmatmul.mubr.msk.f32.vlgmr.msra.gmra.mxu1 %vm482_vm0, %v2818_v21 }
 0x106   :  { %1448 = vmatpush2.msra.mxu0 %v228_v33  ;;  %1544 = vmatprep.mubr.f32.mxu1 %v1799_v3  ;;  %v563_v53 = vpop.f32.mrf.mxu0  ;;  %v662_v19 = vpop.f32.mrf.mxu1 }
 0x107   :  { %1450 = vmatmul.mubr.f32.vlgmr.msra.gmra.mxu0 %v3199_v11 }
 0x108   :  { %1455 = vmatprep.mubr.f32.mxu0 %v3214_v17  ;;  %v664_v55 = vpop.f32.mrf.mxu1 }
 0x109   :  { %v567_v54 = vpop.f32.mrf.mxu0  ;;  %1780 = vmatmul.mubr.msk.f32.gmra.mxu1 %vm482_vm0, %v3248_v29 }
 0x10a   :  { %1550 = vmatprep.mubr.f32.mxu1 %v1799_v3 }
 0x10b   :  { %1456 = vmatmul.mubr.f32.gmra.mxu0 %v3227_v22  ;;  %v569_v56 = vpop.f32.mrf.mxu0  ;;  %v3362_v57 = vpop.f32.mrf.mxu1 }
 0x10c   :  { %1461 = vmatprep.mubr.f32.mxu0 %v3242_v28  ;;  %v3360_v21 = vpop.permute.xlu0 %464 }
 0x10d   :  { %v562_v58 = vadd.f32 %v561_v52, %v3360_v21  ;;  %v564_v59 = vadd.f32 %v563_v53, %v3360_v21  ;;  %1781 = vmatmul.mubr.msk.f32.gmra.mxu1 %vm482_vm0, %v3277_v38  ;;  %v3368_v61 = vpop.f32.mrf.mxu1 }
 0x10e   :  { %v573_v60 = vpop.f32.mrf.mxu0  ;;  %1556 = vmatprep.mubr.f32.mxu1 %v1799_v3 }
 0x10f   :  { %1462 = vmatmul.mubr.f32.gmra.mxu0 %v3261_v34  ;;  %v651_v62 = vadd.f32 %v3296_v7, %v562_v58  ;;  %v653_v0 = vadd.f32 %v652_v63, %v564_v59 }
 0x110   :  { %1467 = vmatprep.mubr.f32.mxu0 %v3287_v40  ;;  %v575_v1 = vpop.f32.mrf.mxu0  ;;  %v739_v8 = vpop.f32.mrf.mxu1 }
 0x111   :  { %vm1563_vm1 = vcmp.gt.f32.partialorder %v651_v62, 0.0  ;;  %v1611_v2 = vmul.f32 0.01, %v651_v62  ;;  %vm1564_vm2 = vcmp.gt.f32.partialorder %v653_v0, 0.0  ;;  %v1612_v4 = vmul.f32 0.01, %v653_v0  ;;  %v3374_v6 = vpop.permute.xlu0 %469  ;;  %1782 = vmatmul.mubr.msk.f32.gmra.mxu1 %vm482_vm0, %v1798_v23 }
 0x112   :  { %v568_v9 = vadd.f32 %v567_v54, %v3374_v6  ;;  %v570_v11 = vadd.f32 %v569_v56, %v3374_v6  ;;  %v741_v16 = vpop.f32.mrf.mxu1  ;;  %v740_v20 = vadd.f32 %v739_v8, %v3360_v21 }
 0x113   :  { %1468 = vmatmul.mubr.f32.gmra.mxu0 %v3304_v43  ;;  %v1659_v3 = vsel %vm1563_vm1, %v651_v62, %v1611_v2  ;;  %v1660_v12 = vsel %vm1564_vm2, %v653_v0, %v1612_v4  ;;  %v579_v14 = vpop.f32.mrf.mxu0  ;;  %v742_v26 = vadd.f32 %v741_v16, %v3360_v21 }
 0x114   :  { %1707 = vst [vmem:[%s3577_s3] sm:$0xff] %v1659_v3  ;;  %1708 = vst [vmem:[%s3577_s3 + $0x8] sm:$0xff] %v1660_v12  ;;  %v657_v17 = vadd.f32 %v656_v31, %v568_v9  ;;  %v659_v18 = vadd.f32 %v658_v51, %v570_v11 }
 0x115   :  { %v3387_v22 = vpop.permute.xlu1 %474  ;;  %v581_v24 = vpop.f32.mrf.mxu0 }
 0x116   :  { %vm1575_vm3 = vcmp.gt.f32.partialorder %v657_v17, 0.0  ;;  %v1623_v27 = vmul.f32 0.01, %v657_v17  ;;  %vm1576_vm4 = vcmp.gt.f32.partialorder %v659_v18, 0.0  ;;  %v1624_v28 = vmul.f32 0.01, %v659_v18 }
 0x117   :  { %v574_v29 = vadd.f32 %v573_v60, %v3387_v22  ;;  %v576_v30 = vadd.f32 %v575_v1, %v3387_v22  ;;  %v828_v32 = vpop.f32.mrf.mxu0 }
 0x118   :  { %v1671_v34 = vsel %vm1575_vm3, %v657_v17, %v1623_v27  ;;  %v1672_v35 = vsel %vm1576_vm4, %v659_v18, %v1624_v28  ;;  %v829_v36 = vadd.f32 %v828_v32, %v740_v20 }
 0x119   :  { %1719 = vst [vmem:[%s3577_s3 + $0x60] sm:$0xff] %v1671_v34  ;;  %1720 = vst [vmem:[%s3577_s3 + $0x68] sm:$0xff] %v1672_v35  ;;  %v663_v37 = vadd.f32 %v662_v19, %v574_v29  ;;  %v665_v38 = vadd.f32 %v664_v55, %v576_v30  ;;  %v830_v39 = vpop.f32.mrf.mxu0 }
 0x11a   :  { %vm1565_vm5 = vcmp.gt.f32.partialorder %v829_v36, 0.0  ;;  %v1613_v40 = vmul.f32 0.01, %v829_v36  ;;  %v831_v5 = vadd.f32 %v830_v39, %v742_v26  ;;  %v3398_v42 = vpop.permute.xlu1 %479  ;;  %v745_v43 = vpop.f32.mrf.mxu1 }
 0x11b   :  { %vm1587_vm6 = vcmp.gt.f32.partialorder %v663_v37, 0.0  ;;  %v1635_v41 = vmul.f32 0.01, %v663_v37  ;;  %vm1588_vm7 = vcmp.gt.f32.partialorder %v665_v38, 0.0  ;;  %v1636_v7 = vmul.f32 0.01, %v665_v38 }
 0x11c   :  { %v580_v13 = vadd.f32 %v579_v14, %v3398_v42  ;;  %v582_v44 = vadd.f32 %v581_v24, %v3398_v42  ;;  %v1661_v15 = vsel %vm1565_vm5, %v829_v36, %v1613_v40  ;;  %v746_v45 = vadd.f32 %v745_v43, %v3374_v6  ;;  %v747_v47 = vpop.f32.mrf.mxu1  ;;  %v834_v25 = vpop.f32.mrf.mxu0 }
 0x11d   :  { %v1683_v46 = vsel %vm1587_vm6, %v663_v37, %v1635_v41  ;;  %v1684_v63 = vsel %vm1588_vm7, %v665_v38, %v1636_v7  ;;  %1709 = vst [vmem:[%s3577_s3 + $0x10] sm:$0xff] %v1661_v15  ;;  %vm1566_vm8 = vcmp.gt.f32.partialorder %v831_v5, 0.0  ;;  %v1614_v23 = vmul.f32 0.01, %v831_v5 }
 0x11e   :  { %1731 = vst [vmem:[%s3577_s3 + $0xc0] sm:$0xff] %v1683_v46  ;;  %1732 = vst [vmem:[%s3577_s3 + $0xc8] sm:$0xff] %v1684_v63  ;;  %v669_v48 = vadd.f32 %v3362_v57, %v580_v13  ;;  %v671_v49 = vadd.f32 %v3368_v61, %v582_v44  ;;  %v748_v10 = vadd.f32 %v747_v47, %v3374_v6  ;;  %v836_v33 = vpop.f32.mrf.mxu0 }
 0x11f   :  { %v835_v31 = vadd.f32 %v834_v25, %v746_v45  ;;  %v1662_v50 = vsel %vm1566_vm8, %v831_v5, %v1614_v23  ;;  %v751_v53 = vpop.f32.mrf.mxu1 }
 0x120   :  { %vm1599_vm9 = vcmp.gt.f32.partialorder %v669_v48, 0.0  ;;  %v1647_v51 = vmul.f32 0.01, %v669_v48  ;;  %vm1600_vm10 = vcmp.gt.f32.partialorder %v671_v49, 0.0  ;;  %v1648_v52 = vmul.f32 0.01, %v671_v49 }
 0x121   :  { %1710 = vst [vmem:[%s3577_s3 + $0x18] sm:$0xff] %v1662_v50  ;;  %vm1577_vm11 = vcmp.gt.f32.partialorder %v835_v31, 0.0  ;;  %v1625_v19 = vmul.f32 0.01, %v835_v31  ;;  %v752_v54 = vadd.f32 %v751_v53, %v3387_v22  ;;  %v837_v55 = vadd.f32 %v836_v33, %v748_v10  ;;  %v753_v58 = vpop.f32.mrf.mxu1  ;;  %v840_v59 = vpop.f32.mrf.mxu0 }
 0x122   :  { %v1695_v56 = vsel %vm1599_vm9, %v669_v48, %v1647_v51  ;;  %v1696_v57 = vsel %vm1600_vm10, %v671_v49, %v1648_v52  ;;  %v754_v62 = vadd.f32 %v753_v58, %v3387_v22 }
 0x123   :  { %1743 = vst [vmem:[%s3577_s3 + $0x120] sm:$0xff] %v1695_v56  ;;  %1744 = vst [vmem:[%s3577_s3 + $0x128] sm:$0xff] %v1696_v57  ;;  %v1673_v60 = vsel %vm1577_vm11, %v835_v31, %v1625_v19  ;;  %vm1578_vm12 = vcmp.gt.f32.partialorder %v837_v55, 0.0  ;;  %v1626_v61 = vmul.f32 0.01, %v837_v55  ;;  %v841_v0 = vadd.f32 %v840_v59, %v752_v54  ;;  %v842_v1 = vpop.f32.mrf.mxu0 }
 0x124   :  { %1721 = vst [vmem:[%s3577_s3 + $0x70] sm:$0xff] %v1673_v60  ;;  %v757_v4 = vpop.f32.mrf.mxu1  ;;  %v843_v8 = vadd.f32 %v842_v1, %v754_v62 }
 0x125   :  { %v1674_v2 = vsel %vm1578_vm12, %v837_v55, %v1626_v61  ;;  %vm1589_vm13 = vcmp.gt.f32.partialorder %v841_v0, 0.0  ;;  %v1637_v9 = vmul.f32 0.01, %v841_v0  ;;  %v758_v11 = vadd.f32 %v757_v4, %v3398_v42 }
 0x126   :  { %1722 = vst [vmem:[%s3577_s3 + $0x78] sm:$0xff] %v1674_v2  ;;  %vm1590_vm14 = vcmp.gt.f32.partialorder %v843_v8, 0.0  ;;  %v1638_v3 = vmul.f32 0.01, %v843_v8  ;;  %v759_v12 = vpop.f32.mrf.mxu1  ;;  %v846_v14 = vpop.f32.mrf.mxu0 }
 0x127   :  { %v1685_v16 = vsel %vm1589_vm13, %v841_v0, %v1637_v9  ;;  %v760_v17 = vadd.f32 %v759_v12, %v3398_v42  ;;  %v847_v18 = vadd.f32 %v846_v14, %v758_v11 }
 0x128   :  { %1733 = vst [vmem:[%s3577_s3 + $0xd0] sm:$0xff] %v1685_v16  ;;  %v1686_v20 = vsel %vm1590_vm14, %v843_v8, %v1638_v3  ;;  %v848_v24 = vpop.f32.mrf.mxu0 }
 0x129   :  { %1734 = vst [vmem:[%s3577_s3 + $0xd8] sm:$0xff] %v1686_v20  ;;  %vm1601_vm15 = vcmp.gt.f32.partialorder %v847_v18, 0.0  ;;  %v1649_v26 = vmul.f32 0.01, %v847_v18  ;;  %v849_v27 = vadd.f32 %v848_v24, %v760_v17 }
 0x12b   :  { %v1697_v28 = vsel %vm1601_vm15, %v847_v18, %v1649_v26  ;;  %vm1602_vm0 = vcmp.gt.f32.partialorder %v849_v27, 0.0  ;;  %v1650_v29 = vmul.f32 0.01, %v849_v27  ;;  %v1006_v32 = vpop.f32.mrf.mxu0 }
 0x12c   :  { %1745 = vst [vmem:[%s3577_s3 + $0x130] sm:$0xff] %v1697_v28 }
 0x12d   :  { %v1698_v30 = vsel %vm1602_vm0, %v849_v27, %v1650_v29  ;;  %v1008_v39 = vpop.f32.mrf.mxu0 }
 0x12e   :  { %1746 = vst [vmem:[%s3577_s3 + $0x138] sm:$0xff] %v1698_v30 }
 0x155   :  { %v917_v34 = vpop.f32.mrf.mxu1 }
 0x156   :  { %v918_v35 = vadd.f32 %v917_v34, %v3360_v21 }
 0x157   :  { %v919_v36 = vpop.f32.mrf.mxu1 }
 0x158   :  { %v1007_v37 = vadd.f32 %v1006_v32, %v918_v35  ;;  %v920_v38 = vadd.f32 %v919_v36, %v3360_v21 }
 0x159   :  { %v923_v40 = vpop.f32.mrf.mxu1 }
 0x15a   :  { %vm1567_vm1 = vcmp.gt.f32.partialorder %v1007_v37, 0.0  ;;  %v1615_v5 = vmul.f32 0.01, %v1007_v37  ;;  %v1009_v41 = vadd.f32 %v1008_v39, %v920_v38  ;;  %v924_v7 = vadd.f32 %v923_v40, %v3374_v6 }
 0x15b   :  { %v925_v43 = vpop.f32.mrf.mxu1 }
 0x15c   :  { %v1663_v13 = vsel %vm1567_vm1, %v1007_v37, %v1615_v5  ;;  %vm1568_vm2 = vcmp.gt.f32.partialorder %v1009_v41, 0.0  ;;  %v1616_v44 = vmul.f32 0.01, %v1009_v41  ;;  %v926_v15 = vadd.f32 %v925_v43, %v3374_v6 }
 0x15d   :  { %1711 = vst [vmem:[%s3577_s3 + $0x20] sm:$0xff] %v1663_v13  ;;  %v929_v63 = vpop.f32.mrf.mxu1 }
 0x15e   :  { %v1664_v45 = vsel %vm1568_vm2, %v1009_v41, %v1616_v44  ;;  %v1012_v46 = vpop.f32.mrf.mxu0  ;;  %v930_v10 = vadd.f32 %v929_v63, %v3387_v22 }
 0x15f   :  { %1712 = vst [vmem:[%s3577_s3 + $0x28] sm:$0xff] %v1664_v45  ;;  %v1013_v23 = vadd.f32 %v1012_v46, %v924_v7  ;;  %v931_v25 = vpop.f32.mrf.mxu1 }
 0x160   :  { %v1014_v47 = vpop.f32.mrf.mxu0  ;;  %v932_v33 = vadd.f32 %v931_v25, %v3387_v22 }
 0x161   :  { %vm1579_vm3 = vcmp.gt.f32.partialorder %v1013_v23, 0.0  ;;  %v1627_v48 = vmul.f32 0.01, %v1013_v23  ;;  %v1015_v49 = vadd.f32 %v1014_v47, %v926_v15 }
 0x163   :  { %v1675_v31 = vsel %vm1579_vm3, %v1013_v23, %v1627_v48  ;;  %vm1580_vm4 = vcmp.gt.f32.partialorder %v1015_v49, 0.0  ;;  %v1628_v50 = vmul.f32 0.01, %v1015_v49 }
 0x164   :  { %1723 = vst [vmem:[%s3577_s3 + $0x80] sm:$0xff] %v1675_v31  ;;  %v935_v51 = vpop.f32.mrf.mxu1  ;;  %v1018_v53 = vpop.f32.mrf.mxu0 }
 0x165   :  { %v1676_v52 = vsel %vm1580_vm4, %v1015_v49, %v1628_v50  ;;  %v1019_v19 = vadd.f32 %v1018_v53, %v930_v10  ;;  %v936_v55 = vadd.f32 %v935_v51, %v3398_v42 }
 0x166   :  { %1724 = vst [vmem:[%s3577_s3 + $0x88] sm:$0xff] %v1676_v52  ;;  %v937_v54 = vpop.f32.mrf.mxu1  ;;  %v1020_v56 = vpop.f32.mrf.mxu0 }
 0x167   :  { %vm1591_vm5 = vcmp.gt.f32.partialorder %v1019_v19, 0.0  ;;  %v1639_v57 = vmul.f32 0.01, %v1019_v19  ;;  %v1021_v58 = vadd.f32 %v1020_v56, %v932_v33  ;;  %v938_v59 = vadd.f32 %v937_v54, %v3398_v42 }
 0x169   :  { %v1687_v60 = vsel %vm1591_vm5, %v1019_v19, %v1639_v57  ;;  %vm1592_vm6 = vcmp.gt.f32.partialorder %v1021_v58, 0.0  ;;  %v1640_v61 = vmul.f32 0.01, %v1021_v58 }
 0x16a   :  { %v1024_v62 = vpop.f32.mrf.mxu0  ;;  %1735 = vst [vmem:[%s3577_s3 + $0xe0] sm:$0xff] %v1687_v60  ;;  %v1184_v14 = vpop.f32.mrf.mxu1 }
 0x16b   :  { %v1025_v0 = vadd.f32 %v1024_v62, %v936_v55  ;;  %v1688_v1 = vsel %vm1592_vm6, %v1021_v58, %v1640_v61 }
 0x16c   :  { %v1026_v2 = vpop.f32.mrf.mxu0  ;;  %1736 = vst [vmem:[%s3577_s3 + $0xe8] sm:$0xff] %v1688_v1  ;;  %v1186_v24 = vpop.f32.mrf.mxu1 }
 0x16d   :  { %vm1603_vm7 = vcmp.gt.f32.partialorder %v1025_v0, 0.0  ;;  %v1651_v4 = vmul.f32 0.01, %v1025_v0  ;;  %v1027_v8 = vadd.f32 %v1026_v2, %v938_v59 }
 0x16f   :  { %v1699_v9 = vsel %vm1603_vm7, %v1025_v0, %v1651_v4  ;;  %vm1604_vm8 = vcmp.gt.f32.partialorder %v1027_v8, 0.0  ;;  %v1652_v11 = vmul.f32 0.01, %v1027_v8 }
 0x170   :  { %1747 = vst [vmem:[%s3577_s3 + $0x140] sm:$0xff] %v1699_v9 }
 0x171   :  { %v1700_v3 = vsel %vm1604_vm8, %v1027_v8, %v1652_v11 }
 0x172   :  { %1748 = vst [vmem:[%s3577_s3 + $0x148] sm:$0xff] %v1700_v3  ;;  %v1095_v12 = vpop.f32.mrf.mxu0 }
 0x173   :  { %v1096_v16 = vadd.f32 %v1095_v12, %v3360_v21 }
 0x174   :  { %v1097_v17 = vpop.f32.mrf.mxu0 }
 0x175   :  { %v1185_v18 = vadd.f32 %v1184_v14, %v1096_v16  ;;  %v1098_v20 = vadd.f32 %v1097_v17, %v3360_v21 }
 0x176   :  { %v1101_v26 = vpop.f32.mrf.mxu0 }
 0x177   :  { %vm1569_vm9 = vcmp.gt.f32.partialorder %v1185_v18, 0.0  ;;  %v1617_v27 = vmul.f32 0.01, %v1185_v18  ;;  %v1187_v28 = vadd.f32 %v1186_v24, %v1098_v20  ;;  %v1102_v29 = vadd.f32 %v1101_v26, %v3374_v6 }
 0x178   :  { %v1103_v30 = vpop.f32.mrf.mxu0 }
 0x179   :  { %v1665_v32 = vsel %vm1569_vm9, %v1185_v18, %v1617_v27  ;;  %vm1570_vm10 = vcmp.gt.f32.partialorder %v1187_v28, 0.0  ;;  %v1618_v34 = vmul.f32 0.01, %v1187_v28  ;;  %v1104_v35 = vadd.f32 %v1103_v30, %v3374_v6  ;;  %v1190_v36 = vpop.f32.mrf.mxu1 }
 0x17a   :  { %1713 = vst [vmem:[%s3577_s3 + $0x30] sm:$0xff] %v1665_v32  ;;  %v1191_v37 = vadd.f32 %v1190_v36, %v1102_v29 }
 0x17b   :  { %v1666_v38 = vsel %vm1570_vm10, %v1187_v28, %v1618_v34  ;;  %v1107_v39 = vpop.f32.mrf.mxu0  ;;  %v1192_v40 = vpop.f32.mrf.mxu1 }
 0x17c   :  { %1714 = vst [vmem:[%s3577_s3 + $0x38] sm:$0xff] %v1666_v38  ;;  %vm1581_vm11 = vcmp.gt.f32.partialorder %v1191_v37, 0.0  ;;  %v1629_v5 = vmul.f32 0.01, %v1191_v37  ;;  %v1108_v41 = vadd.f32 %v1107_v39, %v3387_v22  ;;  %v1193_v7 = vadd.f32 %v1192_v40, %v1104_v35 }
 0x17d   :  { %v1109_v43 = vpop.f32.mrf.mxu0 }
 0x17e   :  { %v1677_v13 = vsel %vm1581_vm11, %v1191_v37, %v1629_v5  ;;  %vm1582_vm12 = vcmp.gt.f32.partialorder %v1193_v7, 0.0  ;;  %v1630_v44 = vmul.f32 0.01, %v1193_v7  ;;  %v1110_v15 = vadd.f32 %v1109_v43, %v3387_v22  ;;  %v1196_v45 = vpop.f32.mrf.mxu1 }
 0x17f   :  { %1725 = vst [vmem:[%s3577_s3 + $0x90] sm:$0xff] %v1677_v13  ;;  %v1197_v46 = vadd.f32 %v1196_v45, %v1108_v41 }
 0x180   :  { %v1678_v63 = vsel %vm1582_vm12, %v1193_v7, %v1630_v44  ;;  %v1113_v23 = vpop.f32.mrf.mxu0  ;;  %v1198_v47 = vpop.f32.mrf.mxu1 }
 0x181   :  { %1726 = vst [vmem:[%s3577_s3 + $0x98] sm:$0xff] %v1678_v63  ;;  %vm1593_vm13 = vcmp.gt.f32.partialorder %v1197_v46, 0.0  ;;  %v1641_v25 = vmul.f32 0.01, %v1197_v46  ;;  %v1114_v48 = vadd.f32 %v1113_v23, %v3398_v42  ;;  %v1199_v49 = vadd.f32 %v1198_v47, %v1110_v15 }
 0x182   :  { %v1115_v10 = vpop.f32.mrf.mxu0 }
 0x183   :  { %v1689_v31 = vsel %vm1593_vm13, %v1197_v46, %v1641_v25  ;;  %vm1594_vm14 = vcmp.gt.f32.partialorder %v1199_v49, 0.0  ;;  %v1642_v50 = vmul.f32 0.01, %v1199_v49  ;;  %v1116_v33 = vadd.f32 %v1115_v10, %v3398_v42  ;;  %v1202_v51 = vpop.f32.mrf.mxu1 }
 0x184   :  { %1737 = vst [vmem:[%s3577_s3 + $0xf0] sm:$0xff] %v1689_v31  ;;  %v1203_v52 = vadd.f32 %v1202_v51, %v1114_v48 }
 0x185   :  { %v1690_v53 = vsel %vm1594_vm14, %v1199_v49, %v1642_v50  ;;  %v1204_v19 = vpop.f32.mrf.mxu1 }
 0x186   :  { %1738 = vst [vmem:[%s3577_s3 + $0xf8] sm:$0xff] %v1690_v53  ;;  %vm1605_vm15 = vcmp.gt.f32.partialorder %v1203_v52, 0.0  ;;  %v1653_v54 = vmul.f32 0.01, %v1203_v52  ;;  %v1205_v55 = vadd.f32 %v1204_v19, %v1116_v33  ;;  %v1362_v59 = vpop.f32.mrf.mxu0 }
 0x188   :  { %v1701_v56 = vsel %vm1605_vm15, %v1203_v52, %v1653_v54  ;;  %vm1606_vm0 = vcmp.gt.f32.partialorder %v1205_v55, 0.0  ;;  %v1654_v57 = vmul.f32 0.01, %v1205_v55  ;;  %v1364_v2 = vpop.f32.mrf.mxu0 }
 0x189   :  { %1749 = vst [vmem:[%s3577_s3 + $0x150] sm:$0xff] %v1701_v56 }
 0x18a   :  { %v1702_v58 = vsel %vm1606_vm0, %v1205_v55, %v1654_v57 }
 0x18b   :  { %1750 = vst [vmem:[%s3577_s3 + $0x158] sm:$0xff] %v1702_v58 }
 0x1af   :  { %v1273_v60 = vpop.f32.mrf.mxu1 }
 0x1b0   :  { %v1274_v61 = vadd.f32 %v1273_v60, %v3360_v21 }
 0x1b1   :  { %v1275_v62 = vpop.f32.mrf.mxu1 }
 0x1b2   :  { %v1363_v0 = vadd.f32 %v1362_v59, %v1274_v61  ;;  %v1276_v1 = vadd.f32 %v1275_v62, %v3360_v21 }
 0x1b3   :  { %v1279_v4 = vpop.f32.mrf.mxu1 }
 0x1b4   :  { %vm1571_vm1 = vcmp.gt.f32.partialorder %v1363_v0, 0.0  ;;  %v1619_v8 = vmul.f32 0.01, %v1363_v0  ;;  %v1365_v9 = vadd.f32 %v1364_v2, %v1276_v1  ;;  %v1280_v11 = vadd.f32 %v1279_v4, %v3374_v6 }
 0x1b5   :  { %v1281_v3 = vpop.f32.mrf.mxu1  ;;  %v1368_v12 = vpop.f32.mrf.mxu0 }
 0x1b6   :  { %v1667_v14 = vsel %vm1571_vm1, %v1363_v0, %v1619_v8  ;;  %vm1572_vm2 = vcmp.gt.f32.partialorder %v1365_v9, 0.0  ;;  %v1620_v16 = vmul.f32 0.01, %v1365_v9  ;;  %v1282_v17 = vadd.f32 %v1281_v3, %v3374_v6 }
 0x1b7   :  { %1715 = vst [vmem:[%s3577_s3 + $0x40] sm:$0xff] %v1667_v14  ;;  %v1369_v18 = vadd.f32 %v1368_v12, %v1280_v11  ;;  %v1285_v20 = vpop.f32.mrf.mxu1  ;;  %v1370_v24 = vpop.f32.mrf.mxu0 }
 0x1b8   :  { %v1668_v26 = vsel %vm1572_vm2, %v1365_v9, %v1620_v16  ;;  %v1286_v27 = vadd.f32 %v1285_v20, %v3387_v22  ;;  %v1371_v28 = vadd.f32 %v1370_v24, %v1282_v17 }
 0x1b9   :  { %1716 = vst [vmem:[%s3577_s3 + $0x48] sm:$0xff] %v1668_v26  ;;  %vm1583_vm3 = vcmp.gt.f32.partialorder %v1369_v18, 0.0  ;;  %v1631_v29 = vmul.f32 0.01, %v1369_v18  ;;  %v1287_v30 = vpop.f32.mrf.mxu1  ;;  %v1374_v32 = vpop.f32.mrf.mxu0 }
 0x1ba   :  { %vm1584_vm4 = vcmp.gt.f32.partialorder %v1371_v28, 0.0  ;;  %v1632_v34 = vmul.f32 0.01, %v1371_v28  ;;  %v1288_v35 = vadd.f32 %v1287_v30, %v3387_v22  ;;  %v1375_v36 = vadd.f32 %v1374_v32, %v1286_v27 }
 0x1bb   :  { %v1679_v37 = vsel %vm1583_vm3, %v1369_v18, %v1631_v29  ;;  %v1376_v38 = vpop.f32.mrf.mxu0  ;;  %v1291_v5 = vpop.f32.mrf.mxu1 }
 0x1bc   :  { %1727 = vst [vmem:[%s3577_s3 + $0xa0] sm:$0xff] %v1679_v37  ;;  %v1680_v39 = vsel %vm1584_vm4, %v1371_v28, %v1632_v34  ;;  %vm1595_vm5 = vcmp.gt.f32.partialorder %v1375_v36, 0.0  ;;  %v1643_v40 = vmul.f32 0.01, %v1375_v36  ;;  %v1377_v41 = vadd.f32 %v1376_v38, %v1288_v35 }
 0x1bd   :  { %1728 = vst [vmem:[%s3577_s3 + $0xa8] sm:$0xff] %v1680_v39  ;;  %v1292_v7 = vadd.f32 %v1291_v5, %v3398_v42  ;;  %v1293_v44 = vpop.f32.mrf.mxu1 }
 0x1be   :  { %v1691_v43 = vsel %vm1595_vm5, %v1375_v36, %v1643_v40  ;;  %vm1596_vm6 = vcmp.gt.f32.partialorder %v1377_v41, 0.0  ;;  %v1644_v13 = vmul.f32 0.01, %v1377_v41  ;;  %v1294_v15 = vadd.f32 %v1293_v44, %v3398_v42 }
 0x1bf   :  { %1739 = vst [vmem:[%s3577_s3 + $0x100] sm:$0xff] %v1691_v43  ;;  %v1380_v45 = vpop.f32.mrf.mxu0 }
 0x1c0   :  { %v1692_v46 = vsel %vm1596_vm6, %v1377_v41, %v1644_v13  ;;  %v1381_v63 = vadd.f32 %v1380_v45, %v1292_v7 }
 0x1c1   :  { %1740 = vst [vmem:[%s3577_s3 + $0x108] sm:$0xff] %v1692_v46  ;;  %v1382_v23 = vpop.f32.mrf.mxu0 }
 0x1c2   :  { %vm1607_vm7 = vcmp.gt.f32.partialorder %v1381_v63, 0.0  ;;  %v1655_v47 = vmul.f32 0.01, %v1381_v63  ;;  %v1383_v25 = vadd.f32 %v1382_v23, %v1294_v15 }
 0x1c4   :  { %v1703_v48 = vsel %vm1607_vm7, %v1381_v63, %v1655_v47  ;;  %vm1608_vm8 = vcmp.gt.f32.partialorder %v1383_v25, 0.0  ;;  %v1656_v49 = vmul.f32 0.01, %v1383_v25 }
 0x1c5   :  { %1751 = vst [vmem:[%s3577_s3 + $0x160] sm:$0xff] %v1703_v48  ;;  %v1540_v31 = vpop.f32.mrf.mxu1 }
 0x1c6   :  { %v1704_v10 = vsel %vm1608_vm8, %v1383_v25, %v1656_v49 }
 0x1c7   :  { %1752 = vst [vmem:[%s3577_s3 + $0x168] sm:$0xff] %v1704_v10  ;;  %v1451_v50 = vpop.f32.mrf.mxu0  ;;  %v1542_v51 = vpop.f32.mrf.mxu1 }
 0x1c8   :  { %v1452_v33 = vadd.f32 %v1451_v50, %v3360_v21 }
 0x1c9   :  { %v1453_v52 = vpop.f32.mrf.mxu0  ;;  %v1546_v54 = vpop.f32.mrf.mxu1 }
 0x1ca   :  { %v1541_v53 = vadd.f32 %v1540_v31, %v1452_v33  ;;  %v1454_v19 = vadd.f32 %v1453_v52, %v3360_v21 }
 0x1cb   :  { %v1457_v55 = vpop.f32.mrf.mxu0  ;;  %v1548_v59 = vpop.f32.mrf.mxu1 }
 0x1cc   :  { %vm1573_vm9 = vcmp.gt.f32.partialorder %v1541_v53, 0.0  ;;  %v1621_v56 = vmul.f32 0.01, %v1541_v53  ;;  %v1543_v57 = vadd.f32 %v1542_v51, %v1454_v19  ;;  %v1458_v58 = vadd.f32 %v1457_v55, %v3374_v6 }
 0x1cd   :  { %v1459_v60 = vpop.f32.mrf.mxu0  ;;  %v1552_v1 = vpop.f32.mrf.mxu1 }
 0x1ce   :  { %v1669_v61 = vsel %vm1573_vm9, %v1541_v53, %v1621_v56  ;;  %vm1574_vm10 = vcmp.gt.f32.partialorder %v1543_v57, 0.0  ;;  %v1622_v62 = vmul.f32 0.01, %v1543_v57  ;;  %v1547_v0 = vadd.f32 %v1546_v54, %v1458_v58 }
 0x1cf   :  { %1717 = vst [vmem:[%s3577_s3 + $0x50] sm:$0xff] %v1669_v61  ;;  %v1460_v21 = vadd.f32 %v1459_v60, %v3374_v6  ;;  %v1463_v2 = vpop.f32.mrf.mxu0  ;;  %v1554_v11 = vpop.f32.mrf.mxu1 }
 0x1d0   :  { %v1670_v4 = vsel %vm1574_vm10, %v1543_v57, %v1622_v62  ;;  %vm1585_vm11 = vcmp.gt.f32.partialorder %v1547_v0, 0.0  ;;  %v1633_v8 = vmul.f32 0.01, %v1547_v0  ;;  %v1464_v9 = vadd.f32 %v1463_v2, %v3387_v22 }
 0x1d1   :  { %1718 = vst [vmem:[%s3577_s3 + $0x58] sm:$0xff] %v1670_v4  ;;  %v1549_v3 = vadd.f32 %v1548_v59, %v1460_v21  ;;  %v1465_v12 = vpop.f32.mrf.mxu0  ;;  %v1558_v27 = vpop.f32.mrf.mxu1 }
 0x1d2   :  { %v1681_v14 = vsel %vm1585_vm11, %v1547_v0, %v1633_v8  ;;  %v1553_v16 = vadd.f32 %v1552_v1, %v1464_v9  ;;  %v1466_v17 = vadd.f32 %v1465_v12, %v3387_v22 }
 0x1d3   :  { %1729 = vst [vmem:[%s3577_s3 + $0xb0] sm:$0xff] %v1681_v14  ;;  %vm1586_vm12 = vcmp.gt.f32.partialorder %v1549_v3, 0.0  ;;  %v1634_v6 = vmul.f32 0.01, %v1549_v3  ;;  %v1469_v18 = vpop.f32.mrf.mxu0  ;;  %v1560_v37 = vpop.f32.mrf.mxu1 }
 0x1d4   :  { %vm1597_vm13 = vcmp.gt.f32.partialorder %v1553_v16, 0.0  ;;  %v1645_v20 = vmul.f32 0.01, %v1553_v16  ;;  %v1555_v24 = vadd.f32 %v1554_v11, %v1466_v17  ;;  %v1470_v26 = vadd.f32 %v1469_v18, %v3398_v42 }
 0x1d5   :  { %v1682_v28 = vsel %vm1586_vm12, %v1549_v3, %v1634_v6  ;;  %v1471_v29 = vpop.f32.mrf.mxu0 }
 0x1d6   :  { %1730 = vst [vmem:[%s3577_s3 + $0xb8] sm:$0xff] %v1682_v28  ;;  %v1693_v22 = vsel %vm1597_vm13, %v1553_v16, %v1645_v20  ;;  %vm1598_vm14 = vcmp.gt.f32.partialorder %v1555_v24, 0.0  ;;  %v1646_v30 = vmul.f32 0.01, %v1555_v24  ;;  %v1559_v32 = vadd.f32 %v1558_v27, %v1470_v26 }
 0x1d7   :  { %1741 = vst [vmem:[%s3577_s3 + $0x110] sm:$0xff] %v1693_v22  ;;  %v1472_v34 = vadd.f32 %v1471_v29, %v3398_v42 }
 0x1d8   :  { %v1694_v35 = vsel %vm1598_vm14, %v1555_v24, %v1646_v30  ;;  %vm1609_vm15 = vcmp.gt.f32.partialorder %v1559_v32, 0.0  ;;  %v1657_v36 = vmul.f32 0.01, %v1559_v32 }
 0x1d9   :  { %1742 = vst [vmem:[%s3577_s3 + $0x118] sm:$0xff] %v1694_v35  ;;  %v1561_v38 = vadd.f32 %v1560_v37, %v1472_v34 }
 0x1da   :  { %v1705_v39 = vsel %vm1609_vm15, %v1559_v32, %v1657_v36 }
 0x1db   :  { %1753 = vst [vmem:[%s3577_s3 + $0x170] sm:$0xff] %v1705_v39  ;;  %vm1610_vm0 = vcmp.gt.f32.partialorder %v1561_v38, 0.0  ;;  %v1658_v40 = vmul.f32 0.01, %v1561_v38 }
 0x1dd   :  { %v1706_v5 = vsel %vm1610_vm0, %v1561_v38, %v1658_v40 }
 0x1de   :  { %1754 = vst [vmem:[%s3577_s3 + $0x178] sm:$0xff] %v1706_v5 }

// kernel: triplet_forward.9
= control target key start
LH: loop header
LB: loop body
LE: loop exit
PB: predicated region body
PF: predicated region fallthrough
CT: control target
= control target key end

     0   :  { %v358_v3 = vmov 0.0   ;;  %v359_v4 = vmov 0   ;;  %vm122_vm0 = vcmask 261120   ;;  %vm338_vm2 = vcmask 719872   ;;  %s680_s0 = inlined_call_operand.vmem [shape: f32[288,216], index: 0, kind: input, shape index: {}]   ;;  %s681_s1 = inlined_call_operand.vmem [shape: f32[32,288], index: 1, kind: input, shape index: {}]   ;;  %s682_s2 = inlined_call_operand.vmem [shape: f32[32,1], index: 2, kind: input, shape index: {}]   ;;  %s683_s3 = inlined_call_operand.vmem [shape: f32[32,216], index: 3, kind: output, shape index: {}]  }
   0x1   :  { %v57_v0 = vld [vmem:[%s680_s0 + $0xf8] sm:$0xff]  ;;  %v56_v1 = vld [vmem:[%s680_s0 + $0xf0] sm:$0xff]  ;;  %v55_v2 = vld [vmem:[%s680_s0 + $0xe8] sm:$0xff]  ;;  %288 = vmatprep.mubr.f32.mxu1 %v358_v3  ;;  %356 = vset.pattern.permute.xlu0 %v359_v4 }
   0x2   :  { %135 = vmatprep.subr.mxu0 %v57_v0  ;;  %v54_v5 = vld [vmem:[%s680_s0 + $0xe0] sm:$0xff]  ;;  %357 = vset.pattern.permute.xlu1 %v359_v4  ;;  %v53_v6 = vld [vmem:[%s680_s0 + $0xd8] sm:$0xff]  ;;  %v52_v7 = vld [vmem:[%s680_s0 + $0xd0] sm:$0xff] }
   0x3   :  { %136 = vmatpush1.msra.mxu0 %v56_v1  ;;  %v51_v8 = vld [vmem:[%s680_s0 + $0xc8] sm:$0xff]  ;;  %v50_v9 = vld [vmem:[%s680_s0 + $0xc0] sm:$0xff]  ;;  %v49_v10 = vld [vmem:[%s680_s0 + $0xb8] sm:$0xff] }
   0x4   :  { %137 = vmatprep.subr.mxu0 %v55_v2  ;;  %v48_v11 = vld [vmem:[%s680_s0 + $0xb0] sm:$0xff]  ;;  %v47_v12 = vld [vmem:[%s680_s0 + $0xa8] sm:$0xff]  ;;  %v46_v13 = vld [vmem:[%s680_s0 + $0xa0] sm:$0xff] }
   0x5   :  { %138 = vmatpush1.msra.mxu0 %v54_v5  ;;  %v45_v14 = vld [vmem:[%s680_s0 + $0x98] sm:$0xff]  ;;  %v44_v15 = vld [vmem:[%s680_s0 + $0x90] sm:$0xff]  ;;  %v43_v16 = vld [vmem:[%s680_s0 + $0x88] sm:$0xff] }
   0x6   :  { %139 = vmatprep.subr.mxu0 %v53_v6  ;;  %v42_v17 = vld [vmem:[%s680_s0 + $0x80] sm:$0xff]  ;;  %v41_v18 = vld [vmem:[%s680_s0 + $0x78] sm:$0xff]  ;;  %v40_v19 = vld [vmem:[%s680_s0 + $0x70] sm:$0xff] }
   0x7   :  { %140 = vmatpush1.msra.mxu0 %v52_v7  ;;  %v39_v20 = vld [vmem:[%s680_s0 + $0x68] sm:$0xff]  ;;  %v38_v21 = vld [vmem:[%s680_s0 + $0x60] sm:$0xff]  ;;  %v37_v22 = vld [vmem:[%s680_s0 + $0x58] sm:$0xff] }
   0x8   :  { %141 = vmatprep.subr.mxu0 %v51_v8  ;;  %v36_v23 = vld [vmem:[%s680_s0 + $0x50] sm:$0xff]  ;;  %v97_v24 = vld [vmem:[%s680_s0 + $0x238] sm:$0xff]  ;;  %v35_v26 = vld [vmem:[%s680_s0 + $0x48] sm:$0xff] }
   0x9   :  { %142 = vmatpush1.msra.mxu0 %v50_v9  ;;  %v96_v25 = vld [vmem:[%s680_s0 + $0x230] sm:$0xff]  ;;  %248 = vmatprep.subr.mxu1 %v97_v24  ;;  %v95_v27 = vld [vmem:[%s680_s0 + $0x228] sm:$0xff]  ;;  %v34_v28 = vld [vmem:[%s680_s0 + $0x40] sm:$0xff] }
   0xa   :  { %143 = vmatprep.subr.mxu0 %v49_v10  ;;  %249 = vmatpush1.msra.mxu1 %v96_v25  ;;  %v94_v29 = vld [vmem:[%s680_s0 + $0x220] sm:$0xff]  ;;  %v93_v30 = vld [vmem:[%s680_s0 + $0x218] sm:$0xff]  ;;  %v92_v32 = vld [vmem:[%s680_s0 + $0x210] sm:$0xff] }
   0xb   :  { %144 = vmatpush1.msra.mxu0 %v48_v11  ;;  %v33_v31 = vld [vmem:[%s680_s0 + $0x38] sm:$0xff]  ;;  %250 = vmatprep.subr.mxu1 %v95_v27  ;;  %v32_v33 = vld [vmem:[%s680_s0 + $0x30] sm:$0xff]  ;;  %v91_v34 = vld [vmem:[%s680_s0 + $0x208] sm:$0xff] }
   0xc   :  { %145 = vmatprep.subr.mxu0 %v47_v12  ;;  %251 = vmatpush1.msra.mxu1 %v94_v29  ;;  %v31_v35 = vld [vmem:[%s680_s0 + $0x28] sm:$0xff]  ;;  %v30_v37 = vld [vmem:[%s680_s0 + $0x20] sm:$0xff]  ;;  %v29_v39 = vld [vmem:[%s680_s0 + $0x18] sm:$0xff] }
   0xd   :  { %146 = vmatpush1.msra.mxu0 %v46_v13  ;;  %252 = vmatprep.subr.mxu1 %v93_v30  ;;  %v15_v36 = vld [vmem:[%s681_s1 + $0x8] sm:$0xff]  ;;  %v90_v38 = vld [vmem:[%s680_s0 + $0x200] sm:$0xff]  ;;  %v16_v40 = vld [vmem:[%s681_s1 + $0x10] sm:$0xff] }
   0xe   :  { %147 = vmatprep.subr.mxu0 %v45_v14  ;;  %253 = vmatpush1.msra.mxu1 %v92_v32  ;;  %v28_v41 = vld [vmem:[%s680_s0 + $0x10] sm:$0xff]  ;;  %v27_v42 = vld [vmem:[%s680_s0 + $0x8] sm:$0xff]  ;;  %v98_v43 = vld [vmem:[%s682_s2] sm:$0xff] }
   0xf   :  { %148 = vmatpush1.msra.mxu0 %v44_v15  ;;  %254 = vmatprep.subr.mxu1 %v91_v34  ;;  %v26_v44 = vld [vmem:[%s680_s0] sm:$0xff]  ;;  %v100_v45 = vld [vmem:[%s682_s2 + $0x10] sm:$0xff]  ;;  %v89_v46 = vld [vmem:[%s680_s0 + $0x1f8] sm:$0xff] }
  0x10   :  { %149 = vmatprep.subr.mxu0 %v43_v16  ;;  %199 = vmatprep.mubr.f32.mxu0 %v15_v36  ;;  %v19_v47 = vld [vmem:[%s681_s1 + $0x28] sm:$0xff]  ;;  %v88_v48 = vld [vmem:[%s680_s0 + $0x1f0] sm:$0xff]  ;;  %v86_v51 = vld [vmem:[%s680_s0 + $0x1e0] sm:$0xff] }
  0x11   :  { %150 = vmatpush1.msra.mxu0 %v42_v17  ;;  %255 = vmatpush1.msra.mxu1 %v90_v38  ;;  %v87_v49 = vld [vmem:[%s680_s0 + $0x1e8] sm:$0xff]  ;;  %v101_v52 = vld [vmem:[%s682_s2 + $0x18] sm:$0xff]  ;;  %v22_v54 = vld [vmem:[%s681_s1 + $0x40] sm:$0xff] }
  0x12   :  { %151 = vmatprep.subr.mxu0 %v41_v18  ;;  %350 = vmatmul.mubr.msk.f32.vlgmr.msra.gmra.mxu1 %vm122_vm0, %v16_v40  ;;  %v99_v50 = vld [vmem:[%s682_s2 + $0x8] sm:$0xff]  ;;  %v85_v53 = vld [vmem:[%s680_s0 + $0x1d8] sm:$0xff]  ;;  %v84_v55 = vld [vmem:[%s680_s0 + $0x1d0] sm:$0xff] }
  0x13   :  { %152 = vmatpush1.msra.mxu0 %v40_v19  ;;  %294 = vmatprep.mubr.f32.mxu1 %v358_v3  ;;  %v83_v56 = vld [vmem:[%s680_s0 + $0x1c8] sm:$0xff]  ;;  %v82_v57 = vld [vmem:[%s680_s0 + $0x1c0] sm:$0xff]  ;;  %v81_v58 = vld [vmem:[%s680_s0 + $0x1b8] sm:$0xff] }
  0x14   :  { %153 = vmatprep.subr.mxu0 %v39_v20  ;;  %104 = vperm.xlu0 %356, %v98_v43   ;;  %v25_v59 = vld [vmem:[%s681_s1 + $0x58] sm:$0xff]  ;;  %v80_v60 = vld [vmem:[%s680_s0 + $0x1b0] sm:$0xff]  ;;  %v79_v61 = vld [vmem:[%s680_s0 + $0x1a8] sm:$0xff] }
  0x15   :  { %154 = vmatpush1.msra.mxu0 %v38_v21  ;;  %114 = vperm.xlu1 %357, %v100_v45   ;;  %v78_v62 = vld [vmem:[%s680_s0 + $0x1a0] sm:$0xff]  ;;  %v77_v63 = vld [vmem:[%s680_s0 + $0x198] sm:$0xff]  ;;  %v76_v0 = vld [vmem:[%s680_s0 + $0x190] sm:$0xff] }
  0x16   :  { %155 = vmatprep.subr.mxu0 %v37_v22  ;;  %351 = vmatmul.mubr.msk.f32.gmra.mxu1 %vm122_vm0, %v19_v47  ;;  %v75_v1 = vld [vmem:[%s680_s0 + $0x188] sm:$0xff]  ;;  %v74_v2 = vld [vmem:[%s680_s0 + $0x180] sm:$0xff]  ;;  %v72_v4 = vld [vmem:[%s680_s0 + $0x170] sm:$0xff] }
  0x17   :  { %156 = vmatpush1.msra.mxu0 %v36_v23  ;;  %300 = vmatprep.mubr.f32.mxu1 %v358_v3  ;;  %v71_v5 = vld [vmem:[%s680_s0 + $0x168] sm:$0xff]  ;;  %v70_v6 = vld [vmem:[%s680_s0 + $0x160] sm:$0xff]  ;;  %v69_v7 = vld [vmem:[%s680_s0 + $0x158] sm:$0xff] }
  0x18   :  { %157 = vmatprep.subr.mxu0 %v35_v26  ;;  %109 = vperm.xlu0 %356, %v99_v50   ;;  %v68_v8 = vld [vmem:[%s680_s0 + $0x150] sm:$0xff]  ;;  %v67_v9 = vld [vmem:[%s680_s0 + $0x148] sm:$0xff]  ;;  %v66_v10 = vld [vmem:[%s680_s0 + $0x140] sm:$0xff] }
  0x19   :  { %158 = vmatpush1.msra.mxu0 %v34_v28  ;;  %119 = vperm.xlu1 %357, %v101_v52   ;;  %v65_v11 = vld [vmem:[%s680_s0 + $0x138] sm:$0xff]  ;;  %v64_v12 = vld [vmem:[%s680_s0 + $0x130] sm:$0xff]  ;;  %v63_v13 = vld [vmem:[%s680_s0 + $0x128] sm:$0xff] }
  0x1a   :  { %159 = vmatprep.subr.mxu0 %v33_v31  ;;  %352 = vmatmul.mubr.msk.f32.gmra.mxu1 %vm122_vm0, %v22_v54  ;;  %v62_v14 = vld [vmem:[%s680_s0 + $0x120] sm:$0xff]  ;;  %v61_v15 = vld [vmem:[%s680_s0 + $0x118] sm:$0xff]  ;;  %v60_v16 = vld [vmem:[%s680_s0 + $0x110] sm:$0xff] }
  0x1b   :  { %160 = vmatpush1.msra.mxu0 %v32_v33  ;;  %306 = vmatprep.mubr.f32.mxu1 %v358_v3  ;;  %v73_v3 = vld [vmem:[%s680_s0 + $0x178] sm:$0xff]  ;;  %v59_v17 = vld [vmem:[%s680_s0 + $0x108] sm:$0xff]  ;;  %v58_v18 = vld [vmem:[%s680_s0 + $0x100] sm:$0xff] }
  0x1c   :  { %161 = vmatprep.subr.mxu0 %v31_v35  ;;  %v14_v19 = vld [vmem:[%s681_s1] sm:$0xff]  ;;  %v17_v21 = vld [vmem:[%s681_s1 + $0x18] sm:$0xff]  ;;  %v20_v23 = vld [vmem:[%s681_s1 + $0x30] sm:$0xff] }
  0x1d   :  { %162 = vmatpush1.msra.mxu0 %v30_v37  ;;  %v18_v20 = vld [vmem:[%s681_s1 + $0x20] sm:$0xff]  ;;  %v21_v22 = vld [vmem:[%s681_s1 + $0x38] sm:$0xff]  ;;  %v24_v24 = vld [vmem:[%s681_s1 + $0x50] sm:$0xff] }
  0x1e   :  { %163 = vmatprep.subr.mxu0 %v29_v39  ;;  %353 = vmatmul.mubr.msk.f32.gmra.mxu1 %vm122_vm0, %v25_v59  ;;  %v23_v25 = vld [vmem:[%s681_s1 + $0x48] sm:$0xff] }
  0x1f   :  { %164 = vmatpush1.msra.mxu0 %v28_v41 }
  0x20   :  { %165 = vmatprep.subr.mxu0 %v27_v42 }
  0x21   :  { %166 = vmatpush1.msra.mxu0 %v26_v44 }
  0x22   :  { %167 = vmatprep.subr.mxu0 %v89_v46 }
  0x23   :  { %168 = vmatpush2.msra.mxu0 %v88_v48 }
  0x24   :  { %169 = vmatprep.subr.mxu0 %v87_v49 }
  0x25   :  { %170 = vmatpush2.msra.mxu0 %v86_v51 }
  0x26   :  { %171 = vmatprep.subr.mxu0 %v85_v53 }
  0x27   :  { %172 = vmatpush2.msra.mxu0 %v84_v55 }
  0x28   :  { %173 = vmatprep.subr.mxu0 %v83_v56 }
  0x29   :  { %174 = vmatpush2.msra.mxu0 %v82_v57 }
  0x2a   :  { %175 = vmatprep.subr.mxu0 %v81_v58 }
  0x2b   :  { %176 = vmatpush2.msra.mxu0 %v80_v60 }
  0x2c   :  { %177 = vmatprep.subr.mxu0 %v79_v61 }
  0x2d   :  { %178 = vmatpush2.msra.mxu0 %v78_v62 }
  0x2e   :  { %179 = vmatprep.subr.mxu0 %v77_v63 }
  0x2f   :  { %180 = vmatpush2.msra.mxu0 %v76_v0 }
  0x30   :  { %181 = vmatprep.subr.mxu0 %v75_v1 }
  0x31   :  { %182 = vmatpush2.msra.mxu0 %v74_v2 }
  0x32   :  { %183 = vmatprep.subr.mxu0 %v73_v3 }
  0x33   :  { %184 = vmatpush2.msra.mxu0 %v72_v4 }
  0x34   :  { %185 = vmatprep.subr.mxu0 %v71_v5 }
  0x35   :  { %186 = vmatpush2.msra.mxu0 %v70_v6 }
  0x36   :  { %187 = vmatprep.subr.mxu0 %v69_v7 }
  0x37   :  { %188 = vmatpush2.msra.mxu0 %v68_v8 }
  0x38   :  { %189 = vmatprep.subr.mxu0 %v67_v9 }
  0x39   :  { %190 = vmatpush2.msra.mxu0 %v66_v10 }
  0x3a   :  { %191 = vmatprep.subr.mxu0 %v65_v11 }
  0x3b   :  { %192 = vmatpush2.msra.mxu0 %v64_v12 }
  0x3c   :  { %193 = vmatprep.subr.mxu0 %v63_v13 }
  0x3d   :  { %194 = vmatpush2.msra.mxu0 %v62_v14 }
  0x3e   :  { %195 = vmatprep.subr.mxu0 %v61_v15 }
  0x3f   :  { %196 = vmatpush2.msra.mxu0 %v60_v16 }
  0x40   :  { %197 = vmatprep.subr.mxu0 %v59_v17 }
  0x41   :  { %198 = vmatpush2.msra.mxu0 %v58_v18 }
  0x42   :  { %200 = vmatmul.mubr.f32.vlgmr.msra.gmra.mxu0 %v14_v19 }
  0x43   :  { %205 = vmatprep.mubr.f32.mxu0 %v18_v20 }
  0x46   :  { %206 = vmatmul.mubr.f32.gmra.mxu0 %v17_v21 }
  0x47   :  { %211 = vmatprep.mubr.f32.mxu0 %v21_v22 }
  0x4a   :  { %212 = vmatmul.mubr.f32.gmra.mxu0 %v20_v23 }
  0x4b   :  { %217 = vmatprep.mubr.f32.mxu0 %v24_v24 }
  0x4e   :  { %218 = vmatmul.mubr.f32.gmra.mxu0 %v23_v25 }
  0x8f   :  { %v105_v28 = vpop.permute.xlu0 %104 }
  0x90   :  { %v115_v42 = vpop.permute.xlu1 %114 }
  0x93   :  { %v110_v34 = vpop.permute.xlu0 %109 }
  0x94   :  { %v120_v59 = vpop.permute.xlu1 %119 }
  0xd2   :  { %v290_v26 = vpop.f32.mrf.mxu1 }
  0xd4   :  { %v292_v27 = vpop.f32.mrf.mxu1 }
  0xd6   :  { %v296_v29 = vpop.f32.mrf.mxu1 }
  0xd8   :  { %v298_v32 = vpop.f32.mrf.mxu1 }
  0xda   :  { %v302_v41 = vpop.f32.mrf.mxu1 }
  0xdc   :  { %v304_v52 = vpop.f32.mrf.mxu1 }
  0xde   :  { %v308_v0 = vpop.f32.mrf.mxu1 }
  0xe0   :  { %v310_v9 = vpop.f32.mrf.mxu1 }
 0x102   :  { %v201_v30 = vpop.f32.mrf.mxu0 }
 0x103   :  { %v202_v31 = vadd.f32 %v201_v30, %v105_v28 }
 0x104   :  { %v203_v33 = vpop.f32.mrf.mxu0 }
 0x105   :  { %v291_v35 = vadd.f32 %v290_v26, %v202_v31  ;;  %v204_v36 = vadd.f32 %v203_v33, %v105_v28 }
 0x106   :  { %v207_v37 = vpop.f32.mrf.mxu0 }
 0x107   :  { %vm313_vm1 = vcmp.gt.f32.partialorder %v291_v35, 0.0  ;;  %v321_v38 = vmul.f32 0.01, %v291_v35  ;;  %v293_v39 = vadd.f32 %v292_v27, %v204_v36  ;;  %v208_v40 = vadd.f32 %v207_v37, %v110_v34 }
 0x108   :  { %v209_v43 = vpop.f32.mrf.mxu0 }
 0x109   :  { %v329_v44 = vsel %vm313_vm1, %v291_v35, %v321_v38  ;;  %vm314_vm3 = vcmp.gt.f32.partialorder %v293_v39, 0.0  ;;  %v322_v45 = vmul.f32 0.01, %v293_v39  ;;  %v297_v46 = vadd.f32 %v296_v29, %v208_v40 }
 0x10a   :  { %337 = vst [vmem:[%s683_s3] sm:$0xff] %v329_v44  ;;  %v210_v47 = vadd.f32 %v209_v43, %v110_v34  ;;  %v213_v48 = vpop.f32.mrf.mxu0 }
 0x10b   :  { %v330_v49 = vsel %vm314_vm3, %v293_v39, %v322_v45  ;;  %vm315_vm4 = vcmp.gt.f32.partialorder %v297_v46, 0.0  ;;  %v323_v50 = vmul.f32 0.01, %v297_v46  ;;  %v214_v51 = vadd.f32 %v213_v48, %v115_v42 }
 0x10c   :  { %339 = vst.msk [vmem:[%s683_s3 + $0x8] sm:$0xff] %vm338_vm2, %v330_v49  ;;  %v299_v53 = vadd.f32 %v298_v32, %v210_v47  ;;  %v215_v54 = vpop.f32.mrf.mxu0 }
 0x10d   :  { %v331_v55 = vsel %vm315_vm4, %v297_v46, %v323_v50  ;;  %v303_v56 = vadd.f32 %v302_v41, %v214_v51  ;;  %v216_v57 = vadd.f32 %v215_v54, %v115_v42 }
 0x10e   :  { %340 = vst [vmem:[%s683_s3 + $0x10] sm:$0xff] %v331_v55  ;;  %vm316_vm5 = vcmp.gt.f32.partialorder %v299_v53, 0.0  ;;  %v324_v58 = vmul.f32 0.01, %v299_v53  ;;  %v219_v60 = vpop.f32.mrf.mxu0 }
 0x10f   :  { %vm317_vm6 = vcmp.gt.f32.partialorder %v303_v56, 0.0  ;;  %v325_v61 = vmul.f32 0.01, %v303_v56  ;;  %v305_v62 = vadd.f32 %v304_v52, %v216_v57  ;;  %v220_v63 = vadd.f32 %v219_v60, %v120_v59 }
 0x110   :  { %v332_v1 = vsel %vm316_vm5, %v299_v53, %v324_v58  ;;  %v221_v2 = vpop.f32.mrf.mxu0 }
 0x111   :  { %341 = vst.msk [vmem:[%s683_s3 + $0x18] sm:$0xff] %vm338_vm2, %v332_v1  ;;  %v333_v3 = vsel %vm317_vm6, %v303_v56, %v325_v61  ;;  %vm318_vm7 = vcmp.gt.f32.partialorder %v305_v62, 0.0  ;;  %v326_v4 = vmul.f32 0.01, %v305_v62  ;;  %v309_v5 = vadd.f32 %v308_v0, %v220_v63 }
 0x112   :  { %342 = vst [vmem:[%s683_s3 + $0x20] sm:$0xff] %v333_v3  ;;  %v222_v6 = vadd.f32 %v221_v2, %v120_v59 }
 0x113   :  { %v334_v7 = vsel %vm318_vm7, %v305_v62, %v326_v4  ;;  %vm319_vm8 = vcmp.gt.f32.partialorder %v309_v5, 0.0  ;;  %v327_v8 = vmul.f32 0.01, %v309_v5 }
 0x114   :  { %343 = vst.msk [vmem:[%s683_s3 + $0x28] sm:$0xff] %vm338_vm2, %v334_v7  ;;  %v311_v10 = vadd.f32 %v310_v9, %v222_v6 }
 0x115   :  { %v335_v11 = vsel %vm319_vm8, %v309_v5, %v327_v8 }
 0x116   :  { %344 = vst [vmem:[%s683_s3 + $0x30] sm:$0xff] %v335_v11  ;;  %vm320_vm9 = vcmp.gt.f32.partialorder %v311_v10, 0.0  ;;  %v328_v12 = vmul.f32 0.01, %v311_v10 }
 0x118   :  { %v336_v13 = vsel %vm320_vm9, %v311_v10, %v328_v12 }
 0x119   :  { %345 = vst.msk [vmem:[%s683_s3 + $0x38] sm:$0xff] %vm338_vm2, %v336_v13 }

// kernel: triplet_forward.10
= control target key start
LH: loop header
LB: loop body
LE: loop exit
PB: predicated region body
PF: predicated region fallthrough
CT: control target
= control target key end

     0   :  { %v661_v3 = vmov 0   ;;  %vm116_vm0 = vcmask 261120   ;;  %vm509_vm1 = vcmask 195584   ;;  %s1016_s1 = inlined_call_operand.vmem [shape: f32[288,24], index: 1, kind: input, shape index: {}]   ;;  %s1017_s3 = inlined_call_operand.vmem [shape: f32[32,288], index: 3, kind: input, shape index: {}]   ;;  %s1018_s0 = inlined_call_operand.vmem [shape: f32[288,24], index: 0, kind: input, shape index: {}]   ;;  %s1019_s2 = inlined_call_operand.vmem [shape: f32[32,288], index: 2, kind: input, shape index: {}]   ;;  %s1020_s4 = inlined_call_operand.vmem [shape: f32[32,1], index: 4, kind: input, shape index: {}]   ;;  %s1021_s5 = inlined_call_operand.vmem [shape: f32[32,24], index: 5, kind: output, shape index: {}]  }
   0x1   :  { %v111_v0 = vld [vmem:[%s1016_s1 + $0xf8] sm:$0xff]  ;;  %659 = vset.pattern.permute.xlu0 %v661_v3  ;;  %660 = vset.pattern.permute.xlu1 %v661_v3  ;;  %v110_v4 = vld [vmem:[%s1016_s1 + $0xf0] sm:$0xff]  ;;  %v109_v7 = vld [vmem:[%s1016_s1 + $0xe8] sm:$0xff] }
   0x2   :  { %v115_v1 = vld [vmem:[%s1016_s1 + $0x118] sm:$0xff]  ;;  %526 = vmatprep.subr.mxu0 %v111_v0  ;;  %v114_v5 = vld [vmem:[%s1016_s1 + $0x110] sm:$0xff]  ;;  %v113_v8 = vld [vmem:[%s1016_s1 + $0x108] sm:$0xff] }
   0x3   :  { %v95_v2 = vld [vmem:[%s1016_s1 + $0x78] sm:$0xff]  ;;  %630 = vmatprep.subr.mxu1 %v115_v1  ;;  %v94_v6 = vld [vmem:[%s1016_s1 + $0x70] sm:$0xff]  ;;  %v93_v9 = vld [vmem:[%s1016_s1 + $0x68] sm:$0xff] }
   0x4   :  { %527 = vmatpush3.msra.mxu0 %v95_v2  ;;  %631 = vmatpush3.msra.mxu1 %v115_v1  ;;  %v108_v10 = vld [vmem:[%s1016_s1 + $0xe0] sm:$0xff]  ;;  %v70_v13 = vld [vmem:[%s1017_s3 + $0x10] sm:$0xff]  ;;  %v107_v14 = vld [vmem:[%s1016_s1 + $0xd8] sm:$0xff] }
   0x5   :  { %528 = vmatprep.subr.mxu0 %v110_v4  ;;  %632 = vmatprep.subr.mxu1 %v114_v5  ;;  %v112_v11 = vld [vmem:[%s1016_s1 + $0x100] sm:$0xff]  ;;  %v73_v15 = vld [vmem:[%s1017_s3 + $0x28] sm:$0xff]  ;;  %v63_v16 = vld [vmem:[%s1018_s0 + $0xf8] sm:$0xff] }
   0x6   :  { %529 = vmatpush3.msra.mxu0 %v94_v6  ;;  %633 = vmatpush3.msra.mxu1 %v114_v5  ;;  %v92_v12 = vld [vmem:[%s1016_s1 + $0x60] sm:$0xff]  ;;  %v91_v17 = vld [vmem:[%s1016_s1 + $0x58] sm:$0xff]  ;;  %v106_v19 = vld [vmem:[%s1016_s1 + $0xd0] sm:$0xff] }
   0x7   :  { %530 = vmatprep.subr.mxu0 %v109_v7  ;;  %634 = vmatprep.subr.mxu1 %v113_v8  ;;  %v47_v18 = vld [vmem:[%s1018_s0 + $0x78] sm:$0xff]  ;;  %v62_v20 = vld [vmem:[%s1018_s0 + $0xf0] sm:$0xff]  ;;  %v105_v23 = vld [vmem:[%s1016_s1 + $0xc8] sm:$0xff] }
   0x8   :  { %531 = vmatpush3.msra.mxu0 %v93_v9  ;;  %635 = vmatpush3.msra.mxu1 %v113_v8  ;;  %v90_v21 = vld [vmem:[%s1016_s1 + $0x50] sm:$0xff]  ;;  %v61_v24 = vld [vmem:[%s1018_s0 + $0xe8] sm:$0xff]  ;;  %v104_v27 = vld [vmem:[%s1016_s1 + $0xc0] sm:$0xff] }
   0x9   :  { %532 = vmatprep.subr.mxu0 %v108_v10  ;;  %636 = vmatprep.subr.mxu1 %v112_v11  ;;  %v46_v22 = vld [vmem:[%s1018_s0 + $0x70] sm:$0xff]  ;;  %v89_v25 = vld [vmem:[%s1016_s1 + $0x48] sm:$0xff]  ;;  %v60_v28 = vld [vmem:[%s1018_s0 + $0xe0] sm:$0xff] }
   0xa   :  { %533 = vmatpush3.msra.mxu0 %v92_v12  ;;  %637 = vmatpush3.msra.mxu1 %v112_v11  ;;  %v45_v26 = vld [vmem:[%s1018_s0 + $0x68] sm:$0xff]  ;;  %v88_v29 = vld [vmem:[%s1016_s1 + $0x40] sm:$0xff]  ;;  %v103_v31 = vld [vmem:[%s1016_s1 + $0xb8] sm:$0xff] }
   0xb   :  { %638 = vmatprep.mubr.msk.f32.mxu1 %vm116_vm0, %v70_v13  ;;  %534 = vmatprep.subr.mxu0 %v107_v14  ;;  %v44_v30 = vld [vmem:[%s1018_s0 + $0x60] sm:$0xff]  ;;  %v59_v32 = vld [vmem:[%s1018_s0 + $0xd8] sm:$0xff]  ;;  %v102_v35 = vld [vmem:[%s1016_s1 + $0xb0] sm:$0xff] }
   0xc   :  { %639 = vmatmul.mubr.msk.f32.vlgmr.msra.gmra.mxu1 %vm116_vm0, %v73_v15  ;;  %578 = vmatprep.subr.mxu1 %v63_v16  ;;  %v87_v33 = vld [vmem:[%s1016_s1 + $0x38] sm:$0xff]  ;;  %v58_v36 = vld [vmem:[%s1018_s0 + $0xd0] sm:$0xff]  ;;  %v101_v39 = vld [vmem:[%s1016_s1 + $0xa8] sm:$0xff] }
   0xd   :  { %535 = vmatpush3.msra.mxu0 %v91_v17  ;;  %579 = vmatpush3.msra.mxu1 %v47_v18  ;;  %v43_v34 = vld [vmem:[%s1018_s0 + $0x58] sm:$0xff]  ;;  %v86_v37 = vld [vmem:[%s1016_s1 + $0x30] sm:$0xff]  ;;  %v57_v40 = vld [vmem:[%s1018_s0 + $0xc8] sm:$0xff] }
   0xe   :  { %536 = vmatprep.subr.mxu0 %v106_v19  ;;  %580 = vmatprep.subr.mxu1 %v62_v20  ;;  %v42_v38 = vld [vmem:[%s1018_s0 + $0x50] sm:$0xff]  ;;  %v85_v41 = vld [vmem:[%s1016_s1 + $0x28] sm:$0xff]  ;;  %v100_v43 = vld [vmem:[%s1016_s1 + $0xa0] sm:$0xff] }
   0xf   :  { %537 = vmatpush3.msra.mxu0 %v90_v21  ;;  %581 = vmatpush3.msra.mxu1 %v46_v22  ;;  %v41_v42 = vld [vmem:[%s1018_s0 + $0x48] sm:$0xff]  ;;  %v56_v44 = vld [vmem:[%s1018_s0 + $0xc0] sm:$0xff]  ;;  %v99_v47 = vld [vmem:[%s1016_s1 + $0x98] sm:$0xff] }
  0x10   :  { %538 = vmatprep.subr.mxu0 %v105_v23  ;;  %582 = vmatprep.subr.mxu1 %v61_v24  ;;  %v84_v45 = vld [vmem:[%s1016_s1 + $0x20] sm:$0xff]  ;;  %v55_v48 = vld [vmem:[%s1018_s0 + $0xb8] sm:$0xff]  ;;  %v98_v51 = vld [vmem:[%s1016_s1 + $0x90] sm:$0xff] }
  0x11   :  { %539 = vmatpush3.msra.mxu0 %v89_v25  ;;  %583 = vmatpush3.msra.mxu1 %v45_v26  ;;  %v40_v46 = vld [vmem:[%s1018_s0 + $0x40] sm:$0xff]  ;;  %v83_v49 = vld [vmem:[%s1016_s1 + $0x18] sm:$0xff]  ;;  %v54_v52 = vld [vmem:[%s1018_s0 + $0xb0] sm:$0xff] }
  0x12   :  { %540 = vmatprep.subr.mxu0 %v104_v27  ;;  %584 = vmatprep.subr.mxu1 %v60_v28  ;;  %v39_v50 = vld [vmem:[%s1018_s0 + $0x38] sm:$0xff]  ;;  %v82_v53 = vld [vmem:[%s1016_s1 + $0x10] sm:$0xff]  ;;  %v97_v55 = vld [vmem:[%s1016_s1 + $0x88] sm:$0xff] }
  0x13   :  { %541 = vmatpush3.msra.mxu0 %v88_v29  ;;  %585 = vmatpush3.msra.mxu1 %v44_v30  ;;  %v38_v54 = vld [vmem:[%s1018_s0 + $0x30] sm:$0xff]  ;;  %v53_v56 = vld [vmem:[%s1018_s0 + $0xa8] sm:$0xff]  ;;  %v96_v59 = vld [vmem:[%s1016_s1 + $0x80] sm:$0xff] }
  0x14   :  { %542 = vmatprep.subr.mxu0 %v103_v31  ;;  %586 = vmatprep.subr.mxu1 %v59_v32  ;;  %v81_v57 = vld [vmem:[%s1016_s1 + $0x8] sm:$0xff]  ;;  %v52_v60 = vld [vmem:[%s1018_s0 + $0xa0] sm:$0xff]  ;;  %v51_v1 = vld [vmem:[%s1018_s0 + $0x98] sm:$0xff] }
  0x15   :  { %543 = vmatpush3.msra.mxu0 %v87_v33  ;;  %587 = vmatpush3.msra.mxu1 %v43_v34  ;;  %v37_v58 = vld [vmem:[%s1018_s0 + $0x28] sm:$0xff]  ;;  %v80_v61 = vld [vmem:[%s1016_s1] sm:$0xff]  ;;  %v35_v3 = vld [vmem:[%s1018_s0 + $0x18] sm:$0xff] }
  0x16   :  { %544 = vmatprep.subr.mxu0 %v102_v35  ;;  %588 = vmatprep.subr.mxu1 %v58_v36  ;;  %v69_v62 = vld [vmem:[%s1017_s3 + $0x8] sm:$0xff]  ;;  %v36_v63 = vld [vmem:[%s1018_s0 + $0x20] sm:$0xff]  ;;  %v79_v5 = vld [vmem:[%s1017_s3 + $0x58] sm:$0xff] }
  0x17   :  { %545 = vmatpush3.msra.mxu0 %v86_v37  ;;  %589 = vmatpush3.msra.mxu1 %v42_v38  ;;  %v68_v0 = vld [vmem:[%s1017_s3] sm:$0xff]  ;;  %v50_v6 = vld [vmem:[%s1018_s0 + $0x90] sm:$0xff]  ;;  %v67_v8 = vld [vmem:[%s1018_s0 + $0x118] sm:$0xff] }
  0x18   :  { %546 = vmatprep.subr.mxu0 %v101_v39  ;;  %590 = vmatprep.subr.mxu1 %v57_v40  ;;  %v76_v2 = vld [vmem:[%s1017_s3 + $0x40] sm:$0xff]  ;;  %v34_v7 = vld [vmem:[%s1018_s0 + $0x10] sm:$0xff]  ;;  %v71_v9 = vld [vmem:[%s1017_s3 + $0x18] sm:$0xff] }
  0x19   :  { %547 = vmatpush3.msra.mxu0 %v85_v41  ;;  %591 = vmatpush3.msra.mxu1 %v41_v42  ;;  %v72_v4 = vld [vmem:[%s1017_s3 + $0x20] sm:$0xff]  ;;  %v49_v10 = vld [vmem:[%s1018_s0 + $0x88] sm:$0xff]  ;;  %v75_v13 = vld [vmem:[%s1017_s3 + $0x38] sm:$0xff] }
  0x1a   :  { %548 = vmatprep.subr.mxu0 %v100_v43  ;;  %592 = vmatprep.subr.mxu1 %v56_v44  ;;  %v33_v11 = vld [vmem:[%s1018_s0 + $0x8] sm:$0xff]  ;;  %v48_v12 = vld [vmem:[%s1018_s0 + $0x80] sm:$0xff]  ;;  %v66_v16 = vld [vmem:[%s1018_s0 + $0x110] sm:$0xff] }
  0x1b   :  { %549 = vmatpush3.msra.mxu0 %v84_v45  ;;  %593 = vmatpush3.msra.mxu1 %v40_v46  ;;  %v32_v14 = vld [vmem:[%s1018_s0] sm:$0xff]  ;;  %v21_v15 = vld [vmem:[%s1019_s2 + $0x8] sm:$0xff]  ;;  %v74_v17 = vld [vmem:[%s1017_s3 + $0x30] sm:$0xff] }
  0x1c   :  { %550 = vmatprep.subr.mxu0 %v99_v47  ;;  %594 = vmatprep.subr.mxu1 %v55_v48  ;;  %v20_v18 = vld [vmem:[%s1019_s2] sm:$0xff]  ;;  %v78_v19 = vld [vmem:[%s1017_s3 + $0x50] sm:$0xff]  ;;  %v65_v21 = vld [vmem:[%s1018_s0 + $0x108] sm:$0xff] }
  0x1d   :  { %551 = vmatpush3.msra.mxu0 %v83_v49  ;;  %595 = vmatpush3.msra.mxu1 %v39_v50  ;;  %v24_v20 = vld [vmem:[%s1019_s2 + $0x20] sm:$0xff]  ;;  %v77_v23 = vld [vmem:[%s1017_s3 + $0x48] sm:$0xff]  ;;  %v483_v24 = vld [vmem:[%s1020_s4 + $0x10] sm:$0xff] }
  0x1e   :  { %552 = vmatprep.subr.mxu0 %v98_v51  ;;  %596 = vmatprep.subr.mxu1 %v54_v52  ;;  %v481_v22 = vld [vmem:[%s1020_s4] sm:$0xff]  ;;  %v23_v25 = vld [vmem:[%s1019_s2 + $0x18] sm:$0xff]  ;;  %v22_v28 = vld [vmem:[%s1019_s2 + $0x10] sm:$0xff] }
  0x1f   :  { %553 = vmatpush3.msra.mxu0 %v82_v53  ;;  %597 = vmatpush3.msra.mxu1 %v38_v54  ;;  %v64_v26 = vld [vmem:[%s1018_s0 + $0x100] sm:$0xff]  ;;  %v27_v27 = vld [vmem:[%s1019_s2 + $0x38] sm:$0xff]  ;;  %v25_v29 = vld [vmem:[%s1019_s2 + $0x28] sm:$0xff] }
  0x20   :  { %554 = vmatprep.subr.mxu0 %v97_v55  ;;  %598 = vmatprep.subr.mxu1 %v53_v56  ;;  %v482_v30 = vld [vmem:[%s1020_s4 + $0x8] sm:$0xff]  ;;  %v26_v31 = vld [vmem:[%s1019_s2 + $0x30] sm:$0xff]  ;;  %v28_v32 = vld [vmem:[%s1019_s2 + $0x40] sm:$0xff] }
  0x21   :  { %555 = vmatpush3.msra.mxu0 %v81_v57  ;;  %599 = vmatpush3.msra.mxu1 %v37_v58  ;;  %v30_v33 = vld [vmem:[%s1019_s2 + $0x50] sm:$0xff]  ;;  %v484_v34 = vld [vmem:[%s1020_s4 + $0x18] sm:$0xff]  ;;  %v29_v36 = vld [vmem:[%s1019_s2 + $0x48] sm:$0xff] }
  0x22   :  { %556 = vmatprep.subr.mxu0 %v96_v59  ;;  %600 = vmatprep.subr.mxu1 %v52_v60  ;;  %v31_v35 = vld [vmem:[%s1019_s2 + $0x58] sm:$0xff] }
  0x23   :  { %557 = vmatpush3.msra.mxu0 %v80_v61  ;;  %193 = vmatprep.mubr.f32.mxu0 %v69_v62 }
  0x24   :  { %601 = vmatpush3.msra.mxu1 %v36_v63  ;;  %194 = vmatmul.mubr.f32.vlgmr.msra.gmra.mxu0 %v68_v0 }
  0x25   :  { %602 = vmatprep.subr.mxu1 %v51_v1  ;;  %641 = vmatprep.mubr.msk.f32.mxu1 %vm116_vm0, %v76_v2 }
  0x26   :  { %603 = vmatpush3.msra.mxu1 %v35_v3  ;;  %198 = vmatprep.mubr.f32.mxu0 %v72_v4 }
  0x27   :  { %642 = vmatmul.mubr.msk.f32.gmra.mxu1 %vm116_vm0, %v79_v5  ;;  %604 = vmatprep.subr.mxu1 %v50_v6 }
  0x28   :  { %605 = vmatpush3.msra.mxu1 %v34_v7  ;;  %644 = vmatprep.subr.mxu0 %v67_v8 }
  0x29   :  { %199 = vmatmul.mubr.f32.gmra.mxu0 %v71_v9  ;;  %606 = vmatprep.subr.mxu1 %v49_v10 }
  0x2a   :  { %645 = vmatpush3.msra.mxu0 %v67_v8  ;;  %607 = vmatpush3.msra.mxu1 %v33_v11 }
  0x2b   :  { %608 = vmatprep.subr.mxu1 %v48_v12  ;;  %203 = vmatprep.mubr.f32.mxu0 %v75_v13 }
  0x2c   :  { %609 = vmatpush3.msra.mxu1 %v32_v14  ;;  %375 = vmatprep.mubr.f32.mxu1 %v21_v15 }
  0x2d   :  { %646 = vmatprep.subr.mxu0 %v66_v16  ;;  %204 = vmatmul.mubr.f32.gmra.mxu0 %v74_v17 }
  0x2e   :  { %376 = vmatmul.mubr.f32.vlgmr.msra.gmra.mxu1 %v20_v18  ;;  %647 = vmatpush3.msra.mxu0 %v66_v16 }
  0x2f   :  { %208 = vmatprep.mubr.f32.mxu0 %v78_v19  ;;  %380 = vmatprep.mubr.f32.mxu1 %v24_v20 }
  0x30   :  { %648 = vmatprep.subr.mxu0 %v65_v21  ;;  %487 = vperm.xlu0 %659, %v481_v22  }
  0x31   :  { %209 = vmatmul.mubr.f32.gmra.mxu0 %v77_v23  ;;  %497 = vperm.xlu1 %660, %v483_v24  }
  0x32   :  { %381 = vmatmul.mubr.f32.gmra.mxu1 %v23_v25  ;;  %649 = vmatpush3.msra.mxu0 %v65_v21 }
  0x33   :  { %650 = vmatprep.subr.mxu0 %v64_v26  ;;  %385 = vmatprep.mubr.f32.mxu1 %v27_v27 }
  0x34   :  { %651 = vmatpush3.msra.mxu0 %v64_v26  ;;  %652 = vmatprep.mubr.msk.f32.mxu0 %vm116_vm0, %v22_v28 }
  0x35   :  { %653 = vmatmul.mubr.msk.f32.vlgmr.msra.gmra.mxu0 %vm116_vm0, %v25_v29  ;;  %492 = vperm.xlu0 %659, %v482_v30  }
  0x36   :  { %386 = vmatmul.mubr.f32.gmra.mxu1 %v26_v31  ;;  %655 = vmatprep.mubr.msk.f32.mxu0 %vm116_vm0, %v28_v32 }
  0x37   :  { %390 = vmatprep.mubr.f32.mxu1 %v30_v33  ;;  %502 = vperm.xlu1 %660, %v484_v34  }
  0x39   :  { %656 = vmatmul.mubr.msk.f32.gmra.mxu0 %vm116_vm0, %v31_v35 }
  0x3a   :  { %391 = vmatmul.mubr.f32.gmra.mxu1 %v29_v36 }
  0xab   :  { %v488_v54 = vpop.permute.xlu0 %487 }
  0xac   :  { %v498_v15 = vpop.permute.xlu1 %497 }
  0xb0   :  { %v493_v4 = vpop.permute.xlu0 %492 }
  0xb2   :  { %v503_v23 = vpop.permute.xlu1 %502 }
  0xcc   :  { %v640_v37 = vpop.f32.mrf.mxu1 }
  0xce   :  { %v280_v39 = vpop.f32.mrf.mxu1 }
  0xe4   :  { %v558_v38 = vpop.f32.mrf.mxu0 }
  0xe6   :  { %v559_v40 = vpop.f32.mrf.mxu0 }
  0xe7   :  { %v643_v41 = vpop.f32.mrf.mxu1  ;;  %v560_v48 = vadd.f32 %v559_v40, %v558_v38 }
  0xe9   :  { %v561_v42 = vpop.f32.mrf.mxu0  ;;  %v290_v44 = vpop.f32.mrf.mxu1  ;;  %v281_v56 = vadd.f32 %v560_v48, %v280_v39 }
  0xeb   :  { %v562_v43 = vpop.f32.mrf.mxu0 }
  0xec   :  { %v563_v50 = vadd.f32 %v562_v43, %v561_v42 }
  0xed   :  { %v564_v45 = vpop.f32.mrf.mxu0 }
  0xee   :  { %v610_v46 = vpop.f32.mrf.mxu1  ;;  %v286_v58 = vadd.f32 %v640_v37, %v563_v50 }
  0xef   :  { %v565_v47 = vpop.f32.mrf.mxu0 }
  0xf0   :  { %v611_v49 = vpop.f32.mrf.mxu1  ;;  %v566_v59 = vadd.f32 %v565_v47, %v564_v45 }
  0xf1   :  { %v567_v51 = vpop.f32.mrf.mxu0  ;;  %v612_v52 = vadd.f32 %v611_v49, %v610_v46 }
  0xf2   :  { %v613_v53 = vpop.f32.mrf.mxu1  ;;  %v291_v5 = vadd.f32 %v566_v59, %v290_v44 }
  0xf3   :  { %v568_v55 = vpop.f32.mrf.mxu0  ;;  %v378_v63 = vadd.f32 %v612_v52, %v281_v56 }
  0xf4   :  { %v614_v57 = vpop.f32.mrf.mxu1  ;;  %v569_v6 = vadd.f32 %v568_v55, %v567_v51 }
  0xf5   :  { %v615_v60 = vadd.f32 %v614_v57, %v613_v53  ;;  %v654_v61 = vpop.f32.mrf.mxu0 }
  0xf6   :  { %v616_v62 = vpop.f32.mrf.mxu1  ;;  %v296_v17 = vadd.f32 %v643_v41, %v569_v6 }
  0xf7   :  { %v383_v0 = vadd.f32 %v615_v60, %v286_v58  ;;  %v462_v1 = vpop.f32.mrf.mxu0 }
  0xf8   :  { %v617_v2 = vpop.f32.mrf.mxu1  ;;  %v463_v3 = vadd.f32 %v462_v1, %v378_v63 }
  0xf9   :  { %v468_v7 = vadd.f32 %v654_v61, %v383_v0  ;;  %v618_v8 = vadd.f32 %v617_v2, %v616_v62  ;;  %v657_v9 = vpop.f32.mrf.mxu0 }
  0xfa   :  { %v505_v10 = vadd.f32 %v488_v54, %v463_v3  ;;  %v619_v11 = vpop.f32.mrf.mxu1 }
  0xfb   :  { %v506_v12 = vadd.f32 %v493_v4, %v468_v7  ;;  %v388_v13 = vadd.f32 %v618_v8, %v291_v5  ;;  %v472_v14 = vpop.f32.mrf.mxu0 }
  0xfc   :  { %510 = vst.msk [vmem:[%s1021_s5] sm:$0xff] %vm509_vm1, %v505_v10  ;;  %v620_v16 = vpop.f32.mrf.mxu1 }
  0xfd   :  { %511 = vst.msk [vmem:[%s1021_s5 + $0x8] sm:$0xff] %vm509_vm1, %v506_v12  ;;  %v621_v18 = vadd.f32 %v620_v16, %v619_v11  ;;  %v473_v19 = vadd.f32 %v472_v14, %v388_v13 }
  0xff   :  { %v393_v20 = vadd.f32 %v621_v18, %v296_v17  ;;  %v507_v21 = vadd.f32 %v498_v15, %v473_v19 }
 0x101   :  { %512 = vst.msk [vmem:[%s1021_s5 + $0x10] sm:$0xff] %vm509_vm1, %v507_v21  ;;  %v478_v22 = vadd.f32 %v657_v9, %v393_v20 }
 0x103   :  { %v508_v24 = vadd.f32 %v503_v23, %v478_v22 }
 0x105   :  { %513 = vst.msk [vmem:[%s1021_s5 + $0x18] sm:$0xff] %vm509_vm1, %v508_v24 }

// kernel: triplet_forward.11
= control target key start
LH: loop header
LB: loop body
LE: loop exit
PB: predicated region body
PF: predicated region fallthrough
CT: control target
= control target key end

     0   :  { %v4510_v3 = vmov 0   ;;  %vm116_vm0 = vcmask 261120   ;;  %s4511_s23 = smov 122   ;;  %s4512_s26 = smov 116   ;;  %s5540_s0 = inlined_call_operand.vmem [shape: f32[288,24], index: 0, kind: input, shape index: {}]   ;;  %s5541_s2 = inlined_call_operand.vmem [shape: f32[32,288], index: 2, kind: input, shape index: {}]   ;;  %s5542_s3 = inlined_call_operand.vmem [shape: f32[32,1], index: 3, kind: input, shape index: {}]   ;;  %s5543_s4 = inlined_call_operand.vmem [shape: f32[4,32,32], index: 4, kind: input, shape index: {}]   ;;  %s5544_s1 = inlined_call_operand.vmem [shape: f32[288,6], index: 1, kind: input, shape index: {}]   ;;  %s5545_s5 = inlined_call_operand.vmem [shape: f32[32,288], index: 5, kind: input, shape index: {}]   ;;  %s5546_s6 = inlined_call_operand.vmem [shape: f32[32,1], index: 6, kind: input, shape index: {}]   ;;  %s5547_s8 = inlined_call_operand.vmem [shape: f32[18,32,1], index: 8, kind: input, shape index: {}]   ;;  %s5548_s9 = inlined_call_operand.vmem [shape: f32[32,1], index: 9, kind: input, shape index: {}]   ;;  %s5549_s10 = inlined_call_operand.vmem [shape: f32[32,1], index: 10, kind: input, shape index: {}]   ;;  %s5550_s12 = inlined_call_operand.vmem [shape: f32[32,1], index: 12, kind: input, shape index: {}]   ;;  %s5551_s7 = inlined_call_operand.vmem [shape: f32[18,32,32], index: 7, kind: input, shape index: {}]   ;;  %s5552_s11 = inlined_call_operand.vmem [shape: f32[32,32], index: 11, kind: input, shape index: {}]   ;;  %s5553_s13 = inlined_call_operand.vmem [shape: f32[32,6], index: 13, kind: output, shape index: {}]  }
   0x1   :  { %v87_v0 = vld [vmem:[%s5540_s0 + $0xf8] sm:$0xff]  ;;  %v86_v2 = vld [vmem:[%s5540_s0 + $0xf0] sm:$0xff]  ;;  %4509 = vset.pattern.permute.xlu1 %v4510_v3  ;;  %4508 = vset.pattern.permute.xlu0 %v4510_v3  ;;  %v85_v5 = vld [vmem:[%s5540_s0 + $0xe8] sm:$0xff] }
   0x2   :  { %v71_v1 = vld [vmem:[%s5540_s0 + $0x78] sm:$0xff]  ;;  %3858 = vmatprep.subr.mxu0 %v87_v0  ;;  %v70_v4 = vld [vmem:[%s5540_s0 + $0x70] sm:$0xff]  ;;  %v69_v6 = vld [vmem:[%s5540_s0 + $0x68] sm:$0xff] }
   0x3   :  { %3859 = vmatpush3.msra.mxu0 %v71_v1  ;;  %v84_v7 = vld [vmem:[%s5540_s0 + $0xe0] sm:$0xff]  ;;  %v83_v9 = vld [vmem:[%s5540_s0 + $0xd8] sm:$0xff]  ;;  %v82_v11 = vld [vmem:[%s5540_s0 + $0xd0] sm:$0xff] }
   0x4   :  { %3860 = vmatprep.subr.mxu0 %v86_v2  ;;  %v68_v8 = vld [vmem:[%s5540_s0 + $0x60] sm:$0xff]  ;;  %v67_v10 = vld [vmem:[%s5540_s0 + $0x58] sm:$0xff]  ;;  %v66_v12 = vld [vmem:[%s5540_s0 + $0x50] sm:$0xff] }
   0x5   :  { %3861 = vmatpush3.msra.mxu0 %v70_v4  ;;  %v91_v13 = vld [vmem:[%s5540_s0 + $0x118] sm:$0xff]  ;;  %v81_v14 = vld [vmem:[%s5540_s0 + $0xc8] sm:$0xff]  ;;  %v90_v15 = vld [vmem:[%s5540_s0 + $0x110] sm:$0xff] }
   0x6   :  { %3862 = vmatprep.subr.mxu0 %v85_v5  ;;  %4146 = vmatprep.subr.mxu1 %v91_v13  ;;  %v65_v16 = vld [vmem:[%s5540_s0 + $0x48] sm:$0xff]  ;;  %v80_v18 = vld [vmem:[%s5540_s0 + $0xc0] sm:$0xff]  ;;  %v79_v21 = vld [vmem:[%s5540_s0 + $0xb8] sm:$0xff] }
   0x7   :  { %3863 = vmatpush3.msra.mxu0 %v69_v6  ;;  %4147 = vmatpush3.msra.mxu1 %v91_v13  ;;  %v45_v17 = vld [vmem:[%s5541_s2 + $0x8] sm:$0xff]  ;;  %v64_v20 = vld [vmem:[%s5540_s0 + $0x40] sm:$0xff]  ;;  %v63_v23 = vld [vmem:[%s5540_s0 + $0x38] sm:$0xff] }
   0x8   :  { %3864 = vmatprep.subr.mxu0 %v84_v7  ;;  %4148 = vmatprep.subr.mxu1 %v90_v15  ;;  %v89_v19 = vld [vmem:[%s5540_s0 + $0x108] sm:$0xff]  ;;  %v88_v22 = vld [vmem:[%s5540_s0 + $0x100] sm:$0xff]  ;;  %v78_v24 = vld [vmem:[%s5540_s0 + $0xb0] sm:$0xff] }
   0x9   :  { %3865 = vmatpush3.msra.mxu0 %v68_v8  ;;  %193 = vmatprep.mubr.f32.mxu0 %v45_v17  ;;  %v46_v25 = vld [vmem:[%s5541_s2 + $0x10] sm:$0xff]  ;;  %v49_v27 = vld [vmem:[%s5541_s2 + $0x28] sm:$0xff]  ;;  %v52_v29 = vld [vmem:[%s5541_s2 + $0x40] sm:$0xff] }
   0xa   :  { %3866 = vmatprep.subr.mxu0 %v83_v9  ;;  %4149 = vmatpush3.msra.mxu1 %v90_v15  ;;  %v62_v26 = vld [vmem:[%s5540_s0 + $0x30] sm:$0xff]  ;;  %v77_v28 = vld [vmem:[%s5540_s0 + $0xa8] sm:$0xff]  ;;  %v76_v32 = vld [vmem:[%s5540_s0 + $0xa0] sm:$0xff] }
   0xb   :  { %3867 = vmatpush3.msra.mxu0 %v67_v10  ;;  %4150 = vmatprep.subr.mxu1 %v89_v19  ;;  %v61_v30 = vld [vmem:[%s5540_s0 + $0x28] sm:$0xff]  ;;  %v95_v33 = vld [vmem:[%s5542_s3 + $0x18] sm:$0xff]  ;;  %v60_v34 = vld [vmem:[%s5540_s0 + $0x20] sm:$0xff] }
   0xc   :  { %3868 = vmatprep.subr.mxu0 %v82_v11  ;;  %4151 = vmatpush3.msra.mxu1 %v89_v19  ;;  %v93_v31 = vld [vmem:[%s5542_s3 + $0x8] sm:$0xff]  ;;  %v55_v35 = vld [vmem:[%s5541_s2 + $0x58] sm:$0xff]  ;;  %v92_v38 = vld [vmem:[%s5542_s3] sm:$0xff] }
   0xd   :  { %3869 = vmatpush3.msra.mxu0 %v66_v12  ;;  %4152 = vmatprep.subr.mxu1 %v88_v22  ;;  %v75_v36 = vld [vmem:[%s5540_s0 + $0x98] sm:$0xff]  ;;  %v74_v39 = vld [vmem:[%s5540_s0 + $0x90] sm:$0xff]  ;;  %v73_v42 = vld [vmem:[%s5540_s0 + $0x88] sm:$0xff] }
   0xe   :  { %3870 = vmatprep.subr.mxu0 %v81_v14  ;;  %4153 = vmatpush3.msra.mxu1 %v88_v22  ;;  %v59_v37 = vld [vmem:[%s5540_s0 + $0x18] sm:$0xff]  ;;  %v94_v40 = vld [vmem:[%s5542_s3 + $0x10] sm:$0xff]  ;;  %v57_v43 = vld [vmem:[%s5540_s0 + $0x8] sm:$0xff]  ;;  %s4513_s3 = smov 110  }
   0xf   :  { %3871 = vmatpush3.msra.mxu0 %v65_v16  ;;  %4154 = vmatprep.mubr.msk.f32.mxu1 %vm116_vm0, %v46_v25  ;;  %v58_v41 = vld [vmem:[%s5540_s0 + $0x10] sm:$0xff]  ;;  %v72_v44 = vld [vmem:[%s5540_s0 + $0x80] sm:$0xff]  ;;  %v47_v48 = vld [vmem:[%s5541_s2 + $0x18] sm:$0xff] }
  0x10   :  { %3872 = vmatprep.subr.mxu0 %v80_v18  ;;  %4155 = vmatmul.mubr.msk.f32.vlgmr.msra.gmra.mxu1 %vm116_vm0, %v49_v27  ;;  %v56_v45 = vld [vmem:[%s5540_s0] sm:$0xff]  ;;  %v51_v49 = vld [vmem:[%s5541_s2 + $0x38] sm:$0xff]  ;;  %v50_v50 = vld [vmem:[%s5541_s2 + $0x30] sm:$0xff] }
  0x11   :  { %3873 = vmatpush3.msra.mxu0 %v64_v20  ;;  %4157 = vmatprep.mubr.msk.f32.mxu1 %vm116_vm0, %v52_v29  ;;  %v44_v46 = vld [vmem:[%s5541_s2] sm:$0xff]  ;;  %v54_v51 = vld [vmem:[%s5541_s2 + $0x50] sm:$0xff]  ;;  %v53_v52 = vld [vmem:[%s5541_s2 + $0x48] sm:$0xff] }
  0x12   :  { %3874 = vmatprep.subr.mxu0 %v79_v21  ;;  %103 = vperm.xlu1 %4509, %v93_v31   ;;  %v48_v47 = vld [vmem:[%s5541_s2 + $0x20] sm:$0xff]  ;;  %v358_v54 = vld [vmem:[%s5544_s1 + $0x118] sm:$0xff]  ;;  %v357_v55 = vld [vmem:[%s5544_s1 + $0x110] sm:$0xff] }
  0x13   :  { %3875 = vmatpush3.msra.mxu0 %v63_v23  ;;  %113 = vperm.xlu0 %4508, %v95_v33   ;;  %v359_v53 = vld [vmem:[%s5543_s4] sm:$0xff]  ;;  %v356_v56 = vld [vmem:[%s5544_s1 + $0x108] sm:$0xff]  ;;  %v313_v58 = vld [vmem:[%s5545_s5 + $0x10] sm:$0xff] }
  0x14   :  { %3876 = vmatprep.subr.mxu0 %v78_v24  ;;  %4158 = vmatmul.mubr.msk.f32.gmra.mxu1 %vm116_vm0, %v55_v35  ;;  %v355_v57 = vld [vmem:[%s5544_s1 + $0x100] sm:$0xff]  ;;  %v316_v59 = vld [vmem:[%s5545_s5 + $0x28] sm:$0xff]  ;;  %v322_v10 = vld [vmem:[%s5545_s5 + $0x58] sm:$0xff] }
  0x15   :  { %3877 = vmatpush3.msra.mxu0 %v62_v26  ;;  %4168 = vmatprep.mubr.msk.f32.mxu1 %vm116_vm0, %v359_v53  ;;  %v319_v7 = vld [vmem:[%s5545_s5 + $0x40] sm:$0xff]  ;;  %v354_v35 = vld [vmem:[%s5544_s1 + $0xf8] sm:$0xff] }
  0x16   :  { %3878 = vmatprep.subr.mxu0 %v77_v28  ;;  %98 = vperm.xlu1 %4509, %v92_v38   ;;  %v361_v38 = vld [vmem:[%s5543_s4 + $0x10] sm:$0xff]  ;;  %v1000_v53 = vld [vmem:[%s5546_s6] sm:$0xff] }
  0x17   :  { %3879 = vmatpush3.msra.mxu0 %v61_v30  ;;  %108 = vperm.xlu0 %4508, %v94_v40   ;;  %v3622_v30 = vld [vmem:[%s5543_s4 + $0x20] sm:$0xff]  ;;  %v337_v40 = vld [vmem:[%s5544_s1 + $0x70] sm:$0xff] }
  0x18   :  { %3880 = vmatprep.subr.mxu0 %v76_v32 }
  0x19   :  { %3881 = vmatpush3.msra.mxu0 %v60_v34 }
  0x1a   :  { %3882 = vmatprep.subr.mxu0 %v75_v36  ;;  %v360_v36 = vld [vmem:[%s5543_s4 + $0x8] sm:$0xff] }
  0x1b   :  { %3883 = vmatpush3.msra.mxu0 %v59_v37  ;;  %v338_v37 = vld [vmem:[%s5544_s1 + $0x78] sm:$0xff] }
  0x1c   :  { %3884 = vmatprep.subr.mxu0 %v74_v39  ;;  %v353_v39 = vld [vmem:[%s5544_s1 + $0xf0] sm:$0xff] }
  0x1d   :  { %3885 = vmatpush3.msra.mxu0 %v58_v41  ;;  %v352_v41 = vld [vmem:[%s5544_s1 + $0xe8] sm:$0xff] }
  0x1e   :  { %3886 = vmatprep.subr.mxu0 %v73_v42  ;;  %v336_v42 = vld [vmem:[%s5544_s1 + $0x68] sm:$0xff] }
  0x1f   :  { %3887 = vmatpush3.msra.mxu0 %v57_v43  ;;  %v351_v43 = vld [vmem:[%s5544_s1 + $0xe0] sm:$0xff] }
  0x20   :  { %3888 = vmatprep.subr.mxu0 %v72_v44  ;;  %v362_v44 = vld [vmem:[%s5543_s4 + $0x18] sm:$0xff] }
  0x21   :  { %3889 = vmatpush3.msra.mxu0 %v56_v45  ;;  %v335_v45 = vld [vmem:[%s5544_s1 + $0x60] sm:$0xff] }
  0x22   :  { %194 = vmatmul.mubr.f32.vlgmr.msra.gmra.mxu0 %v44_v46  ;;  %4174 = vmatprep.subr.mxu0 %v358_v54  ;;  %v1002_v46 = vld [vmem:[%s5546_s6 + $0x10] sm:$0xff] }
  0x23   :  { %198 = vmatprep.mubr.f32.mxu0 %v48_v47  ;;  %4175 = vmatpush3.msra.mxu0 %v358_v54  ;;  %v350_v47 = vld [vmem:[%s5544_s1 + $0xd8] sm:$0xff]  ;;  %v348_v54 = vld [vmem:[%s5544_s1 + $0xc8] sm:$0xff] }
  0x24   :  { %4176 = vmatprep.subr.mxu0 %v357_v55 }
  0x25   :  { %4177 = vmatpush3.msra.mxu0 %v357_v55  ;;  %v332_v55 = vld [vmem:[%s5544_s1 + $0x48] sm:$0xff] }
  0x26   :  { %199 = vmatmul.mubr.f32.gmra.mxu0 %v47_v48  ;;  %4178 = vmatprep.subr.mxu0 %v356_v56  ;;  %v334_v48 = vld [vmem:[%s5544_s1 + $0x58] sm:$0xff] }
  0x27   :  { %203 = vmatprep.mubr.f32.mxu0 %v51_v49  ;;  %4179 = vmatpush3.msra.mxu0 %v356_v56  ;;  %v312_v49 = vld [vmem:[%s5545_s5 + $0x8] sm:$0xff]  ;;  %v347_v56 = vld [vmem:[%s5544_s1 + $0xc0] sm:$0xff] }
  0x28   :  { %4180 = vmatprep.subr.mxu0 %v355_v57 }
  0x29   :  { %4181 = vmatpush3.msra.mxu0 %v355_v57  ;;  %v1001_v57 = vld [vmem:[%s5546_s6 + $0x8] sm:$0xff] }
  0x2a   :  { %204 = vmatmul.mubr.f32.gmra.mxu0 %v50_v50  ;;  %v349_v50 = vld [vmem:[%s5544_s1 + $0xd0] sm:$0xff] }
  0x2b   :  { %208 = vmatprep.mubr.f32.mxu0 %v54_v51  ;;  %v1003_v51 = vld [vmem:[%s5546_s6 + $0x18] sm:$0xff] }
  0x2e   :  { %209 = vmatmul.mubr.f32.gmra.mxu0 %v53_v52  ;;  %v333_v52 = vld [vmem:[%s5544_s1 + $0x50] sm:$0xff] }
  0x2f   :  { %4182 = vmatprep.mubr.msk.f32.mxu0 %vm116_vm0, %v313_v58  ;;  %v331_v58 = vld [vmem:[%s5544_s1 + $0x40] sm:$0xff] }
  0x32   :  { %4183 = vmatmul.mubr.msk.f32.vlgmr.msra.gmra.mxu0 %vm116_vm0, %v316_v59  ;;  %v1034_v59 = vld [vmem:[%s5547_s8 + $0x10] sm:$0xff] }
  0x33   :  { %4185 = vmatprep.mubr.msk.f32.mxu0 %vm116_vm0, %v319_v7  ;;  %v3661_v7 = vld [vmem:[%s5547_s8 + $0x58] sm:$0xff] }
  0x36   :  { %4186 = vmatmul.mubr.msk.f32.gmra.mxu0 %vm116_vm0, %v322_v10  ;;  %v341_v10 = vld [vmem:[%s5544_s1 + $0x90] sm:$0xff] }
  0x37   :  { %4196 = vmatprep.mubr.msk.f32.mxu0 %vm116_vm0, %v3622_v30  ;;  %v3681_v30 = vld [vmem:[%s5547_s8 + $0x78] sm:$0xff] }
  0x8d   :  { %v104_v60 = vpop.permute.xlu1 %103 }
  0x8e   :  { %v114_v2 = vpop.permute.xlu0 %113 }
  0x91   :  { %v99_v0 = vpop.permute.xlu1 %98 }
  0x92   :  { %v109_v16 = vpop.permute.xlu0 %108 }
  0xd0   :  { %v4156_v62 = vpop.f32.mrf.mxu1 }
  0xd2   :  { %v280_v4 = vpop.f32.mrf.mxu1 }
  0xd4   :  { %v4159_v12 = vpop.f32.mrf.mxu1 }
  0xd6   :  { %v290_v21 = vpop.f32.mrf.mxu1 }
  0xe2   :  { %v3890_v61 = vpop.f32.mrf.mxu0 }
  0xe4   :  { %v3891_v63 = vpop.f32.mrf.mxu0 }
  0xe5   :  { %v3892_v1 = vadd.f32 %v3891_v63, %v3890_v61  ;;  %v330_v61 = vld [vmem:[%s5544_s1 + $0x38] sm:$0xff] }
  0xe6   :  { %v3893_v3 = vpop.f32.mrf.mxu0  ;;  %v1035_v63 = vld [vmem:[%s5547_s8 + $0x18] sm:$0xff] }
  0xe7   :  { %v196_v5 = vadd.f32 %v3892_v1, %v99_v0  ;;  %v329_v0 = vld [vmem:[%s5544_s1 + $0x30] sm:$0xff]  ;;  %v1032_v1 = vld [vmem:[%s5547_s8] sm:$0xff] }
  0xe8   :  { %v3894_v6 = vpop.f32.mrf.mxu0 }
  0xe9   :  { %v3895_v8 = vadd.f32 %v3894_v6, %v3893_v3  ;;  %v281_v9 = vadd.f32 %v280_v4, %v196_v5  ;;  %v328_v3 = vld [vmem:[%s5544_s1 + $0x28] sm:$0xff]  ;;  %v343_v4 = vld [vmem:[%s5544_s1 + $0xa0] sm:$0xff] }
  0xea   :  { %v3896_v11 = vpop.f32.mrf.mxu0  ;;  %v1033_v5 = vld [vmem:[%s5547_s8 + $0x8] sm:$0xff]  ;;  %v327_v6 = vld [vmem:[%s5544_s1 + $0x20] sm:$0xff] }
  0xeb   :  { %v201_v13 = vadd.f32 %v3895_v8, %v104_v60  ;;  %vm299_vm1 = vcmp.gt.f32.partialorder %v281_v9, 0.0  ;;  %v303_v14 = vmul.f32 0.01, %v281_v9  ;;  %v346_v60 = vld [vmem:[%s5544_s1 + $0xb8] sm:$0xff] }
  0xec   :  { %v3897_v15 = vpop.f32.mrf.mxu0  ;;  %v342_v8 = vld [vmem:[%s5544_s1 + $0x98] sm:$0xff] }
  0xed   :  { %v286_v17 = vadd.f32 %v4156_v62, %v201_v13  ;;  %v307_v18 = vsel %vm299_vm1, %v281_v9, %v303_v14  ;;  %v3898_v19 = vadd.f32 %v3897_v15, %v3896_v11  ;;  %v345_v62 = vld [vmem:[%s5544_s1 + $0xb0] sm:$0xff]  ;;  %v326_v9 = vld [vmem:[%s5544_s1 + $0x18] sm:$0xff]  ;;  %v340_v14 = vld [vmem:[%s5544_s1 + $0x88] sm:$0xff] }
  0xee   :  { %v3899_v20 = vpop.f32.mrf.mxu0  ;;  %651 = vrot.lane.b32.xlu1 %v307_v18, %s4511_s23  ;;  %v3653_v11 = vld [vmem:[%s5547_s8 + $0x38] sm:$0xff]  ;;  %v3660_v13 = vld [vmem:[%s5547_s8 + $0x50] sm:$0xff]  ;;  %v324_v15 = vld [vmem:[%s5544_s1 + $0x8] sm:$0xff] }
  0xef   :  { %v304_v22 = vmul.f32 0.01, %v286_v17  ;;  %v206_v23 = vadd.f32 %v3898_v19, %v109_v16  ;;  %vm300_vm2 = vcmp.gt.f32.partialorder %v286_v17, 0.0  ;;  %v339_v16 = vld [vmem:[%s5544_s1 + $0x80] sm:$0xff]  ;;  %v3659_v19 = vld [vmem:[%s5547_s8 + $0x48] sm:$0xff] }
  0xf0   :  { %v3900_v24 = vpop.f32.mrf.mxu0 }
  0xf1   :  { %v3901_v25 = vadd.f32 %v3900_v24, %v3899_v20  ;;  %v291_v26 = vadd.f32 %v290_v21, %v206_v23  ;;  %v308_v27 = vsel %vm300_vm2, %v286_v17, %v304_v22  ;;  %v3652_v17 = vld [vmem:[%s5547_s8 + $0x30] sm:$0xff]  ;;  %v311_v20 = vld [vmem:[%s5545_s5] sm:$0xff]  ;;  %v3651_v22 = vld [vmem:[%s5547_s8 + $0x28] sm:$0xff] }
  0xf2   :  { %653 = vrot.lane.b32.xlu0 %v308_v27, %s4511_s23  ;;  %v315_v21 = vld [vmem:[%s5545_s5 + $0x20] sm:$0xff]  ;;  %v314_v24 = vld [vmem:[%s5545_s5 + $0x18] sm:$0xff] }
  0xf3   :  { %v211_v28 = vadd.f32 %v3901_v25, %v114_v2  ;;  %vm301_vm3 = vcmp.gt.f32.partialorder %v291_v26, 0.0  ;;  %v305_v29 = vmul.f32 0.01, %v291_v26  ;;  %v344_v2 = vld [vmem:[%s5544_s1 + $0xa8] sm:$0xff]  ;;  %v3658_v23 = vld [vmem:[%s5547_s8 + $0x40] sm:$0xff]  ;;  %v318_v25 = vld [vmem:[%s5545_s5 + $0x38] sm:$0xff] }
  0xf5   :  { %v296_v31 = vadd.f32 %v4159_v12, %v211_v28  ;;  %v309_v32 = vsel %vm301_vm3, %v291_v26, %v305_v29  ;;  %v325_v12 = vld [vmem:[%s5544_s1 + $0x10] sm:$0xff]  ;;  %v3650_v26 = vld [vmem:[%s5547_s8 + $0x20] sm:$0xff] }
  0xf6   :  { %655 = vrot.lane.b32.xlu1 %v309_v32, %s4511_s23  ;;  %v317_v28 = vld [vmem:[%s5545_s5 + $0x30] sm:$0xff] }
  0xf7   :  { %v306_v33 = vmul.f32 0.01, %v296_v31  ;;  %vm302_vm4 = vcmp.gt.f32.partialorder %v296_v31, 0.0  ;;  %v321_v29 = vld [vmem:[%s5545_s5 + $0x50] sm:$0xff] }
  0xf9   :  { %v310_v34 = vsel %vm302_vm4, %v296_v31, %v306_v33  ;;  %v3678_v31 = vld [vmem:[%s5547_s8 + $0x60] sm:$0xff] }
  0xfa   :  { %4160 = vmatprep.subr.mxu1 %v310_v34  ;;  %657 = vrot.lane.b32.xlu0 %v310_v34, %s4511_s23  ;;  %v3638_v33 = vld [vmem:[%s5543_s4 + $0x60] sm:$0xff] }
  0xfb   :  { %771 = vrot.lane.b32.xlu1 %v308_v27, %s4512_s26  ;;  %4161 = vmatpush3.msra.mxu1 %v310_v34 }
  0xfc   :  { %4162 = vmatprep.subr.mxu1 %v309_v32 }
  0xfd   :  { %4163 = vmatpush3.msra.mxu1 %v309_v32 }
  0xfe   :  { %891 = vrot.lane.b32.xlu0 %v309_v32, %s4513_s3  ;;  %4164 = vmatprep.subr.mxu1 %v308_v27 }
  0xff   :  { %773 = vrot.lane.b32.xlu1 %v309_v32, %s4512_s26  ;;  %4165 = vmatpush3.msra.mxu1 %v308_v27  ;;  %v320_v32 = vld [vmem:[%s5545_s5 + $0x48] sm:$0xff] }
 0x100   :  { %4166 = vmatprep.subr.mxu1 %v307_v18 }
 0x101   :  { %4167 = vmatpush3.msra.mxu1 %v307_v18 }
 0x102   :  { %775 = vrot.lane.b32.xlu0 %v310_v34, %s4512_s26  ;;  %3918 = vmatprep.subr.mxu1 %v354_v35  ;;  %v3697_v35 = vld [vmem:[%s5547_s8 + $0xb8] sm:$0xff] }
 0x103   :  { %769 = vrot.lane.b32.xlu1 %v307_v18, %s4512_s26  ;;  %4169 = vmatmul.mubr.msk.f32.vlgmr.msra.gmra.mxu1 %vm116_vm0, %v360_v36  ;;  %v3689_v36 = vld [vmem:[%s5547_s8 + $0x98] sm:$0xff] }
 0x104   :  { %3919 = vmatpush3.msra.mxu1 %v338_v37  ;;  %4171 = vmatprep.mubr.msk.f32.mxu1 %vm116_vm0, %v361_v38  ;;  %v3696_v37 = vld [vmem:[%s5547_s8 + $0xb0] sm:$0xff] }
 0x105   :  { %3920 = vmatprep.subr.mxu1 %v353_v39  ;;  %v3688_v38 = vld [vmem:[%s5547_s8 + $0x90] sm:$0xff]  ;;  %v3695_v39 = vld [vmem:[%s5547_s8 + $0xa8] sm:$0xff] }
 0x106   :  { %893 = vrot.lane.b32.xlu0 %v310_v34, %s4513_s3  ;;  %3921 = vmatpush3.msra.mxu1 %v337_v40  ;;  %v3679_v34 = vld [vmem:[%s5547_s8 + $0x68] sm:$0xff] }
 0x107   :  { %887 = vrot.lane.b32.xlu1 %v307_v18, %s4513_s3  ;;  %3922 = vmatprep.subr.mxu1 %v352_v41  ;;  %v323_v18 = vld [vmem:[%s5544_s1] sm:$0xff]  ;;  %v3687_v40 = vld [vmem:[%s5547_s8 + $0x88] sm:$0xff] }
 0x108   :  { %3923 = vmatpush3.msra.mxu1 %v336_v42  ;;  %v3694_v41 = vld [vmem:[%s5547_s8 + $0xa0] sm:$0xff] }
 0x109   :  { %3924 = vmatprep.subr.mxu1 %v351_v43  ;;  %4172 = vmatmul.mubr.msk.f32.gmra.mxu1 %vm116_vm0, %v362_v44  ;;  %v3686_v42 = vld [vmem:[%s5547_s8 + $0x80] sm:$0xff]  ;;  %v3716_v43 = vld [vmem:[%s5547_s8 + $0xd0] sm:$0xff]  ;;  %v3717_v44 = vld [vmem:[%s5547_s8 + $0xd8] sm:$0xff] }
 0x10a   :  { %889 = vrot.lane.b32.xlu0 %v308_v27, %s4513_s3  ;;  %3925 = vmatpush3.msra.mxu1 %v335_v45  ;;  %v3680_v27 = vld [vmem:[%s5547_s8 + $0x70] sm:$0xff]  ;;  %v3714_v45 = vld [vmem:[%s5547_s8 + $0xc0] sm:$0xff] }
 0x10b   :  { %1016 = vperm.xlu1 %4509, %v1002_v46   ;;  %3926 = vmatprep.subr.mxu1 %v350_v47  ;;  %v3715_v46 = vld [vmem:[%s5547_s8 + $0xc8] sm:$0xff]  ;;  %v3733_v47 = vld [vmem:[%s5547_s8 + $0x118] sm:$0xff] }
 0x10c   :  { %3927 = vmatpush3.msra.mxu1 %v334_v48  ;;  %536 = vmatprep.mubr.f32.mxu1 %v312_v49  ;;  %v3725_v48 = vld [vmem:[%s5547_s8 + $0xf8] sm:$0xff]  ;;  %v3732_v49 = vld [vmem:[%s5547_s8 + $0x110] sm:$0xff] }
 0x10d   :  { %3928 = vmatprep.subr.mxu1 %v349_v50  ;;  %v3724_v50 = vld [vmem:[%s5547_s8 + $0xf0] sm:$0xff] }
 0x10e   :  { %1021 = vperm.xlu0 %4508, %v1003_v51   ;;  %3929 = vmatpush3.msra.mxu1 %v333_v52  ;;  %v3731_v51 = vld [vmem:[%s5547_s8 + $0x108] sm:$0xff] }
 0x10f   :  { %1006 = vperm.xlu1 %4509, %v1000_v53   ;;  %3930 = vmatprep.subr.mxu1 %v348_v54  ;;  %v3723_v52 = vld [vmem:[%s5547_s8 + $0xe8] sm:$0xff]  ;;  %v3730_v53 = vld [vmem:[%s5547_s8 + $0x100] sm:$0xff] }
 0x110   :  { %3931 = vmatpush3.msra.mxu1 %v332_v55  ;;  %v3722_v54 = vld [vmem:[%s5547_s8 + $0xe0] sm:$0xff]  ;;  %v3752_v55 = vld [vmem:[%s5547_s8 + $0x130] sm:$0xff] }
 0x111   :  { %3932 = vmatprep.subr.mxu1 %v347_v56  ;;  %v3753_v56 = vld [vmem:[%s5547_s8 + $0x138] sm:$0xff] }
 0x112   :  { %1011 = vperm.xlu0 %4508, %v1001_v57   ;;  %3933 = vmatpush3.msra.mxu1 %v331_v58  ;;  %v3750_v57 = vld [vmem:[%s5547_s8 + $0x120] sm:$0xff]  ;;  %v3751_v58 = vld [vmem:[%s5547_s8 + $0x128] sm:$0xff] }
 0x113   :  { %1185 = vperm.xlu1 %4509, %v1034_v59   ;;  %3934 = vmatprep.subr.mxu1 %v346_v60  ;;  %v3769_v59 = vld [vmem:[%s5547_s8 + $0x178] sm:$0xff] }
 0x114   :  { %3935 = vmatpush3.msra.mxu1 %v330_v61  ;;  %v3761_v60 = vld [vmem:[%s5547_s8 + $0x158] sm:$0xff]  ;;  %v3768_v61 = vld [vmem:[%s5547_s8 + $0x170] sm:$0xff] }
 0x115   :  { %3936 = vmatprep.subr.mxu1 %v345_v62 }
 0x116   :  { %1190 = vperm.xlu0 %4508, %v1035_v63   ;;  %3937 = vmatpush3.msra.mxu1 %v329_v0  ;;  %v3760_v63 = vld [vmem:[%s5547_s8 + $0x150] sm:$0xff] }
 0x117   :  { %1175 = vperm.xlu1 %4509, %v1032_v1   ;;  %3938 = vmatprep.subr.mxu1 %v344_v2  ;;  %v3767_v1 = vld [vmem:[%s5547_s8 + $0x168] sm:$0xff] }
 0x118   :  { %3939 = vmatpush3.msra.mxu1 %v328_v3  ;;  %v3759_v3 = vld [vmem:[%s5547_s8 + $0x148] sm:$0xff] }
 0x119   :  { %3940 = vmatprep.subr.mxu1 %v343_v4 }
 0x11a   :  { %1180 = vperm.xlu0 %4508, %v1033_v5   ;;  %3941 = vmatpush3.msra.mxu1 %v327_v6  ;;  %v3766_v5 = vld [vmem:[%s5547_s8 + $0x160] sm:$0xff] }
 0x11b   :  { %1319 = vperm.xlu1 %4509, %v3661_v7   ;;  %3942 = vmatprep.subr.mxu1 %v342_v8  ;;  %v3758_v7 = vld [vmem:[%s5547_s8 + $0x140] sm:$0xff] }
 0x11c   :  { %3943 = vmatpush3.msra.mxu1 %v326_v9  ;;  %v3788_v9 = vld [vmem:[%s5547_s8 + $0x190] sm:$0xff] }
 0x11d   :  { %3944 = vmatprep.subr.mxu1 %v341_v10  ;;  %v3623_v10 = vld [vmem:[%s5543_s4 + $0x28] sm:$0xff] }
 0x11e   :  { %1073 = vperm.xlu0 %4508, %v3653_v11   ;;  %3945 = vmatpush3.msra.mxu1 %v325_v12  ;;  %v3789_v11 = vld [vmem:[%s5547_s8 + $0x198] sm:$0xff] }
 0x11f   :  { %1314 = vperm.xlu1 %4509, %v3660_v13   ;;  %3946 = vmatprep.subr.mxu1 %v340_v14  ;;  %v3786_v13 = vld [vmem:[%s5547_s8 + $0x180] sm:$0xff] }
 0x120   :  { %3947 = vmatpush3.msra.mxu1 %v324_v15  ;;  %v3624_v15 = vld [vmem:[%s5543_s4 + $0x30] sm:$0xff] }
 0x121   :  { %3948 = vmatprep.subr.mxu1 %v339_v16  ;;  %v3625_v16 = vld [vmem:[%s5543_s4 + $0x38] sm:$0xff] }
 0x122   :  { %1068 = vperm.xlu0 %4508, %v3652_v17   ;;  %3949 = vmatpush3.msra.mxu1 %v323_v18  ;;  %v3787_v17 = vld [vmem:[%s5547_s8 + $0x188] sm:$0xff] }
 0x123   :  { %1309 = vperm.xlu1 %4509, %v3659_v19   ;;  %537 = vmatmul.mubr.f32.vlgmr.msra.gmra.mxu1 %v311_v20  ;;  %v3805_v19 = vld [vmem:[%s5547_s8 + $0x1d8] sm:$0xff] }
 0x124   :  { %541 = vmatprep.mubr.f32.mxu1 %v315_v21  ;;  %v3630_v21 = vld [vmem:[%s5543_s4 + $0x40] sm:$0xff] }
 0x126   :  { %1063 = vperm.xlu0 %4508, %v3651_v22  }
 0x127   :  { %1304 = vperm.xlu1 %4509, %v3658_v23   ;;  %542 = vmatmul.mubr.f32.gmra.mxu1 %v314_v24  ;;  %v3631_v23 = vld [vmem:[%s5543_s4 + $0x48] sm:$0xff]  ;;  %v3797_v24 = vld [vmem:[%s5547_s8 + $0x1b8] sm:$0xff] }
 0x128   :  { %546 = vmatprep.mubr.f32.mxu1 %v318_v25  ;;  %v3804_v25 = vld [vmem:[%s5547_s8 + $0x1d0] sm:$0xff] }
 0x12a   :  { %1058 = vperm.xlu0 %4508, %v3650_v26   ;;  %v3632_v26 = vld [vmem:[%s5543_s4 + $0x50] sm:$0xff] }
 0x12b   :  { %1582 = vperm.xlu1 %4509, %v3680_v27   ;;  %547 = vmatmul.mubr.f32.gmra.mxu1 %v317_v28  ;;  %v3633_v27 = vld [vmem:[%s5543_s4 + $0x58] sm:$0xff] }
 0x12c   :  { %551 = vmatprep.mubr.f32.mxu1 %v321_v29  ;;  %v3639_v29 = vld [vmem:[%s5543_s4 + $0x68] sm:$0xff] }
 0x12e   :  { %1587 = vperm.xlu0 %4508, %v3681_v30   ;;  %v3796_v30 = vld [vmem:[%s5547_s8 + $0x1b0] sm:$0xff] }
 0x12f   :  { %1572 = vperm.xlu1 %4509, %v3678_v31   ;;  %552 = vmatmul.mubr.f32.gmra.mxu1 %v320_v32  ;;  %v3803_v31 = vld [vmem:[%s5547_s8 + $0x1c8] sm:$0xff]  ;;  %v3640_v32 = vld [vmem:[%s5543_s4 + $0x70] sm:$0xff] }
 0x130   :  { %4224 = vmatprep.mubr.msk.f32.mxu1 %vm116_vm0, %v3638_v33  ;;  %v3641_v33 = vld [vmem:[%s5543_s4 + $0x78] sm:$0xff] }
 0x132   :  { %1577 = vperm.xlu0 %4508, %v3679_v34   ;;  %v3795_v34 = vld [vmem:[%s5547_s8 + $0x1a8] sm:$0xff] }
 0x133   :  { %1716 = vperm.xlu1 %4509, %v3697_v35   ;;  %v3802_v35 = vld [vmem:[%s5547_s8 + $0x1c0] sm:$0xff] }
 0x136   :  { %1470 = vperm.xlu0 %4508, %v3689_v36   ;;  %v3794_v36 = vld [vmem:[%s5547_s8 + $0x1a0] sm:$0xff] }
 0x137   :  { %1711 = vperm.xlu1 %4509, %v3696_v37   ;;  %v3824_v37 = vld [vmem:[%s5547_s8 + $0x1f0] sm:$0xff] }
 0x13a   :  { %1465 = vperm.xlu0 %4508, %v3688_v38   ;;  %v3825_v38 = vld [vmem:[%s5547_s8 + $0x1f8] sm:$0xff] }
 0x13b   :  { %1706 = vperm.xlu1 %4509, %v3695_v39   ;;  %v3822_v39 = vld [vmem:[%s5547_s8 + $0x1e0] sm:$0xff] }
 0x13e   :  { %1460 = vperm.xlu0 %4508, %v3687_v40   ;;  %v3823_v40 = vld [vmem:[%s5547_s8 + $0x1e8] sm:$0xff] }
 0x13f   :  { %1701 = vperm.xlu1 %4509, %v3694_v41   ;;  %v3841_v41 = vld [vmem:[%s5547_s8 + $0x238] sm:$0xff] }
 0x142   :  { %1455 = vperm.xlu0 %4508, %v3686_v42   ;;  %v3833_v42 = vld [vmem:[%s5547_s8 + $0x218] sm:$0xff] }
 0x143   :  { %1979 = vperm.xlu1 %4509, %v3716_v43   ;;  %v3840_v43 = vld [vmem:[%s5547_s8 + $0x230] sm:$0xff] }
 0x146   :  { %1984 = vperm.xlu0 %4508, %v3717_v44   ;;  %v3832_v44 = vld [vmem:[%s5547_s8 + $0x210] sm:$0xff] }
 0x147   :  { %1969 = vperm.xlu1 %4509, %v3714_v45   ;;  %v3839_v45 = vld [vmem:[%s5547_s8 + $0x228] sm:$0xff] }
 0x14a   :  { %1974 = vperm.xlu0 %4508, %v3715_v46   ;;  %v3831_v46 = vld [vmem:[%s5547_s8 + $0x208] sm:$0xff] }
 0x14b   :  { %2113 = vperm.xlu1 %4509, %v3733_v47   ;;  %v3830_v47 = vld [vmem:[%s5547_s8 + $0x200] sm:$0xff] }
 0x14e   :  { %1867 = vperm.xlu0 %4508, %v3725_v48   ;;  %v3411_v48 = vld [vmem:[%s5548_s9 + $0x18] sm:$0xff] }
 0x14f   :  { %2108 = vperm.xlu1 %4509, %v3732_v49   ;;  %v3410_v49 = vld [vmem:[%s5548_s9 + $0x10] sm:$0xff] }
 0x152   :  { %1862 = vperm.xlu0 %4508, %v3724_v50   ;;  %v3838_v50 = vld [vmem:[%s5547_s8 + $0x220] sm:$0xff] }
 0x153   :  { %2103 = vperm.xlu1 %4509, %v3731_v51   ;;  %v3409_v51 = vld [vmem:[%s5548_s9 + $0x8] sm:$0xff] }
 0x156   :  { %1857 = vperm.xlu0 %4508, %v3723_v52   ;;  %v3439_v52 = vld [vmem:[%s5549_s10 + $0x18] sm:$0xff] }
 0x157   :  { %2098 = vperm.xlu1 %4509, %v3730_v53   ;;  %v3408_v53 = vld [vmem:[%s5548_s9] sm:$0xff] }
 0x15a   :  { %1852 = vperm.xlu0 %4508, %v3722_v54   ;;  %v3438_v54 = vld [vmem:[%s5549_s10 + $0x10] sm:$0xff] }
 0x15b   :  { %2376 = vperm.xlu1 %4509, %v3752_v55   ;;  %v3436_v55 = vld [vmem:[%s5549_s10] sm:$0xff] }
 0x15e   :  { %2381 = vperm.xlu0 %4508, %v3753_v56   ;;  %v3437_v56 = vld [vmem:[%s5549_s10 + $0x8] sm:$0xff] }
 0x15f   :  { %2366 = vperm.xlu1 %4509, %v3750_v57   ;;  %v3481_v57 = vld [vmem:[%s5550_s12 + $0x8] sm:$0xff] }
 0x160   :  { %v652_v62 = vpop.permute.xlu1 %651 }
 0x162   :  { %2371 = vperm.xlu0 %4508, %v3751_v58   ;;  %v3480_v58 = vld [vmem:[%s5550_s12] sm:$0xff] }
 0x163   :  { %2510 = vperm.xlu1 %4509, %v3769_v59   ;;  %v3483_v59 = vld [vmem:[%s5550_s12 + $0x18] sm:$0xff] }
 0x164   :  { %v654_v0 = vpop.permute.xlu0 %653 }
 0x166   :  { %2264 = vperm.xlu0 %4508, %v3761_v60   ;;  %v3482_v60 = vld [vmem:[%s5550_s12 + $0x10] sm:$0xff] }
 0x167   :  { %2505 = vperm.xlu1 %4509, %v3768_v61   ;;  %v3646_v61 = vld [vmem:[%s5551_s7 + $0x20] sm:$0xff] }
 0x168   :  { %v656_v2 = vpop.permute.xlu1 %655 }
 0x16a   :  { %2259 = vperm.xlu0 %4508, %v3760_v63  }
 0x16b   :  { %2500 = vperm.xlu1 %4509, %v3767_v1  }
 0x16c   :  { %v658_v4 = vpop.permute.xlu0 %657 }
 0x16d   :  { %4188 = vmatprep.subr.mxu0 %v658_v4  ;;  %v772_v6 = vpop.permute.xlu1 %771 }
 0x16e   :  { %2254 = vperm.xlu0 %4508, %v3759_v3   ;;  %4189 = vmatpush3.msra.mxu0 %v658_v4 }
 0x16f   :  { %2495 = vperm.xlu1 %4509, %v3766_v5   ;;  %4190 = vmatprep.subr.mxu0 %v656_v2 }
 0x170   :  { %v892_v8 = vpop.permute.xlu0 %891  ;;  %4191 = vmatpush3.msra.mxu0 %v656_v2 }
 0x171   :  { %4192 = vmatprep.subr.mxu0 %v654_v0  ;;  %v774_v14 = vpop.permute.xlu1 %773 }
 0x172   :  { %2249 = vperm.xlu0 %4508, %v3758_v7   ;;  %4193 = vmatpush3.msra.mxu0 %v654_v0 }
 0x173   :  { %2773 = vperm.xlu1 %4509, %v3788_v9   ;;  %4194 = vmatprep.subr.mxu0 %v652_v62 }
 0x174   :  { %v776_v12 = vpop.permute.xlu0 %775  ;;  %4195 = vmatpush3.msra.mxu0 %v652_v62  ;;  %v1028_v62 = vld [vmem:[%s5551_s7] sm:$0xff] }
 0x175   :  { %4197 = vmatmul.mubr.msk.f32.vlgmr.msra.gmra.mxu0 %vm116_vm0, %v3623_v10  ;;  %4202 = vmatprep.subr.mxu0 %v776_v12  ;;  %v770_v20 = vpop.permute.xlu1 %769 }
 0x176   :  { %2778 = vperm.xlu0 %4508, %v3789_v11   ;;  %4203 = vmatpush3.msra.mxu0 %v776_v12 }
 0x177   :  { %2763 = vperm.xlu1 %4509, %v3786_v13   ;;  %4204 = vmatprep.subr.mxu0 %v774_v14 }
 0x178   :  { %v894_v18 = vpop.permute.xlu0 %893  ;;  %4199 = vmatprep.mubr.msk.f32.mxu0 %vm116_vm0, %v3624_v15  ;;  %4205 = vmatpush3.msra.mxu0 %v774_v14 }
 0x179   :  { %4200 = vmatmul.mubr.msk.f32.gmra.mxu0 %vm116_vm0, %v3625_v16  ;;  %4206 = vmatprep.subr.mxu0 %v772_v6  ;;  %v888_v28 = vpop.permute.xlu1 %887 }
 0x17a   :  { %4216 = vmatprep.subr.mxu1 %v894_v18  ;;  %2768 = vperm.xlu0 %4508, %v3787_v17  }
 0x17b   :  { %2907 = vperm.xlu1 %4509, %v3805_v19   ;;  %4207 = vmatpush3.msra.mxu0 %v772_v6  ;;  %v4184_v6 = vpop.f32.mrf.mxu0 }
 0x17c   :  { %4217 = vmatpush3.msra.mxu1 %v894_v18  ;;  %4208 = vmatprep.subr.mxu0 %v770_v20  ;;  %v890_v22 = vpop.permute.xlu0 %889 }
 0x17d   :  { %4218 = vmatprep.subr.mxu1 %v892_v8  ;;  %4209 = vmatpush3.msra.mxu0 %v770_v20  ;;  %v623_v9 = vpop.f32.mrf.mxu0 }
 0x17e   :  { %4210 = vmatprep.mubr.msk.f32.mxu0 %vm116_vm0, %v3630_v21  ;;  %4219 = vmatpush3.msra.mxu1 %v892_v8 }
 0x17f   :  { %4211 = vmatmul.mubr.msk.f32.vlgmr.msra.gmra.mxu0 %vm116_vm0, %v3631_v23  ;;  %4220 = vmatprep.subr.mxu1 %v890_v22  ;;  %v4187_v10 = vpop.f32.mrf.mxu0 }
 0x180   :  { %2661 = vperm.xlu0 %4508, %v3797_v24   ;;  %2902 = vperm.xlu1 %4509, %v3804_v25  }
 0x181   :  { %4221 = vmatpush3.msra.mxu1 %v890_v22  ;;  %4213 = vmatprep.mubr.msk.f32.mxu0 %vm116_vm0, %v3632_v26  ;;  %v633_v12 = vpop.f32.mrf.mxu0 }
 0x182   :  { %4222 = vmatprep.subr.mxu1 %v888_v28 }
 0x183   :  { %4223 = vmatpush3.msra.mxu1 %v888_v28  ;;  %4214 = vmatmul.mubr.msk.f32.gmra.mxu0 %vm116_vm0, %v3633_v27 }
 0x184   :  { %4225 = vmatmul.mubr.msk.f32.vlgmr.msra.gmra.mxu1 %vm116_vm0, %v3639_v29  ;;  %2656 = vperm.xlu0 %4508, %v3796_v30  }
 0x185   :  { %2897 = vperm.xlu1 %4509, %v3803_v31   ;;  %4227 = vmatprep.mubr.msk.f32.mxu1 %vm116_vm0, %v3640_v32 }
 0x186   :  { %4238 = vmatprep.mubr.msk.f32.mxu0 %vm116_vm0, %v3646_v61  ;;  %v3648_v61 = vld [vmem:[%s5551_s7 + $0x30] sm:$0xff] }
 0x188   :  { %4228 = vmatmul.mubr.msk.f32.gmra.mxu1 %vm116_vm0, %v3641_v33  ;;  %2651 = vperm.xlu0 %4508, %v3795_v34  }
 0x189   :  { %2892 = vperm.xlu1 %4509, %v3802_v35   ;;  %4252 = vmatprep.mubr.msk.f32.mxu1 %vm116_vm0, %v1028_v62  ;;  %v1030_v62 = vld [vmem:[%s5551_s7 + $0x10] sm:$0xff] }
 0x18c   :  { %2646 = vperm.xlu0 %4508, %v3794_v36  }
 0x18d   :  { %3170 = vperm.xlu1 %4509, %v3824_v37  }
 0x190   :  { %3175 = vperm.xlu0 %4508, %v3825_v38  }
 0x191   :  { %3160 = vperm.xlu1 %4509, %v3822_v39  }
 0x194   :  { %3165 = vperm.xlu0 %4508, %v3823_v40  }
 0x195   :  { %3304 = vperm.xlu1 %4509, %v3841_v41   ;;  %v1022_v41 = vpop.permute.xlu0 %1021 }
 0x198   :  { %3058 = vperm.xlu0 %4508, %v3833_v42  }
 0x199   :  { %3299 = vperm.xlu1 %4509, %v3840_v43  }
 0x19c   :  { %3053 = vperm.xlu0 %4508, %v3832_v44  }
 0x19d   :  { %3294 = vperm.xlu1 %4509, %v3839_v45  }
 0x1a0   :  { %3048 = vperm.xlu0 %4508, %v3831_v46  }
 0x1a1   :  { %3043 = vperm.xlu1 %4509, %v3830_v47   ;;  %v1017_v47 = vpop.permute.xlu1 %1016 }
 0x1a4   :  { %3429 = vperm.xlu0 %4508, %v3411_v48  }
 0x1a5   :  { %3424 = vperm.xlu1 %4509, %v3410_v49  }
 0x1a8   :  { %3289 = vperm.xlu0 %4508, %v3838_v50  }
 0x1a9   :  { %3419 = vperm.xlu1 %4509, %v3409_v51  }
 0x1ac   :  { %3457 = vperm.xlu0 %4508, %v3439_v52  }
 0x1ad   :  { %3414 = vperm.xlu1 %4509, %v3408_v53  }
 0x1b0   :  { %3452 = vperm.xlu0 %4508, %v3438_v54  }
 0x1b1   :  { %3442 = vperm.xlu1 %4509, %v3436_v55   ;;  %v1012_v55 = vpop.permute.xlu0 %1011 }
 0x1b4   :  { %3447 = vperm.xlu0 %4508, %v3437_v56  }
 0x1b5   :  { %3491 = vperm.xlu1 %4509, %v3481_v57   ;;  %v1007_v57 = vpop.permute.xlu1 %1006 }
 0x1b8   :  { %3486 = vperm.xlu0 %4508, %v3480_v58  }
 0x1b9   :  { %3501 = vperm.xlu1 %4509, %v3483_v59   ;;  %v3647_v59 = vld [vmem:[%s5551_s7 + $0x28] sm:$0xff] }
 0x1bc   :  { %3496 = vperm.xlu0 %4508, %v3482_v60   ;;  %v1029_v60 = vld [vmem:[%s5551_s7 + $0x8] sm:$0xff] }
 0x1c3   :  { %v4170_v63 = vpop.f32.mrf.mxu1 }
 0x1c5   :  { %v441_v0 = vpop.f32.mrf.mxu1 }
 0x1c9   :  { %v4173_v1 = vpop.f32.mrf.mxu1 }
 0x1cb   :  { %v451_v2 = vpop.f32.mrf.mxu1 }
 0x1e3   :  { %v3950_v3 = vpop.f32.mrf.mxu1 }
 0x1e5   :  { %v3951_v4 = vpop.f32.mrf.mxu1 }
 0x1e6   :  { %v3952_v22 = vadd.f32 %v3951_v4, %v3950_v3  ;;  %v1186_v3 = vpop.permute.xlu1 %1185 }
 0x1e7   :  { %v3953_v5 = vpop.f32.mrf.mxu1 }
 0x1e8   :  { %v539_v28 = vadd.f32 %v3952_v22, %v441_v0  ;;  %v1031_v0 = vld [vmem:[%s5551_s7 + $0x18] sm:$0xff]  ;;  %v3655_v22 = vld [vmem:[%s5551_s7 + $0x48] sm:$0xff] }
 0x1e9   :  { %v3954_v7 = vpop.f32.mrf.mxu1 }
 0x1ea   :  { %v3955_v20 = vadd.f32 %v3954_v7, %v3953_v5  ;;  %v624_v37 = vadd.f32 %v623_v9, %v539_v28 }
 0x1eb   :  { %v3956_v8 = vpop.f32.mrf.mxu1 }
 0x1ec   :  { %v544_v25 = vadd.f32 %v4170_v63, %v3955_v20  ;;  %v3649_v63 = vld [vmem:[%s5551_s7 + $0x38] sm:$0xff] }
 0x1ed   :  { %v3957_v11 = vpop.f32.mrf.mxu1 }
 0x1ee   :  { %v3958_v21 = vadd.f32 %v3957_v11, %v3956_v8  ;;  %v629_v32 = vadd.f32 %v4184_v6, %v544_v25  ;;  %v3682_v25 = vld [vmem:[%s5551_s7 + $0x80] sm:$0xff] }
 0x1ef   :  { %v3959_v13 = vpop.f32.mrf.mxu1 }
 0x1f0   :  { %v549_v26 = vadd.f32 %v3958_v21, %v451_v2  ;;  %v1191_v2 = vpop.permute.xlu0 %1190 }
 0x1f1   :  { %v3960_v16 = vpop.f32.mrf.mxu1 }
 0x1f2   :  { %v3961_v18 = vadd.f32 %v3960_v16, %v3959_v13  ;;  %v634_v33 = vadd.f32 %v633_v12, %v549_v26  ;;  %v3674_v26 = vld [vmem:[%s5551_s7 + $0x60] sm:$0xff] }
 0x1f4   :  { %v554_v23 = vadd.f32 %v4173_v1, %v3961_v18  ;;  %v3654_v1 = vld [vmem:[%s5551_s7 + $0x40] sm:$0xff]  ;;  %v1181_v6 = vpop.permute.xlu0 %1180 }
 0x1f6   :  { %v639_v29 = vadd.f32 %v4187_v10, %v554_v23  ;;  %v1176_v10 = vpop.permute.xlu1 %1175  ;;  %v3656_v23 = vld [vmem:[%s5551_s7 + $0x50] sm:$0xff] }
 0x1fa   :  { %v1320_v28 = vpop.permute.xlu1 %1319 }
 0x235   :  { %v4198_v14 = vpop.f32.mrf.mxu0 }
 0x236   :  { %v761_v38 = vadd.f32 %v4198_v14, %v629_v32  ;;  %v1315_v32 = vpop.permute.xlu1 %1314 }
 0x237   :  { %v741_v15 = vpop.f32.mrf.mxu0 }
 0x238   :  { %v760_v43 = vadd.f32 %v741_v15, %v624_v37 }
 0x239   :  { %v4201_v17 = vpop.f32.mrf.mxu0 }
 0x23a   :  { %v763_v34 = vadd.f32 %v4201_v17, %v639_v29 }
 0x23b   :  { %v751_v19 = vpop.f32.mrf.mxu0 }
 0x23c   :  { %v762_v39 = vadd.f32 %v751_v19, %v634_v33 }
 0x23f   :  { %v4212_v24 = vpop.f32.mrf.mxu0 }
 0x240   :  { %v879_v44 = vadd.f32 %v4212_v24, %v761_v38  ;;  %v3657_v24 = vld [vmem:[%s5551_s7 + $0x58] sm:$0xff] }
 0x241   :  { %v859_v27 = vpop.f32.mrf.mxu0 }
 0x242   :  { %v878_v49 = vadd.f32 %v859_v27, %v760_v43 }
 0x243   :  { %v4215_v30 = vpop.f32.mrf.mxu0 }
 0x244   :  { %v4226_v31 = vpop.f32.mrf.mxu1  ;;  %v881_v40 = vadd.f32 %v4215_v30, %v763_v34  ;;  %v1074_v30 = vpop.permute.xlu0 %1073 }
 0x245   :  { %v869_v35 = vpop.f32.mrf.mxu0  ;;  %v997_v50 = vadd.f32 %v4226_v31, %v879_v44 }
 0x246   :  { %v977_v36 = vpop.f32.mrf.mxu1  ;;  %v880_v45 = vadd.f32 %v869_v35, %v762_v39 }
 0x247   :  { %v996_v53 = vadd.f32 %v977_v36, %v878_v49  ;;  %v1025_v56 = vadd.f32 %v1012_v55, %v997_v50  ;;  %v1310_v36 = vpop.permute.xlu1 %1309  ;;  %v3683_v55 = vld [vmem:[%s5551_s7 + $0x88] sm:$0xff] }
 0x248   :  { %v4229_v42 = vpop.f32.mrf.mxu1  ;;  %v1069_v33 = vpop.permute.xlu0 %1068 }
 0x249   :  { %v999_v46 = vadd.f32 %v4229_v42, %v881_v40  ;;  %v1024_v58 = vadd.f32 %v1007_v57, %v996_v53  ;;  %v3684_v57 = vld [vmem:[%s5551_s7 + $0x90] sm:$0xff] }
 0x24a   :  { %v987_v48 = vpop.f32.mrf.mxu1 }
 0x24b   :  { %v1027_v51 = vadd.f32 %v1022_v41, %v999_v46  ;;  %v998_v52 = vadd.f32 %v987_v48, %v880_v45 }
 0x24c   :  { %v1064_v38 = vpop.permute.xlu0 %1063 }
 0x24d   :  { %v1026_v54 = vadd.f32 %v1017_v47, %v998_v52  ;;  %4230 = vmatprep.subr.mxu0 %v1027_v51  ;;  %4244 = vmatprep.subr.mxu1 %v1027_v51  ;;  %v1305_v47 = vpop.permute.xlu1 %1304 }
 0x24e   :  { %4231 = vmatpush3.msra.mxu0 %v1027_v51  ;;  %4245 = vmatpush3.msra.mxu1 %v1027_v51 }
 0x24f   :  { %4232 = vmatprep.subr.mxu0 %v1026_v54  ;;  %4246 = vmatprep.subr.mxu1 %v1026_v54 }
 0x250   :  { %4233 = vmatpush3.msra.mxu0 %v1026_v54  ;;  %4247 = vmatpush3.msra.mxu1 %v1026_v54  ;;  %v1059_v51 = vpop.permute.xlu0 %1058 }
 0x251   :  { %4234 = vmatprep.subr.mxu0 %v1025_v56  ;;  %4248 = vmatprep.subr.mxu1 %v1025_v56 }
 0x252   :  { %4235 = vmatpush3.msra.mxu0 %v1025_v56  ;;  %4249 = vmatpush3.msra.mxu1 %v1025_v56  ;;  %v3675_v56 = vld [vmem:[%s5551_s7 + $0x68] sm:$0xff] }
 0x253   :  { %4236 = vmatprep.subr.mxu0 %v1024_v58  ;;  %4250 = vmatprep.subr.mxu1 %v1024_v58 }
 0x254   :  { %4237 = vmatpush3.msra.mxu0 %v1024_v58  ;;  %4251 = vmatpush3.msra.mxu1 %v1024_v58  ;;  %v3676_v58 = vld [vmem:[%s5551_s7 + $0x70] sm:$0xff] }
 0x255   :  { %4239 = vmatmul.mubr.msk.f32.vlgmr.msra.gmra.mxu0 %vm116_vm0, %v3647_v59  ;;  %4253 = vmatmul.mubr.msk.f32.vlgmr.msra.gmra.mxu1 %vm116_vm0, %v1029_v60  ;;  %v3685_v59 = vld [vmem:[%s5551_s7 + $0x98] sm:$0xff] }
 0x256   :  { %4241 = vmatprep.mubr.msk.f32.mxu0 %vm116_vm0, %v3648_v61  ;;  %4255 = vmatprep.mubr.msk.f32.mxu1 %vm116_vm0, %v1030_v62  ;;  %v3677_v60 = vld [vmem:[%s5551_s7 + $0x78] sm:$0xff]  ;;  %v3690_v61 = vld [vmem:[%s5551_s7 + $0xa0] sm:$0xff]  ;;  %v1588_v62 = vpop.permute.xlu0 %1587 }
 0x259   :  { %4242 = vmatmul.mubr.msk.f32.gmra.mxu0 %vm116_vm0, %v3649_v63  ;;  %4256 = vmatmul.mubr.msk.f32.gmra.mxu1 %vm116_vm0, %v1031_v0  ;;  %v1583_v63 = vpop.permute.xlu1 %1582 }
 0x25a   :  { %4266 = vmatprep.mubr.msk.f32.mxu0 %vm116_vm0, %v3654_v1  ;;  %4280 = vmatprep.mubr.msk.f32.mxu1 %vm116_vm0, %v3682_v25 }
 0x315   :  { %v4254_v4 = vpop.f32.mrf.mxu1  ;;  %v4240_v27 = vpop.f32.mrf.mxu0 }
 0x316   :  { %v1277_v8 = vadd.f32 %v4254_v4, %v1181_v6  ;;  %v1160_v48 = vadd.f32 %v4240_v27, %v1064_v38  ;;  %v1573_v6 = vpop.permute.xlu1 %1572 }
 0x317   :  { %v1271_v5 = vpop.f32.mrf.mxu1  ;;  %v1154_v29 = vpop.f32.mrf.mxu0 }
 0x318   :  { %v1272_v12 = vadd.f32 %v1271_v5, %v1176_v10  ;;  %v1295_v15 = vmul.f32 0.01, %v1277_v8  ;;  %vm1291_vm7 = vcmp.gt.f32.partialorder %v1277_v8, 0.0  ;;  %v1155_v52 = vadd.f32 %v1154_v29, %v1059_v51  ;;  %v3719_v51 = vld [vmem:[%s5551_s7 + $0xe8] sm:$0xff] }
 0x319   :  { %v4257_v7 = vpop.f32.mrf.mxu1  ;;  %v4243_v31 = vpop.f32.mrf.mxu0 }
 0x31a   :  { %v1287_v9 = vadd.f32 %v4257_v7, %v1191_v2  ;;  %v1294_v18 = vmul.f32 0.01, %v1272_v12  ;;  %vm1290_vm8 = vcmp.gt.f32.partialorder %v1272_v12, 0.0  ;;  %v1299_v20 = vsel %vm1291_vm7, %v1277_v8, %v1295_v15  ;;  %v1578_v2 = vpop.permute.xlu0 %1577 }
 0x31b   :  { %v1281_v11 = vpop.f32.mrf.mxu1  ;;  %v1164_v34 = vpop.f32.mrf.mxu0  ;;  %v1170_v40 = vadd.f32 %v4243_v31, %v1074_v30 }
 0x31c   :  { %v1297_v13 = vmul.f32 0.01, %v1287_v9  ;;  %v1282_v14 = vadd.f32 %v1281_v11, %v1186_v3  ;;  %vm1293_vm5 = vcmp.gt.f32.partialorder %v1287_v9, 0.0  ;;  %v1298_v21 = vsel %vm1290_vm8, %v1272_v12, %v1294_v18  ;;  %v3691_v18 = vld [vmem:[%s5551_s7 + $0xa8] sm:$0xff] }
 0x31d   :  { %v1165_v43 = vadd.f32 %v1164_v34, %v1069_v33 }
 0x31e   :  { %v1296_v16 = vmul.f32 0.01, %v1282_v14  ;;  %v1301_v17 = vsel %vm1293_vm5, %v1287_v9, %v1297_v13  ;;  %vm1292_vm6 = vcmp.gt.f32.partialorder %v1282_v14, 0.0 }
 0x31f   :  { %4258 = vmatprep.subr.mxu0 %v1301_v17 }
 0x320   :  { %4259 = vmatpush3.msra.mxu0 %v1301_v17  ;;  %v1300_v19 = vsel %vm1292_vm6, %v1282_v14, %v1296_v16 }
 0x321   :  { %4260 = vmatprep.subr.mxu0 %v1300_v19 }
 0x322   :  { %4261 = vmatpush3.msra.mxu0 %v1300_v19  ;;  %v3692_v19 = vld [vmem:[%s5551_s7 + $0xb0] sm:$0xff] }
 0x323   :  { %4262 = vmatprep.subr.mxu0 %v1299_v20 }
 0x324   :  { %4263 = vmatpush3.msra.mxu0 %v1299_v20  ;;  %v3693_v20 = vld [vmem:[%s5551_s7 + $0xb8] sm:$0xff] }
 0x325   :  { %4264 = vmatprep.subr.mxu0 %v1298_v21 }
 0x326   :  { %4265 = vmatpush3.msra.mxu0 %v1298_v21  ;;  %v3718_v21 = vld [vmem:[%s5551_s7 + $0xe0] sm:$0xff] }
 0x327   :  { %4267 = vmatmul.mubr.msk.f32.vlgmr.msra.gmra.mxu0 %vm116_vm0, %v3655_v22  ;;  %v3710_v22 = vld [vmem:[%s5551_s7 + $0xc0] sm:$0xff] }
 0x328   :  { %4269 = vmatprep.mubr.msk.f32.mxu0 %vm116_vm0, %v3656_v23 }
 0x32b   :  { %4270 = vmatmul.mubr.msk.f32.gmra.mxu0 %vm116_vm0, %v3657_v24  ;;  %v1717_v24 = vpop.permute.xlu1 %1716 }
 0x32c   :  { %4294 = vmatprep.mubr.msk.f32.mxu0 %vm116_vm0, %v3674_v26  ;;  %v1471_v26 = vpop.permute.xlu0 %1470 }
 0x330   :  { %v1466_v29 = vpop.permute.xlu0 %1465 }
 0x334   :  { %v1461_v34 = vpop.permute.xlu0 %1460 }
 0x3e7   :  { %v4268_v35 = vpop.f32.mrf.mxu0 }
 0x3e8   :  { %v1406_v44 = vadd.f32 %v4268_v35, %v1310_v36 }
 0x3e9   :  { %v1400_v37 = vpop.f32.mrf.mxu0 }
 0x3ea   :  { %v1401_v49 = vadd.f32 %v1400_v37, %v1305_v47  ;;  %v1420_v53 = vadd.f32 %v1406_v44, %v1160_v48  ;;  %v1456_v47 = vpop.permute.xlu0 %1455 }
 0x3eb   :  { %v4271_v39 = vpop.f32.mrf.mxu0 }
 0x3ec   :  { %v1416_v41 = vadd.f32 %v4271_v39, %v1320_v28  ;;  %v1419_v54 = vadd.f32 %v1401_v49, %v1155_v52  ;;  %v1712_v28 = vpop.permute.xlu1 %1711  ;;  %v3711_v52 = vld [vmem:[%s5551_s7 + $0xc8] sm:$0xff] }
 0x3ed   :  { %v1410_v42 = vpop.f32.mrf.mxu0 }
 0x3ee   :  { %v1422_v45 = vadd.f32 %v1416_v41, %v1170_v40  ;;  %v1411_v46 = vadd.f32 %v1410_v42, %v1315_v32 }
 0x3f0   :  { %v1421_v50 = vadd.f32 %v1411_v46, %v1165_v43  ;;  %4272 = vmatprep.subr.mxu1 %v1422_v45  ;;  %4286 = vmatprep.subr.mxu0 %v1422_v45  ;;  %v1707_v32 = vpop.permute.xlu1 %1706 }
 0x3f1   :  { %4273 = vmatpush3.msra.mxu1 %v1422_v45  ;;  %4287 = vmatpush3.msra.mxu0 %v1422_v45 }
 0x3f2   :  { %4274 = vmatprep.subr.mxu1 %v1421_v50  ;;  %4288 = vmatprep.subr.mxu0 %v1421_v50 }
 0x3f3   :  { %4275 = vmatpush3.msra.mxu1 %v1421_v50  ;;  %4289 = vmatpush3.msra.mxu0 %v1421_v50 }
 0x3f4   :  { %4276 = vmatprep.subr.mxu1 %v1420_v53  ;;  %4290 = vmatprep.subr.mxu0 %v1420_v53  ;;  %v1702_v43 = vpop.permute.xlu1 %1701 }
 0x3f5   :  { %4277 = vmatpush3.msra.mxu1 %v1420_v53  ;;  %4291 = vmatpush3.msra.mxu0 %v1420_v53  ;;  %v3720_v53 = vld [vmem:[%s5551_s7 + $0xf0] sm:$0xff] }
 0x3f6   :  { %4278 = vmatprep.subr.mxu1 %v1419_v54  ;;  %4292 = vmatprep.subr.mxu0 %v1419_v54 }
 0x3f7   :  { %4279 = vmatpush3.msra.mxu1 %v1419_v54  ;;  %4293 = vmatpush3.msra.mxu0 %v1419_v54  ;;  %v3712_v54 = vld [vmem:[%s5551_s7 + $0xd0] sm:$0xff] }
 0x3f8   :  { %4281 = vmatmul.mubr.msk.f32.vlgmr.msra.gmra.mxu1 %vm116_vm0, %v3683_v55  ;;  %4295 = vmatmul.mubr.msk.f32.vlgmr.msra.gmra.mxu0 %vm116_vm0, %v3675_v56  ;;  %v3721_v55 = vld [vmem:[%s5551_s7 + $0xf8] sm:$0xff] }
 0x3f9   :  { %4283 = vmatprep.mubr.msk.f32.mxu1 %vm116_vm0, %v3684_v57  ;;  %4297 = vmatprep.mubr.msk.f32.mxu0 %vm116_vm0, %v3676_v58  ;;  %v3713_v56 = vld [vmem:[%s5551_s7 + $0xd8] sm:$0xff]  ;;  %v3726_v57 = vld [vmem:[%s5551_s7 + $0x100] sm:$0xff]  ;;  %v1985_v58 = vpop.permute.xlu0 %1984 }
 0x3fc   :  { %4284 = vmatmul.mubr.msk.f32.gmra.mxu1 %vm116_vm0, %v3685_v59  ;;  %4298 = vmatmul.mubr.msk.f32.gmra.mxu0 %vm116_vm0, %v3677_v60  ;;  %v1980_v59 = vpop.permute.xlu1 %1979 }
 0x3fd   :  { %4308 = vmatprep.mubr.msk.f32.mxu1 %vm116_vm0, %v3690_v61  ;;  %4322 = vmatprep.mubr.msk.f32.mxu0 %vm116_vm0, %v3718_v21 }
 0x4b8   :  { %v4296_v0 = vpop.f32.mrf.mxu0  ;;  %v4282_v23 = vpop.f32.mrf.mxu1 }
 0x4b9   :  { %v1674_v4 = vadd.f32 %v4296_v0, %v1578_v2  ;;  %v1557_v44 = vadd.f32 %v4282_v23, %v1461_v34  ;;  %v1970_v2 = vpop.permute.xlu1 %1969 }
 0x4ba   :  { %v1668_v1 = vpop.f32.mrf.mxu0  ;;  %v1551_v25 = vpop.f32.mrf.mxu1 }
 0x4bb   :  { %v1669_v8 = vadd.f32 %v1668_v1, %v1573_v6  ;;  %v1692_v11 = vmul.f32 0.01, %v1674_v4  ;;  %vm1688_vm11 = vcmp.gt.f32.partialorder %v1674_v4, 0.0  ;;  %v1552_v48 = vadd.f32 %v1551_v25, %v1456_v47  ;;  %v3755_v47 = vld [vmem:[%s5551_s7 + $0x148] sm:$0xff] }
 0x4bc   :  { %v4299_v3 = vpop.f32.mrf.mxu0  ;;  %v4285_v27 = vpop.f32.mrf.mxu1 }
 0x4bd   :  { %v1684_v5 = vadd.f32 %v4299_v3, %v1588_v62  ;;  %v1691_v14 = vmul.f32 0.01, %v1669_v8  ;;  %vm1687_vm12 = vcmp.gt.f32.partialorder %v1669_v8, 0.0  ;;  %v1696_v16 = vsel %vm1688_vm11, %v1674_v4, %v1692_v11  ;;  %v1975_v62 = vpop.permute.xlu0 %1974 }
 0x4be   :  { %v1678_v7 = vpop.f32.mrf.mxu0  ;;  %v1561_v30 = vpop.f32.mrf.mxu1  ;;  %v1567_v36 = vadd.f32 %v4285_v27, %v1471_v26 }
 0x4bf   :  { %v1694_v9 = vmul.f32 0.01, %v1684_v5  ;;  %v1679_v10 = vadd.f32 %v1678_v7, %v1583_v63  ;;  %vm1690_vm9 = vcmp.gt.f32.partialorder %v1684_v5, 0.0  ;;  %v1695_v17 = vsel %vm1687_vm12, %v1669_v8, %v1691_v14  ;;  %v3727_v14 = vld [vmem:[%s5551_s7 + $0x108] sm:$0xff] }
 0x4c0   :  { %v1562_v39 = vadd.f32 %v1561_v30, %v1466_v29 }
 0x4c1   :  { %v1693_v12 = vmul.f32 0.01, %v1679_v10  ;;  %v1698_v13 = vsel %vm1690_vm9, %v1684_v5, %v1694_v9  ;;  %vm1689_vm10 = vcmp.gt.f32.partialorder %v1679_v10, 0.0 }
 0x4c2   :  { %4300 = vmatprep.subr.mxu1 %v1698_v13 }
 0x4c3   :  { %4301 = vmatpush3.msra.mxu1 %v1698_v13  ;;  %v1697_v15 = vsel %vm1689_vm10, %v1679_v10, %v1693_v12 }
 0x4c4   :  { %4302 = vmatprep.subr.mxu1 %v1697_v15 }
 0x4c5   :  { %4303 = vmatpush3.msra.mxu1 %v1697_v15  ;;  %v3728_v15 = vld [vmem:[%s5551_s7 + $0x110] sm:$0xff] }
 0x4c6   :  { %4304 = vmatprep.subr.mxu1 %v1696_v16 }
 0x4c7   :  { %4305 = vmatpush3.msra.mxu1 %v1696_v16  ;;  %v3729_v16 = vld [vmem:[%s5551_s7 + $0x118] sm:$0xff] }
 0x4c8   :  { %4306 = vmatprep.subr.mxu1 %v1695_v17 }
 0x4c9   :  { %4307 = vmatpush3.msra.mxu1 %v1695_v17  ;;  %v3754_v17 = vld [vmem:[%s5551_s7 + $0x140] sm:$0xff] }
 0x4ca   :  { %4309 = vmatmul.mubr.msk.f32.vlgmr.msra.gmra.mxu1 %vm116_vm0, %v3691_v18  ;;  %v3746_v18 = vld [vmem:[%s5551_s7 + $0x120] sm:$0xff] }
 0x4cb   :  { %4311 = vmatprep.mubr.msk.f32.mxu1 %vm116_vm0, %v3692_v19 }
 0x4ce   :  { %4312 = vmatmul.mubr.msk.f32.gmra.mxu1 %vm116_vm0, %v3693_v20  ;;  %v2114_v20 = vpop.permute.xlu1 %2113 }
 0x4cf   :  { %4336 = vmatprep.mubr.msk.f32.mxu1 %vm116_vm0, %v3710_v22  ;;  %v1868_v22 = vpop.permute.xlu0 %1867 }
 0x4d3   :  { %v1863_v25 = vpop.permute.xlu0 %1862 }
 0x4d7   :  { %v1858_v30 = vpop.permute.xlu0 %1857 }
 0x58a   :  { %v4310_v31 = vpop.f32.mrf.mxu1 }
 0x58b   :  { %v1803_v40 = vadd.f32 %v4310_v31, %v1707_v32 }
 0x58c   :  { %v1797_v33 = vpop.f32.mrf.mxu1 }
 0x58d   :  { %v1798_v45 = vadd.f32 %v1797_v33, %v1702_v43  ;;  %v1817_v49 = vadd.f32 %v1803_v40, %v1557_v44  ;;  %v1853_v43 = vpop.permute.xlu0 %1852 }
 0x58e   :  { %v4313_v35 = vpop.f32.mrf.mxu1 }
 0x58f   :  { %v1813_v37 = vadd.f32 %v4313_v35, %v1717_v24  ;;  %v1816_v50 = vadd.f32 %v1798_v45, %v1552_v48  ;;  %v2109_v24 = vpop.permute.xlu1 %2108  ;;  %v3747_v48 = vld [vmem:[%s5551_s7 + $0x128] sm:$0xff] }
 0x590   :  { %v1807_v38 = vpop.f32.mrf.mxu1 }
 0x591   :  { %v1819_v41 = vadd.f32 %v1813_v37, %v1567_v36  ;;  %v1808_v42 = vadd.f32 %v1807_v38, %v1712_v28 }
 0x593   :  { %v1818_v46 = vadd.f32 %v1808_v42, %v1562_v39  ;;  %4314 = vmatprep.subr.mxu0 %v1819_v41  ;;  %4328 = vmatprep.subr.mxu1 %v1819_v41  ;;  %v2104_v28 = vpop.permute.xlu1 %2103 }
 0x594   :  { %4315 = vmatpush3.msra.mxu0 %v1819_v41  ;;  %4329 = vmatpush3.msra.mxu1 %v1819_v41 }
 0x595   :  { %4316 = vmatprep.subr.mxu0 %v1818_v46  ;;  %4330 = vmatprep.subr.mxu1 %v1818_v46 }
 0x596   :  { %4317 = vmatpush3.msra.mxu0 %v1818_v46  ;;  %4331 = vmatpush3.msra.mxu1 %v1818_v46 }
 0x597   :  { %4318 = vmatprep.subr.mxu0 %v1817_v49  ;;  %4332 = vmatprep.subr.mxu1 %v1817_v49  ;;  %v2099_v39 = vpop.permute.xlu1 %2098 }
 0x598   :  { %4319 = vmatpush3.msra.mxu0 %v1817_v49  ;;  %4333 = vmatpush3.msra.mxu1 %v1817_v49  ;;  %v3756_v49 = vld [vmem:[%s5551_s7 + $0x150] sm:$0xff] }
 0x599   :  { %4320 = vmatprep.subr.mxu0 %v1816_v50  ;;  %4334 = vmatprep.subr.mxu1 %v1816_v50 }
 0x59a   :  { %4321 = vmatpush3.msra.mxu0 %v1816_v50  ;;  %4335 = vmatpush3.msra.mxu1 %v1816_v50  ;;  %v3748_v50 = vld [vmem:[%s5551_s7 + $0x130] sm:$0xff] }
 0x59b   :  { %4323 = vmatmul.mubr.msk.f32.vlgmr.msra.gmra.mxu0 %vm116_vm0, %v3719_v51  ;;  %4337 = vmatmul.mubr.msk.f32.vlgmr.msra.gmra.mxu1 %vm116_vm0, %v3711_v52  ;;  %v3757_v51 = vld [vmem:[%s5551_s7 + $0x158] sm:$0xff] }
 0x59c   :  { %4325 = vmatprep.mubr.msk.f32.mxu0 %vm116_vm0, %v3720_v53  ;;  %4339 = vmatprep.mubr.msk.f32.mxu1 %vm116_vm0, %v3712_v54  ;;  %v3749_v52 = vld [vmem:[%s5551_s7 + $0x138] sm:$0xff]  ;;  %v3762_v53 = vld [vmem:[%s5551_s7 + $0x160] sm:$0xff]  ;;  %v2382_v54 = vpop.permute.xlu0 %2381 }
 0x59f   :  { %4326 = vmatmul.mubr.msk.f32.gmra.mxu0 %vm116_vm0, %v3721_v55  ;;  %4340 = vmatmul.mubr.msk.f32.gmra.mxu1 %vm116_vm0, %v3713_v56  ;;  %v2377_v55 = vpop.permute.xlu1 %2376 }
 0x5a0   :  { %4350 = vmatprep.mubr.msk.f32.mxu0 %vm116_vm0, %v3726_v57  ;;  %4364 = vmatprep.mubr.msk.f32.mxu1 %vm116_vm0, %v3754_v17 }
 0x65b   :  { %v4338_v60 = vpop.f32.mrf.mxu1  ;;  %v4324_v19 = vpop.f32.mrf.mxu0 }
 0x65c   :  { %v2071_v0 = vadd.f32 %v4338_v60, %v1975_v62  ;;  %v1954_v40 = vadd.f32 %v4324_v19, %v1858_v30  ;;  %v2367_v62 = vpop.permute.xlu1 %2366 }
 0x65d   :  { %v2065_v61 = vpop.f32.mrf.mxu1  ;;  %v1948_v21 = vpop.f32.mrf.mxu0 }
 0x65e   :  { %v2066_v4 = vadd.f32 %v2065_v61, %v1970_v2  ;;  %v2089_v7 = vmul.f32 0.01, %v2071_v0  ;;  %vm2085_vm15 = vcmp.gt.f32.partialorder %v2071_v0, 0.0  ;;  %v1949_v44 = vadd.f32 %v1948_v21, %v1853_v43  ;;  %v3791_v43 = vld [vmem:[%s5551_s7 + $0x1a8] sm:$0xff] }
 0x65f   :  { %v4341_v63 = vpop.f32.mrf.mxu1  ;;  %v4327_v23 = vpop.f32.mrf.mxu0 }
 0x660   :  { %v2081_v1 = vadd.f32 %v4341_v63, %v1985_v58  ;;  %v2088_v10 = vmul.f32 0.01, %v2066_v4  ;;  %vm2084_vm1 = vcmp.gt.f32.partialorder %v2066_v4, 0.0  ;;  %v2093_v12 = vsel %vm2085_vm15, %v2071_v0, %v2089_v7  ;;  %v2372_v58 = vpop.permute.xlu0 %2371 }
 0x661   :  { %v2075_v3 = vpop.f32.mrf.mxu1  ;;  %v1958_v26 = vpop.f32.mrf.mxu0  ;;  %v1964_v32 = vadd.f32 %v4327_v23, %v1868_v22 }
 0x662   :  { %v2091_v5 = vmul.f32 0.01, %v2081_v1  ;;  %v2076_v6 = vadd.f32 %v2075_v3, %v1980_v59  ;;  %vm2087_vm13 = vcmp.gt.f32.partialorder %v2081_v1, 0.0  ;;  %v2092_v13 = vsel %vm2084_vm1, %v2066_v4, %v2088_v10  ;;  %v3763_v10 = vld [vmem:[%s5551_s7 + $0x168] sm:$0xff] }
 0x663   :  { %v1959_v35 = vadd.f32 %v1958_v26, %v1863_v25 }
 0x664   :  { %v2090_v8 = vmul.f32 0.01, %v2076_v6  ;;  %v2095_v9 = vsel %vm2087_vm13, %v2081_v1, %v2091_v5  ;;  %vm2086_vm14 = vcmp.gt.f32.partialorder %v2076_v6, 0.0 }
 0x665   :  { %4342 = vmatprep.subr.mxu0 %v2095_v9 }
 0x666   :  { %4343 = vmatpush3.msra.mxu0 %v2095_v9  ;;  %v2094_v11 = vsel %vm2086_vm14, %v2076_v6, %v2090_v8 }
 0x667   :  { %4344 = vmatprep.subr.mxu0 %v2094_v11 }
 0x668   :  { %4345 = vmatpush3.msra.mxu0 %v2094_v11  ;;  %v3764_v11 = vld [vmem:[%s5551_s7 + $0x170] sm:$0xff] }
 0x669   :  { %4346 = vmatprep.subr.mxu0 %v2093_v12 }
 0x66a   :  { %4347 = vmatpush3.msra.mxu0 %v2093_v12  ;;  %v3765_v12 = vld [vmem:[%s5551_s7 + $0x178] sm:$0xff] }
 0x66b   :  { %4348 = vmatprep.subr.mxu0 %v2092_v13 }
 0x66c   :  { %4349 = vmatpush3.msra.mxu0 %v2092_v13  ;;  %v3790_v13 = vld [vmem:[%s5551_s7 + $0x1a0] sm:$0xff] }
 0x66d   :  { %4351 = vmatmul.mubr.msk.f32.vlgmr.msra.gmra.mxu0 %vm116_vm0, %v3727_v14  ;;  %v3782_v14 = vld [vmem:[%s5551_s7 + $0x180] sm:$0xff] }
 0x66e   :  { %4353 = vmatprep.mubr.msk.f32.mxu0 %vm116_vm0, %v3728_v15 }
 0x671   :  { %4354 = vmatmul.mubr.msk.f32.gmra.mxu0 %vm116_vm0, %v3729_v16  ;;  %v2511_v16 = vpop.permute.xlu1 %2510 }
 0x672   :  { %4378 = vmatprep.mubr.msk.f32.mxu0 %vm116_vm0, %v3746_v18  ;;  %v2265_v18 = vpop.permute.xlu0 %2264 }
 0x676   :  { %v2260_v21 = vpop.permute.xlu0 %2259 }
 0x67a   :  { %v2255_v26 = vpop.permute.xlu0 %2254 }
 0x72d   :  { %v4352_v27 = vpop.f32.mrf.mxu0 }
 0x72e   :  { %v2200_v36 = vadd.f32 %v4352_v27, %v2104_v28 }
 0x72f   :  { %v2194_v29 = vpop.f32.mrf.mxu0 }
 0x730   :  { %v2195_v41 = vadd.f32 %v2194_v29, %v2099_v39  ;;  %v2214_v45 = vadd.f32 %v2200_v36, %v1954_v40  ;;  %v2250_v39 = vpop.permute.xlu0 %2249 }
 0x731   :  { %v4355_v31 = vpop.f32.mrf.mxu0 }
 0x732   :  { %v2210_v33 = vadd.f32 %v4355_v31, %v2114_v20  ;;  %v2213_v46 = vadd.f32 %v2195_v41, %v1949_v44  ;;  %v2506_v20 = vpop.permute.xlu1 %2505  ;;  %v3783_v44 = vld [vmem:[%s5551_s7 + $0x188] sm:$0xff] }
 0x733   :  { %v2204_v34 = vpop.f32.mrf.mxu0 }
 0x734   :  { %v2216_v37 = vadd.f32 %v2210_v33, %v1964_v32  ;;  %v2205_v38 = vadd.f32 %v2204_v34, %v2109_v24 }
 0x736   :  { %v2215_v42 = vadd.f32 %v2205_v38, %v1959_v35  ;;  %4356 = vmatprep.subr.mxu1 %v2216_v37  ;;  %4370 = vmatprep.subr.mxu0 %v2216_v37  ;;  %v2501_v24 = vpop.permute.xlu1 %2500 }
 0x737   :  { %4357 = vmatpush3.msra.mxu1 %v2216_v37  ;;  %4371 = vmatpush3.msra.mxu0 %v2216_v37 }
 0x738   :  { %4358 = vmatprep.subr.mxu1 %v2215_v42  ;;  %4372 = vmatprep.subr.mxu0 %v2215_v42 }
 0x739   :  { %4359 = vmatpush3.msra.mxu1 %v2215_v42  ;;  %4373 = vmatpush3.msra.mxu0 %v2215_v42 }
 0x73a   :  { %4360 = vmatprep.subr.mxu1 %v2214_v45  ;;  %4374 = vmatprep.subr.mxu0 %v2214_v45  ;;  %v2496_v35 = vpop.permute.xlu1 %2495 }
 0x73b   :  { %4361 = vmatpush3.msra.mxu1 %v2214_v45  ;;  %4375 = vmatpush3.msra.mxu0 %v2214_v45  ;;  %v3792_v45 = vld [vmem:[%s5551_s7 + $0x1b0] sm:$0xff] }
 0x73c   :  { %4362 = vmatprep.subr.mxu1 %v2213_v46  ;;  %4376 = vmatprep.subr.mxu0 %v2213_v46 }
 0x73d   :  { %4363 = vmatpush3.msra.mxu1 %v2213_v46  ;;  %4377 = vmatpush3.msra.mxu0 %v2213_v46  ;;  %v3784_v46 = vld [vmem:[%s5551_s7 + $0x190] sm:$0xff] }
 0x73e   :  { %4365 = vmatmul.mubr.msk.f32.vlgmr.msra.gmra.mxu1 %vm116_vm0, %v3755_v47  ;;  %4379 = vmatmul.mubr.msk.f32.vlgmr.msra.gmra.mxu0 %vm116_vm0, %v3747_v48  ;;  %v3793_v47 = vld [vmem:[%s5551_s7 + $0x1b8] sm:$0xff] }
 0x73f   :  { %4367 = vmatprep.mubr.msk.f32.mxu1 %vm116_vm0, %v3756_v49  ;;  %4381 = vmatprep.mubr.msk.f32.mxu0 %vm116_vm0, %v3748_v50  ;;  %v3785_v48 = vld [vmem:[%s5551_s7 + $0x198] sm:$0xff]  ;;  %v3798_v49 = vld [vmem:[%s5551_s7 + $0x1c0] sm:$0xff]  ;;  %v2779_v50 = vpop.permute.xlu0 %2778 }
 0x742   :  { %4368 = vmatmul.mubr.msk.f32.gmra.mxu1 %vm116_vm0, %v3757_v51  ;;  %4382 = vmatmul.mubr.msk.f32.gmra.mxu0 %vm116_vm0, %v3749_v52  ;;  %v2774_v51 = vpop.permute.xlu1 %2773 }
 0x743   :  { %4392 = vmatprep.mubr.msk.f32.mxu1 %vm116_vm0, %v3762_v53  ;;  %4406 = vmatprep.mubr.msk.f32.mxu0 %vm116_vm0, %v3790_v13 }
 0x7fe   :  { %v4380_v56 = vpop.f32.mrf.mxu0  ;;  %v4366_v15 = vpop.f32.mrf.mxu1 }
 0x7ff   :  { %v2468_v60 = vadd.f32 %v4380_v56, %v2372_v58  ;;  %v2351_v36 = vadd.f32 %v4366_v15, %v2255_v26  ;;  %v2764_v58 = vpop.permute.xlu1 %2763 }
 0x800   :  { %v2462_v57 = vpop.f32.mrf.mxu0  ;;  %v2345_v17 = vpop.f32.mrf.mxu1 }
 0x801   :  { %v2463_v0 = vadd.f32 %v2462_v57, %v2367_v62  ;;  %v2486_v3 = vmul.f32 0.01, %v2468_v60  ;;  %vm2482_vm4 = vcmp.gt.f32.partialorder %v2468_v60, 0.0  ;;  %v2346_v40 = vadd.f32 %v2345_v17, %v2250_v39  ;;  %v3827_v39 = vld [vmem:[%s5551_s7 + $0x208] sm:$0xff] }
 0x802   :  { %v4383_v59 = vpop.f32.mrf.mxu0  ;;  %v4369_v19 = vpop.f32.mrf.mxu1 }
 0x803   :  { %v2478_v61 = vadd.f32 %v4383_v59, %v2382_v54  ;;  %v2485_v6 = vmul.f32 0.01, %v2463_v0  ;;  %vm2481_vm5 = vcmp.gt.f32.partialorder %v2463_v0, 0.0  ;;  %v2490_v8 = vsel %vm2482_vm4, %v2468_v60, %v2486_v3  ;;  %v2769_v54 = vpop.permute.xlu0 %2768 }
 0x804   :  { %v2472_v63 = vpop.f32.mrf.mxu0  ;;  %v2355_v22 = vpop.f32.mrf.mxu1  ;;  %v2361_v28 = vadd.f32 %v4369_v19, %v2265_v18 }
 0x805   :  { %v2488_v1 = vmul.f32 0.01, %v2478_v61  ;;  %v2473_v2 = vadd.f32 %v2472_v63, %v2377_v55  ;;  %vm2484_vm2 = vcmp.gt.f32.partialorder %v2478_v61, 0.0  ;;  %v2489_v9 = vsel %vm2481_vm5, %v2463_v0, %v2485_v6  ;;  %v3799_v6 = vld [vmem:[%s5551_s7 + $0x1c8] sm:$0xff] }
 0x806   :  { %v2356_v31 = vadd.f32 %v2355_v22, %v2260_v21 }
 0x807   :  { %v2487_v4 = vmul.f32 0.01, %v2473_v2  ;;  %v2492_v5 = vsel %vm2484_vm2, %v2478_v61, %v2488_v1  ;;  %vm2483_vm3 = vcmp.gt.f32.partialorder %v2473_v2, 0.0 }
 0x808   :  { %4384 = vmatprep.subr.mxu1 %v2492_v5 }
 0x809   :  { %4385 = vmatpush3.msra.mxu1 %v2492_v5  ;;  %v2491_v7 = vsel %vm2483_vm3, %v2473_v2, %v2487_v4  ;;  %vm3601_vm3 = vcmask 48128  }
 0x80a   :  { %4386 = vmatprep.subr.mxu1 %v2491_v7 }
 0x80b   :  { %4387 = vmatpush3.msra.mxu1 %v2491_v7  ;;  %v3800_v7 = vld [vmem:[%s5551_s7 + $0x1d0] sm:$0xff] }
 0x80c   :  { %4388 = vmatprep.subr.mxu1 %v2490_v8 }
 0x80d   :  { %4389 = vmatpush3.msra.mxu1 %v2490_v8  ;;  %v3801_v8 = vld [vmem:[%s5551_s7 + $0x1d8] sm:$0xff] }
 0x80e   :  { %4390 = vmatprep.subr.mxu1 %v2489_v9 }
 0x80f   :  { %4391 = vmatpush3.msra.mxu1 %v2489_v9  ;;  %v3826_v9 = vld [vmem:[%s5551_s7 + $0x200] sm:$0xff] }
 0x810   :  { %4393 = vmatmul.mubr.msk.f32.vlgmr.msra.gmra.mxu1 %vm116_vm0, %v3763_v10  ;;  %v3818_v10 = vld [vmem:[%s5551_s7 + $0x1e0] sm:$0xff] }
 0x811   :  { %4395 = vmatprep.mubr.msk.f32.mxu1 %vm116_vm0, %v3764_v11 }
 0x814   :  { %4396 = vmatmul.mubr.msk.f32.gmra.mxu1 %vm116_vm0, %v3765_v12  ;;  %v2908_v12 = vpop.permute.xlu1 %2907 }
 0x815   :  { %4420 = vmatprep.mubr.msk.f32.mxu1 %vm116_vm0, %v3782_v14  ;;  %v2662_v14 = vpop.permute.xlu0 %2661 }
 0x819   :  { %v2657_v17 = vpop.permute.xlu0 %2656 }
 0x81d   :  { %v2652_v22 = vpop.permute.xlu0 %2651 }
 0x8d0   :  { %v4394_v23 = vpop.f32.mrf.mxu1 }
 0x8d1   :  { %v2597_v32 = vadd.f32 %v4394_v23, %v2501_v24 }
 0x8d2   :  { %v2591_v25 = vpop.f32.mrf.mxu1 }
 0x8d3   :  { %v2592_v37 = vadd.f32 %v2591_v25, %v2496_v35  ;;  %v2611_v41 = vadd.f32 %v2597_v32, %v2351_v36  ;;  %v2647_v35 = vpop.permute.xlu0 %2646 }
 0x8d4   :  { %v4397_v27 = vpop.f32.mrf.mxu1 }
 0x8d5   :  { %v2607_v29 = vadd.f32 %v4397_v27, %v2511_v16  ;;  %v2610_v42 = vadd.f32 %v2592_v37, %v2346_v40  ;;  %v2903_v16 = vpop.permute.xlu1 %2902  ;;  %v3819_v40 = vld [vmem:[%s5551_s7 + $0x1e8] sm:$0xff] }
 0x8d6   :  { %v2601_v30 = vpop.f32.mrf.mxu1 }
 0x8d7   :  { %v2613_v33 = vadd.f32 %v2607_v29, %v2361_v28  ;;  %v2602_v34 = vadd.f32 %v2601_v30, %v2506_v20 }
 0x8d9   :  { %v2612_v38 = vadd.f32 %v2602_v34, %v2356_v31  ;;  %4398 = vmatprep.subr.mxu0 %v2613_v33  ;;  %4412 = vmatprep.subr.mxu1 %v2613_v33  ;;  %v2898_v20 = vpop.permute.xlu1 %2897 }
 0x8da   :  { %4399 = vmatpush3.msra.mxu0 %v2613_v33  ;;  %4413 = vmatpush3.msra.mxu1 %v2613_v33 }
 0x8db   :  { %4400 = vmatprep.subr.mxu0 %v2612_v38  ;;  %4414 = vmatprep.subr.mxu1 %v2612_v38 }
 0x8dc   :  { %4401 = vmatpush3.msra.mxu0 %v2612_v38  ;;  %4415 = vmatpush3.msra.mxu1 %v2612_v38 }
 0x8dd   :  { %4402 = vmatprep.subr.mxu0 %v2611_v41  ;;  %4416 = vmatprep.subr.mxu1 %v2611_v41  ;;  %v2893_v31 = vpop.permute.xlu1 %2892 }
 0x8de   :  { %4403 = vmatpush3.msra.mxu0 %v2611_v41  ;;  %4417 = vmatpush3.msra.mxu1 %v2611_v41  ;;  %v3828_v41 = vld [vmem:[%s5551_s7 + $0x210] sm:$0xff] }
 0x8df   :  { %4404 = vmatprep.subr.mxu0 %v2610_v42  ;;  %4418 = vmatprep.subr.mxu1 %v2610_v42 }
 0x8e0   :  { %4405 = vmatpush3.msra.mxu0 %v2610_v42  ;;  %4419 = vmatpush3.msra.mxu1 %v2610_v42  ;;  %v3820_v42 = vld [vmem:[%s5551_s7 + $0x1f0] sm:$0xff] }
 0x8e1   :  { %4407 = vmatmul.mubr.msk.f32.vlgmr.msra.gmra.mxu0 %vm116_vm0, %v3791_v43  ;;  %4421 = vmatmul.mubr.msk.f32.vlgmr.msra.gmra.mxu1 %vm116_vm0, %v3783_v44  ;;  %v3829_v43 = vld [vmem:[%s5551_s7 + $0x218] sm:$0xff] }
 0x8e2   :  { %4409 = vmatprep.mubr.msk.f32.mxu0 %vm116_vm0, %v3792_v45  ;;  %4423 = vmatprep.mubr.msk.f32.mxu1 %vm116_vm0, %v3784_v46  ;;  %v3821_v44 = vld [vmem:[%s5551_s7 + $0x1f8] sm:$0xff]  ;;  %v3834_v45 = vld [vmem:[%s5551_s7 + $0x220] sm:$0xff]  ;;  %v3176_v46 = vpop.permute.xlu0 %3175 }
 0x8e5   :  { %4410 = vmatmul.mubr.msk.f32.gmra.mxu0 %vm116_vm0, %v3793_v47  ;;  %4424 = vmatmul.mubr.msk.f32.gmra.mxu1 %vm116_vm0, %v3785_v48  ;;  %v3171_v47 = vpop.permute.xlu1 %3170 }
 0x8e6   :  { %4434 = vmatprep.mubr.msk.f32.mxu0 %vm116_vm0, %v3798_v49  ;;  %4448 = vmatprep.mubr.msk.f32.mxu1 %vm116_vm0, %v3826_v9 }
 0x9a1   :  { %v4422_v52 = vpop.f32.mrf.mxu1  ;;  %v4408_v11 = vpop.f32.mrf.mxu0 }
 0x9a2   :  { %v2865_v56 = vadd.f32 %v4422_v52, %v2769_v54  ;;  %v2748_v32 = vadd.f32 %v4408_v11, %v2652_v22  ;;  %v3161_v54 = vpop.permute.xlu1 %3160 }
 0x9a3   :  { %v2859_v53 = vpop.f32.mrf.mxu1  ;;  %v2742_v13 = vpop.f32.mrf.mxu0 }
 0x9a4   :  { %v2860_v60 = vadd.f32 %v2859_v53, %v2764_v58  ;;  %v2883_v63 = vmul.f32 0.01, %v2865_v56  ;;  %vm2879_vm8 = vcmp.gt.f32.partialorder %v2865_v56, 0.0  ;;  %v2743_v36 = vadd.f32 %v2742_v13, %v2647_v35 }
 0x9a5   :  { %v4425_v55 = vpop.f32.mrf.mxu1  ;;  %v4411_v15 = vpop.f32.mrf.mxu0 }
 0x9a6   :  { %v2875_v57 = vadd.f32 %v4425_v55, %v2779_v50  ;;  %v2882_v2 = vmul.f32 0.01, %v2860_v60  ;;  %vm2878_vm9 = vcmp.gt.f32.partialorder %v2860_v60, 0.0  ;;  %v2887_v4 = vsel %vm2879_vm8, %v2865_v56, %v2883_v63  ;;  %v3166_v50 = vpop.permute.xlu0 %3165 }
 0x9a7   :  { %v2869_v59 = vpop.f32.mrf.mxu1  ;;  %v2752_v18 = vpop.f32.mrf.mxu0  ;;  %v2758_v24 = vadd.f32 %v4411_v15, %v2662_v14 }
 0x9a8   :  { %v2885_v61 = vmul.f32 0.01, %v2875_v57  ;;  %v2870_v62 = vadd.f32 %v2869_v59, %v2774_v51  ;;  %vm2881_vm6 = vcmp.gt.f32.partialorder %v2875_v57, 0.0  ;;  %v2886_v5 = vsel %vm2878_vm9, %v2860_v60, %v2882_v2  ;;  %v3835_v2 = vld [vmem:[%s5551_s7 + $0x228] sm:$0xff] }
 0x9a9   :  { %v2753_v27 = vadd.f32 %v2752_v18, %v2657_v17 }
 0x9aa   :  { %v2884_v0 = vmul.f32 0.01, %v2870_v62  ;;  %v2889_v1 = vsel %vm2881_vm6, %v2875_v57, %v2885_v61  ;;  %vm2880_vm7 = vcmp.gt.f32.partialorder %v2870_v62, 0.0 }
 0x9ab   :  { %4426 = vmatprep.subr.mxu0 %v2889_v1 }
 0x9ac   :  { %4427 = vmatpush3.msra.mxu0 %v2889_v1  ;;  %v2888_v3 = vsel %vm2880_vm7, %v2870_v62, %v2884_v0 }
 0x9ad   :  { %4428 = vmatprep.subr.mxu0 %v2888_v3 }
 0x9ae   :  { %4429 = vmatpush3.msra.mxu0 %v2888_v3  ;;  %v3836_v3 = vld [vmem:[%s5551_s7 + $0x230] sm:$0xff] }
 0x9af   :  { %4430 = vmatprep.subr.mxu0 %v2887_v4 }
 0x9b0   :  { %4431 = vmatpush3.msra.mxu0 %v2887_v4  ;;  %v3837_v4 = vld [vmem:[%s5551_s7 + $0x238] sm:$0xff] }
 0x9b1   :  { %4432 = vmatprep.subr.mxu0 %v2886_v5 }
 0x9b2   :  { %4433 = vmatpush3.msra.mxu0 %v2886_v5  ;;  %v3476_v5 = vld [vmem:[%s5552_s11] sm:$0xff] }
 0x9b3   :  { %4435 = vmatmul.mubr.msk.f32.vlgmr.msra.gmra.mxu0 %vm116_vm0, %v3799_v6  ;;  %v3478_v6 = vld [vmem:[%s5552_s11 + $0x10] sm:$0xff] }
 0x9b4   :  { %4437 = vmatprep.mubr.msk.f32.mxu0 %vm116_vm0, %v3800_v7  ;;  %v3059_v7 = vpop.permute.xlu0 %3058 }
 0x9b7   :  { %4438 = vmatmul.mubr.msk.f32.gmra.mxu0 %vm116_vm0, %v3801_v8  ;;  %v3305_v8 = vpop.permute.xlu1 %3304 }
 0x9b8   :  { %4462 = vmatprep.mubr.msk.f32.mxu0 %vm116_vm0, %v3818_v10  ;;  %v3054_v9 = vpop.permute.xlu0 %3053 }
 0x9bb   :  { %v3300_v10 = vpop.permute.xlu1 %3299 }
 0x9bc   :  { %v3049_v11 = vpop.permute.xlu0 %3048 }
 0x9c0   :  { %v3430_v13 = vpop.permute.xlu0 %3429 }
 0x9c4   :  { %v3290_v17 = vpop.permute.xlu0 %3289 }
 0xa73   :  { %v4436_v19 = vpop.f32.mrf.mxu0 }
 0xa74   :  { %v2994_v28 = vadd.f32 %v4436_v19, %v2898_v20  ;;  %v3458_v20 = vpop.permute.xlu0 %3457 }
 0xa75   :  { %v2988_v21 = vpop.f32.mrf.mxu0 }
 0xa76   :  { %v2989_v33 = vadd.f32 %v2988_v21, %v2893_v31  ;;  %v3008_v37 = vadd.f32 %v2994_v28, %v2748_v32 }
 0xa77   :  { %v4439_v23 = vpop.f32.mrf.mxu0 }
 0xa78   :  { %v3004_v25 = vadd.f32 %v4439_v23, %v2908_v12  ;;  %v3007_v38 = vadd.f32 %v2989_v33, %v2743_v36  ;;  %v3295_v12 = vpop.permute.xlu1 %3294 }
 0xa79   :  { %v2998_v26 = vpop.f32.mrf.mxu0 }
 0xa7a   :  { %v3010_v29 = vadd.f32 %v3004_v25, %v2758_v24  ;;  %v2999_v30 = vadd.f32 %v2998_v26, %v2903_v16 }
 0xa7c   :  { %v3009_v34 = vadd.f32 %v2999_v30, %v2753_v27  ;;  %4440 = vmatprep.subr.mxu1 %v3010_v29  ;;  %4454 = vmatprep.subr.mxu0 %v3010_v29  ;;  %v3044_v15 = vpop.permute.xlu1 %3043  ;;  %v3453_v30 = vpop.permute.xlu0 %3452 }
 0xa7d   :  { %4441 = vmatpush3.msra.mxu1 %v3010_v29  ;;  %4455 = vmatpush3.msra.mxu0 %v3010_v29 }
 0xa7e   :  { %4442 = vmatprep.subr.mxu1 %v3009_v34  ;;  %4456 = vmatprep.subr.mxu0 %v3009_v34 }
 0xa7f   :  { %4443 = vmatpush3.msra.mxu1 %v3009_v34  ;;  %4457 = vmatpush3.msra.mxu0 %v3009_v34 }
 0xa80   :  { %4444 = vmatprep.subr.mxu1 %v3008_v37  ;;  %4458 = vmatprep.subr.mxu0 %v3008_v37  ;;  %v3425_v18 = vpop.permute.xlu1 %3424 }
 0xa81   :  { %4445 = vmatpush3.msra.mxu1 %v3008_v37  ;;  %4459 = vmatpush3.msra.mxu0 %v3008_v37 }
 0xa82   :  { %4446 = vmatprep.subr.mxu1 %v3007_v38  ;;  %4460 = vmatprep.subr.mxu0 %v3007_v38 }
 0xa83   :  { %4447 = vmatpush3.msra.mxu1 %v3007_v38  ;;  %4461 = vmatpush3.msra.mxu0 %v3007_v38 }
 0xa84   :  { %4449 = vmatmul.mubr.msk.f32.vlgmr.msra.gmra.mxu1 %vm116_vm0, %v3827_v39  ;;  %4463 = vmatmul.mubr.msk.f32.vlgmr.msra.gmra.mxu0 %vm116_vm0, %v3819_v40  ;;  %v3420_v22 = vpop.permute.xlu1 %3419 }
 0xa85   :  { %4451 = vmatprep.mubr.msk.f32.mxu1 %vm116_vm0, %v3828_v41  ;;  %4465 = vmatprep.mubr.msk.f32.mxu0 %vm116_vm0, %v3820_v42 }
 0xa88   :  { %4452 = vmatmul.mubr.msk.f32.gmra.mxu1 %vm116_vm0, %v3829_v43  ;;  %4466 = vmatmul.mubr.msk.f32.gmra.mxu0 %vm116_vm0, %v3821_v44  ;;  %v3415_v35 = vpop.permute.xlu1 %3414  ;;  %v3448_v44 = vpop.permute.xlu0 %3447 }
 0xa89   :  { %4476 = vmatprep.mubr.msk.f32.mxu1 %vm116_vm0, %v3834_v45  ;;  %4490 = vmatprep.mubr.msk.f32.mxu0 %vm116_vm0, %v3476_v5 }
 0xb44   :  { %v4464_v48 = vpop.f32.mrf.mxu0  ;;  %v4450_v14 = vpop.f32.mrf.mxu1 }
 0xb45   :  { %v3262_v52 = vadd.f32 %v4464_v48, %v3166_v50  ;;  %v3145_v24 = vadd.f32 %v4450_v14, %v3049_v11  ;;  %v3443_v48 = vpop.permute.xlu1 %3442 }
 0xb46   :  { %v3256_v49 = vpop.f32.mrf.mxu0  ;;  %v3139_v16 = vpop.f32.mrf.mxu1 }
 0xb47   :  { %v3257_v56 = vadd.f32 %v3256_v49, %v3161_v54  ;;  %v3280_v59 = vmul.f32 0.01, %v3262_v52  ;;  %vm3276_vm12 = vcmp.gt.f32.partialorder %v3262_v52, 0.0  ;;  %v3140_v27 = vadd.f32 %v3139_v16, %v3044_v15 }
 0xb48   :  { %v4467_v51 = vpop.f32.mrf.mxu0  ;;  %v4453_v19 = vpop.f32.mrf.mxu1 }
 0xb49   :  { %v3272_v53 = vadd.f32 %v4467_v51, %v3176_v46  ;;  %v3279_v62 = vmul.f32 0.01, %v3257_v56  ;;  %vm3275_vm13 = vcmp.gt.f32.partialorder %v3257_v56, 0.0  ;;  %v3284_v0 = vsel %vm3276_vm12, %v3262_v52, %v3280_v59  ;;  %v3477_v59 = vld [vmem:[%s5552_s11 + $0x8] sm:$0xff] }
 0xb4a   :  { %v3266_v55 = vpop.f32.mrf.mxu0  ;;  %v3149_v21 = vpop.f32.mrf.mxu1  ;;  %v3155_v32 = vadd.f32 %v4453_v19, %v3059_v7 }
 0xb4b   :  { %v3282_v57 = vmul.f32 0.01, %v3272_v53  ;;  %v3267_v58 = vadd.f32 %v3266_v55, %v3171_v47  ;;  %vm3278_vm10 = vcmp.gt.f32.partialorder %v3272_v53, 0.0  ;;  %v3283_v1 = vsel %vm3275_vm13, %v3257_v56, %v3279_v62  ;;  %v3487_v62 = vpop.permute.xlu0 %3486 }
 0xb4c   :  { %v3150_v37 = vadd.f32 %v3149_v21, %v3054_v9 }
 0xb4d   :  { %v3281_v60 = vmul.f32 0.01, %v3267_v58  ;;  %v3286_v61 = vsel %vm3278_vm10, %v3272_v53, %v3282_v57  ;;  %vm3277_vm11 = vcmp.gt.f32.partialorder %v3267_v58, 0.0 }
 0xb4e   :  { %4468 = vmatprep.subr.mxu1 %v3286_v61 }
 0xb4f   :  { %4469 = vmatpush3.msra.mxu1 %v3286_v61  ;;  %v3285_v63 = vsel %vm3277_vm11, %v3267_v58, %v3281_v60  ;;  %v3479_v60 = vld [vmem:[%s5552_s11 + $0x18] sm:$0xff]  ;;  %v3492_v61 = vpop.permute.xlu1 %3491 }
 0xb50   :  { %4470 = vmatprep.subr.mxu1 %v3285_v63 }
 0xb51   :  { %4471 = vmatpush3.msra.mxu1 %v3285_v63 }
 0xb52   :  { %4472 = vmatprep.subr.mxu1 %v3284_v0 }
 0xb53   :  { %4473 = vmatpush3.msra.mxu1 %v3284_v0  ;;  %v3502_v63 = vpop.permute.xlu1 %3501 }
 0xb54   :  { %4474 = vmatprep.subr.mxu1 %v3283_v1 }
 0xb55   :  { %4475 = vmatpush3.msra.mxu1 %v3283_v1 }
 0xb56   :  { %4477 = vmatmul.mubr.msk.f32.vlgmr.msra.gmra.mxu1 %vm116_vm0, %v3835_v2  ;;  %v3497_v2 = vpop.permute.xlu0 %3496 }
 0xb57   :  { %4479 = vmatprep.mubr.msk.f32.mxu1 %vm116_vm0, %v3836_v3 }
 0xb5a   :  { %4480 = vmatmul.mubr.msk.f32.gmra.mxu1 %vm116_vm0, %v3837_v4 }
 0xb5b   :  { %4493 = vmatprep.mubr.msk.f32.mxu1 %vm116_vm0, %v3478_v6 }
 0xc16   :  { %v4478_v23 = vpop.f32.mrf.mxu1 }
 0xc17   :  { %v3391_v25 = vadd.f32 %v4478_v23, %v3295_v12 }
 0xc18   :  { %v3385_v26 = vpop.f32.mrf.mxu1 }
 0xc19   :  { %v3405_v28 = vadd.f32 %v3391_v25, %v3145_v24  ;;  %v3386_v29 = vadd.f32 %v3385_v26, %v3290_v17 }
 0xc1a   :  { %v4481_v31 = vpop.f32.mrf.mxu1 }
 0xc1b   :  { %v3404_v33 = vadd.f32 %v3386_v29, %v3140_v27  ;;  %v3401_v34 = vadd.f32 %v4481_v31, %v3305_v8  ;;  %v3433_v38 = vmul.f32 %v3420_v22, %v3405_v28 }
 0xc1c   :  { %v3395_v36 = vpop.f32.mrf.mxu1 }
 0xc1d   :  { %v3407_v39 = vadd.f32 %v3401_v34, %v3155_v32  ;;  %v3396_v40 = vadd.f32 %v3395_v36, %v3300_v10  ;;  %v3432_v41 = vmul.f32 %v3415_v35, %v3404_v33  ;;  %v3461_v45 = vadd.f32 %v3448_v44, %v3433_v38 }
 0xc1f   :  { %v3435_v42 = vmul.f32 %v3430_v13, %v3407_v39  ;;  %v3406_v43 = vadd.f32 %v3396_v40, %v3150_v37  ;;  %v3460_v49 = vadd.f32 %v3443_v48, %v3432_v41  ;;  %v3469_v54 = vmul.f32 0.01, %v3461_v45 }
 0xc20   :  { %vm3465_vm1 = vcmp.gt.f32.partialorder %v3461_v45, 0.0 }
 0xc21   :  { %v3463_v46 = vadd.f32 %v3458_v20, %v3435_v42  ;;  %v3434_v47 = vmul.f32 %v3425_v18, %v3406_v43  ;;  %v3468_v56 = vmul.f32 0.01, %v3460_v49  ;;  %vm3464_vm2 = vcmp.gt.f32.partialorder %v3460_v49, 0.0 }
 0xc22   :  { %v3473_v57 = vsel %vm3465_vm1, %v3461_v45, %v3469_v54 }
 0xc23   :  { %v3462_v50 = vadd.f32 %v3453_v30, %v3434_v47  ;;  %vm3467_vm14 = vcmp.gt.f32.partialorder %v3463_v46, 0.0  ;;  %v3471_v51 = vmul.f32 0.01, %v3463_v46  ;;  %v3472_v58 = vsel %vm3464_vm2, %v3460_v49, %v3468_v56 }
 0xc25   :  { %v3475_v52 = vsel %vm3467_vm14, %v3463_v46, %v3471_v51  ;;  %vm3466_vm15 = vcmp.gt.f32.partialorder %v3462_v50, 0.0  ;;  %v3470_v53 = vmul.f32 0.01, %v3462_v50 }
 0xc26   :  { %4482 = vmatprep.subr.mxu0 %v3475_v52  ;;  %4496 = vmatprep.subr.mxu1 %v3475_v52 }
 0xc27   :  { %4483 = vmatpush3.msra.mxu0 %v3475_v52  ;;  %4500 = vmatpush3.msra.mxu1 %v3475_v52  ;;  %v3474_v55 = vsel %vm3466_vm15, %v3462_v50, %v3470_v53 }
 0xc28   :  { %4484 = vmatprep.subr.mxu0 %v3474_v55  ;;  %4497 = vmatprep.subr.mxu1 %v3474_v55 }
 0xc29   :  { %4485 = vmatpush3.msra.mxu0 %v3474_v55  ;;  %4501 = vmatpush3.msra.mxu1 %v3474_v55 }
 0xc2a   :  { %4486 = vmatprep.subr.mxu0 %v3473_v57  ;;  %4498 = vmatprep.subr.mxu1 %v3473_v57 }
 0xc2b   :  { %4487 = vmatpush3.msra.mxu0 %v3473_v57  ;;  %4502 = vmatpush3.msra.mxu1 %v3473_v57 }
 0xc2c   :  { %4488 = vmatprep.subr.mxu0 %v3472_v58  ;;  %4499 = vmatprep.subr.mxu1 %v3472_v58 }
 0xc2d   :  { %4489 = vmatpush3.msra.mxu0 %v3472_v58  ;;  %4503 = vmatpush3.msra.mxu1 %v3472_v58 }
 0xc2e   :  { %4491 = vmatmul.mubr.msk.f32.vlgmr.msra.gmra.mxu0 %vm116_vm0, %v3477_v59  ;;  %4494 = vmatmul.mubr.msk.f32.vlgmr.msra.gmra.mxu1 %vm116_vm0, %v3479_v60 }
 0xcee   :  { %v4492_v0 = vpop.f32.mrf.mxu0  ;;  %v4495_v1 = vpop.f32.mrf.mxu1 }
 0xcef   :  { %v3588_v3 = vadd.f32 %v4492_v0, %v3492_v61  ;;  %v3598_v4 = vadd.f32 %v4495_v1, %v3502_v63 }
 0xcf0   :  { %v3582_v5 = vpop.f32.mrf.mxu0  ;;  %v3592_v6 = vpop.f32.mrf.mxu1 }
 0xcf1   :  { %3603 = vst.msk [vmem:[%s5553_s13 + $0x8] sm:$0xff] %vm3601_vm3, %v3588_v3  ;;  %3605 = vst.msk [vmem:[%s5553_s13 + $0x18] sm:$0xff] %vm3601_vm3, %v3598_v4  ;;  %v3583_v7 = vadd.f32 %v3582_v5, %v3487_v62  ;;  %v3593_v8 = vadd.f32 %v3592_v6, %v3497_v2 }
 0xcf3   :  { %3602 = vst.msk [vmem:[%s5553_s13] sm:$0xff] %vm3601_vm3, %v3583_v7  ;;  %3604 = vst.msk [vmem:[%s5553_s13 + $0x10] sm:$0xff] %vm3601_vm3, %v3593_v8 }

</bundles_post_ra>
